<compile_context>
chip_gen: v7x
topology: tpu7x:2x2x1
jax: 0.10.0
libtpu: 0.0.40
codegen_flags: <defaults>
</compile_context>

<pallas_src>
import math

import jax
import jax.numpy as jnp
from jax.experimental import pallas as pl
from jax.experimental.pallas import tpu as pltpu

# ----------------------------- config (small, consistent with module) ------------------------
EMB = 32                  # embedding_dim
FF = 64                   # feed_forward_size
NUM_HEADS = 4
DH = EMB // NUM_HEADS
SCALE = 1.0 / math.sqrt(DH)
NUM_LAYERS = 2
TIME_SEQ = 3              # time_sequence_length (f)
TOKENS_PER_ACTION = 2
ACTION_BINS = 16
NUM_TOKENS = 4            # token_learner_num_output_tokens
TL_BOTTLENECK = 16
CONV_FEAT = 16
IMG_H = IMG_W = 16
IMG_C = 3
PATCH_K = 9 * IMG_C                      # 27
PATCH_K_PAD = 32                         # contraction dim zero-padded to 32
HW = (IMG_H // 2) * (IMG_W // 2)         # 64
L_SRC = TIME_SEQ * NUM_TOKENS + 2 * TIME_SEQ    # 18 (image tokens + ee/goal dist tokens)
L_TGT = TIME_SEQ * TOKENS_PER_ACTION            # 6

_F32 = jnp.float32


# ----------------------------- in-kernel math helpers -----------------------------------------
def _gelu(x):
    # tanh-approximate GELU (see TODO above)
    return 0.5 * x * (1.0 + jnp.tanh(0.7978845608028654 * (x + 0.044715 * x * x * x)))


def _layernorm(x, g, b):
    mu = jnp.mean(x, axis=-1, keepdims=True)
    xc = x - mu
    var = jnp.mean(xc * xc, axis=-1, keepdims=True)
    return xc * jax.lax.rsqrt(var + 1e-5) * g + b


def _softmax_last(s):
    s = s - jnp.max(s, axis=-1, keepdims=True)
    p = jnp.exp(s)
    return p * pl.reciprocal(jnp.sum(p, axis=-1, keepdims=True), approx=True)


def _full_spec(a):
    nd = a.ndim
    return pl.BlockSpec(a.shape, lambda i, _n=nd: (0,) * _n)


# ----------------------------- kernel 1: fused image tokenizer --------------------------------
def tokenizer_kernel(patch_ref, text_ref, conv_w_ref, conv_b_ref, proj_w_ref, proj_b_ref,
                     lng_ref, lnb_ref, w1_ref, b1_ref, w2t_ref, b2_ref, o_ref):
    x = patch_ref[0]                                                       # (HW, 32)
    f1 = jnp.dot(x, conv_w_ref[...], preferred_element_type=_F32) + conv_b_ref[...]
    f1 = jnp.maximum(f1, 0.0)                                              # (HW, CONV_FEAT)
    feat = jnp.dot(f1, proj_w_ref[...], preferred_element_type=_F32) + proj_b_ref[...]
    feat = feat + text_ref[0]                                              # (HW, EMB) text cond.
    ln = _layernorm(feat, lng_ref[...], lnb_ref[...])
    h = _gelu(jnp.dot(ln, w1_ref[...], preferred_element_type=_F32) + b1_ref[...])   # (HW, TLB)
    # attention maps computed directly in (N, HW) orientation (contract-last-last matmul)
    att = jax.lax.dot_general(w2t_ref[...], h, (((1,), (1,)), ((), ())),
                              preferred_element_type=_F32) + b2_ref[...]   # (N, HW)
    p = _softmax_last(att)                                                 # softmax over HW
    o_ref[0] = jnp.dot(p, feat, preferred_element_type=_F32)               # (N, EMB)


def run_tokenizer(tp, patches, texts_bf):
    bf = patches.shape[0]
    conv_w = jnp.pad(tp["conv_w"], ((0, PATCH_K_PAD - PATCH_K), (0, 0)))   # zero-pad K 27->32
    weights = [conv_w, tp["conv_b"], tp["proj_w"], tp["proj_b"],
               tp["tl_ln_g"], tp["tl_ln_b"], tp["tl_w1"], tp["tl_b1"],
               tp["tl_w2t"], tp["tl_b2"]]
    return pl.pallas_call(
        tokenizer_kernel,
        grid=(bf,),
        in_specs=[pl.BlockSpec((1, HW, PATCH_K_PAD), lambda i: (i, 0, 0)),
                  pl.BlockSpec((1, 1, EMB), lambda i: (i, 0, 0))]
                 + [_full_spec(a) for a in weights],
        out_specs=pl.BlockSpec((1, NUM_TOKENS, EMB), lambda i: (i, 0, 0)),
        out_shape=jax.ShapeDtypeStruct((bf, NUM_TOKENS, EMB), _F32),
        compiler_params=pltpu.CompilerParams(dimension_semantics=("parallel",)),
    )(patches, texts_bf, *weights)


def extract_patches(videos_bf):
    # glue: stride-2 3x3 patch extraction (pure data movement), K padded 27 -> 32
    bf, H, W, _ = videos_bf.shape
    xpad = jnp.pad(videos_bf, ((0, 0), (1, 1), (1, 1), (0, 0)))
    cols = []
    for dy in range(3):
        for dx in range(3):
            cols.append(xpad[:, dy:dy + H:2, dx:dx + W:2, :])
    patches = jnp.concatenate(cols, axis=-1).reshape(bf, HW, PATCH_K)
    return jnp.pad(patches, ((0, 0), (0, 0), (0, PATCH_K_PAD - PATCH_K))).astype(_F32)


# ----------------------------- kernel 2: fused transformer ------------------------------------
def _attend(q, k, v, wo, bo, bias):
    # q is pre-scaled by 1/sqrt(DH); heads sliced statically from the fused projections.
    out = None
    for h in range(NUM_HEADS):
        sl = slice(h * DH, (h + 1) * DH)
        s = jax.lax.dot_general(q[:, sl], k[:, sl], (((1,), (1,)), ((), ())),
                                preferred_element_type=_F32)               # (Lq, Lk)
        p = _softmax_last(s + bias)
        oh = jnp.dot(p, v[:, sl], preferred_element_type=_F32)             # (Lq, DH)
        c = jnp.dot(oh, wo[sl, :], preferred_element_type=_F32)            # (Lq, EMB)
        out = c if out is None else out + c
    return out + bo


def _self_attn(x, wqkv, bqkv, wo, bo, bias):
    qkv = jnp.dot(x, wqkv, preferred_element_type=_F32) + bqkv             # fused (L, 3E)
    q = qkv[:, 0:EMB] * SCALE
    k = qkv[:, EMB:2 * EMB]
    v = qkv[:, 2 * EMB:3 * EMB]
    return _attend(q, k, v, wo, bo, bias)


def _cross_attn(x, mem, wq, bq, wkv, bkv, wo, bo, bias):
    q = (jnp.dot(x, wq, preferred_element_type=_F32) + bq) * SCALE
    kv = jnp.dot(mem, wkv, preferred_element_type=_F32) + bkv              # fused (L_src, 2E)
    return _attend(q, kv[:, 0:EMB], kv[:, EMB:2 * EMB], wo, bo, bias)


def _ffn(x, w1, b1, w2, b2):
    h = _gelu(jnp.dot(x, w1, preferred_element_type=_F32) + b1)
    return jnp.dot(h, w2, preferred_element_type=_F32) + b2


def run_transformer(wt, img_pad, dist_vals, act, sel_rows,
                    pos_src, pos_tgt, src_bias, tgt_bias, mem_bias):
    b = img_pad.shape[0]
    leaves, treedef = jax.tree_util.tree_flatten(wt)
    n_data = 9

    def kernel(*refs):
        (img_ref, dv_ref, act_ref, sel_ref,
         ps_ref, pt_ref, sb_ref, tb_ref, mb_ref) = refs[:n_data]
        o_ref = refs[-1]
        W = jax.tree_util.tree_unflatten(treedef, refs[n_data:-1])

        sb, tb, mb = sb_ref[...], tb_ref[...], mb_ref[...]

        # ---- source tokens: image tokens (rows 0..f*N-1) + ee/goal dist encoder tokens
        #      (placed via precomputed value/indicator columns -> pure broadcasts, no concat)
        dw = W["dist_w"][...]                                              # (2, EMB)
        db = W["dist_b"][...]
        dv = dv_ref[0]                                                     # (L_SRC, 2)
        sel = sel_ref[...]                                                 # (L_SRC, 2)
        x = (img_ref[0]
             + dv[:, 0:1] * dw[0:1, :] + dv[:, 1:2] * dw[1:2, :]
             + sel[:, 0:1] * db[0:1, :] + sel[:, 1:2] * db[1:2, :]
             + ps_ref[...])                                                # (L_SRC, EMB)

        # ---- target (action) tokens
        y = (jnp.dot(act_ref[0], W["act_w"][...], preferred_element_type=_F32)
             + W["act_b"][...] + pt_ref[...])                              # (L_TGT, EMB)

        # ---- encoder (post-norm, gelu, eval-mode dropout)
        enc = W["enc"]
        for l in range(NUM_LAYERS):
            lng, lnb = enc["lng"][l], enc["lnb"][l]
            a = _self_attn(x, enc["wqkv"][l], enc["bqkv"][l], enc["wo"][l], enc["bo"][l], sb)
            x = _layernorm(x + a, lng[0:1], lnb[0:1])
            h = _ffn(x, enc["w1"][l], enc["b1"][l], enc["w2"][l], enc["b2"][l])
            x = _layernorm(x + h, lng[1:2], lnb[1:2])
        mem = _layernorm(x, W["enc_norm_g"][...], W["enc_norm_b"][...])

        # ---- decoder
        dec = W["dec"]
        for l in range(NUM_LAYERS):
            lng, lnb = dec["lng"][l], dec["lnb"][l]
            a = _self_attn(y, dec["wqkv"][l], dec["bqkv"][l], dec["wo_s"][l], dec["bo_s"][l], tb)
            y = _layernorm(y + a, lng[0:1], lnb[0:1])
            a = _cross_attn(y, mem, dec["wq_c"][l], dec["bq_c"][l], dec["wkv_c"][l],
                            dec["bkv_c"][l], dec["wo_c"][l], dec["bo_c"][l], mb)
            y = _layernorm(y + a, lng[1:2], lnb[1:2])
            h = _ffn(y, dec["w1"][l], dec["b1"][l], dec["w2"][l], dec["b2"][l])
            y = _layernorm(y + h, lng[2:3], lnb[2:3])
        y = _layernorm(y, W["dec_norm_g"][...], W["dec_norm_b"][...])

        # ---- to_logits = LayerNorm + Linear
        z = _layernorm(y, W["out_ln_g"][...], W["out_ln_b"][...])
        o_ref[0] = jnp.dot(z, W["out_w"][...], preferred_element_type=_F32) + W["out_b"][...]

    data_specs = [
        pl.BlockSpec((1,) + img_pad.shape[1:], lambda i: (i, 0, 0)),
        pl.BlockSpec((1,) + dist_vals.shape[1:], lambda i: (i, 0, 0)),
        pl.BlockSpec((1,) + act.shape[1:], lambda i: (i, 0, 0)),
        _full_spec(sel_rows), _full_spec(pos_src), _full_spec(pos_tgt),
        _full_spec(src_bias), _full_spec(tgt_bias), _full_spec(mem_bias),
    ]

    return pl.pallas_call(
        kernel,
        grid=(b,),
        in_specs=data_specs + [_full_spec(a) for a in leaves],
        out_specs=pl.BlockSpec((1, L_TGT, ACTION_BINS), lambda i: (i, 0, 0)),
        out_shape=jax.ShapeDtypeStruct((b, L_TGT, ACTION_BINS), _F32),
        compiler_params=pltpu.CompilerParams(dimension_semantics=("parallel",)),
    )(img_pad, dist_vals, act, sel_rows, pos_src, pos_tgt,
      src_bias, tgt_bias, mem_bias, *leaves)


# ----------------------------- model forward ---------------------------------------------------
def posemb_sincos_1d(seq, dim, temperature=10000.0):
    n = jnp.arange(seq)
    omega = jnp.arange(dim // 2) / (dim // 2 - 1)
    omega = 1.0 / (temperature ** omega)
    n = n[:, None] * omega[None, :]
    return jnp.concatenate([jnp.sin(n), jnp.cos(n)], axis=1).astype(_F32)


def rt1_forward(params, ee_obj_dist, goal_dist, videos, texts, action_logits):
    b, f = videos.shape[0], videos.shape[1]
    assert f == TIME_SEQ
    bf = b * f

    # ---- image tokenizer (Pallas kernel 1, parallel over frames)
    videos_bf = videos.reshape((bf,) + videos.shape[2:])
    patches = extract_patches(videos_bf)                               # (bf, HW, 32)
    texts_bf = texts.reshape(bf, 1, EMB).astype(_F32)
    tok = run_tokenizer(params["tokenizer"], patches, texts_bf)        # (bf, N, EMB)
    img_tok = tok.reshape(b, f * NUM_TOKENS, EMB)                      # 'b (f n) c'
    img_pad = jnp.pad(img_tok, ((0, 0), (0, 2 * f), (0, 0)))           # rows 12..17 for dist toks

    # ---- dist-token value / indicator columns (glue data movement)
    ee = ee_obj_dist.reshape(b, f, 1).astype(_F32)
    gd = goal_dist.reshape(b, f, 1).astype(_F32)
    zf = jnp.zeros((b, f, 1), _F32)
    dist_vals = jnp.concatenate(
        [jnp.zeros((b, f * NUM_TOKENS, 2), _F32),
         jnp.concatenate([ee, zf], axis=-1),
         jnp.concatenate([zf, gd], axis=-1)], axis=1)                  # (b, L_SRC, 2)
    sel_rows = jnp.concatenate(
        [jnp.zeros((f * NUM_TOKENS, 2), _F32),
         jnp.concatenate([jnp.ones((f, 1), _F32), jnp.zeros((f, 1), _F32)], axis=-1),
         jnp.concatenate([jnp.zeros((f, 1), _F32), jnp.ones((f, 1), _F32)], axis=-1)], axis=0)

    act = action_logits.reshape(b, f * TOKENS_PER_ACTION, ACTION_BINS).astype(_F32)

    pos_src = posemb_sincos_1d(L_SRC, EMB)
    pos_tgt = posemb_sincos_1d(L_TGT, EMB)

    # masks (True = disallowed) -> additive biases (glue, matches PyTorch construction)
    token_mask = ~jnp.tril(jnp.ones((L_SRC, L_SRC), dtype=bool))
    tril_f = jnp.tril(jnp.ones((f, f), dtype=_F32))
    action_mask = ~(jnp.kron(jnp.eye(TOKENS_PER_ACTION, dtype=_F32), tril_f).astype(bool))
    memory_mask = ~(jnp.kron(tril_f, jnp.ones((TOKENS_PER_ACTION, NUM_TOKENS + 2),
                                              dtype=_F32)).astype(bool))

    def to_bias(m):
        return jnp.where(m, jnp.float32(-1e9), jnp.float32(0.0))

    logits = run_transformer(params["transformer"], img_pad, dist_vals, act, sel_rows,
                             pos_src, pos_tgt,
                             to_bias(token_mask), to_bias(action_mask), to_bias(memory_mask))
    return logits.reshape(b, f, TOKENS_PER_ACTION, ACTION_BINS)


# ----------------------------- deterministic parameter init -----------------------------------
def init_params(key):
    keys = iter(jax.random.split(key, 64))

    def w(shape, scale=0.02):
        return scale * jax.random.normal(next(keys), shape, dtype=_F32)

    def zeros(shape):
        return jnp.zeros(shape, _F32)

    def ones(shape):
        return jnp.ones(shape, _F32)

    L = NUM_LAYERS
    tokenizer = {
        "conv_w": w((PATCH_K, CONV_FEAT)), "conv_b": zeros((1, CONV_FEAT)),
        "proj_w": w((CONV_FEAT, EMB)), "proj_b": zeros((1, EMB)),
        "tl_ln_g": ones((1, EMB)), "tl_ln_b": zeros((1, EMB)),
        "tl_w1": w((EMB, TL_BOTTLENECK)), "tl_b1": zeros((1, TL_BOTTLENECK)),
        "tl_w2t": w((NUM_TOKENS, TL_BOTTLENECK)), "tl_b2": zeros((NUM_TOKENS, 1)),
    }
    transformer = {
        "dist_w": w((2, EMB)), "dist_b": zeros((2, EMB)),      # rows: [obj_dist, goal_dist]
        "act_w": w((ACTION_BINS, EMB)), "act_b": zeros((1, EMB)),
        "enc": {
            "wqkv": w((L, EMB, 3 * EMB)), "bqkv": zeros((L, 1, 3 * EMB)),
            "wo": w((L, EMB, EMB)), "bo": zeros((L, 1, EMB)),
            "w1": w((L, EMB, FF)), "b1": zeros((L, 1, FF)),
            "w2": w((L, FF, EMB)), "b2": zeros((L, 1, EMB)),
            "lng": ones((L, 2, EMB)), "lnb": zeros((L, 2, EMB)),
        },
        "dec": {
            "wqkv": w((L, EMB, 3 * EMB)), "bqkv": zeros((L, 1, 3 * EMB)),
            "wo_s": w((L, EMB, EMB)), "bo_s": zeros((L, 1, EMB)),
            "wq_c": w((L, EMB, EMB)), "bq_c": zeros((L, 1, EMB)),
            "wkv_c": w((L, EMB, 2 * EMB)), "bkv_c": zeros((L, 1, 2 * EMB)),
            "wo_c": w((L, EMB, EMB)), "bo_c": zeros((L, 1, EMB)),
            "w1": w((L, EMB, FF)), "b1": zeros((L, 1, FF)),
            "w2": w((L, FF, EMB)), "b2": zeros((L, 1, EMB)),
            "lng": ones((L, 3, EMB)), "lnb": zeros((L, 3, EMB)),
        },
        "enc_norm_g": ones((1, EMB)), "enc_norm_b": zeros((1, EMB)),
        "dec_norm_g": ones((1, EMB)), "dec_norm_b": zeros((1, EMB)),
        "out_ln_g": ones((1, EMB)), "out_ln_b": zeros((1, EMB)),
        "out_w": w((EMB, ACTION_BINS)), "out_b": zeros((1, ACTION_BINS)),
    }
    return {"tokenizer": tokenizer, "transformer": transformer}


# ----------------------------- main ------------------------------------------------------------
if __name__ == "__main__":
    key = jax.random.PRNGKey(0)
    kp, k1, k2, k3, k4, k5 = jax.random.split(key, 6)
    params = init_params(kp)

    b, f = 2, TIME_SEQ
    videos = jax.random.uniform(k1, (b, f, IMG_H, IMG_W, IMG_C), dtype=_F32)
    texts = 0.1 * jax.random.normal(k2, (b, f, EMB), dtype=_F32)
    action_logits = 0.1 * jax.random.normal(k3, (b, f, TOKENS_PER_ACTION, ACTION_BINS), dtype=_F32)
    ee_obj_dist = jax.random.uniform(k4, (b, f), dtype=_F32)
    goal_dist = jax.random.uniform(k5, (b, f), dtype=_F32)

    out = jax.jit(rt1_forward)(params, ee_obj_dist, goal_dist, videos, texts, action_logits)
    out = jax.block_until_ready(out)
    assert out.shape == (b, f, TOKENS_PER_ACTION, ACTION_BINS), out.shape
    assert bool(jnp.all(jnp.isfinite(out)))
    print("KERNEL_OK")
</pallas_src>

<mosaic_0001>
module attributes {stable_mosaic.version = 11 : i64} {
  func.func @tokenizer_kernel(%arg0: i32, %arg1: memref<1x64x32xf32, #tpu.memory_space<vmem>>, %arg2: memref<1x1x32xf32, #tpu.memory_space<vmem>>, %arg3: memref<32x16xf32, #tpu.memory_space<vmem>>, %arg4: memref<1x16xf32, #tpu.memory_space<vmem>>, %arg5: memref<16x32xf32, #tpu.memory_space<vmem>>, %arg6: memref<1x32xf32, #tpu.memory_space<vmem>>, %arg7: memref<1x32xf32, #tpu.memory_space<vmem>>, %arg8: memref<1x32xf32, #tpu.memory_space<vmem>>, %arg9: memref<32x16xf32, #tpu.memory_space<vmem>>, %arg10: memref<1x16xf32, #tpu.memory_space<vmem>>, %arg11: memref<4x16xf32, #tpu.memory_space<vmem>>, %arg12: memref<4x1xf32, #tpu.memory_space<vmem>>, %arg13: memref<1x4x32xf32, #tpu.memory_space<vmem>>) attributes {dimension_semantics = [#tpu.dimension_semantics<parallel>], iteration_bounds = array<i64: 6>, scalar_prefetch = 0 : i64, scratch_operands = 0 : i64, tpu.core_type = #tpu.core_type<tc>, window_params = [{transform_indices = @transform_0, window_bounds = array<i64: 1, 64, 32>}, {transform_indices = @transform_1, window_bounds = array<i64: 1, 1, 32>}, {pipeline_mode = #tpu.pipeline_mode<synchronous>, transform_indices = @transform_2, window_bounds = array<i64: 32, 16>}, {pipeline_mode = #tpu.pipeline_mode<synchronous>, transform_indices = @transform_3, window_bounds = array<i64: 1, 16>}, {pipeline_mode = #tpu.pipeline_mode<synchronous>, transform_indices = @transform_4, window_bounds = array<i64: 16, 32>}, {pipeline_mode = #tpu.pipeline_mode<synchronous>, transform_indices = @transform_5, window_bounds = array<i64: 1, 32>}, {pipeline_mode = #tpu.pipeline_mode<synchronous>, transform_indices = @transform_6, window_bounds = array<i64: 1, 32>}, {pipeline_mode = #tpu.pipeline_mode<synchronous>, transform_indices = @transform_7, window_bounds = array<i64: 1, 32>}, {pipeline_mode = #tpu.pipeline_mode<synchronous>, transform_indices = @transform_8, window_bounds = array<i64: 32, 16>}, {pipeline_mode = #tpu.pipeline_mode<synchronous>, transform_indices = @transform_9, window_bounds = array<i64: 1, 16>}, {pipeline_mode = #tpu.pipeline_mode<synchronous>, transform_indices = @transform_10, window_bounds = array<i64: 4, 16>}, {pipeline_mode = #tpu.pipeline_mode<synchronous>, transform_indices = @transform_11, window_bounds = array<i64: 4, 1>}, {transform_indices = @transform_12, window_bounds = array<i64: 1, 4, 32>}]} {
    %c0 = arith.constant 0 : index
    %c0_0 = arith.constant 0 : index
    %c0_1 = arith.constant 0 : index
    %0 = vector.load %arg1[%c0, %c0_0, %c0_1] : memref<1x64x32xf32, #tpu.memory_space<vmem>>, vector<1x64x32xf32>
    %1 = vector.shape_cast %0 : vector<1x64x32xf32> to vector<64x32xf32>
    %c0_2 = arith.constant 0 : index
    %c0_3 = arith.constant 0 : index
    %2 = vector.load %arg3[%c0_2, %c0_3] : memref<32x16xf32, #tpu.memory_space<vmem>>, vector<32x16xf32>
    %cst = arith.constant dense<0.000000e+00> : vector<64x16xf32>
    %3 = tpu.matmul %1, %2, %cst {dimension_numbers = #tpu.dot_dimension_numbers<[1], [0], [0], [1], [0, 0, 1, 1], [], []>} : vector<64x32xf32>, vector<32x16xf32>, vector<64x16xf32> -> vector<64x16xf32>
    %c0_4 = arith.constant 0 : index
    %c0_5 = arith.constant 0 : index
    %4 = vector.load %arg4[%c0_4, %c0_5] : memref<1x16xf32, #tpu.memory_space<vmem>>, vector<1x16xf32>
    %5 = vector.broadcast %4 : vector<1x16xf32> to vector<64x16xf32>
    %6 = arith.addf %3, %5 : vector<64x16xf32>
    %cst_6 = arith.constant 0.000000e+00 : f32
    %7 = vector.broadcast %cst_6 : f32 to vector<64x16xf32>
    %8 = arith.maximumf %6, %7 : vector<64x16xf32>
    %c0_7 = arith.constant 0 : index
    %c0_8 = arith.constant 0 : index
    %9 = vector.load %arg5[%c0_7, %c0_8] : memref<16x32xf32, #tpu.memory_space<vmem>>, vector<16x32xf32>
    %cst_9 = arith.constant dense<0.000000e+00> : vector<64x32xf32>
    %10 = tpu.matmul %8, %9, %cst_9 {dimension_numbers = #tpu.dot_dimension_numbers<[1], [0], [0], [1], [0, 0, 1, 1], [], []>} : vector<64x16xf32>, vector<16x32xf32>, vector<64x32xf32> -> vector<64x32xf32>
    %c0_10 = arith.constant 0 : index
    %c0_11 = arith.constant 0 : index
    %11 = vector.load %arg6[%c0_10, %c0_11] : memref<1x32xf32, #tpu.memory_space<vmem>>, vector<1x32xf32>
    %12 = vector.broadcast %11 : vector<1x32xf32> to vector<64x32xf32>
    %13 = arith.addf %10, %12 : vector<64x32xf32>
    %c0_12 = arith.constant 0 : index
    %c0_13 = arith.constant 0 : index
    %c0_14 = arith.constant 0 : index
    %14 = vector.load %arg2[%c0_12, %c0_13, %c0_14] : memref<1x1x32xf32, #tpu.memory_space<vmem>>, vector<1x1x32xf32>
    %15 = vector.shape_cast %14 : vector<1x1x32xf32> to vector<1x32xf32>
    %16 = vector.broadcast %15 : vector<1x32xf32> to vector<64x32xf32>
    %17 = arith.addf %13, %16 : vector<64x32xf32>
    %c0_15 = arith.constant 0 : index
    %c0_16 = arith.constant 0 : index
    %18 = vector.load %arg7[%c0_15, %c0_16] : memref<1x32xf32, #tpu.memory_space<vmem>>, vector<1x32xf32>
    %c0_17 = arith.constant 0 : index
    %c0_18 = arith.constant 0 : index
    %19 = vector.load %arg8[%c0_17, %c0_18] : memref<1x32xf32, #tpu.memory_space<vmem>>, vector<1x32xf32>
    %cst_19 = arith.constant dense<0.000000e+00> : vector<64xf32>
    %20 = vector.multi_reduction <add>, %17, %cst_19 [1] : vector<64x32xf32> to vector<64xf32>
    %21 = vector.shape_cast %20 : vector<64xf32> to vector<64x1xf32>
    %cst_20 = arith.constant 3.200000e+01 : f32
    %22 = vector.broadcast %cst_20 : f32 to vector<64x1xf32>
    %23 = arith.divf %21, %22 : vector<64x1xf32>
    %24 = vector.broadcast %23 : vector<64x1xf32> to vector<64x32xf32>
    %25 = arith.subf %17, %24 : vector<64x32xf32>
    %26 = arith.mulf %25, %25 : vector<64x32xf32>
    %cst_21 = arith.constant dense<0.000000e+00> : vector<64xf32>
    %27 = vector.multi_reduction <add>, %26, %cst_21 [1] : vector<64x32xf32> to vector<64xf32>
    %28 = vector.shape_cast %27 : vector<64xf32> to vector<64x1xf32>
    %cst_22 = arith.constant 3.200000e+01 : f32
    %29 = vector.broadcast %cst_22 : f32 to vector<64x1xf32>
    %30 = arith.divf %28, %29 : vector<64x1xf32>
    %cst_23 = arith.constant 9.99999974E-6 : f32
    %31 = vector.broadcast %cst_23 : f32 to vector<64x1xf32>
    %32 = arith.addf %30, %31 : vector<64x1xf32>
    %33 = math.rsqrt %32 : vector<64x1xf32>
    %34 = vector.broadcast %33 : vector<64x1xf32> to vector<64x32xf32>
    %35 = arith.mulf %25, %34 : vector<64x32xf32>
    %36 = vector.broadcast %18 : vector<1x32xf32> to vector<64x32xf32>
    %37 = arith.mulf %35, %36 : vector<64x32xf32>
    %38 = vector.broadcast %19 : vector<1x32xf32> to vector<64x32xf32>
    %39 = arith.addf %37, %38 : vector<64x32xf32>
    %c0_24 = arith.constant 0 : index
    %c0_25 = arith.constant 0 : index
    %40 = vector.load %arg9[%c0_24, %c0_25] : memref<32x16xf32, #tpu.memory_space<vmem>>, vector<32x16xf32>
    %cst_26 = arith.constant dense<0.000000e+00> : vector<64x16xf32>
    %41 = tpu.matmul %39, %40, %cst_26 {dimension_numbers = #tpu.dot_dimension_numbers<[1], [0], [0], [1], [0, 0, 1, 1], [], []>} : vector<64x32xf32>, vector<32x16xf32>, vector<64x16xf32> -> vector<64x16xf32>
    %c0_27 = arith.constant 0 : index
    %c0_28 = arith.constant 0 : index
    %42 = vector.load %arg10[%c0_27, %c0_28] : memref<1x16xf32, #tpu.memory_space<vmem>>, vector<1x16xf32>
    %43 = vector.broadcast %42 : vector<1x16xf32> to vector<64x16xf32>
    %44 = arith.addf %41, %43 : vector<64x16xf32>
    %cst_29 = arith.constant 5.000000e-01 : f32
    %45 = vector.broadcast %cst_29 : f32 to vector<64x16xf32>
    %46 = arith.mulf %45, %44 : vector<64x16xf32>
    %cst_30 = arith.constant 4.471500e-02 : f32
    %47 = vector.broadcast %cst_30 : f32 to vector<64x16xf32>
    %48 = arith.mulf %47, %44 : vector<64x16xf32>
    %49 = arith.mulf %48, %44 : vector<64x16xf32>
    %50 = arith.mulf %49, %44 : vector<64x16xf32>
    %51 = arith.addf %44, %50 : vector<64x16xf32>
    %cst_31 = arith.constant 0.797884583 : f32
    %52 = vector.broadcast %cst_31 : f32 to vector<64x16xf32>
    %53 = arith.mulf %52, %51 : vector<64x16xf32>
    %54 = math.tanh %53 : vector<64x16xf32>
    %cst_32 = arith.constant 1.000000e+00 : f32
    %55 = vector.broadcast %cst_32 : f32 to vector<64x16xf32>
    %56 = arith.addf %55, %54 : vector<64x16xf32>
    %57 = arith.mulf %46, %56 : vector<64x16xf32>
    %c0_33 = arith.constant 0 : index
    %c0_34 = arith.constant 0 : index
    %58 = vector.load %arg11[%c0_33, %c0_34] : memref<4x16xf32, #tpu.memory_space<vmem>>, vector<4x16xf32>
    %cst_35 = arith.constant dense<0.000000e+00> : vector<4x64xf32>
    %59 = tpu.matmul %58, %57, %cst_35 {dimension_numbers = #tpu.dot_dimension_numbers<[1], [1], [0], [0], [0, 0, 1, 0], [], []>} : vector<4x16xf32>, vector<64x16xf32>, vector<4x64xf32> -> vector<4x64xf32>
    %c0_36 = arith.constant 0 : index
    %c0_37 = arith.constant 0 : index
    %60 = vector.load %arg12[%c0_36, %c0_37] : memref<4x1xf32, #tpu.memory_space<vmem>>, vector<4x1xf32>
    %61 = vector.broadcast %60 : vector<4x1xf32> to vector<4x64xf32>
    %62 = arith.addf %59, %61 : vector<4x64xf32>
    %cst_38 = arith.constant dense<0xFF800000> : vector<4xf32>
    %63 = vector.multi_reduction <maximumf>, %62, %cst_38 [1] : vector<4x64xf32> to vector<4xf32>
    %64 = vector.shape_cast %63 : vector<4xf32> to vector<4x1xf32>
    %65 = vector.broadcast %64 : vector<4x1xf32> to vector<4x64xf32>
    %66 = arith.subf %62, %65 : vector<4x64xf32>
    %67 = math.exp %66 : vector<4x64xf32>
    %cst_39 = arith.constant dense<0.000000e+00> : vector<4xf32>
    %68 = vector.multi_reduction <add>, %67, %cst_39 [1] : vector<4x64xf32> to vector<4xf32>
    %69 = vector.shape_cast %68 : vector<4xf32> to vector<4x1xf32>
    %70 = tpu.reciprocal %69 {approx = true} : vector<4x1xf32> -> vector<4x1xf32>
    %71 = vector.broadcast %70 : vector<4x1xf32> to vector<4x64xf32>
    %72 = arith.mulf %67, %71 : vector<4x64xf32>
    %cst_40 = arith.constant dense<0.000000e+00> : vector<4x32xf32>
    %73 = tpu.matmul %72, %17, %cst_40 {dimension_numbers = #tpu.dot_dimension_numbers<[1], [0], [0], [1], [0, 0, 1, 1], [], []>} : vector<4x64xf32>, vector<64x32xf32>, vector<4x32xf32> -> vector<4x32xf32>
    %c0_41 = arith.constant 0 : index
    %c0_42 = arith.constant 0 : index
    %c0_43 = arith.constant 0 : index
    %74 = vector.load %arg13[%c0_41, %c0_42, %c0_43] : memref<1x4x32xf32, #tpu.memory_space<vmem>>, vector<1x4x32xf32>
    %75 = vector.shape_cast %74 : vector<1x4x32xf32> to vector<4x32xf32>
    %76 = vector.shape_cast %73 : vector<4x32xf32> to vector<1x4x32xf32>
    tpu.vector_store %arg13[%c0_41, %c0_42, %c0_43], %76 {strides = array<i32>} : memref<1x4x32xf32, #tpu.memory_space<vmem>>, vector<1x4x32xf32>,
    return
  }
  func.func @transform_0(%arg0: i32) -> (i32, i32, i32) {
    %c0_i32 = arith.constant 0 : i32
    %c0_i32_0 = arith.constant 0 : i32
    %c0_i32_1 = arith.constant 0 : i32
    return %arg0, %c0_i32, %c0_i32_0 : i32, i32, i32
  }
  func.func @transform_1(%arg0: i32) -> (i32, i32, i32) {
    %c0_i32 = arith.constant 0 : i32
    %c0_i32_0 = arith.constant 0 : i32
    %c0_i32_1 = arith.constant 0 : i32
    return %arg0, %c0_i32, %c0_i32_0 : i32, i32, i32
  }
  func.func @transform_2(%arg0: i32) -> (i32, i32) {
    %c0_i32 = arith.constant 0 : i32
    %c0_i32_0 = arith.constant 0 : i32
    %c0_i32_1 = arith.constant 0 : i32
    return %c0_i32, %c0_i32_0 : i32, i32
  }
  func.func @transform_3(%arg0: i32) -> (i32, i32) {
    %c0_i32 = arith.constant 0 : i32
    %c0_i32_0 = arith.constant 0 : i32
    %c0_i32_1 = arith.constant 0 : i32
    return %c0_i32, %c0_i32_0 : i32, i32
  }
  func.func @transform_4(%arg0: i32) -> (i32, i32) {
    %c0_i32 = arith.constant 0 : i32
    %c0_i32_0 = arith.constant 0 : i32
    %c0_i32_1 = arith.constant 0 : i32
    return %c0_i32, %c0_i32_0 : i32, i32
  }
  func.func @transform_5(%arg0: i32) -> (i32, i32) {
    %c0_i32 = arith.constant 0 : i32
    %c0_i32_0 = arith.constant 0 : i32
    %c0_i32_1 = arith.constant 0 : i32
    return %c0_i32, %c0_i32_0 : i32, i32
  }
  func.func @transform_6(%arg0: i32) -> (i32, i32) {
    %c0_i32 = arith.constant 0 : i32
    %c0_i32_0 = arith.constant 0 : i32
    %c0_i32_1 = arith.constant 0 : i32
    return %c0_i32, %c0_i32_0 : i32, i32
  }
  func.func @transform_7(%arg0: i32) -> (i32, i32) {
    %c0_i32 = arith.constant 0 : i32
    %c0_i32_0 = arith.constant 0 : i32
    %c0_i32_1 = arith.constant 0 : i32
    return %c0_i32, %c0_i32_0 : i32, i32
  }
  func.func @transform_8(%arg0: i32) -> (i32, i32) {
    %c0_i32 = arith.constant 0 : i32
    %c0_i32_0 = arith.constant 0 : i32
    %c0_i32_1 = arith.constant 0 : i32
    return %c0_i32, %c0_i32_0 : i32, i32
  }
  func.func @transform_9(%arg0: i32) -> (i32, i32) {
    %c0_i32 = arith.constant 0 : i32
    %c0_i32_0 = arith.constant 0 : i32
    %c0_i32_1 = arith.constant 0 : i32
    return %c0_i32, %c0_i32_0 : i32, i32
  }
  func.func @transform_10(%arg0: i32) -> (i32, i32) {
    %c0_i32 = arith.constant 0 : i32
    %c0_i32_0 = arith.constant 0 : i32
    %c0_i32_1 = arith.constant 0 : i32
    return %c0_i32, %c0_i32_0 : i32, i32
  }
  func.func @transform_11(%arg0: i32) -> (i32, i32) {
    %c0_i32 = arith.constant 0 : i32
    %c0_i32_0 = arith.constant 0 : i32
    %c0_i32_1 = arith.constant 0 : i32
    return %c0_i32, %c0_i32_0 : i32, i32
  }
  func.func @transform_12(%arg0: i32) -> (i32, i32, i32) {
    %c0_i32 = arith.constant 0 : i32
    %c0_i32_0 = arith.constant 0 : i32
    %c0_i32_1 = arith.constant 0 : i32
    return %arg0, %c0_i32, %c0_i32_0 : i32, i32, i32
  }
}

module attributes {stable_mosaic.version = 11 : i64} {
  func.func @kernel(%arg0: i32, %arg1: memref<1x18x32xf32, #tpu.memory_space<vmem>>, %arg2: memref<1x18x2xf32, #tpu.memory_space<vmem>>, %arg3: memref<1x6x16xf32, #tpu.memory_space<vmem>>, %arg4: memref<18x2xf32, #tpu.memory_space<vmem>>, %arg5: memref<18x32xf32, #tpu.memory_space<vmem>>, %arg6: memref<6x32xf32, #tpu.memory_space<vmem>>, %arg7: memref<18x18xf32, #tpu.memory_space<vmem>>, %arg8: memref<6x6xf32, #tpu.memory_space<vmem>>, %arg9: memref<6x18xf32, #tpu.memory_space<vmem>>, %arg10: memref<1x32xf32, #tpu.memory_space<vmem>>, %arg11: memref<16x32xf32, #tpu.memory_space<vmem>>, %arg12: memref<2x1x64xf32, #tpu.memory_space<vmem>>, %arg13: memref<2x1x32xf32, #tpu.memory_space<vmem>>, %arg14: memref<2x1x64xf32, #tpu.memory_space<vmem>>, %arg15: memref<2x1x32xf32, #tpu.memory_space<vmem>>, %arg16: memref<2x1x32xf32, #tpu.memory_space<vmem>>, %arg17: memref<2x1x32xf32, #tpu.memory_space<vmem>>, %arg18: memref<2x1x96xf32, #tpu.memory_space<vmem>>, %arg19: memref<2x3x32xf32, #tpu.memory_space<vmem>>, %arg20: memref<2x3x32xf32, #tpu.memory_space<vmem>>, %arg21: memref<2x32x64xf32, #tpu.memory_space<vmem>>, %arg22: memref<2x64x32xf32, #tpu.memory_space<vmem>>, %arg23: memref<2x32x64xf32, #tpu.memory_space<vmem>>, %arg24: memref<2x32x32xf32, #tpu.memory_space<vmem>>, %arg25: memref<2x32x32xf32, #tpu.memory_space<vmem>>, %arg26: memref<2x32x32xf32, #tpu.memory_space<vmem>>, %arg27: memref<2x32x96xf32, #tpu.memory_space<vmem>>, %arg28: memref<1x32xf32, #tpu.memory_space<vmem>>, %arg29: memref<1x32xf32, #tpu.memory_space<vmem>>, %arg30: memref<2x32xf32, #tpu.memory_space<vmem>>, %arg31: memref<2x32xf32, #tpu.memory_space<vmem>>, %arg32: memref<2x1x64xf32, #tpu.memory_space<vmem>>, %arg33: memref<2x1x32xf32, #tpu.memory_space<vmem>>, %arg34: memref<2x1x32xf32, #tpu.memory_space<vmem>>, %arg35: memref<2x1x96xf32, #tpu.memory_space<vmem>>, %arg36: memref<2x2x32xf32, #tpu.memory_space<vmem>>, %arg37: memref<2x2x32xf32, #tpu.memory_space<vmem>>, %arg38: memref<2x32x64xf32, #tpu.memory_space<vmem>>, %arg39: memref<2x64x32xf32, #tpu.memory_space<vmem>>, %arg40: memref<2x32x32xf32, #tpu.memory_space<vmem>>, %arg41: memref<2x32x96xf32, #tpu.memory_space<vmem>>, %arg42: memref<1x32xf32, #tpu.memory_space<vmem>>, %arg43: memref<1x32xf32, #tpu.memory_space<vmem>>, %arg44: memref<1x16xf32, #tpu.memory_space<vmem>>, %arg45: memref<1x32xf32, #tpu.memory_space<vmem>>, %arg46: memref<1x32xf32, #tpu.memory_space<vmem>>, %arg47: memref<32x16xf32, #tpu.memory_space<vmem>>, %arg48: memref<1x6x16xf32, #tpu.memory_space<vmem>>) attributes {dimension_semantics = [#tpu.dimension_semantics<parallel>], iteration_bounds = array<i64: 2>, scalar_prefetch = 0 : i64, scratch_operands = 0 : i64, tpu.core_type = #tpu.core_type<tc>, window_params = [{transform_indices = @transform_0, window_bounds = array<i64: 1, 18, 32>}, {transform_indices = @transform_1, window_bounds = array<i64: 1, 18, 2>}, {transform_indices = @transform_2, window_bounds = array<i64: 1, 6, 16>}, {pipeline_mode = #tpu.pipeline_mode<synchronous>, transform_indices = @transform_3, window_bounds = array<i64: 18, 2>}, {pipeline_mode = #tpu.pipeline_mode<synchronous>, transform_indices = @transform_4, window_bounds = array<i64: 18, 32>}, {pipeline_mode = #tpu.pipeline_mode<synchronous>, transform_indices = @transform_5, window_bounds = array<i64: 6, 32>}, {pipeline_mode = #tpu.pipeline_mode<synchronous>, transform_indices = @transform_6, window_bounds = array<i64: 18, 18>}, {pipeline_mode = #tpu.pipeline_mode<synchronous>, transform_indices = @transform_7, window_bounds = array<i64: 6, 6>}, {pipeline_mode = #tpu.pipeline_mode<synchronous>, transform_indices = @transform_8, window_bounds = array<i64: 6, 18>}, {pipeline_mode = #tpu.pipeline_mode<synchronous>, transform_indices = @transform_9, window_bounds = array<i64: 1, 32>}, {pipeline_mode = #tpu.pipeline_mode<synchronous>, transform_indices = @transform_10, window_bounds = array<i64: 16, 32>}, {pipeline_mode = #tpu.pipeline_mode<synchronous>, transform_indices = @transform_11, window_bounds = array<i64: 2, 1, 64>}, {pipeline_mode = #tpu.pipeline_mode<synchronous>, transform_indices = @transform_12, window_bounds = array<i64: 2, 1, 32>}, {pipeline_mode = #tpu.pipeline_mode<synchronous>, transform_indices = @transform_13, window_bounds = array<i64: 2, 1, 64>}, {pipeline_mode = #tpu.pipeline_mode<synchronous>, transform_indices = @transform_14, window_bounds = array<i64: 2, 1, 32>}, {pipeline_mode = #tpu.pipeline_mode<synchronous>, transform_indices = @transform_15, window_bounds = array<i64: 2, 1, 32>}, {pipeline_mode = #tpu.pipeline_mode<synchronous>, transform_indices = @transform_16, window_bounds = array<i64: 2, 1, 32>}, {pipeline_mode = #tpu.pipeline_mode<synchronous>, transform_indices = @transform_17, window_bounds = array<i64: 2, 1, 96>}, {pipeline_mode = #tpu.pipeline_mode<synchronous>, transform_indices = @transform_18, window_bounds = array<i64: 2, 3, 32>}, {pipeline_mode = #tpu.pipeline_mode<synchronous>, transform_indices = @transform_19, window_bounds = array<i64: 2, 3, 32>}, {pipeline_mode = #tpu.pipeline_mode<synchronous>, transform_indices = @transform_20, window_bounds = array<i64: 2, 32, 64>}, {pipeline_mode = #tpu.pipeline_mode<synchronous>, transform_indices = @transform_21, window_bounds = array<i64: 2, 64, 32>}, {pipeline_mode = #tpu.pipeline_mode<synchronous>, transform_indices = @transform_22, window_bounds = array<i64: 2, 32, 64>}, {pipeline_mode = #tpu.pipeline_mode<synchronous>, transform_indices = @transform_23, window_bounds = array<i64: 2, 32, 32>}, {pipeline_mode = #tpu.pipeline_mode<synchronous>, transform_indices = @transform_24, window_bounds = array<i64: 2, 32, 32>}, {pipeline_mode = #tpu.pipeline_mode<synchronous>, transform_indices = @transform_25, window_bounds = array<i64: 2, 32, 32>}, {pipeline_mode = #tpu.pipeline_mode<synchronous>, transform_indices = @transform_26, window_bounds = array<i64: 2, 32, 96>}, {pipeline_mode = #tpu.pipeline_mode<synchronous>, transform_indices = @transform_27, window_bounds = array<i64: 1, 32>}, {pipeline_mode = #tpu.pipeline_mode<synchronous>, transform_indices = @transform_28, window_bounds = array<i64: 1, 32>}, {pipeline_mode = #tpu.pipeline_mode<synchronous>, transform_indices = @transform_29, window_bounds = array<i64: 2, 32>}, {pipeline_mode = #tpu.pipeline_mode<synchronous>, transform_indices = @transform_30, window_bounds = array<i64: 2, 32>}, {pipeline_mode = #tpu.pipeline_mode<synchronous>, transform_indices = @transform_31, window_bounds = array<i64: 2, 1, 64>}, {pipeline_mode = #tpu.pipeline_mode<synchronous>, transform_indices = @transform_32, window_bounds = array<i64: 2, 1, 32>}, {pipeline_mode = #tpu.pipeline_mode<synchronous>, transform_indices = @transform_33, window_bounds = array<i64: 2, 1, 32>}, {pipeline_mode = #tpu.pipeline_mode<synchronous>, transform_indices = @transform_34, window_bounds = array<i64: 2, 1, 96>}, {pipeline_mode = #tpu.pipeline_mode<synchronous>, transform_indices = @transform_35, window_bounds = array<i64: 2, 2, 32>}, {pipeline_mode = #tpu.pipeline_mode<synchronous>, transform_indices = @transform_36, window_bounds = array<i64: 2, 2, 32>}, {pipeline_mode = #tpu.pipeline_mode<synchronous>, transform_indices = @transform_37, window_bounds = array<i64: 2, 32, 64>}, {pipeline_mode = #tpu.pipeline_mode<synchronous>, transform_indices = @transform_38, window_bounds = array<i64: 2, 64, 32>}, {pipeline_mode = #tpu.pipeline_mode<synchronous>, transform_indices = @transform_39, window_bounds = array<i64: 2, 32, 32>}, {pipeline_mode = #tpu.pipeline_mode<synchronous>, transform_indices = @transform_40, window_bounds = array<i64: 2, 32, 96>}, {pipeline_mode = #tpu.pipeline_mode<synchronous>, transform_indices = @transform_41, window_bounds = array<i64: 1, 32>}, {pipeline_mode = #tpu.pipeline_mode<synchronous>, transform_indices = @transform_42, window_bounds = array<i64: 1, 32>}, {pipeline_mode = #tpu.pipeline_mode<synchronous>, transform_indices = @transform_43, window_bounds = array<i64: 1, 16>}, {pipeline_mode = #tpu.pipeline_mode<synchronous>, transform_indices = @transform_44, window_bounds = array<i64: 1, 32>}, {pipeline_mode = #tpu.pipeline_mode<synchronous>, transform_indices = @transform_45, window_bounds = array<i64: 1, 32>}, {pipeline_mode = #tpu.pipeline_mode<synchronous>, transform_indices = @transform_46, window_bounds = array<i64: 32, 16>}, {transform_indices = @transform_47, window_bounds = array<i64: 1, 6, 16>}]} {
    %c0 = arith.constant 0 : index
    %c0_0 = arith.constant 0 : index
    %0 = vector.load %arg7[%c0, %c0_0] : memref<18x18xf32, #tpu.memory_space<vmem>>, vector<18x18xf32>
    %c0_1 = arith.constant 0 : index
    %c0_2 = arith.constant 0 : index
    %1 = vector.load %arg8[%c0_1, %c0_2] : memref<6x6xf32, #tpu.memory_space<vmem>>, vector<6x6xf32>
    %c0_3 = arith.constant 0 : index
    %c0_4 = arith.constant 0 : index
    %2 = vector.load %arg9[%c0_3, %c0_4] : memref<6x18xf32, #tpu.memory_space<vmem>>, vector<6x18xf32>
    %c0_5 = arith.constant 0 : index
    %c0_6 = arith.constant 0 : index
    %3 = vector.load %arg31[%c0_5, %c0_6] : memref<2x32xf32, #tpu.memory_space<vmem>>, vector<2x32xf32>
    %c0_7 = arith.constant 0 : index
    %c0_8 = arith.constant 0 : index
    %4 = vector.load %arg30[%c0_7, %c0_8] : memref<2x32xf32, #tpu.memory_space<vmem>>, vector<2x32xf32>
    %c0_9 = arith.constant 0 : index
    %c0_10 = arith.constant 0 : index
    %c0_11 = arith.constant 0 : index
    %5 = vector.load %arg2[%c0_9, %c0_10, %c0_11] : memref<1x18x2xf32, #tpu.memory_space<vmem>>, vector<1x18x2xf32>
    %6 = vector.shape_cast %5 : vector<1x18x2xf32> to vector<18x2xf32>
    %c0_12 = arith.constant 0 : index
    %c0_13 = arith.constant 0 : index
    %7 = vector.load %arg4[%c0_12, %c0_13] : memref<18x2xf32, #tpu.memory_space<vmem>>, vector<18x2xf32>
    %c0_14 = arith.constant 0 : index
    %c0_15 = arith.constant 0 : index
    %c0_16 = arith.constant 0 : index
    %8 = vector.load %arg1[%c0_14, %c0_15, %c0_16] : memref<1x18x32xf32, #tpu.memory_space<vmem>>, vector<1x18x32xf32>
    %9 = vector.shape_cast %8 : vector<1x18x32xf32> to vector<18x32xf32>
    %10 = vector.extract_strided_slice %6 {offsets = [0, 0], sizes = [18, 1], strides = [1, 1]} : vector<18x2xf32> to vector<18x1xf32>
    %11 = vector.extract_strided_slice %3 {offsets = [0, 0], sizes = [1, 32], strides = [1, 1]} : vector<2x32xf32> to vector<1x32xf32>
    %12 = vector.broadcast %10 : vector<18x1xf32> to vector<18x32xf32>
    %13 = vector.broadcast %11 : vector<1x32xf32> to vector<18x32xf32>
    %14 = arith.mulf %12, %13 : vector<18x32xf32>
    %15 = arith.addf %9, %14 : vector<18x32xf32>
    %16 = vector.extract_strided_slice %6 {offsets = [0, 1], sizes = [18, 1], strides = [1, 1]} : vector<18x2xf32> to vector<18x1xf32>
    %17 = vector.extract_strided_slice %3 {offsets = [1, 0], sizes = [1, 32], strides = [1, 1]} : vector<2x32xf32> to vector<1x32xf32>
    %18 = vector.broadcast %16 : vector<18x1xf32> to vector<18x32xf32>
    %19 = vector.broadcast %17 : vector<1x32xf32> to vector<18x32xf32>
    %20 = arith.mulf %18, %19 : vector<18x32xf32>
    %21 = arith.addf %15, %20 : vector<18x32xf32>
    %22 = vector.extract_strided_slice %7 {offsets = [0, 0], sizes = [18, 1], strides = [1, 1]} : vector<18x2xf32> to vector<18x1xf32>
    %23 = vector.extract_strided_slice %4 {offsets = [0, 0], sizes = [1, 32], strides = [1, 1]} : vector<2x32xf32> to vector<1x32xf32>
    %24 = vector.broadcast %22 : vector<18x1xf32> to vector<18x32xf32>
    %25 = vector.broadcast %23 : vector<1x32xf32> to vector<18x32xf32>
    %26 = arith.mulf %24, %25 : vector<18x32xf32>
    %27 = arith.addf %21, %26 : vector<18x32xf32>
    %28 = vector.extract_strided_slice %7 {offsets = [0, 1], sizes = [18, 1], strides = [1, 1]} : vector<18x2xf32> to vector<18x1xf32>
    %29 = vector.extract_strided_slice %4 {offsets = [1, 0], sizes = [1, 32], strides = [1, 1]} : vector<2x32xf32> to vector<1x32xf32>
    %30 = vector.broadcast %28 : vector<18x1xf32> to vector<18x32xf32>
    %31 = vector.broadcast %29 : vector<1x32xf32> to vector<18x32xf32>
    %32 = arith.mulf %30, %31 : vector<18x32xf32>
    %33 = arith.addf %27, %32 : vector<18x32xf32>
    %c0_17 = arith.constant 0 : index
    %c0_18 = arith.constant 0 : index
    %34 = vector.load %arg5[%c0_17, %c0_18] : memref<18x32xf32, #tpu.memory_space<vmem>>, vector<18x32xf32>
    %35 = arith.addf %33, %34 : vector<18x32xf32>
    %c0_19 = arith.constant 0 : index
    %c0_20 = arith.constant 0 : index
    %c0_21 = arith.constant 0 : index
    %36 = vector.load %arg3[%c0_19, %c0_20, %c0_21] : memref<1x6x16xf32, #tpu.memory_space<vmem>>, vector<1x6x16xf32>
    %37 = vector.shape_cast %36 : vector<1x6x16xf32> to vector<6x16xf32>
    %c0_22 = arith.constant 0 : index
    %c0_23 = arith.constant 0 : index
    %38 = vector.load %arg11[%c0_22, %c0_23] : memref<16x32xf32, #tpu.memory_space<vmem>>, vector<16x32xf32>
    %cst = arith.constant dense<0.000000e+00> : vector<6x32xf32>
    %39 = tpu.matmul %37, %38, %cst {dimension_numbers = #tpu.dot_dimension_numbers<[1], [0], [0], [1], [0, 0, 1, 1], [], []>} : vector<6x16xf32>, vector<16x32xf32>, vector<6x32xf32> -> vector<6x32xf32>
    %c0_24 = arith.constant 0 : index
    %c0_25 = arith.constant 0 : index
    %40 = vector.load %arg10[%c0_24, %c0_25] : memref<1x32xf32, #tpu.memory_space<vmem>>, vector<1x32xf32>
    %41 = vector.broadcast %40 : vector<1x32xf32> to vector<6x32xf32>
    %42 = arith.addf %39, %41 : vector<6x32xf32>
    %c0_26 = arith.constant 0 : index
    %c0_27 = arith.constant 0 : index
    %43 = vector.load %arg6[%c0_26, %c0_27] : memref<6x32xf32, #tpu.memory_space<vmem>>, vector<6x32xf32>
    %44 = arith.addf %42, %43 : vector<6x32xf32>
    %c0_28 = arith.constant 0 : index
    %c0_29 = arith.constant 0 : index
    %c0_30 = arith.constant 0 : index
    %45 = vector.load %arg37[%c0_28, %c0_29, %c0_30] : memref<2x2x32xf32, #tpu.memory_space<vmem>>, vector<1x2x32xf32>
    %46 = vector.shape_cast %45 : vector<1x2x32xf32> to vector<2x32xf32>
    %c0_31 = arith.constant 0 : index
    %c0_32 = arith.constant 0 : index
    %c0_33 = arith.constant 0 : index
    %47 = vector.load %arg36[%c0_31, %c0_32, %c0_33] : memref<2x2x32xf32, #tpu.memory_space<vmem>>, vector<1x2x32xf32>
    %48 = vector.shape_cast %47 : vector<1x2x32xf32> to vector<2x32xf32>
    %c0_34 = arith.constant 0 : index
    %c0_35 = arith.constant 0 : index
    %c0_36 = arith.constant 0 : index
    %49 = vector.load %arg41[%c0_34, %c0_35, %c0_36] : memref<2x32x96xf32, #tpu.memory_space<vmem>>, vector<1x32x96xf32>
    %50 = vector.shape_cast %49 : vector<1x32x96xf32> to vector<32x96xf32>
    %c0_37 = arith.constant 0 : index
    %c0_38 = arith.constant 0 : index
    %c0_39 = arith.constant 0 : index
    %51 = vector.load %arg35[%c0_37, %c0_38, %c0_39] : memref<2x1x96xf32, #tpu.memory_space<vmem>>, vector<1x1x96xf32>
    %52 = vector.shape_cast %51 : vector<1x1x96xf32> to vector<1x96xf32>
    %c0_40 = arith.constant 0 : index
    %c0_41 = arith.constant 0 : index
    %c0_42 = arith.constant 0 : index
    %53 = vector.load %arg40[%c0_40, %c0_41, %c0_42] : memref<2x32x32xf32, #tpu.memory_space<vmem>>, vector<1x32x32xf32>
    %54 = vector.shape_cast %53 : vector<1x32x32xf32> to vector<32x32xf32>
    %c0_43 = arith.constant 0 : index
    %c0_44 = arith.constant 0 : index
    %c0_45 = arith.constant 0 : index
    %55 = vector.load %arg34[%c0_43, %c0_44, %c0_45] : memref<2x1x32xf32, #tpu.memory_space<vmem>>, vector<1x1x32xf32>
    %56 = vector.shape_cast %55 : vector<1x1x32xf32> to vector<1x32xf32>
    %cst_46 = arith.constant dense<0.000000e+00> : vector<18x96xf32>
    %57 = tpu.matmul %35, %50, %cst_46 {dimension_numbers = #tpu.dot_dimension_numbers<[1], [0], [0], [1], [0, 0, 1, 1], [], []>} : vector<18x32xf32>, vector<32x96xf32>, vector<18x96xf32> -> vector<18x96xf32>
    %58 = vector.broadcast %52 : vector<1x96xf32> to vector<18x96xf32>
    %59 = arith.addf %57, %58 : vector<18x96xf32>
    %60 = vector.extract_strided_slice %59 {offsets = [0, 0], sizes = [18, 32], strides = [1, 1]} : vector<18x96xf32> to vector<18x32xf32>
    %cst_47 = arith.constant 0.353553385 : f32
    %61 = vector.broadcast %cst_47 : f32 to vector<18x32xf32>
    %62 = arith.mulf %60, %61 : vector<18x32xf32>
    %63 = vector.extract_strided_slice %59 {offsets = [0, 32], sizes = [18, 32], strides = [1, 1]} : vector<18x96xf32> to vector<18x32xf32>
    %64 = vector.extract_strided_slice %59 {offsets = [0, 64], sizes = [18, 32], strides = [1, 1]} : vector<18x96xf32> to vector<18x32xf32>
    %65 = vector.extract_strided_slice %62 {offsets = [0, 0], sizes = [18, 8], strides = [1, 1]} : vector<18x32xf32> to vector<18x8xf32>
    %66 = vector.extract_strided_slice %63 {offsets = [0, 0], sizes = [18, 8], strides = [1, 1]} : vector<18x32xf32> to vector<18x8xf32>
    %cst_48 = arith.constant dense<0.000000e+00> : vector<18x18xf32>
    %67 = tpu.matmul %65, %66, %cst_48 {dimension_numbers = #tpu.dot_dimension_numbers<[1], [1], [0], [0], [0, 0, 1, 0], [], []>} : vector<18x8xf32>, vector<18x8xf32>, vector<18x18xf32> -> vector<18x18xf32>
    %68 = arith.addf %67, %0 : vector<18x18xf32>
    %cst_49 = arith.constant dense<0xFF800000> : vector<18xf32>
    %69 = vector.multi_reduction <maximumf>, %68, %cst_49 [1] : vector<18x18xf32> to vector<18xf32>
    %70 = vector.shape_cast %69 : vector<18xf32> to vector<18x1xf32>
    %71 = vector.broadcast %70 : vector<18x1xf32> to vector<18x18xf32>
    %72 = arith.subf %68, %71 : vector<18x18xf32>
    %73 = math.exp %72 : vector<18x18xf32>
    %cst_50 = arith.constant dense<0.000000e+00> : vector<18xf32>
    %74 = vector.multi_reduction <add>, %73, %cst_50 [1] : vector<18x18xf32> to vector<18xf32>
    %75 = vector.shape_cast %74 : vector<18xf32> to vector<18x1xf32>
    %76 = tpu.reciprocal %75 {approx = true} : vector<18x1xf32> -> vector<18x1xf32>
    %77 = vector.broadcast %76 : vector<18x1xf32> to vector<18x18xf32>
    %78 = arith.mulf %73, %77 : vector<18x18xf32>
    %79 = vector.extract_strided_slice %64 {offsets = [0, 0], sizes = [18, 8], strides = [1, 1]} : vector<18x32xf32> to vector<18x8xf32>
    %cst_51 = arith.constant dense<0.000000e+00> : vector<18x8xf32>
    %80 = tpu.matmul %78, %79, %cst_51 {dimension_numbers = #tpu.dot_dimension_numbers<[1], [0], [0], [1], [0, 0, 1, 1], [], []>} : vector<18x18xf32>, vector<18x8xf32>, vector<18x8xf32> -> vector<18x8xf32>
    %81 = vector.extract_strided_slice %54 {offsets = [0, 0], sizes = [8, 32], strides = [1, 1]} : vector<32x32xf32> to vector<8x32xf32>
    %cst_52 = arith.constant dense<0.000000e+00> : vector<18x32xf32>
    %82 = tpu.matmul %80, %81, %cst_52 {dimension_numbers = #tpu.dot_dimension_numbers<[1], [0], [0], [1], [0, 0, 1, 1], [], []>} : vector<18x8xf32>, vector<8x32xf32>, vector<18x32xf32> -> vector<18x32xf32>
    %83 = vector.extract_strided_slice %62 {offsets = [0, 8], sizes = [18, 8], strides = [1, 1]} : vector<18x32xf32> to vector<18x8xf32>
    %84 = vector.extract_strided_slice %63 {offsets = [0, 8], sizes = [18, 8], strides = [1, 1]} : vector<18x32xf32> to vector<18x8xf32>
    %cst_53 = arith.constant dense<0.000000e+00> : vector<18x18xf32>
    %85 = tpu.matmul %83, %84, %cst_53 {dimension_numbers = #tpu.dot_dimension_numbers<[1], [1], [0], [0], [0, 0, 1, 0], [], []>} : vector<18x8xf32>, vector<18x8xf32>, vector<18x18xf32> -> vector<18x18xf32>
    %86 = arith.addf %85, %0 : vector<18x18xf32>
    %cst_54 = arith.constant dense<0xFF800000> : vector<18xf32>
    %87 = vector.multi_reduction <maximumf>, %86, %cst_54 [1] : vector<18x18xf32> to vector<18xf32>
    %88 = vector.shape_cast %87 : vector<18xf32> to vector<18x1xf32>
    %89 = vector.broadcast %88 : vector<18x1xf32> to vector<18x18xf32>
    %90 = arith.subf %86, %89 : vector<18x18xf32>
    %91 = math.exp %90 : vector<18x18xf32>
    %cst_55 = arith.constant dense<0.000000e+00> : vector<18xf32>
    %92 = vector.multi_reduction <add>, %91, %cst_55 [1] : vector<18x18xf32> to vector<18xf32>
    %93 = vector.shape_cast %92 : vector<18xf32> to vector<18x1xf32>
    %94 = tpu.reciprocal %93 {approx = true} : vector<18x1xf32> -> vector<18x1xf32>
    %95 = vector.broadcast %94 : vector<18x1xf32> to vector<18x18xf32>
    %96 = arith.mulf %91, %95 : vector<18x18xf32>
    %97 = vector.extract_strided_slice %64 {offsets = [0, 8], sizes = [18, 8], strides = [1, 1]} : vector<18x32xf32> to vector<18x8xf32>
    %cst_56 = arith.constant dense<0.000000e+00> : vector<18x8xf32>
    %98 = tpu.matmul %96, %97, %cst_56 {dimension_numbers = #tpu.dot_dimension_numbers<[1], [0], [0], [1], [0, 0, 1, 1], [], []>} : vector<18x18xf32>, vector<18x8xf32>, vector<18x8xf32> -> vector<18x8xf32>
    %99 = vector.extract_strided_slice %54 {offsets = [8, 0], sizes = [8, 32], strides = [1, 1]} : vector<32x32xf32> to vector<8x32xf32>
    %cst_57 = arith.constant dense<0.000000e+00> : vector<18x32xf32>
    %100 = tpu.matmul %98, %99, %cst_57 {dimension_numbers = #tpu.dot_dimension_numbers<[1], [0], [0], [1], [0, 0, 1, 1], [], []>} : vector<18x8xf32>, vector<8x32xf32>, vector<18x32xf32> -> vector<18x32xf32>
    %101 = arith.addf %82, %100 : vector<18x32xf32>
    %102 = vector.extract_strided_slice %62 {offsets = [0, 16], sizes = [18, 8], strides = [1, 1]} : vector<18x32xf32> to vector<18x8xf32>
    %103 = vector.extract_strided_slice %63 {offsets = [0, 16], sizes = [18, 8], strides = [1, 1]} : vector<18x32xf32> to vector<18x8xf32>
    %cst_58 = arith.constant dense<0.000000e+00> : vector<18x18xf32>
    %104 = tpu.matmul %102, %103, %cst_58 {dimension_numbers = #tpu.dot_dimension_numbers<[1], [1], [0], [0], [0, 0, 1, 0], [], []>} : vector<18x8xf32>, vector<18x8xf32>, vector<18x18xf32> -> vector<18x18xf32>
    %105 = arith.addf %104, %0 : vector<18x18xf32>
    %cst_59 = arith.constant dense<0xFF800000> : vector<18xf32>
    %106 = vector.multi_reduction <maximumf>, %105, %cst_59 [1] : vector<18x18xf32> to vector<18xf32>
    %107 = vector.shape_cast %106 : vector<18xf32> to vector<18x1xf32>
    %108 = vector.broadcast %107 : vector<18x1xf32> to vector<18x18xf32>
    %109 = arith.subf %105, %108 : vector<18x18xf32>
    %110 = math.exp %109 : vector<18x18xf32>
    %cst_60 = arith.constant dense<0.000000e+00> : vector<18xf32>
    %111 = vector.multi_reduction <add>, %110, %cst_60 [1] : vector<18x18xf32> to vector<18xf32>
    %112 = vector.shape_cast %111 : vector<18xf32> to vector<18x1xf32>
    %113 = tpu.reciprocal %112 {approx = true} : vector<18x1xf32> -> vector<18x1xf32>
    %114 = vector.broadcast %113 : vector<18x1xf32> to vector<18x18xf32>
    %115 = arith.mulf %110, %114 : vector<18x18xf32>
    %116 = vector.extract_strided_slice %64 {offsets = [0, 16], sizes = [18, 8], strides = [1, 1]} : vector<18x32xf32> to vector<18x8xf32>
    %cst_61 = arith.constant dense<0.000000e+00> : vector<18x8xf32>
    %117 = tpu.matmul %115, %116, %cst_61 {dimension_numbers = #tpu.dot_dimension_numbers<[1], [0], [0], [1], [0, 0, 1, 1], [], []>} : vector<18x18xf32>, vector<18x8xf32>, vector<18x8xf32> -> vector<18x8xf32>
    %118 = vector.extract_strided_slice %54 {offsets = [16, 0], sizes = [8, 32], strides = [1, 1]} : vector<32x32xf32> to vector<8x32xf32>
    %cst_62 = arith.constant dense<0.000000e+00> : vector<18x32xf32>
    %119 = tpu.matmul %117, %118, %cst_62 {dimension_numbers = #tpu.dot_dimension_numbers<[1], [0], [0], [1], [0, 0, 1, 1], [], []>} : vector<18x8xf32>, vector<8x32xf32>, vector<18x32xf32> -> vector<18x32xf32>
    %120 = arith.addf %101, %119 : vector<18x32xf32>
    %121 = vector.extract_strided_slice %62 {offsets = [0, 24], sizes = [18, 8], strides = [1, 1]} : vector<18x32xf32> to vector<18x8xf32>
    %122 = vector.extract_strided_slice %63 {offsets = [0, 24], sizes = [18, 8], strides = [1, 1]} : vector<18x32xf32> to vector<18x8xf32>
    %cst_63 = arith.constant dense<0.000000e+00> : vector<18x18xf32>
    %123 = tpu.matmul %121, %122, %cst_63 {dimension_numbers = #tpu.dot_dimension_numbers<[1], [1], [0], [0], [0, 0, 1, 0], [], []>} : vector<18x8xf32>, vector<18x8xf32>, vector<18x18xf32> -> vector<18x18xf32>
    %124 = arith.addf %123, %0 : vector<18x18xf32>
    %cst_64 = arith.constant dense<0xFF800000> : vector<18xf32>
    %125 = vector.multi_reduction <maximumf>, %124, %cst_64 [1] : vector<18x18xf32> to vector<18xf32>
    %126 = vector.shape_cast %125 : vector<18xf32> to vector<18x1xf32>
    %127 = vector.broadcast %126 : vector<18x1xf32> to vector<18x18xf32>
    %128 = arith.subf %124, %127 : vector<18x18xf32>
    %129 = math.exp %128 : vector<18x18xf32>
    %cst_65 = arith.constant dense<0.000000e+00> : vector<18xf32>
    %130 = vector.multi_reduction <add>, %129, %cst_65 [1] : vector<18x18xf32> to vector<18xf32>
    %131 = vector.shape_cast %130 : vector<18xf32> to vector<18x1xf32>
    %132 = tpu.reciprocal %131 {approx = true} : vector<18x1xf32> -> vector<18x1xf32>
    %133 = vector.broadcast %132 : vector<18x1xf32> to vector<18x18xf32>
    %134 = arith.mulf %129, %133 : vector<18x18xf32>
    %135 = vector.extract_strided_slice %64 {offsets = [0, 24], sizes = [18, 8], strides = [1, 1]} : vector<18x32xf32> to vector<18x8xf32>
    %cst_66 = arith.constant dense<0.000000e+00> : vector<18x8xf32>
    %136 = tpu.matmul %134, %135, %cst_66 {dimension_numbers = #tpu.dot_dimension_numbers<[1], [0], [0], [1], [0, 0, 1, 1], [], []>} : vector<18x18xf32>, vector<18x8xf32>, vector<18x8xf32> -> vector<18x8xf32>
    %137 = vector.extract_strided_slice %54 {offsets = [24, 0], sizes = [8, 32], strides = [1, 1]} : vector<32x32xf32> to vector<8x32xf32>
    %cst_67 = arith.constant dense<0.000000e+00> : vector<18x32xf32>
    %138 = tpu.matmul %136, %137, %cst_67 {dimension_numbers = #tpu.dot_dimension_numbers<[1], [0], [0], [1], [0, 0, 1, 1], [], []>} : vector<18x8xf32>, vector<8x32xf32>, vector<18x32xf32> -> vector<18x32xf32>
    %139 = arith.addf %120, %138 : vector<18x32xf32>
    %140 = vector.broadcast %56 : vector<1x32xf32> to vector<18x32xf32>
    %141 = arith.addf %139, %140 : vector<18x32xf32>
    %142 = arith.addf %35, %141 : vector<18x32xf32>
    %143 = vector.extract_strided_slice %46 {offsets = [0, 0], sizes = [1, 32], strides = [1, 1]} : vector<2x32xf32> to vector<1x32xf32>
    %144 = vector.extract_strided_slice %48 {offsets = [0, 0], sizes = [1, 32], strides = [1, 1]} : vector<2x32xf32> to vector<1x32xf32>
    %cst_68 = arith.constant dense<0.000000e+00> : vector<18xf32>
    %145 = vector.multi_reduction <add>, %142, %cst_68 [1] : vector<18x32xf32> to vector<18xf32>
    %146 = vector.shape_cast %145 : vector<18xf32> to vector<18x1xf32>
    %cst_69 = arith.constant 3.200000e+01 : f32
    %147 = vector.broadcast %cst_69 : f32 to vector<18x1xf32>
    %148 = arith.divf %146, %147 : vector<18x1xf32>
    %149 = vector.broadcast %148 : vector<18x1xf32> to vector<18x32xf32>
    %150 = arith.subf %142, %149 : vector<18x32xf32>
    %151 = arith.mulf %150, %150 : vector<18x32xf32>
    %cst_70 = arith.constant dense<0.000000e+00> : vector<18xf32>
    %152 = vector.multi_reduction <add>, %151, %cst_70 [1] : vector<18x32xf32> to vector<18xf32>
    %153 = vector.shape_cast %152 : vector<18xf32> to vector<18x1xf32>
    %cst_71 = arith.constant 3.200000e+01 : f32
    %154 = vector.broadcast %cst_71 : f32 to vector<18x1xf32>
    %155 = arith.divf %153, %154 : vector<18x1xf32>
    %cst_72 = arith.constant 9.99999974E-6 : f32
    %156 = vector.broadcast %cst_72 : f32 to vector<18x1xf32>
    %157 = arith.addf %155, %156 : vector<18x1xf32>
    %158 = math.rsqrt %157 : vector<18x1xf32>
    %159 = vector.broadcast %158 : vector<18x1xf32> to vector<18x32xf32>
    %160 = arith.mulf %150, %159 : vector<18x32xf32>
    %161 = vector.broadcast %143 : vector<1x32xf32> to vector<18x32xf32>
    %162 = arith.mulf %160, %161 : vector<18x32xf32>
    %163 = vector.broadcast %144 : vector<1x32xf32> to vector<18x32xf32>
    %164 = arith.addf %162, %163 : vector<18x32xf32>
    %c0_73 = arith.constant 0 : index
    %c0_74 = arith.constant 0 : index
    %c0_75 = arith.constant 0 : index
    %165 = vector.load %arg38[%c0_73, %c0_74, %c0_75] : memref<2x32x64xf32, #tpu.memory_space<vmem>>, vector<1x32x64xf32>
    %166 = vector.shape_cast %165 : vector<1x32x64xf32> to vector<32x64xf32>
    %c0_76 = arith.constant 0 : index
    %c0_77 = arith.constant 0 : index
    %c0_78 = arith.constant 0 : index
    %167 = vector.load %arg32[%c0_76, %c0_77, %c0_78] : memref<2x1x64xf32, #tpu.memory_space<vmem>>, vector<1x1x64xf32>
    %168 = vector.shape_cast %167 : vector<1x1x64xf32> to vector<1x64xf32>
    %c0_79 = arith.constant 0 : index
    %c0_80 = arith.constant 0 : index
    %c0_81 = arith.constant 0 : index
    %169 = vector.load %arg39[%c0_79, %c0_80, %c0_81] : memref<2x64x32xf32, #tpu.memory_space<vmem>>, vector<1x64x32xf32>
    %170 = vector.shape_cast %169 : vector<1x64x32xf32> to vector<64x32xf32>
    %c0_82 = arith.constant 0 : index
    %c0_83 = arith.constant 0 : index
    %c0_84 = arith.constant 0 : index
    %171 = vector.load %arg33[%c0_82, %c0_83, %c0_84] : memref<2x1x32xf32, #tpu.memory_space<vmem>>, vector<1x1x32xf32>
    %172 = vector.shape_cast %171 : vector<1x1x32xf32> to vector<1x32xf32>
    %cst_85 = arith.constant dense<0.000000e+00> : vector<18x64xf32>
    %173 = tpu.matmul %164, %166, %cst_85 {dimension_numbers = #tpu.dot_dimension_numbers<[1], [0], [0], [1], [0, 0, 1, 1], [], []>} : vector<18x32xf32>, vector<32x64xf32>, vector<18x64xf32> -> vector<18x64xf32>
    %174 = vector.broadcast %168 : vector<1x64xf32> to vector<18x64xf32>
    %175 = arith.addf %173, %174 : vector<18x64xf32>
    %cst_86 = arith.constant 5.000000e-01 : f32
    %176 = vector.broadcast %cst_86 : f32 to vector<18x64xf32>
    %177 = arith.mulf %176, %175 : vector<18x64xf32>
    %cst_87 = arith.constant 4.471500e-02 : f32
    %178 = vector.broadcast %cst_87 : f32 to vector<18x64xf32>
    %179 = arith.mulf %178, %175 : vector<18x64xf32>
    %180 = arith.mulf %179, %175 : vector<18x64xf32>
    %181 = arith.mulf %180, %175 : vector<18x64xf32>
    %182 = arith.addf %175, %181 : vector<18x64xf32>
    %cst_88 = arith.constant 0.797884583 : f32
    %183 = vector.broadcast %cst_88 : f32 to vector<18x64xf32>
    %184 = arith.mulf %183, %182 : vector<18x64xf32>
    %185 = math.tanh %184 : vector<18x64xf32>
    %cst_89 = arith.constant 1.000000e+00 : f32
    %186 = vector.broadcast %cst_89 : f32 to vector<18x64xf32>
    %187 = arith.addf %186, %185 : vector<18x64xf32>
    %188 = arith.mulf %177, %187 : vector<18x64xf32>
    %cst_90 = arith.constant dense<0.000000e+00> : vector<18x32xf32>
    %189 = tpu.matmul %188, %170, %cst_90 {dimension_numbers = #tpu.dot_dimension_numbers<[1], [0], [0], [1], [0, 0, 1, 1], [], []>} : vector<18x64xf32>, vector<64x32xf32>, vector<18x32xf32> -> vector<18x32xf32>
    %190 = vector.broadcast %172 : vector<1x32xf32> to vector<18x32xf32>
    %191 = arith.addf %189, %190 : vector<18x32xf32>
    %192 = arith.addf %164, %191 : vector<18x32xf32>
    %193 = vector.extract_strided_slice %46 {offsets = [1, 0], sizes = [1, 32], strides = [1, 1]} : vector<2x32xf32> to vector<1x32xf32>
    %194 = vector.extract_strided_slice %48 {offsets = [1, 0], sizes = [1, 32], strides = [1, 1]} : vector<2x32xf32> to vector<1x32xf32>
    %cst_91 = arith.constant dense<0.000000e+00> : vector<18xf32>
    %195 = vector.multi_reduction <add>, %192, %cst_91 [1] : vector<18x32xf32> to vector<18xf32>
    %196 = vector.shape_cast %195 : vector<18xf32> to vector<18x1xf32>
    %cst_92 = arith.constant 3.200000e+01 : f32
    %197 = vector.broadcast %cst_92 : f32 to vector<18x1xf32>
    %198 = arith.divf %196, %197 : vector<18x1xf32>
    %199 = vector.broadcast %198 : vector<18x1xf32> to vector<18x32xf32>
    %200 = arith.subf %192, %199 : vector<18x32xf32>
    %201 = arith.mulf %200, %200 : vector<18x32xf32>
    %cst_93 = arith.constant dense<0.000000e+00> : vector<18xf32>
    %202 = vector.multi_reduction <add>, %201, %cst_93 [1] : vector<18x32xf32> to vector<18xf32>
    %203 = vector.shape_cast %202 : vector<18xf32> to vector<18x1xf32>
    %cst_94 = arith.constant 3.200000e+01 : f32
    %204 = vector.broadcast %cst_94 : f32 to vector<18x1xf32>
    %205 = arith.divf %203, %204 : vector<18x1xf32>
    %cst_95 = arith.constant 9.99999974E-6 : f32
    %206 = vector.broadcast %cst_95 : f32 to vector<18x1xf32>
    %207 = arith.addf %205, %206 : vector<18x1xf32>
    %208 = math.rsqrt %207 : vector<18x1xf32>
    %209 = vector.broadcast %208 : vector<18x1xf32> to vector<18x32xf32>
    %210 = arith.mulf %200, %209 : vector<18x32xf32>
    %211 = vector.broadcast %193 : vector<1x32xf32> to vector<18x32xf32>
    %212 = arith.mulf %210, %211 : vector<18x32xf32>
    %213 = vector.broadcast %194 : vector<1x32xf32> to vector<18x32xf32>
    %214 = arith.addf %212, %213 : vector<18x32xf32>
    %c1 = arith.constant 1 : index
    %c0_96 = arith.constant 0 : index
    %c0_97 = arith.constant 0 : index
    %215 = vector.load %arg37[%c1, %c0_96, %c0_97] : memref<2x2x32xf32, #tpu.memory_space<vmem>>, vector<1x2x32xf32>
    %216 = vector.shape_cast %215 : vector<1x2x32xf32> to vector<2x32xf32>
    %c1_98 = arith.constant 1 : index
    %c0_99 = arith.constant 0 : index
    %c0_100 = arith.constant 0 : index
    %217 = vector.load %arg36[%c1_98, %c0_99, %c0_100] : memref<2x2x32xf32, #tpu.memory_space<vmem>>, vector<1x2x32xf32>
    %218 = vector.shape_cast %217 : vector<1x2x32xf32> to vector<2x32xf32>
    %c1_101 = arith.constant 1 : index
    %c0_102 = arith.constant 0 : index
    %c0_103 = arith.constant 0 : index
    %219 = vector.load %arg41[%c1_101, %c0_102, %c0_103] : memref<2x32x96xf32, #tpu.memory_space<vmem>>, vector<1x32x96xf32>
    %220 = vector.shape_cast %219 : vector<1x32x96xf32> to vector<32x96xf32>
    %c1_104 = arith.constant 1 : index
    %c0_105 = arith.constant 0 : index
    %c0_106 = arith.constant 0 : index
    %221 = vector.load %arg35[%c1_104, %c0_105, %c0_106] : memref<2x1x96xf32, #tpu.memory_space<vmem>>, vector<1x1x96xf32>
    %222 = vector.shape_cast %221 : vector<1x1x96xf32> to vector<1x96xf32>
    %c1_107 = arith.constant 1 : index
    %c0_108 = arith.constant 0 : index
    %c0_109 = arith.constant 0 : index
    %223 = vector.load %arg40[%c1_107, %c0_108, %c0_109] : memref<2x32x32xf32, #tpu.memory_space<vmem>>, vector<1x32x32xf32>
    %224 = vector.shape_cast %223 : vector<1x32x32xf32> to vector<32x32xf32>
    %c1_110 = arith.constant 1 : index
    %c0_111 = arith.constant 0 : index
    %c0_112 = arith.constant 0 : index
    %225 = vector.load %arg34[%c1_110, %c0_111, %c0_112] : memref<2x1x32xf32, #tpu.memory_space<vmem>>, vector<1x1x32xf32>
    %226 = vector.shape_cast %225 : vector<1x1x32xf32> to vector<1x32xf32>
    %cst_113 = arith.constant dense<0.000000e+00> : vector<18x96xf32>
    %227 = tpu.matmul %214, %220, %cst_113 {dimension_numbers = #tpu.dot_dimension_numbers<[1], [0], [0], [1], [0, 0, 1, 1], [], []>} : vector<18x32xf32>, vector<32x96xf32>, vector<18x96xf32> -> vector<18x96xf32>
    %228 = vector.broadcast %222 : vector<1x96xf32> to vector<18x96xf32>
    %229 = arith.addf %227, %228 : vector<18x96xf32>
    %230 = vector.extract_strided_slice %229 {offsets = [0, 0], sizes = [18, 32], strides = [1, 1]} : vector<18x96xf32> to vector<18x32xf32>
    %cst_114 = arith.constant 0.353553385 : f32
    %231 = vector.broadcast %cst_114 : f32 to vector<18x32xf32>
    %232 = arith.mulf %230, %231 : vector<18x32xf32>
    %233 = vector.extract_strided_slice %229 {offsets = [0, 32], sizes = [18, 32], strides = [1, 1]} : vector<18x96xf32> to vector<18x32xf32>
    %234 = vector.extract_strided_slice %229 {offsets = [0, 64], sizes = [18, 32], strides = [1, 1]} : vector<18x96xf32> to vector<18x32xf32>
    %235 = vector.extract_strided_slice %232 {offsets = [0, 0], sizes = [18, 8], strides = [1, 1]} : vector<18x32xf32> to vector<18x8xf32>
    %236 = vector.extract_strided_slice %233 {offsets = [0, 0], sizes = [18, 8], strides = [1, 1]} : vector<18x32xf32> to vector<18x8xf32>
    %cst_115 = arith.constant dense<0.000000e+00> : vector<18x18xf32>
    %237 = tpu.matmul %235, %236, %cst_115 {dimension_numbers = #tpu.dot_dimension_numbers<[1], [1], [0], [0], [0, 0, 1, 0], [], []>} : vector<18x8xf32>, vector<18x8xf32>, vector<18x18xf32> -> vector<18x18xf32>
    %238 = arith.addf %237, %0 : vector<18x18xf32>
    %cst_116 = arith.constant dense<0xFF800000> : vector<18xf32>
    %239 = vector.multi_reduction <maximumf>, %238, %cst_116 [1] : vector<18x18xf32> to vector<18xf32>
    %240 = vector.shape_cast %239 : vector<18xf32> to vector<18x1xf32>
    %241 = vector.broadcast %240 : vector<18x1xf32> to vector<18x18xf32>
    %242 = arith.subf %238, %241 : vector<18x18xf32>
    %243 = math.exp %242 : vector<18x18xf32>
    %cst_117 = arith.constant dense<0.000000e+00> : vector<18xf32>
    %244 = vector.multi_reduction <add>, %243, %cst_117 [1] : vector<18x18xf32> to vector<18xf32>
    %245 = vector.shape_cast %244 : vector<18xf32> to vector<18x1xf32>
    %246 = tpu.reciprocal %245 {approx = true} : vector<18x1xf32> -> vector<18x1xf32>
    %247 = vector.broadcast %246 : vector<18x1xf32> to vector<18x18xf32>
    %248 = arith.mulf %243, %247 : vector<18x18xf32>
    %249 = vector.extract_strided_slice %234 {offsets = [0, 0], sizes = [18, 8], strides = [1, 1]} : vector<18x32xf32> to vector<18x8xf32>
    %cst_118 = arith.constant dense<0.000000e+00> : vector<18x8xf32>
    %250 = tpu.matmul %248, %249, %cst_118 {dimension_numbers = #tpu.dot_dimension_numbers<[1], [0], [0], [1], [0, 0, 1, 1], [], []>} : vector<18x18xf32>, vector<18x8xf32>, vector<18x8xf32> -> vector<18x8xf32>
    %251 = vector.extract_strided_slice %224 {offsets = [0, 0], sizes = [8, 32], strides = [1, 1]} : vector<32x32xf32> to vector<8x32xf32>
    %cst_119 = arith.constant dense<0.000000e+00> : vector<18x32xf32>
    %252 = tpu.matmul %250, %251, %cst_119 {dimension_numbers = #tpu.dot_dimension_numbers<[1], [0], [0], [1], [0, 0, 1, 1], [], []>} : vector<18x8xf32>, vector<8x32xf32>, vector<18x32xf32> -> vector<18x32xf32>
    %253 = vector.extract_strided_slice %232 {offsets = [0, 8], sizes = [18, 8], strides = [1, 1]} : vector<18x32xf32> to vector<18x8xf32>
    %254 = vector.extract_strided_slice %233 {offsets = [0, 8], sizes = [18, 8], strides = [1, 1]} : vector<18x32xf32> to vector<18x8xf32>
    %cst_120 = arith.constant dense<0.000000e+00> : vector<18x18xf32>
    %255 = tpu.matmul %253, %254, %cst_120 {dimension_numbers = #tpu.dot_dimension_numbers<[1], [1], [0], [0], [0, 0, 1, 0], [], []>} : vector<18x8xf32>, vector<18x8xf32>, vector<18x18xf32> -> vector<18x18xf32>
    %256 = arith.addf %255, %0 : vector<18x18xf32>
    %cst_121 = arith.constant dense<0xFF800000> : vector<18xf32>
    %257 = vector.multi_reduction <maximumf>, %256, %cst_121 [1] : vector<18x18xf32> to vector<18xf32>
    %258 = vector.shape_cast %257 : vector<18xf32> to vector<18x1xf32>
    %259 = vector.broadcast %258 : vector<18x1xf32> to vector<18x18xf32>
    %260 = arith.subf %256, %259 : vector<18x18xf32>
    %261 = math.exp %260 : vector<18x18xf32>
    %cst_122 = arith.constant dense<0.000000e+00> : vector<18xf32>
    %262 = vector.multi_reduction <add>, %261, %cst_122 [1] : vector<18x18xf32> to vector<18xf32>
    %263 = vector.shape_cast %262 : vector<18xf32> to vector<18x1xf32>
    %264 = tpu.reciprocal %263 {approx = true} : vector<18x1xf32> -> vector<18x1xf32>
    %265 = vector.broadcast %264 : vector<18x1xf32> to vector<18x18xf32>
    %266 = arith.mulf %261, %265 : vector<18x18xf32>
    %267 = vector.extract_strided_slice %234 {offsets = [0, 8], sizes = [18, 8], strides = [1, 1]} : vector<18x32xf32> to vector<18x8xf32>
    %cst_123 = arith.constant dense<0.000000e+00> : vector<18x8xf32>
    %268 = tpu.matmul %266, %267, %cst_123 {dimension_numbers = #tpu.dot_dimension_numbers<[1], [0], [0], [1], [0, 0, 1, 1], [], []>} : vector<18x18xf32>, vector<18x8xf32>, vector<18x8xf32> -> vector<18x8xf32>
    %269 = vector.extract_strided_slice %224 {offsets = [8, 0], sizes = [8, 32], strides = [1, 1]} : vector<32x32xf32> to vector<8x32xf32>
    %cst_124 = arith.constant dense<0.000000e+00> : vector<18x32xf32>
    %270 = tpu.matmul %268, %269, %cst_124 {dimension_numbers = #tpu.dot_dimension_numbers<[1], [0], [0], [1], [0, 0, 1, 1], [], []>} : vector<18x8xf32>, vector<8x32xf32>, vector<18x32xf32> -> vector<18x32xf32>
    %271 = arith.addf %252, %270 : vector<18x32xf32>
    %272 = vector.extract_strided_slice %232 {offsets = [0, 16], sizes = [18, 8], strides = [1, 1]} : vector<18x32xf32> to vector<18x8xf32>
    %273 = vector.extract_strided_slice %233 {offsets = [0, 16], sizes = [18, 8], strides = [1, 1]} : vector<18x32xf32> to vector<18x8xf32>
    %cst_125 = arith.constant dense<0.000000e+00> : vector<18x18xf32>
    %274 = tpu.matmul %272, %273, %cst_125 {dimension_numbers = #tpu.dot_dimension_numbers<[1], [1], [0], [0], [0, 0, 1, 0], [], []>} : vector<18x8xf32>, vector<18x8xf32>, vector<18x18xf32> -> vector<18x18xf32>
    %275 = arith.addf %274, %0 : vector<18x18xf32>
    %cst_126 = arith.constant dense<0xFF800000> : vector<18xf32>
    %276 = vector.multi_reduction <maximumf>, %275, %cst_126 [1] : vector<18x18xf32> to vector<18xf32>
    %277 = vector.shape_cast %276 : vector<18xf32> to vector<18x1xf32>
    %278 = vector.broadcast %277 : vector<18x1xf32> to vector<18x18xf32>
    %279 = arith.subf %275, %278 : vector<18x18xf32>
    %280 = math.exp %279 : vector<18x18xf32>
    %cst_127 = arith.constant dense<0.000000e+00> : vector<18xf32>
    %281 = vector.multi_reduction <add>, %280, %cst_127 [1] : vector<18x18xf32> to vector<18xf32>
    %282 = vector.shape_cast %281 : vector<18xf32> to vector<18x1xf32>
    %283 = tpu.reciprocal %282 {approx = true} : vector<18x1xf32> -> vector<18x1xf32>
    %284 = vector.broadcast %283 : vector<18x1xf32> to vector<18x18xf32>
    %285 = arith.mulf %280, %284 : vector<18x18xf32>
    %286 = vector.extract_strided_slice %234 {offsets = [0, 16], sizes = [18, 8], strides = [1, 1]} : vector<18x32xf32> to vector<18x8xf32>
    %cst_128 = arith.constant dense<0.000000e+00> : vector<18x8xf32>
    %287 = tpu.matmul %285, %286, %cst_128 {dimension_numbers = #tpu.dot_dimension_numbers<[1], [0], [0], [1], [0, 0, 1, 1], [], []>} : vector<18x18xf32>, vector<18x8xf32>, vector<18x8xf32> -> vector<18x8xf32>
    %288 = vector.extract_strided_slice %224 {offsets = [16, 0], sizes = [8, 32], strides = [1, 1]} : vector<32x32xf32> to vector<8x32xf32>
    %cst_129 = arith.constant dense<0.000000e+00> : vector<18x32xf32>
    %289 = tpu.matmul %287, %288, %cst_129 {dimension_numbers = #tpu.dot_dimension_numbers<[1], [0], [0], [1], [0, 0, 1, 1], [], []>} : vector<18x8xf32>, vector<8x32xf32>, vector<18x32xf32> -> vector<18x32xf32>
    %290 = arith.addf %271, %289 : vector<18x32xf32>
    %291 = vector.extract_strided_slice %232 {offsets = [0, 24], sizes = [18, 8], strides = [1, 1]} : vector<18x32xf32> to vector<18x8xf32>
    %292 = vector.extract_strided_slice %233 {offsets = [0, 24], sizes = [18, 8], strides = [1, 1]} : vector<18x32xf32> to vector<18x8xf32>
    %cst_130 = arith.constant dense<0.000000e+00> : vector<18x18xf32>
    %293 = tpu.matmul %291, %292, %cst_130 {dimension_numbers = #tpu.dot_dimension_numbers<[1], [1], [0], [0], [0, 0, 1, 0], [], []>} : vector<18x8xf32>, vector<18x8xf32>, vector<18x18xf32> -> vector<18x18xf32>
    %294 = arith.addf %293, %0 : vector<18x18xf32>
    %cst_131 = arith.constant dense<0xFF800000> : vector<18xf32>
    %295 = vector.multi_reduction <maximumf>, %294, %cst_131 [1] : vector<18x18xf32> to vector<18xf32>
    %296 = vector.shape_cast %295 : vector<18xf32> to vector<18x1xf32>
    %297 = vector.broadcast %296 : vector<18x1xf32> to vector<18x18xf32>
    %298 = arith.subf %294, %297 : vector<18x18xf32>
    %299 = math.exp %298 : vector<18x18xf32>
    %cst_132 = arith.constant dense<0.000000e+00> : vector<18xf32>
    %300 = vector.multi_reduction <add>, %299, %cst_132 [1] : vector<18x18xf32> to vector<18xf32>
    %301 = vector.shape_cast %300 : vector<18xf32> to vector<18x1xf32>
    %302 = tpu.reciprocal %301 {approx = true} : vector<18x1xf32> -> vector<18x1xf32>
    %303 = vector.broadcast %302 : vector<18x1xf32> to vector<18x18xf32>
    %304 = arith.mulf %299, %303 : vector<18x18xf32>
    %305 = vector.extract_strided_slice %234 {offsets = [0, 24], sizes = [18, 8], strides = [1, 1]} : vector<18x32xf32> to vector<18x8xf32>
    %cst_133 = arith.constant dense<0.000000e+00> : vector<18x8xf32>
    %306 = tpu.matmul %304, %305, %cst_133 {dimension_numbers = #tpu.dot_dimension_numbers<[1], [0], [0], [1], [0, 0, 1, 1], [], []>} : vector<18x18xf32>, vector<18x8xf32>, vector<18x8xf32> -> vector<18x8xf32>
    %307 = vector.extract_strided_slice %224 {offsets = [24, 0], sizes = [8, 32], strides = [1, 1]} : vector<32x32xf32> to vector<8x32xf32>
    %cst_134 = arith.constant dense<0.000000e+00> : vector<18x32xf32>
    %308 = tpu.matmul %306, %307, %cst_134 {dimension_numbers = #tpu.dot_dimension_numbers<[1], [0], [0], [1], [0, 0, 1, 1], [], []>} : vector<18x8xf32>, vector<8x32xf32>, vector<18x32xf32> -> vector<18x32xf32>
    %309 = arith.addf %290, %308 : vector<18x32xf32>
    %310 = vector.broadcast %226 : vector<1x32xf32> to vector<18x32xf32>
    %311 = arith.addf %309, %310 : vector<18x32xf32>
    %312 = arith.addf %214, %311 : vector<18x32xf32>
    %313 = vector.extract_strided_slice %216 {offsets = [0, 0], sizes = [1, 32], strides = [1, 1]} : vector<2x32xf32> to vector<1x32xf32>
    %314 = vector.extract_strided_slice %218 {offsets = [0, 0], sizes = [1, 32], strides = [1, 1]} : vector<2x32xf32> to vector<1x32xf32>
    %cst_135 = arith.constant dense<0.000000e+00> : vector<18xf32>
    %315 = vector.multi_reduction <add>, %312, %cst_135 [1] : vector<18x32xf32> to vector<18xf32>
    %316 = vector.shape_cast %315 : vector<18xf32> to vector<18x1xf32>
    %cst_136 = arith.constant 3.200000e+01 : f32
    %317 = vector.broadcast %cst_136 : f32 to vector<18x1xf32>
    %318 = arith.divf %316, %317 : vector<18x1xf32>
    %319 = vector.broadcast %318 : vector<18x1xf32> to vector<18x32xf32>
    %320 = arith.subf %312, %319 : vector<18x32xf32>
    %321 = arith.mulf %320, %320 : vector<18x32xf32>
    %cst_137 = arith.constant dense<0.000000e+00> : vector<18xf32>
    %322 = vector.multi_reduction <add>, %321, %cst_137 [1] : vector<18x32xf32> to vector<18xf32>
    %323 = vector.shape_cast %322 : vector<18xf32> to vector<18x1xf32>
    %cst_138 = arith.constant 3.200000e+01 : f32
    %324 = vector.broadcast %cst_138 : f32 to vector<18x1xf32>
    %325 = arith.divf %323, %324 : vector<18x1xf32>
    %cst_139 = arith.constant 9.99999974E-6 : f32
    %326 = vector.broadcast %cst_139 : f32 to vector<18x1xf32>
    %327 = arith.addf %325, %326 : vector<18x1xf32>
    %328 = math.rsqrt %327 : vector<18x1xf32>
    %329 = vector.broadcast %328 : vector<18x1xf32> to vector<18x32xf32>
    %330 = arith.mulf %320, %329 : vector<18x32xf32>
    %331 = vector.broadcast %313 : vector<1x32xf32> to vector<18x32xf32>
    %332 = arith.mulf %330, %331 : vector<18x32xf32>
    %333 = vector.broadcast %314 : vector<1x32xf32> to vector<18x32xf32>
    %334 = arith.addf %332, %333 : vector<18x32xf32>
    %c1_140 = arith.constant 1 : index
    %c0_141 = arith.constant 0 : index
    %c0_142 = arith.constant 0 : index
    %335 = vector.load %arg38[%c1_140, %c0_141, %c0_142] : memref<2x32x64xf32, #tpu.memory_space<vmem>>, vector<1x32x64xf32>
    %336 = vector.shape_cast %335 : vector<1x32x64xf32> to vector<32x64xf32>
    %c1_143 = arith.constant 1 : index
    %c0_144 = arith.constant 0 : index
    %c0_145 = arith.constant 0 : index
    %337 = vector.load %arg32[%c1_143, %c0_144, %c0_145] : memref<2x1x64xf32, #tpu.memory_space<vmem>>, vector<1x1x64xf32>
    %338 = vector.shape_cast %337 : vector<1x1x64xf32> to vector<1x64xf32>
    %c1_146 = arith.constant 1 : index
    %c0_147 = arith.constant 0 : index
    %c0_148 = arith.constant 0 : index
    %339 = vector.load %arg39[%c1_146, %c0_147, %c0_148] : memref<2x64x32xf32, #tpu.memory_space<vmem>>, vector<1x64x32xf32>
    %340 = vector.shape_cast %339 : vector<1x64x32xf32> to vector<64x32xf32>
    %c1_149 = arith.constant 1 : index
    %c0_150 = arith.constant 0 : index
    %c0_151 = arith.constant 0 : index
    %341 = vector.load %arg33[%c1_149, %c0_150, %c0_151] : memref<2x1x32xf32, #tpu.memory_space<vmem>>, vector<1x1x32xf32>
    %342 = vector.shape_cast %341 : vector<1x1x32xf32> to vector<1x32xf32>
    %cst_152 = arith.constant dense<0.000000e+00> : vector<18x64xf32>
    %343 = tpu.matmul %334, %336, %cst_152 {dimension_numbers = #tpu.dot_dimension_numbers<[1], [0], [0], [1], [0, 0, 1, 1], [], []>} : vector<18x32xf32>, vector<32x64xf32>, vector<18x64xf32> -> vector<18x64xf32>
    %344 = vector.broadcast %338 : vector<1x64xf32> to vector<18x64xf32>
    %345 = arith.addf %343, %344 : vector<18x64xf32>
    %cst_153 = arith.constant 5.000000e-01 : f32
    %346 = vector.broadcast %cst_153 : f32 to vector<18x64xf32>
    %347 = arith.mulf %346, %345 : vector<18x64xf32>
    %cst_154 = arith.constant 4.471500e-02 : f32
    %348 = vector.broadcast %cst_154 : f32 to vector<18x64xf32>
    %349 = arith.mulf %348, %345 : vector<18x64xf32>
    %350 = arith.mulf %349, %345 : vector<18x64xf32>
    %351 = arith.mulf %350, %345 : vector<18x64xf32>
    %352 = arith.addf %345, %351 : vector<18x64xf32>
    %cst_155 = arith.constant 0.797884583 : f32
    %353 = vector.broadcast %cst_155 : f32 to vector<18x64xf32>
    %354 = arith.mulf %353, %352 : vector<18x64xf32>
    %355 = math.tanh %354 : vector<18x64xf32>
    %cst_156 = arith.constant 1.000000e+00 : f32
    %356 = vector.broadcast %cst_156 : f32 to vector<18x64xf32>
    %357 = arith.addf %356, %355 : vector<18x64xf32>
    %358 = arith.mulf %347, %357 : vector<18x64xf32>
    %cst_157 = arith.constant dense<0.000000e+00> : vector<18x32xf32>
    %359 = tpu.matmul %358, %340, %cst_157 {dimension_numbers = #tpu.dot_dimension_numbers<[1], [0], [0], [1], [0, 0, 1, 1], [], []>} : vector<18x64xf32>, vector<64x32xf32>, vector<18x32xf32> -> vector<18x32xf32>
    %360 = vector.broadcast %342 : vector<1x32xf32> to vector<18x32xf32>
    %361 = arith.addf %359, %360 : vector<18x32xf32>
    %362 = arith.addf %334, %361 : vector<18x32xf32>
    %363 = vector.extract_strided_slice %216 {offsets = [1, 0], sizes = [1, 32], strides = [1, 1]} : vector<2x32xf32> to vector<1x32xf32>
    %364 = vector.extract_strided_slice %218 {offsets = [1, 0], sizes = [1, 32], strides = [1, 1]} : vector<2x32xf32> to vector<1x32xf32>
    %cst_158 = arith.constant dense<0.000000e+00> : vector<18xf32>
    %365 = vector.multi_reduction <add>, %362, %cst_158 [1] : vector<18x32xf32> to vector<18xf32>
    %366 = vector.shape_cast %365 : vector<18xf32> to vector<18x1xf32>
    %cst_159 = arith.constant 3.200000e+01 : f32
    %367 = vector.broadcast %cst_159 : f32 to vector<18x1xf32>
    %368 = arith.divf %366, %367 : vector<18x1xf32>
    %369 = vector.broadcast %368 : vector<18x1xf32> to vector<18x32xf32>
    %370 = arith.subf %362, %369 : vector<18x32xf32>
    %371 = arith.mulf %370, %370 : vector<18x32xf32>
    %cst_160 = arith.constant dense<0.000000e+00> : vector<18xf32>
    %372 = vector.multi_reduction <add>, %371, %cst_160 [1] : vector<18x32xf32> to vector<18xf32>
    %373 = vector.shape_cast %372 : vector<18xf32> to vector<18x1xf32>
    %cst_161 = arith.constant 3.200000e+01 : f32
    %374 = vector.broadcast %cst_161 : f32 to vector<18x1xf32>
    %375 = arith.divf %373, %374 : vector<18x1xf32>
    %cst_162 = arith.constant 9.99999974E-6 : f32
    %376 = vector.broadcast %cst_162 : f32 to vector<18x1xf32>
    %377 = arith.addf %375, %376 : vector<18x1xf32>
    %378 = math.rsqrt %377 : vector<18x1xf32>
    %379 = vector.broadcast %378 : vector<18x1xf32> to vector<18x32xf32>
    %380 = arith.mulf %370, %379 : vector<18x32xf32>
    %381 = vector.broadcast %363 : vector<1x32xf32> to vector<18x32xf32>
    %382 = arith.mulf %380, %381 : vector<18x32xf32>
    %383 = vector.broadcast %364 : vector<1x32xf32> to vector<18x32xf32>
    %384 = arith.addf %382, %383 : vector<18x32xf32>
    %c0_163 = arith.constant 0 : index
    %c0_164 = arith.constant 0 : index
    %385 = vector.load %arg43[%c0_163, %c0_164] : memref<1x32xf32, #tpu.memory_space<vmem>>, vector<1x32xf32>
    %c0_165 = arith.constant 0 : index
    %c0_166 = arith.constant 0 : index
    %386 = vector.load %arg42[%c0_165, %c0_166] : memref<1x32xf32, #tpu.memory_space<vmem>>, vector<1x32xf32>
    %cst_167 = arith.constant dense<0.000000e+00> : vector<18xf32>
    %387 = vector.multi_reduction <add>, %384, %cst_167 [1] : vector<18x32xf32> to vector<18xf32>
    %388 = vector.shape_cast %387 : vector<18xf32> to vector<18x1xf32>
    %cst_168 = arith.constant 3.200000e+01 : f32
    %389 = vector.broadcast %cst_168 : f32 to vector<18x1xf32>
    %390 = arith.divf %388, %389 : vector<18x1xf32>
    %391 = vector.broadcast %390 : vector<18x1xf32> to vector<18x32xf32>
    %392 = arith.subf %384, %391 : vector<18x32xf32>
    %393 = arith.mulf %392, %392 : vector<18x32xf32>
    %cst_169 = arith.constant dense<0.000000e+00> : vector<18xf32>
    %394 = vector.multi_reduction <add>, %393, %cst_169 [1] : vector<18x32xf32> to vector<18xf32>
    %395 = vector.shape_cast %394 : vector<18xf32> to vector<18x1xf32>
    %cst_170 = arith.constant 3.200000e+01 : f32
    %396 = vector.broadcast %cst_170 : f32 to vector<18x1xf32>
    %397 = arith.divf %395, %396 : vector<18x1xf32>
    %cst_171 = arith.constant 9.99999974E-6 : f32
    %398 = vector.broadcast %cst_171 : f32 to vector<18x1xf32>
    %399 = arith.addf %397, %398 : vector<18x1xf32>
    %400 = math.rsqrt %399 : vector<18x1xf32>
    %401 = vector.broadcast %400 : vector<18x1xf32> to vector<18x32xf32>
    %402 = arith.mulf %392, %401 : vector<18x32xf32>
    %403 = vector.broadcast %385 : vector<1x32xf32> to vector<18x32xf32>
    %404 = arith.mulf %402, %403 : vector<18x32xf32>
    %405 = vector.broadcast %386 : vector<1x32xf32> to vector<18x32xf32>
    %406 = arith.addf %404, %405 : vector<18x32xf32>
    %c0_172 = arith.constant 0 : index
    %c0_173 = arith.constant 0 : index
    %c0_174 = arith.constant 0 : index
    %407 = vector.load %arg20[%c0_172, %c0_173, %c0_174] : memref<2x3x32xf32, #tpu.memory_space<vmem>>, vector<1x3x32xf32>
    %408 = vector.shape_cast %407 : vector<1x3x32xf32> to vector<3x32xf32>
    %c0_175 = arith.constant 0 : index
    %c0_176 = arith.constant 0 : index
    %c0_177 = arith.constant 0 : index
    %409 = vector.load %arg19[%c0_175, %c0_176, %c0_177] : memref<2x3x32xf32, #tpu.memory_space<vmem>>, vector<1x3x32xf32>
    %410 = vector.shape_cast %409 : vector<1x3x32xf32> to vector<3x32xf32>
    %c0_178 = arith.constant 0 : index
    %c0_179 = arith.constant 0 : index
    %c0_180 = arith.constant 0 : index
    %411 = vector.load %arg27[%c0_178, %c0_179, %c0_180] : memref<2x32x96xf32, #tpu.memory_space<vmem>>, vector<1x32x96xf32>
    %412 = vector.shape_cast %411 : vector<1x32x96xf32> to vector<32x96xf32>
    %c0_181 = arith.constant 0 : index
    %c0_182 = arith.constant 0 : index
    %c0_183 = arith.constant 0 : index
    %413 = vector.load %arg18[%c0_181, %c0_182, %c0_183] : memref<2x1x96xf32, #tpu.memory_space<vmem>>, vector<1x1x96xf32>
    %414 = vector.shape_cast %413 : vector<1x1x96xf32> to vector<1x96xf32>
    %c0_184 = arith.constant 0 : index
    %c0_185 = arith.constant 0 : index
    %c0_186 = arith.constant 0 : index
    %415 = vector.load %arg25[%c0_184, %c0_185, %c0_186] : memref<2x32x32xf32, #tpu.memory_space<vmem>>, vector<1x32x32xf32>
    %416 = vector.shape_cast %415 : vector<1x32x32xf32> to vector<32x32xf32>
    %c0_187 = arith.constant 0 : index
    %c0_188 = arith.constant 0 : index
    %c0_189 = arith.constant 0 : index
    %417 = vector.load %arg16[%c0_187, %c0_188, %c0_189] : memref<2x1x32xf32, #tpu.memory_space<vmem>>, vector<1x1x32xf32>
    %418 = vector.shape_cast %417 : vector<1x1x32xf32> to vector<1x32xf32>
    %cst_190 = arith.constant dense<0.000000e+00> : vector<6x96xf32>
    %419 = tpu.matmul %44, %412, %cst_190 {dimension_numbers = #tpu.dot_dimension_numbers<[1], [0], [0], [1], [0, 0, 1, 1], [], []>} : vector<6x32xf32>, vector<32x96xf32>, vector<6x96xf32> -> vector<6x96xf32>
    %420 = vector.broadcast %414 : vector<1x96xf32> to vector<6x96xf32>
    %421 = arith.addf %419, %420 : vector<6x96xf32>
    %422 = vector.extract_strided_slice %421 {offsets = [0, 0], sizes = [6, 32], strides = [1, 1]} : vector<6x96xf32> to vector<6x32xf32>
    %cst_191 = arith.constant 0.353553385 : f32
    %423 = vector.broadcast %cst_191 : f32 to vector<6x32xf32>
    %424 = arith.mulf %422, %423 : vector<6x32xf32>
    %425 = vector.extract_strided_slice %421 {offsets = [0, 32], sizes = [6, 32], strides = [1, 1]} : vector<6x96xf32> to vector<6x32xf32>
    %426 = vector.extract_strided_slice %421 {offsets = [0, 64], sizes = [6, 32], strides = [1, 1]} : vector<6x96xf32> to vector<6x32xf32>
    %427 = vector.extract_strided_slice %424 {offsets = [0, 0], sizes = [6, 8], strides = [1, 1]} : vector<6x32xf32> to vector<6x8xf32>
    %428 = vector.extract_strided_slice %425 {offsets = [0, 0], sizes = [6, 8], strides = [1, 1]} : vector<6x32xf32> to vector<6x8xf32>
    %cst_192 = arith.constant dense<0.000000e+00> : vector<6x6xf32>
    %429 = tpu.matmul %427, %428, %cst_192 {dimension_numbers = #tpu.dot_dimension_numbers<[1], [1], [0], [0], [0, 0, 1, 0], [], []>} : vector<6x8xf32>, vector<6x8xf32>, vector<6x6xf32> -> vector<6x6xf32>
    %430 = arith.addf %429, %1 : vector<6x6xf32>
    %cst_193 = arith.constant dense<0xFF800000> : vector<6xf32>
    %431 = vector.multi_reduction <maximumf>, %430, %cst_193 [1] : vector<6x6xf32> to vector<6xf32>
    %432 = vector.shape_cast %431 : vector<6xf32> to vector<6x1xf32>
    %433 = vector.broadcast %432 : vector<6x1xf32> to vector<6x6xf32>
    %434 = arith.subf %430, %433 : vector<6x6xf32>
    %435 = math.exp %434 : vector<6x6xf32>
    %cst_194 = arith.constant dense<0.000000e+00> : vector<6xf32>
    %436 = vector.multi_reduction <add>, %435, %cst_194 [1] : vector<6x6xf32> to vector<6xf32>
    %437 = vector.shape_cast %436 : vector<6xf32> to vector<6x1xf32>
    %438 = tpu.reciprocal %437 {approx = true} : vector<6x1xf32> -> vector<6x1xf32>
    %439 = vector.broadcast %438 : vector<6x1xf32> to vector<6x6xf32>
    %440 = arith.mulf %435, %439 : vector<6x6xf32>
    %441 = vector.extract_strided_slice %426 {offsets = [0, 0], sizes = [6, 8], strides = [1, 1]} : vector<6x32xf32> to vector<6x8xf32>
    %cst_195 = arith.constant dense<0.000000e+00> : vector<6x8xf32>
    %442 = tpu.matmul %440, %441, %cst_195 {dimension_numbers = #tpu.dot_dimension_numbers<[1], [0], [0], [1], [0, 0, 1, 1], [], []>} : vector<6x6xf32>, vector<6x8xf32>, vector<6x8xf32> -> vector<6x8xf32>
    %443 = vector.extract_strided_slice %416 {offsets = [0, 0], sizes = [8, 32], strides = [1, 1]} : vector<32x32xf32> to vector<8x32xf32>
    %cst_196 = arith.constant dense<0.000000e+00> : vector<6x32xf32>
    %444 = tpu.matmul %442, %443, %cst_196 {dimension_numbers = #tpu.dot_dimension_numbers<[1], [0], [0], [1], [0, 0, 1, 1], [], []>} : vector<6x8xf32>, vector<8x32xf32>, vector<6x32xf32> -> vector<6x32xf32>
    %445 = vector.extract_strided_slice %424 {offsets = [0, 8], sizes = [6, 8], strides = [1, 1]} : vector<6x32xf32> to vector<6x8xf32>
    %446 = vector.extract_strided_slice %425 {offsets = [0, 8], sizes = [6, 8], strides = [1, 1]} : vector<6x32xf32> to vector<6x8xf32>
    %cst_197 = arith.constant dense<0.000000e+00> : vector<6x6xf32>
    %447 = tpu.matmul %445, %446, %cst_197 {dimension_numbers = #tpu.dot_dimension_numbers<[1], [1], [0], [0], [0, 0, 1, 0], [], []>} : vector<6x8xf32>, vector<6x8xf32>, vector<6x6xf32> -> vector<6x6xf32>
    %448 = arith.addf %447, %1 : vector<6x6xf32>
    %cst_198 = arith.constant dense<0xFF800000> : vector<6xf32>
    %449 = vector.multi_reduction <maximumf>, %448, %cst_198 [1] : vector<6x6xf32> to vector<6xf32>
    %450 = vector.shape_cast %449 : vector<6xf32> to vector<6x1xf32>
    %451 = vector.broadcast %450 : vector<6x1xf32> to vector<6x6xf32>
    %452 = arith.subf %448, %451 : vector<6x6xf32>
    %453 = math.exp %452 : vector<6x6xf32>
    %cst_199 = arith.constant dense<0.000000e+00> : vector<6xf32>
    %454 = vector.multi_reduction <add>, %453, %cst_199 [1] : vector<6x6xf32> to vector<6xf32>
    %455 = vector.shape_cast %454 : vector<6xf32> to vector<6x1xf32>
    %456 = tpu.reciprocal %455 {approx = true} : vector<6x1xf32> -> vector<6x1xf32>
    %457 = vector.broadcast %456 : vector<6x1xf32> to vector<6x6xf32>
    %458 = arith.mulf %453, %457 : vector<6x6xf32>
    %459 = vector.extract_strided_slice %426 {offsets = [0, 8], sizes = [6, 8], strides = [1, 1]} : vector<6x32xf32> to vector<6x8xf32>
    %cst_200 = arith.constant dense<0.000000e+00> : vector<6x8xf32>
    %460 = tpu.matmul %458, %459, %cst_200 {dimension_numbers = #tpu.dot_dimension_numbers<[1], [0], [0], [1], [0, 0, 1, 1], [], []>} : vector<6x6xf32>, vector<6x8xf32>, vector<6x8xf32> -> vector<6x8xf32>
    %461 = vector.extract_strided_slice %416 {offsets = [8, 0], sizes = [8, 32], strides = [1, 1]} : vector<32x32xf32> to vector<8x32xf32>
    %cst_201 = arith.constant dense<0.000000e+00> : vector<6x32xf32>
    %462 = tpu.matmul %460, %461, %cst_201 {dimension_numbers = #tpu.dot_dimension_numbers<[1], [0], [0], [1], [0, 0, 1, 1], [], []>} : vector<6x8xf32>, vector<8x32xf32>, vector<6x32xf32> -> vector<6x32xf32>
    %463 = arith.addf %444, %462 : vector<6x32xf32>
    %464 = vector.extract_strided_slice %424 {offsets = [0, 16], sizes = [6, 8], strides = [1, 1]} : vector<6x32xf32> to vector<6x8xf32>
    %465 = vector.extract_strided_slice %425 {offsets = [0, 16], sizes = [6, 8], strides = [1, 1]} : vector<6x32xf32> to vector<6x8xf32>
    %cst_202 = arith.constant dense<0.000000e+00> : vector<6x6xf32>
    %466 = tpu.matmul %464, %465, %cst_202 {dimension_numbers = #tpu.dot_dimension_numbers<[1], [1], [0], [0], [0, 0, 1, 0], [], []>} : vector<6x8xf32>, vector<6x8xf32>, vector<6x6xf32> -> vector<6x6xf32>
    %467 = arith.addf %466, %1 : vector<6x6xf32>
    %cst_203 = arith.constant dense<0xFF800000> : vector<6xf32>
    %468 = vector.multi_reduction <maximumf>, %467, %cst_203 [1] : vector<6x6xf32> to vector<6xf32>
    %469 = vector.shape_cast %468 : vector<6xf32> to vector<6x1xf32>
    %470 = vector.broadcast %469 : vector<6x1xf32> to vector<6x6xf32>
    %471 = arith.subf %467, %470 : vector<6x6xf32>
    %472 = math.exp %471 : vector<6x6xf32>
    %cst_204 = arith.constant dense<0.000000e+00> : vector<6xf32>
    %473 = vector.multi_reduction <add>, %472, %cst_204 [1] : vector<6x6xf32> to vector<6xf32>
    %474 = vector.shape_cast %473 : vector<6xf32> to vector<6x1xf32>
    %475 = tpu.reciprocal %474 {approx = true} : vector<6x1xf32> -> vector<6x1xf32>
    %476 = vector.broadcast %475 : vector<6x1xf32> to vector<6x6xf32>
    %477 = arith.mulf %472, %476 : vector<6x6xf32>
    %478 = vector.extract_strided_slice %426 {offsets = [0, 16], sizes = [6, 8], strides = [1, 1]} : vector<6x32xf32> to vector<6x8xf32>
    %cst_205 = arith.constant dense<0.000000e+00> : vector<6x8xf32>
    %479 = tpu.matmul %477, %478, %cst_205 {dimension_numbers = #tpu.dot_dimension_numbers<[1], [0], [0], [1], [0, 0, 1, 1], [], []>} : vector<6x6xf32>, vector<6x8xf32>, vector<6x8xf32> -> vector<6x8xf32>
    %480 = vector.extract_strided_slice %416 {offsets = [16, 0], sizes = [8, 32], strides = [1, 1]} : vector<32x32xf32> to vector<8x32xf32>
    %cst_206 = arith.constant dense<0.000000e+00> : vector<6x32xf32>
    %481 = tpu.matmul %479, %480, %cst_206 {dimension_numbers = #tpu.dot_dimension_numbers<[1], [0], [0], [1], [0, 0, 1, 1], [], []>} : vector<6x8xf32>, vector<8x32xf32>, vector<6x32xf32> -> vector<6x32xf32>
    %482 = arith.addf %463, %481 : vector<6x32xf32>
    %483 = vector.extract_strided_slice %424 {offsets = [0, 24], sizes = [6, 8], strides = [1, 1]} : vector<6x32xf32> to vector<6x8xf32>
    %484 = vector.extract_strided_slice %425 {offsets = [0, 24], sizes = [6, 8], strides = [1, 1]} : vector<6x32xf32> to vector<6x8xf32>
    %cst_207 = arith.constant dense<0.000000e+00> : vector<6x6xf32>
    %485 = tpu.matmul %483, %484, %cst_207 {dimension_numbers = #tpu.dot_dimension_numbers<[1], [1], [0], [0], [0, 0, 1, 0], [], []>} : vector<6x8xf32>, vector<6x8xf32>, vector<6x6xf32> -> vector<6x6xf32>
    %486 = arith.addf %485, %1 : vector<6x6xf32>
    %cst_208 = arith.constant dense<0xFF800000> : vector<6xf32>
    %487 = vector.multi_reduction <maximumf>, %486, %cst_208 [1] : vector<6x6xf32> to vector<6xf32>
    %488 = vector.shape_cast %487 : vector<6xf32> to vector<6x1xf32>
    %489 = vector.broadcast %488 : vector<6x1xf32> to vector<6x6xf32>
    %490 = arith.subf %486, %489 : vector<6x6xf32>
    %491 = math.exp %490 : vector<6x6xf32>
    %cst_209 = arith.constant dense<0.000000e+00> : vector<6xf32>
    %492 = vector.multi_reduction <add>, %491, %cst_209 [1] : vector<6x6xf32> to vector<6xf32>
    %493 = vector.shape_cast %492 : vector<6xf32> to vector<6x1xf32>
    %494 = tpu.reciprocal %493 {approx = true} : vector<6x1xf32> -> vector<6x1xf32>
    %495 = vector.broadcast %494 : vector<6x1xf32> to vector<6x6xf32>
    %496 = arith.mulf %491, %495 : vector<6x6xf32>
    %497 = vector.extract_strided_slice %426 {offsets = [0, 24], sizes = [6, 8], strides = [1, 1]} : vector<6x32xf32> to vector<6x8xf32>
    %cst_210 = arith.constant dense<0.000000e+00> : vector<6x8xf32>
    %498 = tpu.matmul %496, %497, %cst_210 {dimension_numbers = #tpu.dot_dimension_numbers<[1], [0], [0], [1], [0, 0, 1, 1], [], []>} : vector<6x6xf32>, vector<6x8xf32>, vector<6x8xf32> -> vector<6x8xf32>
    %499 = vector.extract_strided_slice %416 {offsets = [24, 0], sizes = [8, 32], strides = [1, 1]} : vector<32x32xf32> to vector<8x32xf32>
    %cst_211 = arith.constant dense<0.000000e+00> : vector<6x32xf32>
    %500 = tpu.matmul %498, %499, %cst_211 {dimension_numbers = #tpu.dot_dimension_numbers<[1], [0], [0], [1], [0, 0, 1, 1], [], []>} : vector<6x8xf32>, vector<8x32xf32>, vector<6x32xf32> -> vector<6x32xf32>
    %501 = arith.addf %482, %500 : vector<6x32xf32>
    %502 = vector.broadcast %418 : vector<1x32xf32> to vector<6x32xf32>
    %503 = arith.addf %501, %502 : vector<6x32xf32>
    %504 = arith.addf %44, %503 : vector<6x32xf32>
    %505 = vector.extract_strided_slice %408 {offsets = [0, 0], sizes = [1, 32], strides = [1, 1]} : vector<3x32xf32> to vector<1x32xf32>
    %506 = vector.extract_strided_slice %410 {offsets = [0, 0], sizes = [1, 32], strides = [1, 1]} : vector<3x32xf32> to vector<1x32xf32>
    %cst_212 = arith.constant dense<0.000000e+00> : vector<6xf32>
    %507 = vector.multi_reduction <add>, %504, %cst_212 [1] : vector<6x32xf32> to vector<6xf32>
    %508 = vector.shape_cast %507 : vector<6xf32> to vector<6x1xf32>
    %cst_213 = arith.constant 3.200000e+01 : f32
    %509 = vector.broadcast %cst_213 : f32 to vector<6x1xf32>
    %510 = arith.divf %508, %509 : vector<6x1xf32>
    %511 = vector.broadcast %510 : vector<6x1xf32> to vector<6x32xf32>
    %512 = arith.subf %504, %511 : vector<6x32xf32>
    %513 = arith.mulf %512, %512 : vector<6x32xf32>
    %cst_214 = arith.constant dense<0.000000e+00> : vector<6xf32>
    %514 = vector.multi_reduction <add>, %513, %cst_214 [1] : vector<6x32xf32> to vector<6xf32>
    %515 = vector.shape_cast %514 : vector<6xf32> to vector<6x1xf32>
    %cst_215 = arith.constant 3.200000e+01 : f32
    %516 = vector.broadcast %cst_215 : f32 to vector<6x1xf32>
    %517 = arith.divf %515, %516 : vector<6x1xf32>
    %cst_216 = arith.constant 9.99999974E-6 : f32
    %518 = vector.broadcast %cst_216 : f32 to vector<6x1xf32>
    %519 = arith.addf %517, %518 : vector<6x1xf32>
    %520 = math.rsqrt %519 : vector<6x1xf32>
    %521 = vector.broadcast %520 : vector<6x1xf32> to vector<6x32xf32>
    %522 = arith.mulf %512, %521 : vector<6x32xf32>
    %523 = vector.broadcast %505 : vector<1x32xf32> to vector<6x32xf32>
    %524 = arith.mulf %522, %523 : vector<6x32xf32>
    %525 = vector.broadcast %506 : vector<1x32xf32> to vector<6x32xf32>
    %526 = arith.addf %524, %525 : vector<6x32xf32>
    %c0_217 = arith.constant 0 : index
    %c0_218 = arith.constant 0 : index
    %c0_219 = arith.constant 0 : index
    %527 = vector.load %arg26[%c0_217, %c0_218, %c0_219] : memref<2x32x32xf32, #tpu.memory_space<vmem>>, vector<1x32x32xf32>
    %528 = vector.shape_cast %527 : vector<1x32x32xf32> to vector<32x32xf32>
    %c0_220 = arith.constant 0 : index
    %c0_221 = arith.constant 0 : index
    %c0_222 = arith.constant 0 : index
    %529 = vector.load %arg17[%c0_220, %c0_221, %c0_222] : memref<2x1x32xf32, #tpu.memory_space<vmem>>, vector<1x1x32xf32>
    %530 = vector.shape_cast %529 : vector<1x1x32xf32> to vector<1x32xf32>
    %c0_223 = arith.constant 0 : index
    %c0_224 = arith.constant 0 : index
    %c0_225 = arith.constant 0 : index
    %531 = vector.load %arg23[%c0_223, %c0_224, %c0_225] : memref<2x32x64xf32, #tpu.memory_space<vmem>>, vector<1x32x64xf32>
    %532 = vector.shape_cast %531 : vector<1x32x64xf32> to vector<32x64xf32>
    %c0_226 = arith.constant 0 : index
    %c0_227 = arith.constant 0 : index
    %c0_228 = arith.constant 0 : index
    %533 = vector.load %arg14[%c0_226, %c0_227, %c0_228] : memref<2x1x64xf32, #tpu.memory_space<vmem>>, vector<1x1x64xf32>
    %534 = vector.shape_cast %533 : vector<1x1x64xf32> to vector<1x64xf32>
    %c0_229 = arith.constant 0 : index
    %c0_230 = arith.constant 0 : index
    %c0_231 = arith.constant 0 : index
    %535 = vector.load %arg24[%c0_229, %c0_230, %c0_231] : memref<2x32x32xf32, #tpu.memory_space<vmem>>, vector<1x32x32xf32>
    %536 = vector.shape_cast %535 : vector<1x32x32xf32> to vector<32x32xf32>
    %c0_232 = arith.constant 0 : index
    %c0_233 = arith.constant 0 : index
    %c0_234 = arith.constant 0 : index
    %537 = vector.load %arg15[%c0_232, %c0_233, %c0_234] : memref<2x1x32xf32, #tpu.memory_space<vmem>>, vector<1x1x32xf32>
    %538 = vector.shape_cast %537 : vector<1x1x32xf32> to vector<1x32xf32>
    %cst_235 = arith.constant dense<0.000000e+00> : vector<6x32xf32>
    %539 = tpu.matmul %526, %528, %cst_235 {dimension_numbers = #tpu.dot_dimension_numbers<[1], [0], [0], [1], [0, 0, 1, 1], [], []>} : vector<6x32xf32>, vector<32x32xf32>, vector<6x32xf32> -> vector<6x32xf32>
    %540 = vector.broadcast %530 : vector<1x32xf32> to vector<6x32xf32>
    %541 = arith.addf %539, %540 : vector<6x32xf32>
    %cst_236 = arith.constant 0.353553385 : f32
    %542 = vector.broadcast %cst_236 : f32 to vector<6x32xf32>
    %543 = arith.mulf %541, %542 : vector<6x32xf32>
    %cst_237 = arith.constant dense<0.000000e+00> : vector<18x64xf32>
    %544 = tpu.matmul %406, %532, %cst_237 {dimension_numbers = #tpu.dot_dimension_numbers<[1], [0], [0], [1], [0, 0, 1, 1], [], []>} : vector<18x32xf32>, vector<32x64xf32>, vector<18x64xf32> -> vector<18x64xf32>
    %545 = vector.broadcast %534 : vector<1x64xf32> to vector<18x64xf32>
    %546 = arith.addf %544, %545 : vector<18x64xf32>
    %547 = vector.extract_strided_slice %546 {offsets = [0, 0], sizes = [18, 32], strides = [1, 1]} : vector<18x64xf32> to vector<18x32xf32>
    %548 = vector.extract_strided_slice %546 {offsets = [0, 32], sizes = [18, 32], strides = [1, 1]} : vector<18x64xf32> to vector<18x32xf32>
    %549 = vector.extract_strided_slice %543 {offsets = [0, 0], sizes = [6, 8], strides = [1, 1]} : vector<6x32xf32> to vector<6x8xf32>
    %550 = vector.extract_strided_slice %547 {offsets = [0, 0], sizes = [18, 8], strides = [1, 1]} : vector<18x32xf32> to vector<18x8xf32>
    %cst_238 = arith.constant dense<0.000000e+00> : vector<6x18xf32>
    %551 = tpu.matmul %549, %550, %cst_238 {dimension_numbers = #tpu.dot_dimension_numbers<[1], [1], [0], [0], [0, 0, 1, 0], [], []>} : vector<6x8xf32>, vector<18x8xf32>, vector<6x18xf32> -> vector<6x18xf32>
    %552 = arith.addf %551, %2 : vector<6x18xf32>
    %cst_239 = arith.constant dense<0xFF800000> : vector<6xf32>
    %553 = vector.multi_reduction <maximumf>, %552, %cst_239 [1] : vector<6x18xf32> to vector<6xf32>
    %554 = vector.shape_cast %553 : vector<6xf32> to vector<6x1xf32>
    %555 = vector.broadcast %554 : vector<6x1xf32> to vector<6x18xf32>
    %556 = arith.subf %552, %555 : vector<6x18xf32>
    %557 = math.exp %556 : vector<6x18xf32>
    %cst_240 = arith.constant dense<0.000000e+00> : vector<6xf32>
    %558 = vector.multi_reduction <add>, %557, %cst_240 [1] : vector<6x18xf32> to vector<6xf32>
    %559 = vector.shape_cast %558 : vector<6xf32> to vector<6x1xf32>
    %560 = tpu.reciprocal %559 {approx = true} : vector<6x1xf32> -> vector<6x1xf32>
    %561 = vector.broadcast %560 : vector<6x1xf32> to vector<6x18xf32>
    %562 = arith.mulf %557, %561 : vector<6x18xf32>
    %563 = vector.extract_strided_slice %548 {offsets = [0, 0], sizes = [18, 8], strides = [1, 1]} : vector<18x32xf32> to vector<18x8xf32>
    %cst_241 = arith.constant dense<0.000000e+00> : vector<6x8xf32>
    %564 = tpu.matmul %562, %563, %cst_241 {dimension_numbers = #tpu.dot_dimension_numbers<[1], [0], [0], [1], [0, 0, 1, 1], [], []>} : vector<6x18xf32>, vector<18x8xf32>, vector<6x8xf32> -> vector<6x8xf32>
    %565 = vector.extract_strided_slice %536 {offsets = [0, 0], sizes = [8, 32], strides = [1, 1]} : vector<32x32xf32> to vector<8x32xf32>
    %cst_242 = arith.constant dense<0.000000e+00> : vector<6x32xf32>
    %566 = tpu.matmul %564, %565, %cst_242 {dimension_numbers = #tpu.dot_dimension_numbers<[1], [0], [0], [1], [0, 0, 1, 1], [], []>} : vector<6x8xf32>, vector<8x32xf32>, vector<6x32xf32> -> vector<6x32xf32>
    %567 = vector.extract_strided_slice %543 {offsets = [0, 8], sizes = [6, 8], strides = [1, 1]} : vector<6x32xf32> to vector<6x8xf32>
    %568 = vector.extract_strided_slice %547 {offsets = [0, 8], sizes = [18, 8], strides = [1, 1]} : vector<18x32xf32> to vector<18x8xf32>
    %cst_243 = arith.constant dense<0.000000e+00> : vector<6x18xf32>
    %569 = tpu.matmul %567, %568, %cst_243 {dimension_numbers = #tpu.dot_dimension_numbers<[1], [1], [0], [0], [0, 0, 1, 0], [], []>} : vector<6x8xf32>, vector<18x8xf32>, vector<6x18xf32> -> vector<6x18xf32>
    %570 = arith.addf %569, %2 : vector<6x18xf32>
    %cst_244 = arith.constant dense<0xFF800000> : vector<6xf32>
    %571 = vector.multi_reduction <maximumf>, %570, %cst_244 [1] : vector<6x18xf32> to vector<6xf32>
    %572 = vector.shape_cast %571 : vector<6xf32> to vector<6x1xf32>
    %573 = vector.broadcast %572 : vector<6x1xf32> to vector<6x18xf32>
    %574 = arith.subf %570, %573 : vector<6x18xf32>
    %575 = math.exp %574 : vector<6x18xf32>
    %cst_245 = arith.constant dense<0.000000e+00> : vector<6xf32>
    %576 = vector.multi_reduction <add>, %575, %cst_245 [1] : vector<6x18xf32> to vector<6xf32>
    %577 = vector.shape_cast %576 : vector<6xf32> to vector<6x1xf32>
    %578 = tpu.reciprocal %577 {approx = true} : vector<6x1xf32> -> vector<6x1xf32>
    %579 = vector.broadcast %578 : vector<6x1xf32> to vector<6x18xf32>
    %580 = arith.mulf %575, %579 : vector<6x18xf32>
    %581 = vector.extract_strided_slice %548 {offsets = [0, 8], sizes = [18, 8], strides = [1, 1]} : vector<18x32xf32> to vector<18x8xf32>
    %cst_246 = arith.constant dense<0.000000e+00> : vector<6x8xf32>
    %582 = tpu.matmul %580, %581, %cst_246 {dimension_numbers = #tpu.dot_dimension_numbers<[1], [0], [0], [1], [0, 0, 1, 1], [], []>} : vector<6x18xf32>, vector<18x8xf32>, vector<6x8xf32> -> vector<6x8xf32>
    %583 = vector.extract_strided_slice %536 {offsets = [8, 0], sizes = [8, 32], strides = [1, 1]} : vector<32x32xf32> to vector<8x32xf32>
    %cst_247 = arith.constant dense<0.000000e+00> : vector<6x32xf32>
    %584 = tpu.matmul %582, %583, %cst_247 {dimension_numbers = #tpu.dot_dimension_numbers<[1], [0], [0], [1], [0, 0, 1, 1], [], []>} : vector<6x8xf32>, vector<8x32xf32>, vector<6x32xf32> -> vector<6x32xf32>
    %585 = arith.addf %566, %584 : vector<6x32xf32>
    %586 = vector.extract_strided_slice %543 {offsets = [0, 16], sizes = [6, 8], strides = [1, 1]} : vector<6x32xf32> to vector<6x8xf32>
    %587 = vector.extract_strided_slice %547 {offsets = [0, 16], sizes = [18, 8], strides = [1, 1]} : vector<18x32xf32> to vector<18x8xf32>
    %cst_248 = arith.constant dense<0.000000e+00> : vector<6x18xf32>
    %588 = tpu.matmul %586, %587, %cst_248 {dimension_numbers = #tpu.dot_dimension_numbers<[1], [1], [0], [0], [0, 0, 1, 0], [], []>} : vector<6x8xf32>, vector<18x8xf32>, vector<6x18xf32> -> vector<6x18xf32>
    %589 = arith.addf %588, %2 : vector<6x18xf32>
    %cst_249 = arith.constant dense<0xFF800000> : vector<6xf32>
    %590 = vector.multi_reduction <maximumf>, %589, %cst_249 [1] : vector<6x18xf32> to vector<6xf32>
    %591 = vector.shape_cast %590 : vector<6xf32> to vector<6x1xf32>
    %592 = vector.broadcast %591 : vector<6x1xf32> to vector<6x18xf32>
    %593 = arith.subf %589, %592 : vector<6x18xf32>
    %594 = math.exp %593 : vector<6x18xf32>
    %cst_250 = arith.constant dense<0.000000e+00> : vector<6xf32>
    %595 = vector.multi_reduction <add>, %594, %cst_250 [1] : vector<6x18xf32> to vector<6xf32>
    %596 = vector.shape_cast %595 : vector<6xf32> to vector<6x1xf32>
    %597 = tpu.reciprocal %596 {approx = true} : vector<6x1xf32> -> vector<6x1xf32>
    %598 = vector.broadcast %597 : vector<6x1xf32> to vector<6x18xf32>
    %599 = arith.mulf %594, %598 : vector<6x18xf32>
    %600 = vector.extract_strided_slice %548 {offsets = [0, 16], sizes = [18, 8], strides = [1, 1]} : vector<18x32xf32> to vector<18x8xf32>
    %cst_251 = arith.constant dense<0.000000e+00> : vector<6x8xf32>
    %601 = tpu.matmul %599, %600, %cst_251 {dimension_numbers = #tpu.dot_dimension_numbers<[1], [0], [0], [1], [0, 0, 1, 1], [], []>} : vector<6x18xf32>, vector<18x8xf32>, vector<6x8xf32> -> vector<6x8xf32>
    %602 = vector.extract_strided_slice %536 {offsets = [16, 0], sizes = [8, 32], strides = [1, 1]} : vector<32x32xf32> to vector<8x32xf32>
    %cst_252 = arith.constant dense<0.000000e+00> : vector<6x32xf32>
    %603 = tpu.matmul %601, %602, %cst_252 {dimension_numbers = #tpu.dot_dimension_numbers<[1], [0], [0], [1], [0, 0, 1, 1], [], []>} : vector<6x8xf32>, vector<8x32xf32>, vector<6x32xf32> -> vector<6x32xf32>
    %604 = arith.addf %585, %603 : vector<6x32xf32>
    %605 = vector.extract_strided_slice %543 {offsets = [0, 24], sizes = [6, 8], strides = [1, 1]} : vector<6x32xf32> to vector<6x8xf32>
    %606 = vector.extract_strided_slice %547 {offsets = [0, 24], sizes = [18, 8], strides = [1, 1]} : vector<18x32xf32> to vector<18x8xf32>
    %cst_253 = arith.constant dense<0.000000e+00> : vector<6x18xf32>
    %607 = tpu.matmul %605, %606, %cst_253 {dimension_numbers = #tpu.dot_dimension_numbers<[1], [1], [0], [0], [0, 0, 1, 0], [], []>} : vector<6x8xf32>, vector<18x8xf32>, vector<6x18xf32> -> vector<6x18xf32>
    %608 = arith.addf %607, %2 : vector<6x18xf32>
    %cst_254 = arith.constant dense<0xFF800000> : vector<6xf32>
    %609 = vector.multi_reduction <maximumf>, %608, %cst_254 [1] : vector<6x18xf32> to vector<6xf32>
    %610 = vector.shape_cast %609 : vector<6xf32> to vector<6x1xf32>
    %611 = vector.broadcast %610 : vector<6x1xf32> to vector<6x18xf32>
    %612 = arith.subf %608, %611 : vector<6x18xf32>
    %613 = math.exp %612 : vector<6x18xf32>
    %cst_255 = arith.constant dense<0.000000e+00> : vector<6xf32>
    %614 = vector.multi_reduction <add>, %613, %cst_255 [1] : vector<6x18xf32> to vector<6xf32>
    %615 = vector.shape_cast %614 : vector<6xf32> to vector<6x1xf32>
    %616 = tpu.reciprocal %615 {approx = true} : vector<6x1xf32> -> vector<6x1xf32>
    %617 = vector.broadcast %616 : vector<6x1xf32> to vector<6x18xf32>
    %618 = arith.mulf %613, %617 : vector<6x18xf32>
    %619 = vector.extract_strided_slice %548 {offsets = [0, 24], sizes = [18, 8], strides = [1, 1]} : vector<18x32xf32> to vector<18x8xf32>
    %cst_256 = arith.constant dense<0.000000e+00> : vector<6x8xf32>
    %620 = tpu.matmul %618, %619, %cst_256 {dimension_numbers = #tpu.dot_dimension_numbers<[1], [0], [0], [1], [0, 0, 1, 1], [], []>} : vector<6x18xf32>, vector<18x8xf32>, vector<6x8xf32> -> vector<6x8xf32>
    %621 = vector.extract_strided_slice %536 {offsets = [24, 0], sizes = [8, 32], strides = [1, 1]} : vector<32x32xf32> to vector<8x32xf32>
    %cst_257 = arith.constant dense<0.000000e+00> : vector<6x32xf32>
    %622 = tpu.matmul %620, %621, %cst_257 {dimension_numbers = #tpu.dot_dimension_numbers<[1], [0], [0], [1], [0, 0, 1, 1], [], []>} : vector<6x8xf32>, vector<8x32xf32>, vector<6x32xf32> -> vector<6x32xf32>
    %623 = arith.addf %604, %622 : vector<6x32xf32>
    %624 = vector.broadcast %538 : vector<1x32xf32> to vector<6x32xf32>
    %625 = arith.addf %623, %624 : vector<6x32xf32>
    %626 = arith.addf %526, %625 : vector<6x32xf32>
    %627 = vector.extract_strided_slice %408 {offsets = [1, 0], sizes = [1, 32], strides = [1, 1]} : vector<3x32xf32> to vector<1x32xf32>
    %628 = vector.extract_strided_slice %410 {offsets = [1, 0], sizes = [1, 32], strides = [1, 1]} : vector<3x32xf32> to vector<1x32xf32>
    %cst_258 = arith.constant dense<0.000000e+00> : vector<6xf32>
    %629 = vector.multi_reduction <add>, %626, %cst_258 [1] : vector<6x32xf32> to vector<6xf32>
    %630 = vector.shape_cast %629 : vector<6xf32> to vector<6x1xf32>
    %cst_259 = arith.constant 3.200000e+01 : f32
    %631 = vector.broadcast %cst_259 : f32 to vector<6x1xf32>
    %632 = arith.divf %630, %631 : vector<6x1xf32>
    %633 = vector.broadcast %632 : vector<6x1xf32> to vector<6x32xf32>
    %634 = arith.subf %626, %633 : vector<6x32xf32>
    %635 = arith.mulf %634, %634 : vector<6x32xf32>
    %cst_260 = arith.constant dense<0.000000e+00> : vector<6xf32>
    %636 = vector.multi_reduction <add>, %635, %cst_260 [1] : vector<6x32xf32> to vector<6xf32>
    %637 = vector.shape_cast %636 : vector<6xf32> to vector<6x1xf32>
    %cst_261 = arith.constant 3.200000e+01 : f32
    %638 = vector.broadcast %cst_261 : f32 to vector<6x1xf32>
    %639 = arith.divf %637, %638 : vector<6x1xf32>
    %cst_262 = arith.constant 9.99999974E-6 : f32
    %640 = vector.broadcast %cst_262 : f32 to vector<6x1xf32>
    %641 = arith.addf %639, %640 : vector<6x1xf32>
    %642 = math.rsqrt %641 : vector<6x1xf32>
    %643 = vector.broadcast %642 : vector<6x1xf32> to vector<6x32xf32>
    %644 = arith.mulf %634, %643 : vector<6x32xf32>
    %645 = vector.broadcast %627 : vector<1x32xf32> to vector<6x32xf32>
    %646 = arith.mulf %644, %645 : vector<6x32xf32>
    %647 = vector.broadcast %628 : vector<1x32xf32> to vector<6x32xf32>
    %648 = arith.addf %646, %647 : vector<6x32xf32>
    %c0_263 = arith.constant 0 : index
    %c0_264 = arith.constant 0 : index
    %c0_265 = arith.constant 0 : index
    %649 = vector.load %arg21[%c0_263, %c0_264, %c0_265] : memref<2x32x64xf32, #tpu.memory_space<vmem>>, vector<1x32x64xf32>
    %650 = vector.shape_cast %649 : vector<1x32x64xf32> to vector<32x64xf32>
    %c0_266 = arith.constant 0 : index
    %c0_267 = arith.constant 0 : index
    %c0_268 = arith.constant 0 : index
    %651 = vector.load %arg12[%c0_266, %c0_267, %c0_268] : memref<2x1x64xf32, #tpu.memory_space<vmem>>, vector<1x1x64xf32>
    %652 = vector.shape_cast %651 : vector<1x1x64xf32> to vector<1x64xf32>
    %c0_269 = arith.constant 0 : index
    %c0_270 = arith.constant 0 : index
    %c0_271 = arith.constant 0 : index
    %653 = vector.load %arg22[%c0_269, %c0_270, %c0_271] : memref<2x64x32xf32, #tpu.memory_space<vmem>>, vector<1x64x32xf32>
    %654 = vector.shape_cast %653 : vector<1x64x32xf32> to vector<64x32xf32>
    %c0_272 = arith.constant 0 : index
    %c0_273 = arith.constant 0 : index
    %c0_274 = arith.constant 0 : index
    %655 = vector.load %arg13[%c0_272, %c0_273, %c0_274] : memref<2x1x32xf32, #tpu.memory_space<vmem>>, vector<1x1x32xf32>
    %656 = vector.shape_cast %655 : vector<1x1x32xf32> to vector<1x32xf32>
    %cst_275 = arith.constant dense<0.000000e+00> : vector<6x64xf32>
    %657 = tpu.matmul %648, %650, %cst_275 {dimension_numbers = #tpu.dot_dimension_numbers<[1], [0], [0], [1], [0, 0, 1, 1], [], []>} : vector<6x32xf32>, vector<32x64xf32>, vector<6x64xf32> -> vector<6x64xf32>
    %658 = vector.broadcast %652 : vector<1x64xf32> to vector<6x64xf32>
    %659 = arith.addf %657, %658 : vector<6x64xf32>
    %cst_276 = arith.constant 5.000000e-01 : f32
    %660 = vector.broadcast %cst_276 : f32 to vector<6x64xf32>
    %661 = arith.mulf %660, %659 : vector<6x64xf32>
    %cst_277 = arith.constant 4.471500e-02 : f32
    %662 = vector.broadcast %cst_277 : f32 to vector<6x64xf32>
    %663 = arith.mulf %662, %659 : vector<6x64xf32>
    %664 = arith.mulf %663, %659 : vector<6x64xf32>
    %665 = arith.mulf %664, %659 : vector<6x64xf32>
    %666 = arith.addf %659, %665 : vector<6x64xf32>
    %cst_278 = arith.constant 0.797884583 : f32
    %667 = vector.broadcast %cst_278 : f32 to vector<6x64xf32>
    %668 = arith.mulf %667, %666 : vector<6x64xf32>
    %669 = math.tanh %668 : vector<6x64xf32>
    %cst_279 = arith.constant 1.000000e+00 : f32
    %670 = vector.broadcast %cst_279 : f32 to vector<6x64xf32>
    %671 = arith.addf %670, %669 : vector<6x64xf32>
    %672 = arith.mulf %661, %671 : vector<6x64xf32>
    %cst_280 = arith.constant dense<0.000000e+00> : vector<6x32xf32>
    %673 = tpu.matmul %672, %654, %cst_280 {dimension_numbers = #tpu.dot_dimension_numbers<[1], [0], [0], [1], [0, 0, 1, 1], [], []>} : vector<6x64xf32>, vector<64x32xf32>, vector<6x32xf32> -> vector<6x32xf32>
    %674 = vector.broadcast %656 : vector<1x32xf32> to vector<6x32xf32>
    %675 = arith.addf %673, %674 : vector<6x32xf32>
    %676 = arith.addf %648, %675 : vector<6x32xf32>
    %677 = vector.extract_strided_slice %408 {offsets = [2, 0], sizes = [1, 32], strides = [1, 1]} : vector<3x32xf32> to vector<1x32xf32>
    %678 = vector.extract_strided_slice %410 {offsets = [2, 0], sizes = [1, 32], strides = [1, 1]} : vector<3x32xf32> to vector<1x32xf32>
    %cst_281 = arith.constant dense<0.000000e+00> : vector<6xf32>
    %679 = vector.multi_reduction <add>, %676, %cst_281 [1] : vector<6x32xf32> to vector<6xf32>
    %680 = vector.shape_cast %679 : vector<6xf32> to vector<6x1xf32>
    %cst_282 = arith.constant 3.200000e+01 : f32
    %681 = vector.broadcast %cst_282 : f32 to vector<6x1xf32>
    %682 = arith.divf %680, %681 : vector<6x1xf32>
    %683 = vector.broadcast %682 : vector<6x1xf32> to vector<6x32xf32>
    %684 = arith.subf %676, %683 : vector<6x32xf32>
    %685 = arith.mulf %684, %684 : vector<6x32xf32>
    %cst_283 = arith.constant dense<0.000000e+00> : vector<6xf32>
    %686 = vector.multi_reduction <add>, %685, %cst_283 [1] : vector<6x32xf32> to vector<6xf32>
    %687 = vector.shape_cast %686 : vector<6xf32> to vector<6x1xf32>
    %cst_284 = arith.constant 3.200000e+01 : f32
    %688 = vector.broadcast %cst_284 : f32 to vector<6x1xf32>
    %689 = arith.divf %687, %688 : vector<6x1xf32>
    %cst_285 = arith.constant 9.99999974E-6 : f32
    %690 = vector.broadcast %cst_285 : f32 to vector<6x1xf32>
    %691 = arith.addf %689, %690 : vector<6x1xf32>
    %692 = math.rsqrt %691 : vector<6x1xf32>
    %693 = vector.broadcast %692 : vector<6x1xf32> to vector<6x32xf32>
    %694 = arith.mulf %684, %693 : vector<6x32xf32>
    %695 = vector.broadcast %677 : vector<1x32xf32> to vector<6x32xf32>
    %696 = arith.mulf %694, %695 : vector<6x32xf32>
    %697 = vector.broadcast %678 : vector<1x32xf32> to vector<6x32xf32>
    %698 = arith.addf %696, %697 : vector<6x32xf32>
    %c1_286 = arith.constant 1 : index
    %c0_287 = arith.constant 0 : index
    %c0_288 = arith.constant 0 : index
    %699 = vector.load %arg20[%c1_286, %c0_287, %c0_288] : memref<2x3x32xf32, #tpu.memory_space<vmem>>, vector<1x3x32xf32>
    %700 = vector.shape_cast %699 : vector<1x3x32xf32> to vector<3x32xf32>
    %c1_289 = arith.constant 1 : index
    %c0_290 = arith.constant 0 : index
    %c0_291 = arith.constant 0 : index
    %701 = vector.load %arg19[%c1_289, %c0_290, %c0_291] : memref<2x3x32xf32, #tpu.memory_space<vmem>>, vector<1x3x32xf32>
    %702 = vector.shape_cast %701 : vector<1x3x32xf32> to vector<3x32xf32>
    %c1_292 = arith.constant 1 : index
    %c0_293 = arith.constant 0 : index
    %c0_294 = arith.constant 0 : index
    %703 = vector.load %arg27[%c1_292, %c0_293, %c0_294] : memref<2x32x96xf32, #tpu.memory_space<vmem>>, vector<1x32x96xf32>
    %704 = vector.shape_cast %703 : vector<1x32x96xf32> to vector<32x96xf32>
    %c1_295 = arith.constant 1 : index
    %c0_296 = arith.constant 0 : index
    %c0_297 = arith.constant 0 : index
    %705 = vector.load %arg18[%c1_295, %c0_296, %c0_297] : memref<2x1x96xf32, #tpu.memory_space<vmem>>, vector<1x1x96xf32>
    %706 = vector.shape_cast %705 : vector<1x1x96xf32> to vector<1x96xf32>
    %c1_298 = arith.constant 1 : index
    %c0_299 = arith.constant 0 : index
    %c0_300 = arith.constant 0 : index
    %707 = vector.load %arg25[%c1_298, %c0_299, %c0_300] : memref<2x32x32xf32, #tpu.memory_space<vmem>>, vector<1x32x32xf32>
    %708 = vector.shape_cast %707 : vector<1x32x32xf32> to vector<32x32xf32>
    %c1_301 = arith.constant 1 : index
    %c0_302 = arith.constant 0 : index
    %c0_303 = arith.constant 0 : index
    %709 = vector.load %arg16[%c1_301, %c0_302, %c0_303] : memref<2x1x32xf32, #tpu.memory_space<vmem>>, vector<1x1x32xf32>
    %710 = vector.shape_cast %709 : vector<1x1x32xf32> to vector<1x32xf32>
    %cst_304 = arith.constant dense<0.000000e+00> : vector<6x96xf32>
    %711 = tpu.matmul %698, %704, %cst_304 {dimension_numbers = #tpu.dot_dimension_numbers<[1], [0], [0], [1], [0, 0, 1, 1], [], []>} : vector<6x32xf32>, vector<32x96xf32>, vector<6x96xf32> -> vector<6x96xf32>
    %712 = vector.broadcast %706 : vector<1x96xf32> to vector<6x96xf32>
    %713 = arith.addf %711, %712 : vector<6x96xf32>
    %714 = vector.extract_strided_slice %713 {offsets = [0, 0], sizes = [6, 32], strides = [1, 1]} : vector<6x96xf32> to vector<6x32xf32>
    %cst_305 = arith.constant 0.353553385 : f32
    %715 = vector.broadcast %cst_305 : f32 to vector<6x32xf32>
    %716 = arith.mulf %714, %715 : vector<6x32xf32>
    %717 = vector.extract_strided_slice %713 {offsets = [0, 32], sizes = [6, 32], strides = [1, 1]} : vector<6x96xf32> to vector<6x32xf32>
    %718 = vector.extract_strided_slice %713 {offsets = [0, 64], sizes = [6, 32], strides = [1, 1]} : vector<6x96xf32> to vector<6x32xf32>
    %719 = vector.extract_strided_slice %716 {offsets = [0, 0], sizes = [6, 8], strides = [1, 1]} : vector<6x32xf32> to vector<6x8xf32>
    %720 = vector.extract_strided_slice %717 {offsets = [0, 0], sizes = [6, 8], strides = [1, 1]} : vector<6x32xf32> to vector<6x8xf32>
    %cst_306 = arith.constant dense<0.000000e+00> : vector<6x6xf32>
    %721 = tpu.matmul %719, %720, %cst_306 {dimension_numbers = #tpu.dot_dimension_numbers<[1], [1], [0], [0], [0, 0, 1, 0], [], []>} : vector<6x8xf32>, vector<6x8xf32>, vector<6x6xf32> -> vector<6x6xf32>
    %722 = arith.addf %721, %1 : vector<6x6xf32>
    %cst_307 = arith.constant dense<0xFF800000> : vector<6xf32>
    %723 = vector.multi_reduction <maximumf>, %722, %cst_307 [1] : vector<6x6xf32> to vector<6xf32>
    %724 = vector.shape_cast %723 : vector<6xf32> to vector<6x1xf32>
    %725 = vector.broadcast %724 : vector<6x1xf32> to vector<6x6xf32>
    %726 = arith.subf %722, %725 : vector<6x6xf32>
    %727 = math.exp %726 : vector<6x6xf32>
    %cst_308 = arith.constant dense<0.000000e+00> : vector<6xf32>
    %728 = vector.multi_reduction <add>, %727, %cst_308 [1] : vector<6x6xf32> to vector<6xf32>
    %729 = vector.shape_cast %728 : vector<6xf32> to vector<6x1xf32>
    %730 = tpu.reciprocal %729 {approx = true} : vector<6x1xf32> -> vector<6x1xf32>
    %731 = vector.broadcast %730 : vector<6x1xf32> to vector<6x6xf32>
    %732 = arith.mulf %727, %731 : vector<6x6xf32>
    %733 = vector.extract_strided_slice %718 {offsets = [0, 0], sizes = [6, 8], strides = [1, 1]} : vector<6x32xf32> to vector<6x8xf32>
    %cst_309 = arith.constant dense<0.000000e+00> : vector<6x8xf32>
    %734 = tpu.matmul %732, %733, %cst_309 {dimension_numbers = #tpu.dot_dimension_numbers<[1], [0], [0], [1], [0, 0, 1, 1], [], []>} : vector<6x6xf32>, vector<6x8xf32>, vector<6x8xf32> -> vector<6x8xf32>
    %735 = vector.extract_strided_slice %708 {offsets = [0, 0], sizes = [8, 32], strides = [1, 1]} : vector<32x32xf32> to vector<8x32xf32>
    %cst_310 = arith.constant dense<0.000000e+00> : vector<6x32xf32>
    %736 = tpu.matmul %734, %735, %cst_310 {dimension_numbers = #tpu.dot_dimension_numbers<[1], [0], [0], [1], [0, 0, 1, 1], [], []>} : vector<6x8xf32>, vector<8x32xf32>, vector<6x32xf32> -> vector<6x32xf32>
    %737 = vector.extract_strided_slice %716 {offsets = [0, 8], sizes = [6, 8], strides = [1, 1]} : vector<6x32xf32> to vector<6x8xf32>
    %738 = vector.extract_strided_slice %717 {offsets = [0, 8], sizes = [6, 8], strides = [1, 1]} : vector<6x32xf32> to vector<6x8xf32>
    %cst_311 = arith.constant dense<0.000000e+00> : vector<6x6xf32>
    %739 = tpu.matmul %737, %738, %cst_311 {dimension_numbers = #tpu.dot_dimension_numbers<[1], [1], [0], [0], [0, 0, 1, 0], [], []>} : vector<6x8xf32>, vector<6x8xf32>, vector<6x6xf32> -> vector<6x6xf32>
    %740 = arith.addf %739, %1 : vector<6x6xf32>
    %cst_312 = arith.constant dense<0xFF800000> : vector<6xf32>
    %741 = vector.multi_reduction <maximumf>, %740, %cst_312 [1] : vector<6x6xf32> to vector<6xf32>
    %742 = vector.shape_cast %741 : vector<6xf32> to vector<6x1xf32>
    %743 = vector.broadcast %742 : vector<6x1xf32> to vector<6x6xf32>
    %744 = arith.subf %740, %743 : vector<6x6xf32>
    %745 = math.exp %744 : vector<6x6xf32>
    %cst_313 = arith.constant dense<0.000000e+00> : vector<6xf32>
    %746 = vector.multi_reduction <add>, %745, %cst_313 [1] : vector<6x6xf32> to vector<6xf32>
    %747 = vector.shape_cast %746 : vector<6xf32> to vector<6x1xf32>
    %748 = tpu.reciprocal %747 {approx = true} : vector<6x1xf32> -> vector<6x1xf32>
    %749 = vector.broadcast %748 : vector<6x1xf32> to vector<6x6xf32>
    %750 = arith.mulf %745, %749 : vector<6x6xf32>
    %751 = vector.extract_strided_slice %718 {offsets = [0, 8], sizes = [6, 8], strides = [1, 1]} : vector<6x32xf32> to vector<6x8xf32>
    %cst_314 = arith.constant dense<0.000000e+00> : vector<6x8xf32>
    %752 = tpu.matmul %750, %751, %cst_314 {dimension_numbers = #tpu.dot_dimension_numbers<[1], [0], [0], [1], [0, 0, 1, 1], [], []>} : vector<6x6xf32>, vector<6x8xf32>, vector<6x8xf32> -> vector<6x8xf32>
    %753 = vector.extract_strided_slice %708 {offsets = [8, 0], sizes = [8, 32], strides = [1, 1]} : vector<32x32xf32> to vector<8x32xf32>
    %cst_315 = arith.constant dense<0.000000e+00> : vector<6x32xf32>
    %754 = tpu.matmul %752, %753, %cst_315 {dimension_numbers = #tpu.dot_dimension_numbers<[1], [0], [0], [1], [0, 0, 1, 1], [], []>} : vector<6x8xf32>, vector<8x32xf32>, vector<6x32xf32> -> vector<6x32xf32>
    %755 = arith.addf %736, %754 : vector<6x32xf32>
    %756 = vector.extract_strided_slice %716 {offsets = [0, 16], sizes = [6, 8], strides = [1, 1]} : vector<6x32xf32> to vector<6x8xf32>
    %757 = vector.extract_strided_slice %717 {offsets = [0, 16], sizes = [6, 8], strides = [1, 1]} : vector<6x32xf32> to vector<6x8xf32>
    %cst_316 = arith.constant dense<0.000000e+00> : vector<6x6xf32>
    %758 = tpu.matmul %756, %757, %cst_316 {dimension_numbers = #tpu.dot_dimension_numbers<[1], [1], [0], [0], [0, 0, 1, 0], [], []>} : vector<6x8xf32>, vector<6x8xf32>, vector<6x6xf32> -> vector<6x6xf32>
    %759 = arith.addf %758, %1 : vector<6x6xf32>
    %cst_317 = arith.constant dense<0xFF800000> : vector<6xf32>
    %760 = vector.multi_reduction <maximumf>, %759, %cst_317 [1] : vector<6x6xf32> to vector<6xf32>
    %761 = vector.shape_cast %760 : vector<6xf32> to vector<6x1xf32>
    %762 = vector.broadcast %761 : vector<6x1xf32> to vector<6x6xf32>
    %763 = arith.subf %759, %762 : vector<6x6xf32>
    %764 = math.exp %763 : vector<6x6xf32>
    %cst_318 = arith.constant dense<0.000000e+00> : vector<6xf32>
    %765 = vector.multi_reduction <add>, %764, %cst_318 [1] : vector<6x6xf32> to vector<6xf32>
    %766 = vector.shape_cast %765 : vector<6xf32> to vector<6x1xf32>
    %767 = tpu.reciprocal %766 {approx = true} : vector<6x1xf32> -> vector<6x1xf32>
    %768 = vector.broadcast %767 : vector<6x1xf32> to vector<6x6xf32>
    %769 = arith.mulf %764, %768 : vector<6x6xf32>
    %770 = vector.extract_strided_slice %718 {offsets = [0, 16], sizes = [6, 8], strides = [1, 1]} : vector<6x32xf32> to vector<6x8xf32>
    %cst_319 = arith.constant dense<0.000000e+00> : vector<6x8xf32>
    %771 = tpu.matmul %769, %770, %cst_319 {dimension_numbers = #tpu.dot_dimension_numbers<[1], [0], [0], [1], [0, 0, 1, 1], [], []>} : vector<6x6xf32>, vector<6x8xf32>, vector<6x8xf32> -> vector<6x8xf32>
    %772 = vector.extract_strided_slice %708 {offsets = [16, 0], sizes = [8, 32], strides = [1, 1]} : vector<32x32xf32> to vector<8x32xf32>
    %cst_320 = arith.constant dense<0.000000e+00> : vector<6x32xf32>
    %773 = tpu.matmul %771, %772, %cst_320 {dimension_numbers = #tpu.dot_dimension_numbers<[1], [0], [0], [1], [0, 0, 1, 1], [], []>} : vector<6x8xf32>, vector<8x32xf32>, vector<6x32xf32> -> vector<6x32xf32>
    %774 = arith.addf %755, %773 : vector<6x32xf32>
    %775 = vector.extract_strided_slice %716 {offsets = [0, 24], sizes = [6, 8], strides = [1, 1]} : vector<6x32xf32> to vector<6x8xf32>
    %776 = vector.extract_strided_slice %717 {offsets = [0, 24], sizes = [6, 8], strides = [1, 1]} : vector<6x32xf32> to vector<6x8xf32>
    %cst_321 = arith.constant dense<0.000000e+00> : vector<6x6xf32>
    %777 = tpu.matmul %775, %776, %cst_321 {dimension_numbers = #tpu.dot_dimension_numbers<[1], [1], [0], [0], [0, 0, 1, 0], [], []>} : vector<6x8xf32>, vector<6x8xf32>, vector<6x6xf32> -> vector<6x6xf32>
    %778 = arith.addf %777, %1 : vector<6x6xf32>
    %cst_322 = arith.constant dense<0xFF800000> : vector<6xf32>
    %779 = vector.multi_reduction <maximumf>, %778, %cst_322 [1] : vector<6x6xf32> to vector<6xf32>
    %780 = vector.shape_cast %779 : vector<6xf32> to vector<6x1xf32>
    %781 = vector.broadcast %780 : vector<6x1xf32> to vector<6x6xf32>
    %782 = arith.subf %778, %781 : vector<6x6xf32>
    %783 = math.exp %782 : vector<6x6xf32>
    %cst_323 = arith.constant dense<0.000000e+00> : vector<6xf32>
    %784 = vector.multi_reduction <add>, %783, %cst_323 [1] : vector<6x6xf32> to vector<6xf32>
    %785 = vector.shape_cast %784 : vector<6xf32> to vector<6x1xf32>
    %786 = tpu.reciprocal %785 {approx = true} : vector<6x1xf32> -> vector<6x1xf32>
    %787 = vector.broadcast %786 : vector<6x1xf32> to vector<6x6xf32>
    %788 = arith.mulf %783, %787 : vector<6x6xf32>
    %789 = vector.extract_strided_slice %718 {offsets = [0, 24], sizes = [6, 8], strides = [1, 1]} : vector<6x32xf32> to vector<6x8xf32>
    %cst_324 = arith.constant dense<0.000000e+00> : vector<6x8xf32>
    %790 = tpu.matmul %788, %789, %cst_324 {dimension_numbers = #tpu.dot_dimension_numbers<[1], [0], [0], [1], [0, 0, 1, 1], [], []>} : vector<6x6xf32>, vector<6x8xf32>, vector<6x8xf32> -> vector<6x8xf32>
    %791 = vector.extract_strided_slice %708 {offsets = [24, 0], sizes = [8, 32], strides = [1, 1]} : vector<32x32xf32> to vector<8x32xf32>
    %cst_325 = arith.constant dense<0.000000e+00> : vector<6x32xf32>
    %792 = tpu.matmul %790, %791, %cst_325 {dimension_numbers = #tpu.dot_dimension_numbers<[1], [0], [0], [1], [0, 0, 1, 1], [], []>} : vector<6x8xf32>, vector<8x32xf32>, vector<6x32xf32> -> vector<6x32xf32>
    %793 = arith.addf %774, %792 : vector<6x32xf32>
    %794 = vector.broadcast %710 : vector<1x32xf32> to vector<6x32xf32>
    %795 = arith.addf %793, %794 : vector<6x32xf32>
    %796 = arith.addf %698, %795 : vector<6x32xf32>
    %797 = vector.extract_strided_slice %700 {offsets = [0, 0], sizes = [1, 32], strides = [1, 1]} : vector<3x32xf32> to vector<1x32xf32>
    %798 = vector.extract_strided_slice %702 {offsets = [0, 0], sizes = [1, 32], strides = [1, 1]} : vector<3x32xf32> to vector<1x32xf32>
    %cst_326 = arith.constant dense<0.000000e+00> : vector<6xf32>
    %799 = vector.multi_reduction <add>, %796, %cst_326 [1] : vector<6x32xf32> to vector<6xf32>
    %800 = vector.shape_cast %799 : vector<6xf32> to vector<6x1xf32>
    %cst_327 = arith.constant 3.200000e+01 : f32
    %801 = vector.broadcast %cst_327 : f32 to vector<6x1xf32>
    %802 = arith.divf %800, %801 : vector<6x1xf32>
    %803 = vector.broadcast %802 : vector<6x1xf32> to vector<6x32xf32>
    %804 = arith.subf %796, %803 : vector<6x32xf32>
    %805 = arith.mulf %804, %804 : vector<6x32xf32>
    %cst_328 = arith.constant dense<0.000000e+00> : vector<6xf32>
    %806 = vector.multi_reduction <add>, %805, %cst_328 [1] : vector<6x32xf32> to vector<6xf32>
    %807 = vector.shape_cast %806 : vector<6xf32> to vector<6x1xf32>
    %cst_329 = arith.constant 3.200000e+01 : f32
    %808 = vector.broadcast %cst_329 : f32 to vector<6x1xf32>
    %809 = arith.divf %807, %808 : vector<6x1xf32>
    %cst_330 = arith.constant 9.99999974E-6 : f32
    %810 = vector.broadcast %cst_330 : f32 to vector<6x1xf32>
    %811 = arith.addf %809, %810 : vector<6x1xf32>
    %812 = math.rsqrt %811 : vector<6x1xf32>
    %813 = vector.broadcast %812 : vector<6x1xf32> to vector<6x32xf32>
    %814 = arith.mulf %804, %813 : vector<6x32xf32>
    %815 = vector.broadcast %797 : vector<1x32xf32> to vector<6x32xf32>
    %816 = arith.mulf %814, %815 : vector<6x32xf32>
    %817 = vector.broadcast %798 : vector<1x32xf32> to vector<6x32xf32>
    %818 = arith.addf %816, %817 : vector<6x32xf32>
    %c1_331 = arith.constant 1 : index
    %c0_332 = arith.constant 0 : index
    %c0_333 = arith.constant 0 : index
    %819 = vector.load %arg26[%c1_331, %c0_332, %c0_333] : memref<2x32x32xf32, #tpu.memory_space<vmem>>, vector<1x32x32xf32>
    %820 = vector.shape_cast %819 : vector<1x32x32xf32> to vector<32x32xf32>
    %c1_334 = arith.constant 1 : index
    %c0_335 = arith.constant 0 : index
    %c0_336 = arith.constant 0 : index
    %821 = vector.load %arg17[%c1_334, %c0_335, %c0_336] : memref<2x1x32xf32, #tpu.memory_space<vmem>>, vector<1x1x32xf32>
    %822 = vector.shape_cast %821 : vector<1x1x32xf32> to vector<1x32xf32>
    %c1_337 = arith.constant 1 : index
    %c0_338 = arith.constant 0 : index
    %c0_339 = arith.constant 0 : index
    %823 = vector.load %arg23[%c1_337, %c0_338, %c0_339] : memref<2x32x64xf32, #tpu.memory_space<vmem>>, vector<1x32x64xf32>
    %824 = vector.shape_cast %823 : vector<1x32x64xf32> to vector<32x64xf32>
    %c1_340 = arith.constant 1 : index
    %c0_341 = arith.constant 0 : index
    %c0_342 = arith.constant 0 : index
    %825 = vector.load %arg14[%c1_340, %c0_341, %c0_342] : memref<2x1x64xf32, #tpu.memory_space<vmem>>, vector<1x1x64xf32>
    %826 = vector.shape_cast %825 : vector<1x1x64xf32> to vector<1x64xf32>
    %c1_343 = arith.constant 1 : index
    %c0_344 = arith.constant 0 : index
    %c0_345 = arith.constant 0 : index
    %827 = vector.load %arg24[%c1_343, %c0_344, %c0_345] : memref<2x32x32xf32, #tpu.memory_space<vmem>>, vector<1x32x32xf32>
    %828 = vector.shape_cast %827 : vector<1x32x32xf32> to vector<32x32xf32>
    %c1_346 = arith.constant 1 : index
    %c0_347 = arith.constant 0 : index
    %c0_348 = arith.constant 0 : index
    %829 = vector.load %arg15[%c1_346, %c0_347, %c0_348] : memref<2x1x32xf32, #tpu.memory_space<vmem>>, vector<1x1x32xf32>
    %830 = vector.shape_cast %829 : vector<1x1x32xf32> to vector<1x32xf32>
    %cst_349 = arith.constant dense<0.000000e+00> : vector<6x32xf32>
    %831 = tpu.matmul %818, %820, %cst_349 {dimension_numbers = #tpu.dot_dimension_numbers<[1], [0], [0], [1], [0, 0, 1, 1], [], []>} : vector<6x32xf32>, vector<32x32xf32>, vector<6x32xf32> -> vector<6x32xf32>
    %832 = vector.broadcast %822 : vector<1x32xf32> to vector<6x32xf32>
    %833 = arith.addf %831, %832 : vector<6x32xf32>
    %cst_350 = arith.constant 0.353553385 : f32
    %834 = vector.broadcast %cst_350 : f32 to vector<6x32xf32>
    %835 = arith.mulf %833, %834 : vector<6x32xf32>
    %cst_351 = arith.constant dense<0.000000e+00> : vector<18x64xf32>
    %836 = tpu.matmul %406, %824, %cst_351 {dimension_numbers = #tpu.dot_dimension_numbers<[1], [0], [0], [1], [0, 0, 1, 1], [], []>} : vector<18x32xf32>, vector<32x64xf32>, vector<18x64xf32> -> vector<18x64xf32>
    %837 = vector.broadcast %826 : vector<1x64xf32> to vector<18x64xf32>
    %838 = arith.addf %836, %837 : vector<18x64xf32>
    %839 = vector.extract_strided_slice %838 {offsets = [0, 0], sizes = [18, 32], strides = [1, 1]} : vector<18x64xf32> to vector<18x32xf32>
    %840 = vector.extract_strided_slice %838 {offsets = [0, 32], sizes = [18, 32], strides = [1, 1]} : vector<18x64xf32> to vector<18x32xf32>
    %841 = vector.extract_strided_slice %835 {offsets = [0, 0], sizes = [6, 8], strides = [1, 1]} : vector<6x32xf32> to vector<6x8xf32>
    %842 = vector.extract_strided_slice %839 {offsets = [0, 0], sizes = [18, 8], strides = [1, 1]} : vector<18x32xf32> to vector<18x8xf32>
    %cst_352 = arith.constant dense<0.000000e+00> : vector<6x18xf32>
    %843 = tpu.matmul %841, %842, %cst_352 {dimension_numbers = #tpu.dot_dimension_numbers<[1], [1], [0], [0], [0, 0, 1, 0], [], []>} : vector<6x8xf32>, vector<18x8xf32>, vector<6x18xf32> -> vector<6x18xf32>
    %844 = arith.addf %843, %2 : vector<6x18xf32>
    %cst_353 = arith.constant dense<0xFF800000> : vector<6xf32>
    %845 = vector.multi_reduction <maximumf>, %844, %cst_353 [1] : vector<6x18xf32> to vector<6xf32>
    %846 = vector.shape_cast %845 : vector<6xf32> to vector<6x1xf32>
    %847 = vector.broadcast %846 : vector<6x1xf32> to vector<6x18xf32>
    %848 = arith.subf %844, %847 : vector<6x18xf32>
    %849 = math.exp %848 : vector<6x18xf32>
    %cst_354 = arith.constant dense<0.000000e+00> : vector<6xf32>
    %850 = vector.multi_reduction <add>, %849, %cst_354 [1] : vector<6x18xf32> to vector<6xf32>
    %851 = vector.shape_cast %850 : vector<6xf32> to vector<6x1xf32>
    %852 = tpu.reciprocal %851 {approx = true} : vector<6x1xf32> -> vector<6x1xf32>
    %853 = vector.broadcast %852 : vector<6x1xf32> to vector<6x18xf32>
    %854 = arith.mulf %849, %853 : vector<6x18xf32>
    %855 = vector.extract_strided_slice %840 {offsets = [0, 0], sizes = [18, 8], strides = [1, 1]} : vector<18x32xf32> to vector<18x8xf32>
    %cst_355 = arith.constant dense<0.000000e+00> : vector<6x8xf32>
    %856 = tpu.matmul %854, %855, %cst_355 {dimension_numbers = #tpu.dot_dimension_numbers<[1], [0], [0], [1], [0, 0, 1, 1], [], []>} : vector<6x18xf32>, vector<18x8xf32>, vector<6x8xf32> -> vector<6x8xf32>
    %857 = vector.extract_strided_slice %828 {offsets = [0, 0], sizes = [8, 32], strides = [1, 1]} : vector<32x32xf32> to vector<8x32xf32>
    %cst_356 = arith.constant dense<0.000000e+00> : vector<6x32xf32>
    %858 = tpu.matmul %856, %857, %cst_356 {dimension_numbers = #tpu.dot_dimension_numbers<[1], [0], [0], [1], [0, 0, 1, 1], [], []>} : vector<6x8xf32>, vector<8x32xf32>, vector<6x32xf32> -> vector<6x32xf32>
    %859 = vector.extract_strided_slice %835 {offsets = [0, 8], sizes = [6, 8], strides = [1, 1]} : vector<6x32xf32> to vector<6x8xf32>
    %860 = vector.extract_strided_slice %839 {offsets = [0, 8], sizes = [18, 8], strides = [1, 1]} : vector<18x32xf32> to vector<18x8xf32>
    %cst_357 = arith.constant dense<0.000000e+00> : vector<6x18xf32>
    %861 = tpu.matmul %859, %860, %cst_357 {dimension_numbers = #tpu.dot_dimension_numbers<[1], [1], [0], [0], [0, 0, 1, 0], [], []>} : vector<6x8xf32>, vector<18x8xf32>, vector<6x18xf32> -> vector<6x18xf32>
    %862 = arith.addf %861, %2 : vector<6x18xf32>
    %cst_358 = arith.constant dense<0xFF800000> : vector<6xf32>
    %863 = vector.multi_reduction <maximumf>, %862, %cst_358 [1] : vector<6x18xf32> to vector<6xf32>
    %864 = vector.shape_cast %863 : vector<6xf32> to vector<6x1xf32>
    %865 = vector.broadcast %864 : vector<6x1xf32> to vector<6x18xf32>
    %866 = arith.subf %862, %865 : vector<6x18xf32>
    %867 = math.exp %866 : vector<6x18xf32>
    %cst_359 = arith.constant dense<0.000000e+00> : vector<6xf32>
    %868 = vector.multi_reduction <add>, %867, %cst_359 [1] : vector<6x18xf32> to vector<6xf32>
    %869 = vector.shape_cast %868 : vector<6xf32> to vector<6x1xf32>
    %870 = tpu.reciprocal %869 {approx = true} : vector<6x1xf32> -> vector<6x1xf32>
    %871 = vector.broadcast %870 : vector<6x1xf32> to vector<6x18xf32>
    %872 = arith.mulf %867, %871 : vector<6x18xf32>
    %873 = vector.extract_strided_slice %840 {offsets = [0, 8], sizes = [18, 8], strides = [1, 1]} : vector<18x32xf32> to vector<18x8xf32>
    %cst_360 = arith.constant dense<0.000000e+00> : vector<6x8xf32>
    %874 = tpu.matmul %872, %873, %cst_360 {dimension_numbers = #tpu.dot_dimension_numbers<[1], [0], [0], [1], [0, 0, 1, 1], [], []>} : vector<6x18xf32>, vector<18x8xf32>, vector<6x8xf32> -> vector<6x8xf32>
    %875 = vector.extract_strided_slice %828 {offsets = [8, 0], sizes = [8, 32], strides = [1, 1]} : vector<32x32xf32> to vector<8x32xf32>
    %cst_361 = arith.constant dense<0.000000e+00> : vector<6x32xf32>
    %876 = tpu.matmul %874, %875, %cst_361 {dimension_numbers = #tpu.dot_dimension_numbers<[1], [0], [0], [1], [0, 0, 1, 1], [], []>} : vector<6x8xf32>, vector<8x32xf32>, vector<6x32xf32> -> vector<6x32xf32>
    %877 = arith.addf %858, %876 : vector<6x32xf32>
    %878 = vector.extract_strided_slice %835 {offsets = [0, 16], sizes = [6, 8], strides = [1, 1]} : vector<6x32xf32> to vector<6x8xf32>
    %879 = vector.extract_strided_slice %839 {offsets = [0, 16], sizes = [18, 8], strides = [1, 1]} : vector<18x32xf32> to vector<18x8xf32>
    %cst_362 = arith.constant dense<0.000000e+00> : vector<6x18xf32>
    %880 = tpu.matmul %878, %879, %cst_362 {dimension_numbers = #tpu.dot_dimension_numbers<[1], [1], [0], [0], [0, 0, 1, 0], [], []>} : vector<6x8xf32>, vector<18x8xf32>, vector<6x18xf32> -> vector<6x18xf32>
    %881 = arith.addf %880, %2 : vector<6x18xf32>
    %cst_363 = arith.constant dense<0xFF800000> : vector<6xf32>
    %882 = vector.multi_reduction <maximumf>, %881, %cst_363 [1] : vector<6x18xf32> to vector<6xf32>
    %883 = vector.shape_cast %882 : vector<6xf32> to vector<6x1xf32>
    %884 = vector.broadcast %883 : vector<6x1xf32> to vector<6x18xf32>
    %885 = arith.subf %881, %884 : vector<6x18xf32>
    %886 = math.exp %885 : vector<6x18xf32>
    %cst_364 = arith.constant dense<0.000000e+00> : vector<6xf32>
    %887 = vector.multi_reduction <add>, %886, %cst_364 [1] : vector<6x18xf32> to vector<6xf32>
    %888 = vector.shape_cast %887 : vector<6xf32> to vector<6x1xf32>
    %889 = tpu.reciprocal %888 {approx = true} : vector<6x1xf32> -> vector<6x1xf32>
    %890 = vector.broadcast %889 : vector<6x1xf32> to vector<6x18xf32>
    %891 = arith.mulf %886, %890 : vector<6x18xf32>
    %892 = vector.extract_strided_slice %840 {offsets = [0, 16], sizes = [18, 8], strides = [1, 1]} : vector<18x32xf32> to vector<18x8xf32>
    %cst_365 = arith.constant dense<0.000000e+00> : vector<6x8xf32>
    %893 = tpu.matmul %891, %892, %cst_365 {dimension_numbers = #tpu.dot_dimension_numbers<[1], [0], [0], [1], [0, 0, 1, 1], [], []>} : vector<6x18xf32>, vector<18x8xf32>, vector<6x8xf32> -> vector<6x8xf32>
    %894 = vector.extract_strided_slice %828 {offsets = [16, 0], sizes = [8, 32], strides = [1, 1]} : vector<32x32xf32> to vector<8x32xf32>
    %cst_366 = arith.constant dense<0.000000e+00> : vector<6x32xf32>
    %895 = tpu.matmul %893, %894, %cst_366 {dimension_numbers = #tpu.dot_dimension_numbers<[1], [0], [0], [1], [0, 0, 1, 1], [], []>} : vector<6x8xf32>, vector<8x32xf32>, vector<6x32xf32> -> vector<6x32xf32>
    %896 = arith.addf %877, %895 : vector<6x32xf32>
    %897 = vector.extract_strided_slice %835 {offsets = [0, 24], sizes = [6, 8], strides = [1, 1]} : vector<6x32xf32> to vector<6x8xf32>
    %898 = vector.extract_strided_slice %839 {offsets = [0, 24], sizes = [18, 8], strides = [1, 1]} : vector<18x32xf32> to vector<18x8xf32>
    %cst_367 = arith.constant dense<0.000000e+00> : vector<6x18xf32>
    %899 = tpu.matmul %897, %898, %cst_367 {dimension_numbers = #tpu.dot_dimension_numbers<[1], [1], [0], [0], [0, 0, 1, 0], [], []>} : vector<6x8xf32>, vector<18x8xf32>, vector<6x18xf32> -> vector<6x18xf32>
    %900 = arith.addf %899, %2 : vector<6x18xf32>
    %cst_368 = arith.constant dense<0xFF800000> : vector<6xf32>
    %901 = vector.multi_reduction <maximumf>, %900, %cst_368 [1] : vector<6x18xf32> to vector<6xf32>
    %902 = vector.shape_cast %901 : vector<6xf32> to vector<6x1xf32>
    %903 = vector.broadcast %902 : vector<6x1xf32> to vector<6x18xf32>
    %904 = arith.subf %900, %903 : vector<6x18xf32>
    %905 = math.exp %904 : vector<6x18xf32>
    %cst_369 = arith.constant dense<0.000000e+00> : vector<6xf32>
    %906 = vector.multi_reduction <add>, %905, %cst_369 [1] : vector<6x18xf32> to vector<6xf32>
    %907 = vector.shape_cast %906 : vector<6xf32> to vector<6x1xf32>
    %908 = tpu.reciprocal %907 {approx = true} : vector<6x1xf32> -> vector<6x1xf32>
    %909 = vector.broadcast %908 : vector<6x1xf32> to vector<6x18xf32>
    %910 = arith.mulf %905, %909 : vector<6x18xf32>
    %911 = vector.extract_strided_slice %840 {offsets = [0, 24], sizes = [18, 8], strides = [1, 1]} : vector<18x32xf32> to vector<18x8xf32>
    %cst_370 = arith.constant dense<0.000000e+00> : vector<6x8xf32>
    %912 = tpu.matmul %910, %911, %cst_370 {dimension_numbers = #tpu.dot_dimension_numbers<[1], [0], [0], [1], [0, 0, 1, 1], [], []>} : vector<6x18xf32>, vector<18x8xf32>, vector<6x8xf32> -> vector<6x8xf32>
    %913 = vector.extract_strided_slice %828 {offsets = [24, 0], sizes = [8, 32], strides = [1, 1]} : vector<32x32xf32> to vector<8x32xf32>
    %cst_371 = arith.constant dense<0.000000e+00> : vector<6x32xf32>
    %914 = tpu.matmul %912, %913, %cst_371 {dimension_numbers = #tpu.dot_dimension_numbers<[1], [0], [0], [1], [0, 0, 1, 1], [], []>} : vector<6x8xf32>, vector<8x32xf32>, vector<6x32xf32> -> vector<6x32xf32>
    %915 = arith.addf %896, %914 : vector<6x32xf32>
    %916 = vector.broadcast %830 : vector<1x32xf32> to vector<6x32xf32>
    %917 = arith.addf %915, %916 : vector<6x32xf32>
    %918 = arith.addf %818, %917 : vector<6x32xf32>
    %919 = vector.extract_strided_slice %700 {offsets = [1, 0], sizes = [1, 32], strides = [1, 1]} : vector<3x32xf32> to vector<1x32xf32>
    %920 = vector.extract_strided_slice %702 {offsets = [1, 0], sizes = [1, 32], strides = [1, 1]} : vector<3x32xf32> to vector<1x32xf32>
    %cst_372 = arith.constant dense<0.000000e+00> : vector<6xf32>
    %921 = vector.multi_reduction <add>, %918, %cst_372 [1] : vector<6x32xf32> to vector<6xf32>
    %922 = vector.shape_cast %921 : vector<6xf32> to vector<6x1xf32>
    %cst_373 = arith.constant 3.200000e+01 : f32
    %923 = vector.broadcast %cst_373 : f32 to vector<6x1xf32>
    %924 = arith.divf %922, %923 : vector<6x1xf32>
    %925 = vector.broadcast %924 : vector<6x1xf32> to vector<6x32xf32>
    %926 = arith.subf %918, %925 : vector<6x32xf32>
    %927 = arith.mulf %926, %926 : vector<6x32xf32>
    %cst_374 = arith.constant dense<0.000000e+00> : vector<6xf32>
    %928 = vector.multi_reduction <add>, %927, %cst_374 [1] : vector<6x32xf32> to vector<6xf32>
    %929 = vector.shape_cast %928 : vector<6xf32> to vector<6x1xf32>
    %cst_375 = arith.constant 3.200000e+01 : f32
    %930 = vector.broadcast %cst_375 : f32 to vector<6x1xf32>
    %931 = arith.divf %929, %930 : vector<6x1xf32>
    %cst_376 = arith.constant 9.99999974E-6 : f32
    %932 = vector.broadcast %cst_376 : f32 to vector<6x1xf32>
    %933 = arith.addf %931, %932 : vector<6x1xf32>
    %934 = math.rsqrt %933 : vector<6x1xf32>
    %935 = vector.broadcast %934 : vector<6x1xf32> to vector<6x32xf32>
    %936 = arith.mulf %926, %935 : vector<6x32xf32>
    %937 = vector.broadcast %919 : vector<1x32xf32> to vector<6x32xf32>
    %938 = arith.mulf %936, %937 : vector<6x32xf32>
    %939 = vector.broadcast %920 : vector<1x32xf32> to vector<6x32xf32>
    %940 = arith.addf %938, %939 : vector<6x32xf32>
    %c1_377 = arith.constant 1 : index
    %c0_378 = arith.constant 0 : index
    %c0_379 = arith.constant 0 : index
    %941 = vector.load %arg21[%c1_377, %c0_378, %c0_379] : memref<2x32x64xf32, #tpu.memory_space<vmem>>, vector<1x32x64xf32>
    %942 = vector.shape_cast %941 : vector<1x32x64xf32> to vector<32x64xf32>
    %c1_380 = arith.constant 1 : index
    %c0_381 = arith.constant 0 : index
    %c0_382 = arith.constant 0 : index
    %943 = vector.load %arg12[%c1_380, %c0_381, %c0_382] : memref<2x1x64xf32, #tpu.memory_space<vmem>>, vector<1x1x64xf32>
    %944 = vector.shape_cast %943 : vector<1x1x64xf32> to vector<1x64xf32>
    %c1_383 = arith.constant 1 : index
    %c0_384 = arith.constant 0 : index
    %c0_385 = arith.constant 0 : index
    %945 = vector.load %arg22[%c1_383, %c0_384, %c0_385] : memref<2x64x32xf32, #tpu.memory_space<vmem>>, vector<1x64x32xf32>
    %946 = vector.shape_cast %945 : vector<1x64x32xf32> to vector<64x32xf32>
    %c1_386 = arith.constant 1 : index
    %c0_387 = arith.constant 0 : index
    %c0_388 = arith.constant 0 : index
    %947 = vector.load %arg13[%c1_386, %c0_387, %c0_388] : memref<2x1x32xf32, #tpu.memory_space<vmem>>, vector<1x1x32xf32>
    %948 = vector.shape_cast %947 : vector<1x1x32xf32> to vector<1x32xf32>
    %cst_389 = arith.constant dense<0.000000e+00> : vector<6x64xf32>
    %949 = tpu.matmul %940, %942, %cst_389 {dimension_numbers = #tpu.dot_dimension_numbers<[1], [0], [0], [1], [0, 0, 1, 1], [], []>} : vector<6x32xf32>, vector<32x64xf32>, vector<6x64xf32> -> vector<6x64xf32>
    %950 = vector.broadcast %944 : vector<1x64xf32> to vector<6x64xf32>
    %951 = arith.addf %949, %950 : vector<6x64xf32>
    %cst_390 = arith.constant 5.000000e-01 : f32
    %952 = vector.broadcast %cst_390 : f32 to vector<6x64xf32>
    %953 = arith.mulf %952, %951 : vector<6x64xf32>
    %cst_391 = arith.constant 4.471500e-02 : f32
    %954 = vector.broadcast %cst_391 : f32 to vector<6x64xf32>
    %955 = arith.mulf %954, %951 : vector<6x64xf32>
    %956 = arith.mulf %955, %951 : vector<6x64xf32>
    %957 = arith.mulf %956, %951 : vector<6x64xf32>
    %958 = arith.addf %951, %957 : vector<6x64xf32>
    %cst_392 = arith.constant 0.797884583 : f32
    %959 = vector.broadcast %cst_392 : f32 to vector<6x64xf32>
    %960 = arith.mulf %959, %958 : vector<6x64xf32>
    %961 = math.tanh %960 : vector<6x64xf32>
    %cst_393 = arith.constant 1.000000e+00 : f32
    %962 = vector.broadcast %cst_393 : f32 to vector<6x64xf32>
    %963 = arith.addf %962, %961 : vector<6x64xf32>
    %964 = arith.mulf %953, %963 : vector<6x64xf32>
    %cst_394 = arith.constant dense<0.000000e+00> : vector<6x32xf32>
    %965 = tpu.matmul %964, %946, %cst_394 {dimension_numbers = #tpu.dot_dimension_numbers<[1], [0], [0], [1], [0, 0, 1, 1], [], []>} : vector<6x64xf32>, vector<64x32xf32>, vector<6x32xf32> -> vector<6x32xf32>
    %966 = vector.broadcast %948 : vector<1x32xf32> to vector<6x32xf32>
    %967 = arith.addf %965, %966 : vector<6x32xf32>
    %968 = arith.addf %940, %967 : vector<6x32xf32>
    %969 = vector.extract_strided_slice %700 {offsets = [2, 0], sizes = [1, 32], strides = [1, 1]} : vector<3x32xf32> to vector<1x32xf32>
    %970 = vector.extract_strided_slice %702 {offsets = [2, 0], sizes = [1, 32], strides = [1, 1]} : vector<3x32xf32> to vector<1x32xf32>
    %cst_395 = arith.constant dense<0.000000e+00> : vector<6xf32>
    %971 = vector.multi_reduction <add>, %968, %cst_395 [1] : vector<6x32xf32> to vector<6xf32>
    %972 = vector.shape_cast %971 : vector<6xf32> to vector<6x1xf32>
    %cst_396 = arith.constant 3.200000e+01 : f32
    %973 = vector.broadcast %cst_396 : f32 to vector<6x1xf32>
    %974 = arith.divf %972, %973 : vector<6x1xf32>
    %975 = vector.broadcast %974 : vector<6x1xf32> to vector<6x32xf32>
    %976 = arith.subf %968, %975 : vector<6x32xf32>
    %977 = arith.mulf %976, %976 : vector<6x32xf32>
    %cst_397 = arith.constant dense<0.000000e+00> : vector<6xf32>
    %978 = vector.multi_reduction <add>, %977, %cst_397 [1] : vector<6x32xf32> to vector<6xf32>
    %979 = vector.shape_cast %978 : vector<6xf32> to vector<6x1xf32>
    %cst_398 = arith.constant 3.200000e+01 : f32
    %980 = vector.broadcast %cst_398 : f32 to vector<6x1xf32>
    %981 = arith.divf %979, %980 : vector<6x1xf32>
    %cst_399 = arith.constant 9.99999974E-6 : f32
    %982 = vector.broadcast %cst_399 : f32 to vector<6x1xf32>
    %983 = arith.addf %981, %982 : vector<6x1xf32>
    %984 = math.rsqrt %983 : vector<6x1xf32>
    %985 = vector.broadcast %984 : vector<6x1xf32> to vector<6x32xf32>
    %986 = arith.mulf %976, %985 : vector<6x32xf32>
    %987 = vector.broadcast %969 : vector<1x32xf32> to vector<6x32xf32>
    %988 = arith.mulf %986, %987 : vector<6x32xf32>
    %989 = vector.broadcast %970 : vector<1x32xf32> to vector<6x32xf32>
    %990 = arith.addf %988, %989 : vector<6x32xf32>
    %c0_400 = arith.constant 0 : index
    %c0_401 = arith.constant 0 : index
    %991 = vector.load %arg29[%c0_400, %c0_401] : memref<1x32xf32, #tpu.memory_space<vmem>>, vector<1x32xf32>
    %c0_402 = arith.constant 0 : index
    %c0_403 = arith.constant 0 : index
    %992 = vector.load %arg28[%c0_402, %c0_403] : memref<1x32xf32, #tpu.memory_space<vmem>>, vector<1x32xf32>
    %cst_404 = arith.constant dense<0.000000e+00> : vector<6xf32>
    %993 = vector.multi_reduction <add>, %990, %cst_404 [1] : vector<6x32xf32> to vector<6xf32>
    %994 = vector.shape_cast %993 : vector<6xf32> to vector<6x1xf32>
    %cst_405 = arith.constant 3.200000e+01 : f32
    %995 = vector.broadcast %cst_405 : f32 to vector<6x1xf32>
    %996 = arith.divf %994, %995 : vector<6x1xf32>
    %997 = vector.broadcast %996 : vector<6x1xf32> to vector<6x32xf32>
    %998 = arith.subf %990, %997 : vector<6x32xf32>
    %999 = arith.mulf %998, %998 : vector<6x32xf32>
    %cst_406 = arith.constant dense<0.000000e+00> : vector<6xf32>
    %1000 = vector.multi_reduction <add>, %999, %cst_406 [1] : vector<6x32xf32> to vector<6xf32>
    %1001 = vector.shape_cast %1000 : vector<6xf32> to vector<6x1xf32>
    %cst_407 = arith.constant 3.200000e+01 : f32
    %1002 = vector.broadcast %cst_407 : f32 to vector<6x1xf32>
    %1003 = arith.divf %1001, %1002 : vector<6x1xf32>
    %cst_408 = arith.constant 9.99999974E-6 : f32
    %1004 = vector.broadcast %cst_408 : f32 to vector<6x1xf32>
    %1005 = arith.addf %1003, %1004 : vector<6x1xf32>
    %1006 = math.rsqrt %1005 : vector<6x1xf32>
    %1007 = vector.broadcast %1006 : vector<6x1xf32> to vector<6x32xf32>
    %1008 = arith.mulf %998, %1007 : vector<6x32xf32>
    %1009 = vector.broadcast %991 : vector<1x32xf32> to vector<6x32xf32>
    %1010 = arith.mulf %1008, %1009 : vector<6x32xf32>
    %1011 = vector.broadcast %992 : vector<1x32xf32> to vector<6x32xf32>
    %1012 = arith.addf %1010, %1011 : vector<6x32xf32>
    %c0_409 = arith.constant 0 : index
    %c0_410 = arith.constant 0 : index
    %1013 = vector.load %arg46[%c0_409, %c0_410] : memref<1x32xf32, #tpu.memory_space<vmem>>, vector<1x32xf32>
    %c0_411 = arith.constant 0 : index
    %c0_412 = arith.constant 0 : index
    %1014 = vector.load %arg45[%c0_411, %c0_412] : memref<1x32xf32, #tpu.memory_space<vmem>>, vector<1x32xf32>
    %cst_413 = arith.constant dense<0.000000e+00> : vector<6xf32>
    %1015 = vector.multi_reduction <add>, %1012, %cst_413 [1] : vector<6x32xf32> to vector<6xf32>
    %1016 = vector.shape_cast %1015 : vector<6xf32> to vector<6x1xf32>
    %cst_414 = arith.constant 3.200000e+01 : f32
    %1017 = vector.broadcast %cst_414 : f32 to vector<6x1xf32>
    %1018 = arith.divf %1016, %1017 : vector<6x1xf32>
    %1019 = vector.broadcast %1018 : vector<6x1xf32> to vector<6x32xf32>
    %1020 = arith.subf %1012, %1019 : vector<6x32xf32>
    %1021 = arith.mulf %1020, %1020 : vector<6x32xf32>
    %cst_415 = arith.constant dense<0.000000e+00> : vector<6xf32>
    %1022 = vector.multi_reduction <add>, %1021, %cst_415 [1] : vector<6x32xf32> to vector<6xf32>
    %1023 = vector.shape_cast %1022 : vector<6xf32> to vector<6x1xf32>
    %cst_416 = arith.constant 3.200000e+01 : f32
    %1024 = vector.broadcast %cst_416 : f32 to vector<6x1xf32>
    %1025 = arith.divf %1023, %1024 : vector<6x1xf32>
    %cst_417 = arith.constant 9.99999974E-6 : f32
    %1026 = vector.broadcast %cst_417 : f32 to vector<6x1xf32>
    %1027 = arith.addf %1025, %1026 : vector<6x1xf32>
    %1028 = math.rsqrt %1027 : vector<6x1xf32>
    %1029 = vector.broadcast %1028 : vector<6x1xf32> to vector<6x32xf32>
    %1030 = arith.mulf %1020, %1029 : vector<6x32xf32>
    %1031 = vector.broadcast %1013 : vector<1x32xf32> to vector<6x32xf32>
    %1032 = arith.mulf %1030, %1031 : vector<6x32xf32>
    %1033 = vector.broadcast %1014 : vector<1x32xf32> to vector<6x32xf32>
    %1034 = arith.addf %1032, %1033 : vector<6x32xf32>
    %c0_418 = arith.constant 0 : index
    %c0_419 = arith.constant 0 : index
    %1035 = vector.load %arg47[%c0_418, %c0_419] : memref<32x16xf32, #tpu.memory_space<vmem>>, vector<32x16xf32>
    %cst_420 = arith.constant dense<0.000000e+00> : vector<6x16xf32>
    %1036 = tpu.matmul %1034, %1035, %cst_420 {dimension_numbers = #tpu.dot_dimension_numbers<[1], [0], [0], [1], [0, 0, 1, 1], [], []>} : vector<6x32xf32>, vector<32x16xf32>, vector<6x16xf32> -> vector<6x16xf32>
    %c0_421 = arith.constant 0 : index
    %c0_422 = arith.constant 0 : index
    %1037 = vector.load %arg44[%c0_421, %c0_422] : memref<1x16xf32, #tpu.memory_space<vmem>>, vector<1x16xf32>
    %1038 = vector.broadcast %1037 : vector<1x16xf32> to vector<6x16xf32>
    %1039 = arith.addf %1036, %1038 : vector<6x16xf32>
    %c0_423 = arith.constant 0 : index
    %c0_424 = arith.constant 0 : index
    %c0_425 = arith.constant 0 : index
    %1040 = vector.load %arg48[%c0_423, %c0_424, %c0_425] : memref<1x6x16xf32, #tpu.memory_space<vmem>>, vector<1x6x16xf32>
    %1041 = vector.shape_cast %1040 : vector<1x6x16xf32> to vector<6x16xf32>
    %1042 = vector.shape_cast %1039 : vector<6x16xf32> to vector<1x6x16xf32>
    tpu.vector_store %arg48[%c0_423, %c0_424, %c0_425], %1042 {strides = array<i32>} : memref<1x6x16xf32, #tpu.memory_space<vmem>>, vector<1x6x16xf32>,
    return
  }
  func.func @transform_0(%arg0: i32) -> (i32, i32, i32) {
    %c0_i32 = arith.constant 0 : i32
    %c0_i32_0 = arith.constant 0 : i32
    %c0_i32_1 = arith.constant 0 : i32
    return %arg0, %c0_i32, %c0_i32_0 : i32, i32, i32
  }
  func.func @transform_1(%arg0: i32) -> (i32, i32, i32) {
    %c0_i32 = arith.constant 0 : i32
    %c0_i32_0 = arith.constant 0 : i32
    %c0_i32_1 = arith.constant 0 : i32
    return %arg0, %c0_i32, %c0_i32_0 : i32, i32, i32
  }
  func.func @transform_2(%arg0: i32) -> (i32, i32, i32) {
    %c0_i32 = arith.constant 0 : i32
    %c0_i32_0 = arith.constant 0 : i32
    %c0_i32_1 = arith.constant 0 : i32
    return %arg0, %c0_i32, %c0_i32_0 : i32, i32, i32
  }
  func.func @transform_3(%arg0: i32) -> (i32, i32) {
    %c0_i32 = arith.constant 0 : i32
    %c0_i32_0 = arith.constant 0 : i32
    %c0_i32_1 = arith.constant 0 : i32
    return %c0_i32, %c0_i32_0 : i32, i32
  }
  func.func @transform_4(%arg0: i32) -> (i32, i32) {
    %c0_i32 = arith.constant 0 : i32
    %c0_i32_0 = arith.constant 0 : i32
    %c0_i32_1 = arith.constant 0 : i32
    return %c0_i32, %c0_i32_0 : i32, i32
  }
  func.func @transform_5(%arg0: i32) -> (i32, i32) {
    %c0_i32 = arith.constant 0 : i32
    %c0_i32_0 = arith.constant 0 : i32
    %c0_i32_1 = arith.constant 0 : i32
    return %c0_i32, %c0_i32_0 : i32, i32
  }
  func.func @transform_6(%arg0: i32) -> (i32, i32) {
    %c0_i32 = arith.constant 0 : i32
    %c0_i32_0 = arith.constant 0 : i32
    %c0_i32_1 = arith.constant 0 : i32
    return %c0_i32, %c0_i32_0 : i32, i32
  }
  func.func @transform_7(%arg0: i32) -> (i32, i32) {
    %c0_i32 = arith.constant 0 : i32
    %c0_i32_0 = arith.constant 0 : i32
    %c0_i32_1 = arith.constant 0 : i32
    return %c0_i32, %c0_i32_0 : i32, i32
  }
  func.func @transform_8(%arg0: i32) -> (i32, i32) {
    %c0_i32 = arith.constant 0 : i32
    %c0_i32_0 = arith.constant 0 : i32
    %c0_i32_1 = arith.constant 0 : i32
    return %c0_i32, %c0_i32_0 : i32, i32
  }
  func.func @transform_9(%arg0: i32) -> (i32, i32) {
    %c0_i32 = arith.constant 0 : i32
    %c0_i32_0 = arith.constant 0 : i32
    %c0_i32_1 = arith.constant 0 : i32
    return %c0_i32, %c0_i32_0 : i32, i32
  }
  func.func @transform_10(%arg0: i32) -> (i32, i32) {
    %c0_i32 = arith.constant 0 : i32
    %c0_i32_0 = arith.constant 0 : i32
    %c0_i32_1 = arith.constant 0 : i32
    return %c0_i32, %c0_i32_0 : i32, i32
  }
  func.func @transform_11(%arg0: i32) -> (i32, i32, i32) {
    %c0_i32 = arith.constant 0 : i32
    %c0_i32_0 = arith.constant 0 : i32
    %c0_i32_1 = arith.constant 0 : i32
    %c0_i32_2 = arith.constant 0 : i32
    return %c0_i32, %c0_i32_0, %c0_i32_1 : i32, i32, i32
  }
  func.func @transform_12(%arg0: i32) -> (i32, i32, i32) {
    %c0_i32 = arith.constant 0 : i32
    %c0_i32_0 = arith.constant 0 : i32
    %c0_i32_1 = arith.constant 0 : i32
    %c0_i32_2 = arith.constant 0 : i32
    return %c0_i32, %c0_i32_0, %c0_i32_1 : i32, i32, i32
  }
  func.func @transform_13(%arg0: i32) -> (i32, i32, i32) {
    %c0_i32 = arith.constant 0 : i32
    %c0_i32_0 = arith.constant 0 : i32
    %c0_i32_1 = arith.constant 0 : i32
    %c0_i32_2 = arith.constant 0 : i32
    return %c0_i32, %c0_i32_0, %c0_i32_1 : i32, i32, i32
  }
  func.func @transform_14(%arg0: i32) -> (i32, i32, i32) {
    %c0_i32 = arith.constant 0 : i32
    %c0_i32_0 = arith.constant 0 : i32
    %c0_i32_1 = arith.constant 0 : i32
    %c0_i32_2 = arith.constant 0 : i32
    return %c0_i32, %c0_i32_0, %c0_i32_1 : i32, i32, i32
  }
  func.func @transform_15(%arg0: i32) -> (i32, i32, i32) {
    %c0_i32 = arith.constant 0 : i32
    %c0_i32_0 = arith.constant 0 : i32
    %c0_i32_1 = arith.constant 0 : i32
    %c0_i32_2 = arith.constant 0 : i32
    return %c0_i32, %c0_i32_0, %c0_i32_1 : i32, i32, i32
  }
  func.func @transform_16(%arg0: i32) -> (i32, i32, i32) {
    %c0_i32 = arith.constant 0 : i32
    %c0_i32_0 = arith.constant 0 : i32
    %c0_i32_1 = arith.constant 0 : i32
    %c0_i32_2 = arith.constant 0 : i32
    return %c0_i32, %c0_i32_0, %c0_i32_1 : i32, i32, i32
  }
  func.func @transform_17(%arg0: i32) -> (i32, i32, i32) {
    %c0_i32 = arith.constant 0 : i32
    %c0_i32_0 = arith.constant 0 : i32
    %c0_i32_1 = arith.constant 0 : i32
    %c0_i32_2 = arith.constant 0 : i32
    return %c0_i32, %c0_i32_0, %c0_i32_1 : i32, i32, i32
  }
  func.func @transform_18(%arg0: i32) -> (i32, i32, i32) {
    %c0_i32 = arith.constant 0 : i32
    %c0_i32_0 = arith.constant 0 : i32
    %c0_i32_1 = arith.constant 0 : i32
    %c0_i32_2 = arith.constant 0 : i32
    return %c0_i32, %c0_i32_0, %c0_i32_1 : i32, i32, i32
  }
  func.func @transform_19(%arg0: i32) -> (i32, i32, i32) {
    %c0_i32 = arith.constant 0 : i32
    %c0_i32_0 = arith.constant 0 : i32
    %c0_i32_1 = arith.constant 0 : i32
    %c0_i32_2 = arith.constant 0 : i32
    return %c0_i32, %c0_i32_0, %c0_i32_1 : i32, i32, i32
  }
  func.func @transform_20(%arg0: i32) -> (i32, i32, i32) {
    %c0_i32 = arith.constant 0 : i32
    %c0_i32_0 = arith.constant 0 : i32
    %c0_i32_1 = arith.constant 0 : i32
    %c0_i32_2 = arith.constant 0 : i32
    return %c0_i32, %c0_i32_0, %c0_i32_1 : i32, i32, i32
  }
  func.func @transform_21(%arg0: i32) -> (i32, i32, i32) {
    %c0_i32 = arith.constant 0 : i32
    %c0_i32_0 = arith.constant 0 : i32
    %c0_i32_1 = arith.constant 0 : i32
    %c0_i32_2 = arith.constant 0 : i32
    return %c0_i32, %c0_i32_0, %c0_i32_1 : i32, i32, i32
  }
  func.func @transform_22(%arg0: i32) -> (i32, i32, i32) {
    %c0_i32 = arith.constant 0 : i32
    %c0_i32_0 = arith.constant 0 : i32
    %c0_i32_1 = arith.constant 0 : i32
    %c0_i32_2 = arith.constant 0 : i32
    return %c0_i32, %c0_i32_0, %c0_i32_1 : i32, i32, i32
  }
  func.func @transform_23(%arg0: i32) -> (i32, i32, i32) {
    %c0_i32 = arith.constant 0 : i32
    %c0_i32_0 = arith.constant 0 : i32
    %c0_i32_1 = arith.constant 0 : i32
    %c0_i32_2 = arith.constant 0 : i32
    return %c0_i32, %c0_i32_0, %c0_i32_1 : i32, i32, i32
  }
  func.func @transform_24(%arg0: i32) -> (i32, i32, i32) {
    %c0_i32 = arith.constant 0 : i32
    %c0_i32_0 = arith.constant 0 : i32
    %c0_i32_1 = arith.constant 0 : i32
    %c0_i32_2 = arith.constant 0 : i32
    return %c0_i32, %c0_i32_0, %c0_i32_1 : i32, i32, i32
  }
  func.func @transform_25(%arg0: i32) -> (i32, i32, i32) {
    %c0_i32 = arith.constant 0 : i32
    %c0_i32_0 = arith.constant 0 : i32
    %c0_i32_1 = arith.constant 0 : i32
    %c0_i32_2 = arith.constant 0 : i32
    return %c0_i32, %c0_i32_0, %c0_i32_1 : i32, i32, i32
  }
  func.func @transform_26(%arg0: i32) -> (i32, i32, i32) {
    %c0_i32 = arith.constant 0 : i32
    %c0_i32_0 = arith.constant 0 : i32
    %c0_i32_1 = arith.constant 0 : i32
    %c0_i32_2 = arith.constant 0 : i32
    return %c0_i32, %c0_i32_0, %c0_i32_1 : i32, i32, i32
  }
  func.func @transform_27(%arg0: i32) -> (i32, i32) {
    %c0_i32 = arith.constant 0 : i32
    %c0_i32_0 = arith.constant 0 : i32
    %c0_i32_1 = arith.constant 0 : i32
    return %c0_i32, %c0_i32_0 : i32, i32
  }
  func.func @transform_28(%arg0: i32) -> (i32, i32) {
    %c0_i32 = arith.constant 0 : i32
    %c0_i32_0 = arith.constant 0 : i32
    %c0_i32_1 = arith.constant 0 : i32
    return %c0_i32, %c0_i32_0 : i32, i32
  }
  func.func @transform_29(%arg0: i32) -> (i32, i32) {
    %c0_i32 = arith.constant 0 : i32
    %c0_i32_0 = arith.constant 0 : i32
    %c0_i32_1 = arith.constant 0 : i32
    return %c0_i32, %c0_i32_0 : i32, i32
  }
  func.func @transform_30(%arg0: i32) -> (i32, i32) {
    %c0_i32 = arith.constant 0 : i32
    %c0_i32_0 = arith.constant 0 : i32
    %c0_i32_1 = arith.constant 0 : i32
    return %c0_i32, %c0_i32_0 : i32, i32
  }
  func.func @transform_31(%arg0: i32) -> (i32, i32, i32) {
    %c0_i32 = arith.constant 0 : i32
    %c0_i32_0 = arith.constant 0 : i32
    %c0_i32_1 = arith.constant 0 : i32
    %c0_i32_2 = arith.constant 0 : i32
    return %c0_i32, %c0_i32_0, %c0_i32_1 : i32, i32, i32
  }
  func.func @transform_32(%arg0: i32) -> (i32, i32, i32) {
    %c0_i32 = arith.constant 0 : i32
    %c0_i32_0 = arith.constant 0 : i32
    %c0_i32_1 = arith.constant 0 : i32
    %c0_i32_2 = arith.constant 0 : i32
    return %c0_i32, %c0_i32_0, %c0_i32_1 : i32, i32, i32
  }
  func.func @transform_33(%arg0: i32) -> (i32, i32, i32) {
    %c0_i32 = arith.constant 0 : i32
    %c0_i32_0 = arith.constant 0 : i32
    %c0_i32_1 = arith.constant 0 : i32
    %c0_i32_2 = arith.constant 0 : i32
    return %c0_i32, %c0_i32_0, %c0_i32_1 : i32, i32, i32
  }
  func.func @transform_34(%arg0: i32) -> (i32, i32, i32) {
    %c0_i32 = arith.constant 0 : i32
    %c0_i32_0 = arith.constant 0 : i32
    %c0_i32_1 = arith.constant 0 : i32
    %c0_i32_2 = arith.constant 0 : i32
    return %c0_i32, %c0_i32_0, %c0_i32_1 : i32, i32, i32
  }
  func.func @transform_35(%arg0: i32) -> (i32, i32, i32) {
    %c0_i32 = arith.constant 0 : i32
    %c0_i32_0 = arith.constant 0 : i32
    %c0_i32_1 = arith.constant 0 : i32
    %c0_i32_2 = arith.constant 0 : i32
    return %c0_i32, %c0_i32_0, %c0_i32_1 : i32, i32, i32
  }
  func.func @transform_36(%arg0: i32) -> (i32, i32, i32) {
    %c0_i32 = arith.constant 0 : i32
    %c0_i32_0 = arith.constant 0 : i32
    %c0_i32_1 = arith.constant 0 : i32
    %c0_i32_2 = arith.constant 0 : i32
    return %c0_i32, %c0_i32_0, %c0_i32_1 : i32, i32, i32
  }
  func.func @transform_37(%arg0: i32) -> (i32, i32, i32) {
    %c0_i32 = arith.constant 0 : i32
    %c0_i32_0 = arith.constant 0 : i32
    %c0_i32_1 = arith.constant 0 : i32
    %c0_i32_2 = arith.constant 0 : i32
    return %c0_i32, %c0_i32_0, %c0_i32_1 : i32, i32, i32
  }
  func.func @transform_38(%arg0: i32) -> (i32, i32, i32) {
    %c0_i32 = arith.constant 0 : i32
    %c0_i32_0 = arith.constant 0 : i32
    %c0_i32_1 = arith.constant 0 : i32
    %c0_i32_2 = arith.constant 0 : i32
    return %c0_i32, %c0_i32_0, %c0_i32_1 : i32, i32, i32
  }
  func.func @transform_39(%arg0: i32) -> (i32, i32, i32) {
    %c0_i32 = arith.constant 0 : i32
    %c0_i32_0 = arith.constant 0 : i32
    %c0_i32_1 = arith.constant 0 : i32
    %c0_i32_2 = arith.constant 0 : i32
    return %c0_i32, %c0_i32_0, %c0_i32_1 : i32, i32, i32
  }
  func.func @transform_40(%arg0: i32) -> (i32, i32, i32) {
    %c0_i32 = arith.constant 0 : i32
    %c0_i32_0 = arith.constant 0 : i32
    %c0_i32_1 = arith.constant 0 : i32
    %c0_i32_2 = arith.constant 0 : i32
    return %c0_i32, %c0_i32_0, %c0_i32_1 : i32, i32, i32
  }
  func.func @transform_41(%arg0: i32) -> (i32, i32) {
    %c0_i32 = arith.constant 0 : i32
    %c0_i32_0 = arith.constant 0 : i32
    %c0_i32_1 = arith.constant 0 : i32
    return %c0_i32, %c0_i32_0 : i32, i32
  }
  func.func @transform_42(%arg0: i32) -> (i32, i32) {
    %c0_i32 = arith.constant 0 : i32
    %c0_i32_0 = arith.constant 0 : i32
    %c0_i32_1 = arith.constant 0 : i32
    return %c0_i32, %c0_i32_0 : i32, i32
  }
  func.func @transform_43(%arg0: i32) -> (i32, i32) {
    %c0_i32 = arith.constant 0 : i32
    %c0_i32_0 = arith.constant 0 : i32
    %c0_i32_1 = arith.constant 0 : i32
    return %c0_i32, %c0_i32_0 : i32, i32
  }
  func.func @transform_44(%arg0: i32) -> (i32, i32) {
    %c0_i32 = arith.constant 0 : i32
    %c0_i32_0 = arith.constant 0 : i32
    %c0_i32_1 = arith.constant 0 : i32
    return %c0_i32, %c0_i32_0 : i32, i32
  }
  func.func @transform_45(%arg0: i32) -> (i32, i32) {
    %c0_i32 = arith.constant 0 : i32
    %c0_i32_0 = arith.constant 0 : i32
    %c0_i32_1 = arith.constant 0 : i32
    return %c0_i32, %c0_i32_0 : i32, i32
  }
  func.func @transform_46(%arg0: i32) -> (i32, i32) {
    %c0_i32 = arith.constant 0 : i32
    %c0_i32_0 = arith.constant 0 : i32
    %c0_i32_1 = arith.constant 0 : i32
    return %c0_i32, %c0_i32_0 : i32, i32
  }
  func.func @transform_47(%arg0: i32) -> (i32, i32, i32) {
    %c0_i32 = arith.constant 0 : i32
    %c0_i32_0 = arith.constant 0 : i32
    %c0_i32_1 = arith.constant 0 : i32
    return %arg0, %c0_i32, %c0_i32_0 : i32, i32, i32
  }
}

</mosaic_0001>

<bundles_post_ra>
// kernel: rt1_forward.2
= control target key start
LH: loop header
LB: loop body
LE: loop exit
PB: predicated region body
PF: predicated region fallthrough
CT: control target
= control target key end

     0   :  { %17 = vsyncpa [#allocation3], 0  ;;  %s2346_s0 = inlined_call_operand.vmem [shape: f32[6,64,32], index: 0, kind: input, shape index: {}]   ;;  %s2347_s1 = inlined_call_operand.vmem [shape: f32[6,1,32], index: 1, kind: input, shape index: {}]   ;;  %s2348_s2 = inlined_call_operand.vmem [shape: f32[32,16], index: 2, kind: input, shape index: {}]   ;;  %s2349_s3 = inlined_call_operand.vmem [shape: f32[1,16], index: 3, kind: input, shape index: {}]   ;;  %s2350_s4 = inlined_call_operand.vmem [shape: f32[16,32], index: 4, kind: input, shape index: {}]   ;;  %s2351_s5 = inlined_call_operand.hbm [shape: f32[1,32], index: 5, kind: input, shape index: {}]   ;;  %s2352_s6 = inlined_call_operand.hbm [shape: f32[1,32], index: 6, kind: input, shape index: {}]   ;;  %s2353_s7 = inlined_call_operand.hbm [shape: f32[1,32], index: 7, kind: input, shape index: {}]   ;;  %s2354_s8 = inlined_call_operand.vmem [shape: f32[32,16], index: 8, kind: input, shape index: {}]   ;;  %s2355_s9 = inlined_call_operand.hbm [shape: f32[1,16], index: 9, kind: input, shape index: {}]   ;;  %s2356_s10 = inlined_call_operand.vmem [shape: f32[4,16], index: 10, kind: input, shape index: {}]   ;;  %s2357_s11 = inlined_call_operand.vmem [shape: f32[4,1], index: 11, kind: input, shape index: {}]   ;;  %s2358_s12 = inlined_call_operand.vmem [shape: f32[6,4,32], index: 12, kind: output, shape index: {}]  }
   0x1   :  { %18 = vsyncpa [#allocation5], 0 }
   0x2   :  { %19 = vsyncpa [#allocation8], 0  ;;  %s1978_s21 = smov 0  }
   0x3 LB: > { %s1984_s22 = sadd.s32 4294967295, %s1903_s21   ;;  %p1432_p0 = scmp.ge.s32.totalorder %s1903_s21, 1  ;;  %s1903_s21 = sphi %s1978_s21, %s25_s21  }
   0x4   : > { %p318_p1 = scmp.lt.s32.totalorder %s1903_s21, 7  ;;  %p2359_p2 = scmp.eq.s32.totalorder %s1984_s22, 0 }
   0x5   : > { %s1905_s23 = smov [#allocation4]   ;;  %s1906_s26 = smov [#allocation2]  }
   0x6   : > { %s351_s24 = sshll.u32 %s1905_s23, 4  ;;  %p1989_p3 = pnand %p1432_p0, %p318_p1  ;;  %s352_s24 = int_to_ptr.vmem [resolvable:$true] %s351_s24 }
   0x7   : > { %s340_s27 = sshll.u32 %s1906_s26, 4  ;;  %s1907_s28 = smov [#allocation6]   ;;  %s2001_s27 = int_to_ptr.vmem [resolvable:$true] %s340_s27 }
   0x8   : > { %s2361_s25 = scalar_select %p1989_p3, 1, 0 }
   0x9   : > { %p1699_p4 = pneg %p1989_p3  ;;  %s362_s29 = sshll.u32 %s1907_s28, 4  ;;  %s2003_s29 = int_to_ptr.vmem [resolvable:$true] %s362_s29 }
   0xa   : > { %s1908_s13 = smov [#allocation7]   ;;  %s1773_s17 = scalar_lea.hbm %s2352_s6, 16 }
   0xb   : > { %p1997_p5 = pnand %p2359_p2, %p1699_p4  ;;  %s376_s14 = sshll.u32 %s1908_s13, 4  ;;  %s2005_s14 = int_to_ptr.vmem [resolvable:$true] %s376_s14 }
   0xc   : > { %p1774_p6 = scmp.ne.s32.totalorder %s2352_s6, %s1773_s17  ;;  %p1780_p10 = scmp.lt.u32.totalorder %s1773_s17, %s2352_s6 }
   0xd   : > { %p2015_p7 = pneg %p1997_p5 }
   0xf   : > { %p1776_p8 = pnand %p2015_p7, %p1774_p6 }
  0x11   : > { %p1777_p9 = pneg %p1776_p8 }
  0x13   : > { %p1782_p11 = pnand %p1780_p10, %p1777_p9 }
  0x15   : > { %1785 = shalt.err (!%p1782_p11)
}
  0x16   : > { %s1786_s28 = scalar_lea.vmem %s352_s24, 16  ;;  %s1793_s13 = scalar_lea.vmem %s352_s24, 32 }
  0x17   : > { %p1787_p12 = scmp.ne.s32.totalorder %s352_s24, %s1786_s28  ;;  %p1794_p1 = scmp.lt.s32.totalorder %s352_s24, %s352_s24 }
  0x18   : > { %p1795_p4 = scmp.lt.s32.totalorder %s1793_s13, %s1786_s28 }
  0x19   : > { %p1789_p13 = pnand %p1787_p12, %p2015_p7 }
  0x1a   : > { %p1796_p2 = por %p1795_p4, %p1794_p1 }
  0x1b   : > { %p1790_p0 = pneg %p1789_p13 }
  0x1d   : > { %p1797_p3 = pnand %p1796_p2, %p1790_p0 }
  0x1f   : > { %1800 = shalt.err (!%p1797_p3)
}
  0x20   : > { %1705 = dma.hbm_to_vmem [thread:$0]  (!%p1997_p5), %s2352_s6, 16, %s352_s24, [#allocation5]  }
  0x21   : > { %s1801_s19 = scalar_lea.hbm %s2351_s5, 16 }
  0x22   : > { %p1802_p6 = scmp.ne.s32.totalorder %s2351_s5, %s1801_s19  ;;  %p1808_p2 = scmp.lt.u32.totalorder %s1801_s19, %s2351_s5 }
  0x24   : > { %p1804_p8 = pnand %p1802_p6, %p2015_p7 }
  0x26   : > { %p1805_p9 = pneg %p1804_p8 }
  0x28   : > { %p1810_p3 = pnand %p1808_p2, %p1805_p9 }
  0x2a   : > { %1813 = shalt.err (!%p1810_p3)
}
  0x2b   : > { %s1814_s24 = scalar_lea.vmem %s2001_s27, 16  ;;  %s1821_s15 = scalar_lea.vmem %s2001_s27, 32 }
  0x2c   : > { %p1815_p10 = scmp.ne.s32.totalorder %s2001_s27, %s1814_s24  ;;  %p1822_p13 = scmp.lt.s32.totalorder %s2001_s27, %s2001_s27 }
  0x2d   : > { %p1823_p0 = scmp.lt.s32.totalorder %s1821_s15, %s1814_s24 }
  0x2e   : > { %p1817_p11 = pnand %p1815_p10, %p2015_p7 }
  0x2f   : > { %p1824_p1 = por %p1823_p0, %p1822_p13 }
  0x30   : > { %p1818_p12 = pneg %p1817_p11 }
  0x32   : > { %p1825_p4 = pnand %p1824_p1, %p1818_p12 }
  0x34   : > { %1828 = shalt.err (!%p1825_p4)
}
  0x35   : > { %1702 = dma.hbm_to_vmem [thread:$0]  (!%p1997_p5), %s2351_s5, 16, %s2001_s27, [#allocation3]  }
  0x36   : > { %s1829_s23 = scalar_lea.hbm %s2353_s7, 16 }
  0x37   : > { %p1830_p6 = scmp.ne.s32.totalorder %s2353_s7, %s1829_s23  ;;  %p1836_p2 = scmp.lt.u32.totalorder %s1829_s23, %s2353_s7 }
  0x39   : > { %p1832_p8 = pnand %p1830_p6, %p2015_p7 }
  0x3b   : > { %p1833_p9 = pneg %p1832_p8 }
  0x3d   : > { %p1838_p3 = pnand %p1836_p2, %p1833_p9 }
  0x3f   : > { %1841 = shalt.err (!%p1838_p3)
}
  0x40   : > { %s1842_s27 = scalar_lea.vmem %s2003_s29, 16  ;;  %s1849_s15 = scalar_lea.vmem %s2003_s29, 32 }
  0x41   : > { %p1843_p10 = scmp.ne.s32.totalorder %s2003_s29, %s1842_s27  ;;  %p1850_p13 = scmp.lt.s32.totalorder %s2003_s29, %s2003_s29 }
  0x42   : > { %p1851_p0 = scmp.lt.s32.totalorder %s1849_s15, %s1842_s27 }
  0x43   : > { %p1845_p11 = pnand %p1843_p10, %p2015_p7 }
  0x44   : > { %p1852_p1 = por %p1851_p0, %p1850_p13 }
  0x45   : > { %p1846_p12 = pneg %p1845_p11 }
  0x47   : > { %p1853_p4 = pnand %p1852_p1, %p1846_p12 }
  0x49   : > { %1856 = shalt.err (!%p1853_p4)
}
  0x4a   : > { %1708 = dma.hbm_to_vmem [thread:$0]  (!%p1997_p5), %s2353_s7, 16, %s2003_s29, [#allocation5]  }
  0x4b   : > { %s1857_s23 = scalar_lea.hbm %s2355_s9, 16 }
  0x4c   : > { %p1858_p6 = scmp.ne.s32.totalorder %s2355_s9, %s1857_s23  ;;  %p1864_p2 = scmp.lt.u32.totalorder %s1857_s23, %s2355_s9 }
  0x4e   : > { %p1860_p8 = pnand %p1858_p6, %p2015_p7 }
  0x50   : > { %p1861_p9 = pneg %p1860_p8 }
  0x52   : > { %p1866_p3 = pnand %p1864_p2, %p1861_p9 }
  0x54   : > { %1869 = shalt.err (!%p1866_p3)
}
  0x55   : > { %s1870_s29 = scalar_lea.vmem %s2005_s14, 16  ;;  %s1877_s27 = scalar_lea.vmem %s2005_s14, 32 }
  0x56   : > { %p1871_p10 = scmp.ne.s32.totalorder %s2005_s14, %s1870_s29  ;;  %p1878_p13 = scmp.lt.s32.totalorder %s2005_s14, %s2005_s14 }
  0x57   : > { %p1879_p0 = scmp.lt.s32.totalorder %s1877_s27, %s1870_s29 }
  0x58   : > { %p1873_p11 = pnand %p1871_p10, %p2015_p7 }
  0x59   : > { %p1880_p1 = por %p1879_p0, %p1878_p13 }
  0x5a   : > { %p1874_p12 = pneg %p1873_p11 }
  0x5c   : > { %p1881_p4 = pnand %p1880_p1, %p1874_p12 }
  0x5e   : > { %1884 = shalt.err (!%p1881_p4)
}
  0x5f   : > { %1711 = dma.hbm_to_vmem [thread:$0]  (!%p1997_p5), %s2355_s9, 16, %s2005_s14, [#allocation8]  }
  0x60   : > { %p2364_p6 = scmp.ne.s32.totalorder %s2361_s25, 0 }
  0x61   : > { %p2365_p7 = scmp.eq.s32.totalorder (!%p2364_p6), %s1984_s22, 0 }
  0x62   : > { %409 = sbr.rel (%p2364_p6) target bundleno = 1890 (0x762), region = 68 }
  0x69   : > { %1890 = dma.done.wait (%p2365_p7), [#allocation3], 16   ;;  %p2366_p8 = pmov %p2365_p7 }
  0x6a   : > { %p2367_p9 = pmov %p2365_p7 }
  0x6b   : > { %1892 = vsyncadd (%p2366_p8), [#allocation3], 4294967280 }
  0x6c   : > { %1894 = dma.done.wait (%p2367_p9), [#allocation5], 32   ;;  %p2368_p2 = pmov %p2365_p7 }
  0x6e   : > { %1896 = vsyncadd (%p2368_p2), [#allocation5], 4294967264  ;;  %p2369_p3 = pmov %p2368_p2 }
  0x6f   : > { %p2370_p5 = pmov %p2368_p2 }
  0x70   : > { %1898 = dma.done.wait (%p2369_p3), [#allocation8], 16  }
  0x71   : > { %1900 = vsyncadd (%p2370_p5), [#allocation8], 4294967280  ;;  %p465_p10 = scmp.lt.s32.totalorder %s1984_s22, 5  ;;  %vm496_vm0 = vcmask 261120   ;;  %v485_v0 = vld [vmem:[%s2348_s2] sm:$0xff]  ;;  %v486_v1 = vld [vmem:[%s2348_s2 + $0x8] sm:$0xff] }
  0x72   : > { %v487_v2 = vld [vmem:[%s2348_s2 + $0x10] sm:$0xff]  ;;  %v1635_v3 = vpack.c.bf16 %v486_v1, %v485_v0  ;;  %v488_v4 = vld [vmem:[%s2348_s2 + $0x18] sm:$0xff]  ;;  %v634_v14 = vld [vmem:[%s2350_s4] sm:$0xff]  ;;  %vm643_vm1 = vcmask 130048   ;;  %vm1910_vm2 = vmmov 0   ;;  %vm1239_vm4 = vcmask 519168  }
  0x73   : > { %s2374_s22 = smov (!%p465_p10, %s1984_s22), 5  ;;  %v1639_v6 = vpack.c.bf16 %v488_v4, %v487_v2  ;;  %v635_v15 = vld [vmem:[%s2350_s4 + $0x8] sm:$0xff]  ;;  %v1446_v17 = vld [vmem:[%s2349_s3] ss:$0 sm:$0xff]  ;;  %vm2317_vm3 = vmpackc.low %vm643_vm1, %vm643_vm1  ;;  %vm1251_vm5 = vcmask 523264   ;;  %vm1325_vm6 = vcmask 257024  }
  0x74   : > { %s1488_s25 = sshll.u32 %s2374_s22, 6  ;;  %1636 = vmatprep.subr.bf16.mxu0 %v1635_v3  ;;  %v1643_v16 = vpack.c.bf16 %v635_v15, %v634_v14  ;;  %s472_s17 = scalar_lea.vmem %s2347_s1, %s2374_s22  ;;  %v1455_v42 = vld [vmem:[#allocation2] ss:$0 sm:$0xff] }
  0x75   : > { %s469_s20 = scalar_lea.vmem %s2346_s0, %s1488_s25  ;;  %1638 = vmatpush3.bf16.msra.mxu0 %v1635_v3  ;;  %v1464_v44 = vld [vmem:[%s472_s17] ss:$0 sm:$0xff]  ;;  %s1445_s30 = sshll.u32 %s2374_s22, 2 }
  0x76   : > { %v477_v5 = vld [vmem:[%s469_s20] sm:$0xff]  ;;  %1640 = vmatprep.subr.bf16.mxu0 %v1639_v6  ;;  %v478_v7 = vld [vmem:[%s469_s20 + $0x8] sm:$0xff]  ;;  %v479_v8 = vld [vmem:[%s469_s20 + $0x10] sm:$0xff]  ;;  %1644 = vmatprep.subr.bf16.mxu1 %v1643_v16  ;;  %s476_s17 = scalar_lea.vmem %s2358_s12, %s1445_s30 }
  0x77   : > { %1549 = vmatprep.mubr.msk.f32.mxu0 %vm496_vm0, %v477_v5  ;;  %v480_v9 = vld [vmem:[%s469_s20 + $0x18] sm:$0xff]  ;;  %v481_v10 = vld [vmem:[%s469_s20 + $0x20] sm:$0xff]  ;;  %v482_v11 = vld [vmem:[%s469_s20 + $0x28] sm:$0xff]  ;;  %1646 = vmatpush3.bf16.msra.mxu1 %v1643_v16 }
  0x78   : > { %v483_v12 = vld [vmem:[%s469_s20 + $0x30] sm:$0xff]  ;;  %v484_v13 = vld [vmem:[%s469_s20 + $0x38] sm:$0xff] }
  0x79   : > { %1642 = vmatpush3.bf16.msra.mxu0 %v1639_v6 }
  0x7c   : > { %1550 = vmatmul.mubr.msk.f32.vlgmr.msra.gmra.mrb[0].mxu0 %vm496_vm0, %v478_v7 }
  0x7d   : > { %1552 = vmatprep.mubr.msk.f32.mxu0 %vm496_vm0, %v479_v8 }
  0x80   : > { %1553 = vmatmul.mubr.msk.f32.gmra.mrb[2].mxu0 %vm496_vm0, %v480_v9 }
  0x81   : > { %1555 = vmatprep.mubr.msk.f32.mxu0 %vm496_vm0, %v481_v10 }
  0x84   : > { %1556 = vmatmul.mubr.msk.f32.gmra.mrb[4].mxu0 %vm496_vm0, %v482_v11 }
  0x85   : > { %1558 = vmatprep.mubr.msk.f32.mxu0 %vm496_vm0, %v483_v12 }
  0x88   : > { %1559 = vmatmul.mubr.msk.f32.gmra.mrb[6].mxu0 %vm496_vm0, %v484_v13 }
 0x14f   : > { %v1551_v18 = vpop.f32.mrb[0].mxu0 }
 0x150   : > { %v593_v19 = vadd.f32 %v1551_v18, %v1446_v17  ;;  %v587_v20 = vpop.f32.mrb[1].mxu0 }
 0x151   : > { %v588_v21 = vadd.f32 %v1446_v17, %v587_v20 }
 0x152   : > { %v627_v24 = vmax.f32 %v593_v19, 0.0 }
 0x153   : > { %v626_v22 = vmax.f32 %v588_v21, 0.0  ;;  %v1554_v23 = vpop.f32.mrb[2].mxu0 }
 0x154   : > { %v603_v25 = vadd.f32 %v1554_v23, %v1446_v17  ;;  %v597_v26 = vpop.f32.mrb[3].mxu0 }
 0x155   : > { %v598_v27 = vadd.f32 %v1446_v17, %v597_v26  ;;  %1565 = vmatprep.mubr.msk.f32.mxu1 %vm643_vm1, %v626_v22 }
 0x156   : > { %v629_v28 = vmax.f32 %v603_v25, 0.0  ;;  %1566 = vmatmul.mubr.msk.f32.vlgmr.msra.gmra.mrb[0].mxu1 %vm643_vm1, %v627_v24 }
 0x157   : > { %v628_v29 = vmax.f32 %v598_v27, 0.0  ;;  %v1557_v30 = vpop.f32.mrb[4].mxu0 }
 0x158   : > { %v613_v31 = vadd.f32 %v1557_v30, %v1446_v17  ;;  %v607_v32 = vpop.f32.mrb[5].mxu0 }
 0x159   : > { %v608_v33 = vadd.f32 %v1446_v17, %v607_v32  ;;  %1568 = vmatprep.mubr.msk.f32.mxu1 %vm643_vm1, %v628_v29 }
 0x15a   : > { %v631_v34 = vmax.f32 %v613_v31, 0.0  ;;  %1569 = vmatmul.mubr.msk.f32.gmra.mrb[2].mxu1 %vm643_vm1, %v629_v28 }
 0x15b   : > { %v630_v35 = vmax.f32 %v608_v33, 0.0  ;;  %v1560_v36 = vpop.f32.mrb[6].mxu0 }
 0x15c   : > { %v623_v37 = vadd.f32 %v1560_v36, %v1446_v17  ;;  %v617_v38 = vpop.f32.mrb[7].mxu0 }
 0x15d   : > { %v618_v39 = vadd.f32 %v1446_v17, %v617_v38  ;;  %1571 = vmatprep.mubr.msk.f32.mxu1 %vm643_vm1, %v630_v35 }
 0x15e   : > { %v633_v40 = vmax.f32 %v623_v37, 0.0  ;;  %1572 = vmatmul.mubr.msk.f32.gmra.mrb[4].mxu1 %vm643_vm1, %v631_v34 }
 0x15f   : > { %v632_v41 = vmax.f32 %v618_v39, 0.0 }
 0x161   : > { %1574 = vmatprep.mubr.msk.f32.mxu1 %vm643_vm1, %v632_v41 }
 0x162   : > { %1575 = vmatmul.mubr.msk.f32.gmra.mrb[6].mxu1 %vm643_vm1, %v633_v40 }
 0x229   : > { %v1567_v43 = vpop.f32.mrb[0].mxu1 }
 0x22a   : > { %v734_v45 = vpop.f32.mrb[1].mxu1  ;;  %v740_v46 = vadd.f32 %v1567_v43, %v1455_v42 }
 0x22b   : > { %v735_v47 = vadd.f32 %v1455_v42, %v734_v45 }
 0x22c   : > { %v2168_v51 = vadd.f32 %v1464_v44, %v740_v46 }
 0x22d   : > { %v2166_v48 = vadd.f32 %v1464_v44, %v735_v47  ;;  %v1570_v49 = vpop.f32.mrb[2].mxu1 }
 0x22e   : > { %v744_v50 = vpop.f32.mrb[3].mxu1  ;;  %v750_v52 = vadd.f32 %v1570_v49, %v1455_v42  ;;  %v793_v62 = vsel %vm496_vm0, %v2168_v51, 0.0 }
 0x22f   : > { %v745_v53 = vadd.f32 %v1455_v42, %v744_v50  ;;  %v790_v54 = vsel %vm496_vm0, %v2166_v48, 0.0 }
 0x230   : > { %791 = vadd.xlane.f32.xlu0 %v790_v54  ;;  %v2174_v59 = vadd.f32 %v1464_v44, %v750_v52  ;;  %v923_v54 = vld [vmem:[%s2354_s8] sm:$0xff] }
 0x231   : > { %v2172_v55 = vadd.f32 %v1464_v44, %v745_v53  ;;  %v1573_v56 = vpop.f32.mrb[4].mxu1 }
 0x232   : > { %v760_v57 = vadd.f32 %v1573_v56, %v1455_v42  ;;  %v754_v58 = vpop.f32.mrb[5].mxu1  ;;  %v799_v5 = vsel %vm496_vm0, %v2174_v59, 0.0  ;;  %v924_v56 = vld [vmem:[%s2354_s8 + $0x8] sm:$0xff] }
 0x233   : > { %v755_v60 = vadd.f32 %v1455_v42, %v754_v58  ;;  %v796_v61 = vsel %vm496_vm0, %v2172_v55, 0.0  ;;  %v925_v58 = vld [vmem:[%s2354_s8 + $0x10] sm:$0xff] }
 0x234   : > { %797 = vadd.xlane.f32.xlu1 %v796_v61  ;;  %794 = vadd.xlane.f32.xlu0 %v793_v62  ;;  %v2180_v63 = vadd.f32 %v1464_v44, %v760_v57  ;;  %v1647_v57 = vpack.c.bf16 %v924_v56, %v923_v54  ;;  %v1909_v62 = vmov 0.0|0.0  }
 0x235   : > { %v2182_v0 = vadd.f32 %v1464_v44, %v755_v60  ;;  %v1576_v1 = vpop.f32.mrb[6].mxu1  ;;  %v926_v60 = vld [vmem:[%s2354_s8 + $0x18] sm:$0xff]  ;;  %1655 = vmatprep.subr.bf16.mxu0 %v1909_v62 }
 0x236   : > { %v770_v2 = vadd.f32 %v1576_v1, %v1455_v42  ;;  %v764_v3 = vpop.f32.mrb[7].mxu1  ;;  %v805_v9 = vsel %vm496_vm0, %v2180_v63, 0.0  ;;  %1648 = vmatprep.subr.bf16.mxu1 %v1647_v57  ;;  %v1651_v61 = vpack.c.bf16 %v926_v60, %v925_v58 }
 0x237   : > { %v765_v4 = vadd.f32 %v1455_v42, %v764_v3  ;;  %v802_v6 = vsel %vm496_vm0, %v2182_v0, 0.0  ;;  %1650 = vmatpush3.bf16.msra.mxu1 %v1647_v57 }
 0x238   : > { %800 = vadd.xlane.f32.xlu1 %v799_v5  ;;  %803 = vadd.xlane.f32.xlu0 %v802_v6  ;;  %v2188_v7 = vadd.f32 %v1464_v44, %v770_v2 }
 0x239   : > { %v2190_v8 = vadd.f32 %v1464_v44, %v765_v4  ;;  %1652 = vmatprep.subr.bf16.mxu1 %v1651_v61 }
 0x23a   : > { %v811_v11 = vsel %vm496_vm0, %v2188_v7, 0.0 }
 0x23b   : > { %v808_v10 = vsel %vm496_vm0, %v2190_v8, 0.0  ;;  %1654 = vmatpush3.bf16.msra.mxu1 %v1651_v61 }
 0x23c   : > { %806 = vadd.xlane.f32.xlu1 %v805_v9  ;;  %809 = vadd.xlane.f32.xlu0 %v808_v10 }
 0x23d   : > { %1671 = vmatprep.subr.bf16.mxu1 %v1909_v62 }
 0x240   : > { %812 = vadd.xlane.f32.xlu1 %v811_v11 }
 0x2bd   : > { %v792_v12 = vpop.xlane.xlu0 %791 }
 0x2be   : > { %v815_v13 = vmul.f32 0.03125, %v792_v12 }
 0x2c0   : > { %v2199_v14 = vsub.f32 %v2166_v48, %v815_v13 }
 0x2c1   : > { %v798_v15 = vpop.xlane.xlu1 %797  ;;  %v795_v16 = vpop.xlane.xlu0 %794 }
 0x2c2   : > { %v817_v17 = vmul.f32 0.03125, %v798_v15  ;;  %v816_v18 = vmul.f32 0.03125, %v795_v16  ;;  %v831_v19 = vmul.f32 %v2199_v14, %v2199_v14 }
 0x2c4   : > { %v2204_v20 = vsub.f32 %v2172_v55, %v817_v17  ;;  %v2207_v21 = vsub.f32 %v2168_v51, %v816_v18  ;;  %v839_v22 = vsel %vm496_vm0, %v831_v19, 0.0 }
 0x2c5   : > { %v801_v23 = vpop.xlane.xlu1 %800  ;;  %840 = vadd.xlane.f32.xlu0 %v839_v22  ;;  %v804_v24 = vpop.xlane.xlu0 %803 }
 0x2c6   : > { %v818_v25 = vmul.f32 0.03125, %v801_v23  ;;  %v819_v26 = vmul.f32 0.03125, %v804_v24  ;;  %v833_v27 = vmul.f32 %v2204_v20, %v2204_v20  ;;  %v832_v28 = vmul.f32 %v2207_v21, %v2207_v21 }
 0x2c8   : > { %v2215_v29 = vsub.f32 %v2174_v59, %v818_v25  ;;  %v2218_v30 = vsub.f32 %v2182_v0, %v819_v26  ;;  %v845_v31 = vsel %vm496_vm0, %v833_v27, 0.0  ;;  %v842_v32 = vsel %vm496_vm0, %v832_v28, 0.0  ;;  %v1465_v26 = vld [vmem:[#allocation4] ss:$0 sm:$0xff] }
 0x2c9   : > { %v807_v33 = vpop.xlane.xlu1 %806  ;;  %846 = vadd.xlane.f32.xlu0 %v845_v31  ;;  %843 = vadd.xlane.f32.xlu1 %v842_v32  ;;  %v810_v34 = vpop.xlane.xlu0 %809 }
 0x2ca   : > { %v820_v35 = vmul.f32 0.03125, %v807_v33  ;;  %v821_v36 = vmul.f32 0.03125, %v810_v34  ;;  %v834_v37 = vmul.f32 %v2215_v29, %v2215_v29  ;;  %v835_v38 = vmul.f32 %v2218_v30, %v2218_v30  ;;  %v1466_v33 = vld [vmem:[#allocation6] ss:$0 sm:$0xff] }
 0x2cc   : > { %v2227_v39 = vsub.f32 %v2180_v63, %v820_v35  ;;  %v2230_v40 = vsub.f32 %v2190_v8, %v821_v36  ;;  %v848_v41 = vsel %vm496_vm0, %v834_v37, 0.0  ;;  %v851_v42 = vsel %vm496_vm0, %v835_v38, 0.0 }
 0x2cd   : > { %v813_v43 = vpop.xlane.xlu1 %812  ;;  %849 = vadd.xlane.f32.xlu1 %v848_v41  ;;  %852 = vadd.xlane.f32.xlu0 %v851_v42 }
 0x2ce   : > { %v822_v44 = vmul.f32 0.03125, %v813_v43  ;;  %v836_v45 = vmul.f32 %v2227_v39, %v2227_v39  ;;  %v837_v46 = vmul.f32 %v2230_v40, %v2230_v40 }
 0x2d0   : > { %v2239_v47 = vsub.f32 %v2188_v7, %v822_v44  ;;  %v854_v49 = vsel %vm496_vm0, %v836_v45, 0.0  ;;  %v857_v50 = vsel %vm496_vm0, %v837_v46, 0.0 }
 0x2d1   : > { %855 = vadd.xlane.f32.xlu1 %v854_v49  ;;  %858 = vadd.xlane.f32.xlu0 %v857_v50 }
 0x2d2   : > { %v838_v52 = vmul.f32 %v2239_v47, %v2239_v47 }
 0x2d4   : > { %v860_v53 = vsel %vm496_vm0, %v838_v52, 0.0  ;;  %v1672_v52 = vpack.c.bf16 %v2168_v51, %v2166_v48  ;;  %v1675_v48 = vpack.c.bf16 %v2174_v59, %v2172_v55 }
 0x2d5   : > { %861 = vadd.xlane.f32.xlu1 %v860_v53 }
 0x352   : > { %v841_v1 = vpop.xlane.xlu0 %840 }
 0x353   : > { %v863_v2 = vmul.f32 0.03125, %v841_v1 }
 0x355   : > { %v871_v3 = vadd.f32 1e-05, %v863_v2 }
 0x356   : > { %v844_v4 = vpop.xlane.xlu1 %843  ;;  %v847_v5 = vpop.xlane.xlu0 %846 }
 0x357   : > { %1737 = vrsqrt.f32 %v871_v3  ;;  %v864_v6 = vmul.f32 0.03125, %v844_v4  ;;  %v865_v9 = vmul.f32 0.03125, %v847_v5  ;;  %v1681_v4 = vpack.c.bf16 %v2188_v7, %v2190_v8  ;;  %v1467_v5 = vld [vmem:[#allocation7] ss:$0 sm:$0xff] }
 0x359   : > { %v872_v10 = vadd.f32 1e-05, %v864_v6  ;;  %v873_v11 = vadd.f32 1e-05, %v865_v9 }
 0x35a   : > { %v850_v12 = vpop.xlane.xlu1 %849  ;;  %v853_v13 = vpop.xlane.xlu0 %852 }
 0x35b   : > { %1739 = vrsqrt.f32 %v872_v10  ;;  %v866_v15 = vmul.f32 0.03125, %v850_v12  ;;  %v867_v16 = vmul.f32 0.03125, %v853_v13 }
 0x35c   : > { %1741 = vrsqrt.f32 %v873_v11 }
 0x35d   : > { %v874_v17 = vadd.f32 1e-05, %v866_v15  ;;  %v875_v18 = vadd.f32 1e-05, %v867_v16 }
 0x35e   : > { %v856_v19 = vpop.xlane.xlu1 %855  ;;  %v859_v22 = vpop.xlane.xlu0 %858 }
 0x35f   : > { %1743 = vrsqrt.f32 %v874_v17  ;;  %v868_v23 = vmul.f32 0.03125, %v856_v19  ;;  %v869_v24 = vmul.f32 0.03125, %v859_v22 }
 0x360   : > { %1745 = vrsqrt.f32 %v875_v18 }
 0x361   : > { %v1738_v25 = vpop.eup %1737  ;;  %v876_v27 = vadd.f32 1e-05, %v868_v23  ;;  %v877_v28 = vadd.f32 1e-05, %v869_v24 }
 0x362   : > { %v862_v31 = vpop.xlane.xlu1 %861  ;;  %v887_v32 = vmul.f32 %v1738_v25, %v2199_v14 }
 0x363   : > { %1747 = vrsqrt.f32 %v876_v27  ;;  %v870_v34 = vmul.f32 0.03125, %v862_v31 }
 0x364   : > { %1749 = vrsqrt.f32 %v877_v28  ;;  %v901_v35 = vmul.f32 %v1465_v26, %v887_v32 }
 0x365   : > { %v1740_v36 = vpop.eup %1739  ;;  %v878_v37 = vadd.f32 1e-05, %v870_v34 }
 0x366   : > { %v1742_v38 = vpop.eup %1741  ;;  %v888_v41 = vmul.f32 %v1740_v36, %v2207_v21  ;;  %v915_v42 = vadd.f32 %v1466_v33, %v901_v35 }
 0x367   : > { %1751 = vrsqrt.f32 %v878_v37  ;;  %v889_v43 = vmul.f32 %v1742_v38, %v2204_v20 }
 0x368   : > { %v902_v44 = vmul.f32 %v1465_v26, %v888_v41  ;;  %1585 = vmatprep.mubr.msk.f32.mxu1 %vm496_vm0, %v915_v42 }
 0x369   : > { %v1744_v45 = vpop.eup %1743  ;;  %v903_v46 = vmul.f32 %v1465_v26, %v889_v43 }
 0x36a   : > { %v1746_v14 = vpop.eup %1745  ;;  %v916_v49 = vadd.f32 %v1466_v33, %v902_v44  ;;  %v890_v50 = vmul.f32 %v1744_v45, %v2215_v29 }
 0x36b   : > { %v917_v53 = vadd.f32 %v1466_v33, %v903_v46  ;;  %v891_v54 = vmul.f32 %v1746_v14, %v2218_v30 }
 0x36c   : > { %1586 = vmatmul.mubr.msk.f32.vlgmr.msra.gmra.mrb[8].mxu1 %vm496_vm0, %v916_v49  ;;  %v904_v21 = vmul.f32 %v1465_v26, %v890_v50 }
 0x36d   : > { %v1748_v56 = vpop.eup %1747  ;;  %1673 = vmatpush3.bf16.msra.mxu1 %v1672_v52  ;;  %1588 = vmatprep.mubr.msk.f32.mxu1 %vm496_vm0, %v917_v53  ;;  %v905_v20 = vmul.f32 %v1465_v26, %v891_v54 }
 0x36e   : > { %v1750_v57 = vpop.eup %1749  ;;  %1674 = vmatprep.subr.bf16.mxu1 %v1909_v62  ;;  %v918_v58 = vadd.f32 %v1466_v33, %v904_v21  ;;  %v892_v29 = vmul.f32 %v1748_v56, %v2227_v39  ;;  %v1678_v39 = vpack.c.bf16 %v2180_v63, %v2182_v0  ;;  %v1136_v63 = vld [vmem:[%s2357_s11] sm:$0xf]  ;;  %v1912_v0 = vmov 0  }
 0x36f   : > { %v919_v51 = vadd.f32 %v1466_v33, %v905_v20  ;;  %v893_v30 = vmul.f32 %v1750_v57, %v2230_v40  ;;  %1736 = vset.pattern.permute.xlu0 %v1912_v0 }
 0x370   : > { %1589 = vmatmul.mubr.msk.f32.gmra.mrb[10].mxu1 %vm496_vm0, %v918_v58  ;;  %v906_v60 = vmul.f32 %v1465_v26, %v892_v29  ;;  %1139 = vperm.xlu0 %1736, %v1136_v63  }
 0x371   : > { %v1752_v61 = vpop.eup %1751  ;;  %1676 = vmatpush3.bf16.msra.mxu1 %v1675_v48  ;;  %1591 = vmatprep.mubr.msk.f32.mxu1 %vm496_vm0, %v919_v51  ;;  %v907_v1 = vmul.f32 %v1465_v26, %v893_v30 }
 0x372   : > { %1677 = vmatprep.subr.bf16.mxu1 %v1909_v62  ;;  %v920_v2 = vadd.f32 %v1466_v33, %v906_v60  ;;  %v894_v3 = vmul.f32 %v1752_v61, %v2239_v47  ;;  %v1911_v47 = vmov 0.0  }
 0x373   : > { %v921_v55 = vadd.f32 %v1466_v33, %v907_v1  ;;  %1613 = vmatprep.mubr.msk.f32.mxu0 %vm1910_vm2, %v1911_v47 }
 0x374   : > { %1592 = vmatmul.mubr.msk.f32.gmra.mrb[12].mxu1 %vm496_vm0, %v920_v2  ;;  %v908_v59 = vmul.f32 %v1465_v26, %v894_v3 }
 0x375   : > { %1679 = vmatpush3.bf16.msra.mxu1 %v1678_v39  ;;  %1594 = vmatprep.mubr.msk.f32.mxu1 %vm496_vm0, %v921_v55 }
 0x376   : > { %1680 = vmatprep.subr.bf16.mxu1 %v1909_v62  ;;  %v922_v40 = vadd.f32 %v1466_v33, %v908_v59 }
 0x378   : > { %1595 = vmatmul.mubr.msk.f32.gmra.mrb[14].mxu1 %vm496_vm0, %v922_v40 }
 0x379   : > { %1682 = vmatpush3.bf16.msra.mxu1 %v1681_v4  ;;  %1632 = vmatprep.mubr.msk.f32.mxu1 %vm1910_vm2, %v1911_v47 }
 0x43f   : > { %v1587_v6 = vpop.f32.mrb[8].mxu1 }
 0x440   : > { %v1030_v9 = vadd.f32 %v1587_v6, %v1467_v5  ;;  %v1024_v10 = vpop.f32.mrb[9].mxu1 }
 0x441   : > { %v1025_v11 = vadd.f32 %v1467_v5, %v1024_v10 }
 0x442   : > { %v1072_v7 = vmul.f32 0.044715, %v1030_v9  ;;  %v1064_v40 = vmul.f32 0.5, %v1030_v9 }
 0x443   : > { %v1071_v8 = vmul.f32 0.044715, %v1025_v11  ;;  %v1590_v12 = vpop.f32.mrb[10].mxu1  ;;  %v1063_v63 = vmul.f32 0.5, %v1025_v11 }
 0x444   : > { %v1080_v13 = vmul.f32 %v1072_v7, %v1030_v9  ;;  %v2290_v15 = vadd.f32 %v1590_v12, %v1467_v5  ;;  %v1034_v16 = vpop.f32.mrb[11].mxu1 }
 0x445   : > { %v1079_v17 = vmul.f32 %v1071_v8, %v1025_v11  ;;  %v2292_v18 = vadd.f32 %v1467_v5, %v1034_v16 }
 0x446   : > { %v1088_v19 = vmul.f32 %v1080_v13, %v1030_v9  ;;  %v1074_v22 = vmul.f32 0.044715, %v2290_v15  ;;  %v1066_v8 = vmul.f32 0.5, %v2290_v15 }
 0x447   : > { %v1087_v23 = vmul.f32 %v1079_v17, %v1025_v11  ;;  %v1073_v24 = vmul.f32 0.044715, %v2292_v18  ;;  %v1593_v25 = vpop.f32.mrb[12].mxu1 }
 0x448   : > { %v1096_v26 = vadd.f32 %v1088_v19, %v1030_v9  ;;  %v1082_v27 = vmul.f32 %v1074_v22, %v2290_v15  ;;  %v2297_v28 = vadd.f32 %v1593_v25, %v1467_v5  ;;  %v1044_v31 = vpop.f32.mrb[13].mxu1  ;;  %v1065_v9 = vmul.f32 0.5, %v2292_v18 }
 0x449   : > { %v1095_v32 = vadd.f32 %v1087_v23, %v1025_v11  ;;  %v1081_v33 = vmul.f32 %v1073_v24, %v2292_v18  ;;  %v2300_v34 = vadd.f32 %v1467_v5, %v1044_v31 }
 0x44a   : > { %v1104_v35 = vmul.f32 0.7978846, %v1096_v26  ;;  %v1090_v36 = vmul.f32 %v1082_v27, %v2290_v15  ;;  %v1076_v37 = vmul.f32 0.044715, %v2297_v28 }
 0x44b   : > { %v1103_v38 = vmul.f32 0.7978846, %v1095_v32  ;;  %v1089_v41 = vmul.f32 %v1081_v33, %v2292_v18  ;;  %v1075_v42 = vmul.f32 0.044715, %v2300_v34  ;;  %v1596_v43 = vpop.f32.mrb[14].mxu1  ;;  %v1067_v25 = vmul.f32 0.5, %v2300_v34 }
 0x44c   : > { %1753 = vtanh.f32 %v1104_v35  ;;  %v1098_v44 = vadd.f32 %v1090_v36, %v2290_v15  ;;  %v1084_v45 = vmul.f32 %v1076_v37, %v2297_v28  ;;  %v1060_v46 = vadd.f32 %v1596_v43, %v1467_v5  ;;  %v1054_v14 = vpop.f32.mrb[15].mxu1 }
 0x44d   : > { %1755 = vtanh.f32 %v1103_v38  ;;  %v1097_v49 = vadd.f32 %v1089_v41, %v2292_v18  ;;  %v1083_v50 = vmul.f32 %v1075_v42, %v2300_v34  ;;  %v1055_v52 = vadd.f32 %v1467_v5, %v1054_v14 }
 0x44e   : > { %v1106_v53 = vmul.f32 0.7978846, %v1098_v44  ;;  %v1092_v54 = vmul.f32 %v1084_v45, %v2297_v28  ;;  %v1078_v21 = vmul.f32 0.044715, %v1060_v46  ;;  %v1068_v15 = vmul.f32 0.5, %v2297_v28  ;;  %v1140_v44 = vpop.permute.xlu0 %1139 }
 0x44f   : > { %v1105_v56 = vmul.f32 0.7978846, %v1097_v49  ;;  %v1091_v20 = vmul.f32 %v1083_v50, %v2300_v34  ;;  %v1077_v57 = vmul.f32 0.044715, %v1055_v52  ;;  %v1070_v35 = vmul.f32 0.5, %v1060_v46 }
 0x450   : > { %1757 = vtanh.f32 %v1106_v53  ;;  %v1100_v58 = vadd.f32 %v1092_v54, %v2297_v28  ;;  %v1086_v29 = vmul.f32 %v1078_v21, %v1060_v46  ;;  %v1069_v37 = vmul.f32 0.5, %v1055_v52 }
 0x451   : > { %1759 = vtanh.f32 %v1105_v56  ;;  %v1099_v48 = vadd.f32 %v1091_v20, %v2300_v34  ;;  %v1085_v51 = vmul.f32 %v1077_v57, %v1055_v52  ;;  %v1135_v34 = vld [vmem:[%s2356_s10] sm:$0xf] }
 0x452   : > { %v1108_v30 = vmul.f32 0.7978846, %v1100_v58  ;;  %v1094_v60 = vmul.f32 %v1086_v29, %v1060_v46 }
 0x453   : > { %v1107_v61 = vmul.f32 0.7978846, %v1099_v48  ;;  %v1093_v1 = vmul.f32 %v1085_v51, %v1055_v52 }
 0x454   : > { %1761 = vtanh.f32 %v1108_v30  ;;  %v1102_v2 = vadd.f32 %v1094_v60, %v1060_v46 }
 0x455   : > { %1763 = vtanh.f32 %v1107_v61  ;;  %v1101_v3 = vadd.f32 %v1093_v1, %v1055_v52 }
 0x456   : > { %v1754_v39 = vpop.eup %1753  ;;  %v1110_v55 = vmul.f32 0.7978846, %v1102_v2 }
 0x457   : > { %v1756_v59 = vpop.eup %1755  ;;  %v1109_v4 = vmul.f32 0.7978846, %v1101_v3  ;;  %v1120_v47 = vadd.f32 1.0, %v1754_v39 }
 0x458   : > { %1765 = vtanh.f32 %v1110_v55  ;;  %v1119_v0 = vadd.f32 1.0, %v1756_v59 }
 0x459   : > { %1767 = vtanh.f32 %v1109_v4  ;;  %v1128_v5 = vmul.f32 %v1120_v47, %v1064_v40 }
 0x45a   : > { %v1758_v6 = vpop.eup %1757  ;;  %v1127_v10 = vmul.f32 %v1119_v0, %v1063_v63 }
 0x45b   : > { %v1760_v7 = vpop.eup %1759  ;;  %v1122_v13 = vadd.f32 1.0, %v1758_v6 }
 0x45c   : > { %v1656_v16 = vpack.c.bf16 %v1128_v5, %v1127_v10  ;;  %v1121_v11 = vadd.f32 1.0, %v1760_v7 }
 0x45d   : > { %v1130_v17 = vmul.f32 %v1122_v13, %v1066_v8 }
 0x45e   : > { %v1762_v19 = vpop.eup %1761  ;;  %1658 = vmatpush3.bf16.xpose.msk.msra.mxu0 %vm2317_vm3, %v1656_v16  ;;  %v1129_v22 = vmul.f32 %v1121_v11, %v1065_v9 }
 0x45f   : > { %v1764_v23 = vpop.eup %1763  ;;  %1659 = vmatprep.subr.bf16.mxu0 %v1909_v62  ;;  %v1124_v24 = vadd.f32 1.0, %v1762_v19 }
 0x460   : > { %v1660_v26 = vpack.c.bf16 %v1130_v17, %v1129_v22  ;;  %v1123_v27 = vadd.f32 1.0, %v1764_v23 }
 0x461   : > { %v1132_v31 = vmul.f32 %v1124_v24, %v1068_v15 }
 0x462   : > { %v1766_v18 = vpop.eup %1765  ;;  %v1131_v32 = vmul.f32 %v1123_v27, %v1067_v25 }
 0x463   : > { %v1768_v33 = vpop.eup %1767  ;;  %v1126_v36 = vadd.f32 1.0, %v1766_v18 }
 0x464   : > { %v1664_v38 = vpack.c.bf16 %v1132_v31, %v1131_v32  ;;  %v1125_v41 = vadd.f32 1.0, %v1768_v33 }
 0x465   : > { %v1134_v42 = vmul.f32 %v1126_v36, %v1070_v35 }
 0x466   : > { %1662 = vmatpush3.bf16.xpose.msk.msra.mxu0 %vm2317_vm3, %v1660_v26  ;;  %v1133_v28 = vmul.f32 %v1125_v41, %v1069_v37 }
 0x467   : > { %1663 = vmatprep.subr.bf16.mxu0 %v1909_v62 }
 0x468   : > { %v1668_v43 = vpack.c.bf16 %v1134_v42, %v1133_v28 }
 0x46e   : > { %1666 = vmatpush3.bf16.xpose.msk.msra.mxu0 %vm2317_vm3, %v1664_v38 }
 0x46f   : > { %1667 = vmatprep.subr.bf16.mxu0 %v1909_v62 }
 0x476   : > { %1670 = vmatpush3.bf16.xpose.msk.msra.mxu0 %vm2317_vm3, %v1668_v43 }
 0x47d   : > { %1614 = vmatmul.mubr.msk.f32.vlgmr.msra.gmra.mrb[8].mxu0 %vm643_vm1, %v1135_v34 }
 0x550   : > { %v1235_v45 = vpop.f32.mrb[8].mxu0 }
 0x551   : > { %v1236_v46 = vadd.f32 %v1235_v45, %v1140_v44  ;;  %v1615_v14 = vpop.f32.mrb[9].mxu0 }
 0x553   : > { %v1240_v49 = vsel %vm1239_vm4, %v1236_v46, -inf }
 0x554   : > { %1241 = vmax.xlane.f32.xlu1 %v1240_v49 }
 0x5e1   : > { %v1242_v50 = vpop.xlane.xlu1 %1241 }
 0x5e2   : > { %v1243_v52 = vsub.f32 %v1236_v46, %v1242_v50 }
 0x5e4   : > { %v1244_v62 = vmul.f32 1.442695, %v1243_v52 }
 0x5e6   : > { %1769 = vpow2.f32 %v1244_v62 }
 0x5f0   : > { %v1770_v53 = vpop.eup %1769 }
 0x5f1   : > { %v1246_v54 = vsel %vm1239_vm4, %v1770_v53, 0.0 }
 0x5f2   : > { %1247 = vadd.xlane.f32.xlu1 %v1246_v54 }
 0x67f   : > { %v1248_v21 = vpop.xlane.xlu1 %1247 }
 0x680   : > { %1771 = vrcp.f32 %v1248_v21 }
 0x68a   : > { %v1772_v56 = vpop.eup %1771 }
 0x68b   : > { %v1250_v20 = vmul.f32 %v1772_v56, %v1770_v53 }
 0x68d   : > { %1633 = vmatmul.mubr.msk.f32.vlgmr.msra.gmra.mrb[16].mxu1 %vm1251_vm5, %v1250_v20 }
 0x760   : > { %v1321_v57 = vpop.f32.mrb[16].mxu1 }
 0x761   : > { %1326 = vst.msk [vmem:[%s476_s17] sm:$0xf] %vm1325_vm6, %v1321_v57  ;;  %v1634_v58 = vpop.f32.mrb[17].mxu1 }
 0x762 PF: > { %s25_s21 = sadd.s32 1, %s1903_s21  }
 0x763   : > { %p22_p11 = scmp.ge.s32.totalorder %s25_s21, 8  }
 0x765   :  { %24 = sbr.rel (!%p22_p11) target bundleno = 3 (0x3), region = 118 }
 0x76c   :  { %1346 = vsyncpa [#allocation3], 1 }
 0x76d   :  { %1348 = vsyncpa [#allocation3 + $0x1], 1 }
 0x76e   :  { %1349 = vsyncpa [#allocation5], 1 }
 0x76f   :  { %1350 = vsyncpa [#allocation8], 1 }

// kernel: rt1_forward.3
= control target key start
LH: loop header
LB: loop body
LE: loop exit
PB: predicated region body
PF: predicated region fallthrough
CT: control target
= control target key end

     0   :  { %s13419_s6 = smov 1   ;;  %s13420_s10 = smov 2   ;;  %s15424_s0 = inlined_call_operand.smem [shape: u32[48], index: -1, kind: input, shape index: {}] }
   0x1   :  { %s13498_s5 = sld [smem:[%s15424_s0]]   ;;  %s13421_s14 = smov 3  }
   0x2   :  { %s13503_s9 = sld [smem:[%s15424_s0 + %s13419_s6]]   ;;  %s13422_s18 = smov 4  }
   0x3   :  { %s13508_s13 = sld [smem:[%s15424_s0 + %s13420_s10]]   ;;  %s13423_s22 = smov 5  }
   0x4   :  { %s13513_s17 = sld [smem:[%s15424_s0 + %s13421_s14]]   ;;  %s13424_s26 = smov 6  }
   0x5   :  { %s13518_s21 = sld [smem:[%s15424_s0 + %s13422_s18]]   ;;  %s13425_s30 = smov 7  }
   0x6   :  { %s13523_s25 = sld [smem:[%s15424_s0 + %s13423_s22]]   ;;  %s13426_s4 = smov 8  }
   0x7   :  { %15502 = sst [smem:[#allocation20_spill]] %s13498_s5  ;;  %s13427_s10 = smov 9  }
   0x8   :  { %15503 = sst [smem:[#allocation21_spill]] %s13503_s9  ;;  %s13428_s15 = smov 10  }
   0x9   :  { %15504 = sst [smem:[#allocation22_spill]] %s13508_s13  ;;  %s13429_s20 = smov 11  }
   0xa   :  { %15505 = sst [smem:[#allocation23_spill]] %s13513_s17  ;;  %s13431_s1 = smov 13  }
   0xb   :  { %15506 = sst [smem:[#allocation24_spill]] %s13518_s21  ;;  %s13432_s7 = smov 14  }
   0xc   :  { %15507 = sst [smem:[#allocation25_spill]] %s13523_s25  ;;  %s13434_s22 = smov 16  }
   0xd   :  { %s13528_s29 = sld [smem:[%s15424_s0 + %s13424_s26]]   ;;  %s13430_s26 = smov 12  }
   0xe   :  { %s13533_s3 = sld [smem:[%s15424_s0 + %s13425_s30]]   ;;  %s13435_s28 = smov 17  }
   0xf   :  { %s13538_s8 = sld [smem:[%s15424_s0 + %s13426_s4]]  }
  0x10   :  { %s13543_s14 = sld [smem:[%s15424_s0 + %s13427_s10]]  }
  0x11   :  { %s13548_s19 = sld [smem:[%s15424_s0 + %s13428_s15]]   ;;  %s13433_s15 = smov 15  }
  0x12   :  { %s13553_s24 = sld [smem:[%s15424_s0 + %s13429_s20]]  }
  0x13   :  { %15508 = sst [smem:[#allocation26_spill]] %s13528_s29 }
  0x14   :  { %15509 = sst [smem:[#allocation27_spill]] %s13533_s3 }
  0x15   :  { %15510 = sst [smem:[#allocation28_spill]] %s13538_s8 }
  0x16   :  { %15511 = sst [smem:[#allocation29_spill]] %s13543_s14 }
  0x17   :  { %15512 = sst [smem:[#allocation30_spill]] %s13548_s19 }
  0x18   :  { %15513 = sst [smem:[#allocation31_spill]] %s13553_s24 }
  0x19   :  { %s13558_s30 = sld [smem:[%s15424_s0 + %s13430_s26]]  }
  0x1a   :  { %s13563_s6 = sld [smem:[%s15424_s0 + %s13431_s1]]  }
  0x1b   :  { %s13568_s12 = sld [smem:[%s15424_s0 + %s13432_s7]]   ;;  %s13436_s7 = smov 18  }
  0x1c   :  { %s13573_s20 = sld [smem:[%s15424_s0 + %s13433_s15]]   ;;  %s13437_s15 = smov 19  }
  0x1d   :  { %s13578_s27 = sld [smem:[%s15424_s0 + %s13434_s22]]   ;;  %s13438_s22 = smov 20  }
  0x1e   :  { %s13583_s4 = sld [smem:[%s15424_s0 + %s13435_s28]]   ;;  %s13439_s28 = smov 21  }
  0x1f   :  { %15514 = sst [smem:[#allocation32_spill]] %s13558_s30 }
  0x20   :  { %15515 = sst [smem:[#allocation33_spill]] %s13563_s6 }
  0x21   :  { %15516 = sst [smem:[#allocation34_spill]] %s13568_s12 }
  0x22   :  { %15517 = sst [smem:[#allocation35_spill]] %s13573_s20 }
  0x23   :  { %15518 = sst [smem:[#allocation36_spill]] %s13578_s27 }
  0x24   :  { %15519 = sst [smem:[#allocation37_spill]] %s13583_s4 }
  0x25   :  { %s13588_s30 = sld [smem:[%s15424_s0 + %s13436_s7]]   ;;  %s13440_s7 = smov 22  }
  0x26   :  { %s13593_s24 = sld [smem:[%s15424_s0 + %s13437_s15]]   ;;  %s13441_s15 = smov 23  }
  0x27   :  { %s13598_s12 = sld [smem:[%s15424_s0 + %s13438_s22]]   ;;  %s13442_s22 = smov 24  }
  0x28   :  { %s13603_s8 = sld [smem:[%s15424_s0 + %s13439_s28]]   ;;  %s13443_s28 = smov 25  }
  0x29   :  { %s13608_s27 = sld [smem:[%s15424_s0 + %s13440_s7]]   ;;  %s13444_s7 = smov 26  }
  0x2a   :  { %s13613_s6 = sld [smem:[%s15424_s0 + %s13441_s15]]   ;;  %s13445_s15 = smov 27  }
  0x2b   :  { %15520 = sst [smem:[#allocation38_spill]] %s13588_s30 }
  0x2c   :  { %15521 = sst [smem:[#allocation39_spill]] %s13593_s24 }
  0x2d   :  { %15522 = sst [smem:[#allocation40_spill]] %s13598_s12 }
  0x2e   :  { %15523 = sst [smem:[#allocation41_spill]] %s13603_s8 }
  0x2f   :  { %15524 = sst [smem:[#allocation42_spill]] %s13608_s27 }
  0x30   :  { %15525 = sst [smem:[#allocation43_spill]] %s13613_s6 }
  0x31   :  { %s13618_s12 = sld [smem:[%s15424_s0 + %s13442_s22]]   ;;  %s13446_s22 = smov 28  }
  0x32   :  { %s13623_s8 = sld [smem:[%s15424_s0 + %s13443_s28]]   ;;  %s13447_s28 = smov 29  }
  0x33   :  { %s13628_s30 = sld [smem:[%s15424_s0 + %s13444_s7]]   ;;  %s13448_s7 = smov 30  }
  0x34   :  { %s13633_s6 = sld [smem:[%s15424_s0 + %s13445_s15]]   ;;  %s13449_s15 = smov 31  }
  0x35   :  { %s13638_s24 = sld [smem:[%s15424_s0 + %s13446_s22]]   ;;  %s13450_s22 = smov 32  }
  0x36   :  { %s13648_s27 = sld [smem:[%s15424_s0 + %s13448_s7]]   ;;  %s13452_s7 = smov 34  }
  0x37   :  { %15526 = sst [smem:[#allocation44_spill]] %s13618_s12 }
  0x38   :  { %15527 = sst [smem:[#allocation45_spill]] %s13623_s8 }
  0x39   :  { %15528 = sst [smem:[#allocation46_spill]] %s13628_s30 }
  0x3a   :  { %15529 = sst [smem:[#allocation47_spill]] %s13633_s6 }
  0x3b   :  { %15530 = sst [smem:[#allocation48_spill]] %s13638_s24 }
  0x3c   :  { %s13643_s8 = sld [smem:[%s15424_s0 + %s13447_s28]]   ;;  %s13451_s28 = smov 33  }
  0x3d   :  { %15532 = sst [smem:[#allocation50_spill]] %s13648_s27 }
  0x3e   :  { %s13653_s20 = sld [smem:[%s15424_s0 + %s13449_s15]]   ;;  %s13453_s15 = smov 35  }
  0x3f   :  { %s13658_s12 = sld [smem:[%s15424_s0 + %s13450_s22]]   ;;  %s13454_s22 = smov 36  }
  0x40   :  { %s13663_s3 = sld [smem:[%s15424_s0 + %s13451_s28]]   ;;  %s13455_s28 = smov 37  }
  0x41   :  { %s13668_s4 = sld [smem:[%s15424_s0 + %s13452_s7]]   ;;  %s13456_s7 = smov 38  }
  0x42   :  { %15531 = sst [smem:[#allocation49_spill]] %s13643_s8 }
  0x43   :  { %s13673_s25 = sld [smem:[%s15424_s0 + %s13453_s15]]   ;;  %s13457_s15 = smov 39  }
  0x44   :  { %15533 = sst [smem:[#allocation51_spill]] %s13653_s20 }
  0x45   :  { %15534 = sst [smem:[#allocation52_spill]] %s13658_s12 }
  0x46   :  { %15535 = sst [smem:[#allocation53_spill]] %s13663_s3 }
  0x47   :  { %15536 = sst [smem:[#allocation54_spill]] %s13668_s4 }
  0x48   :  { %s13678_s30 = sld [smem:[%s15424_s0 + %s13454_s22]]   ;;  %s13458_s22 = smov 40  }
  0x49   :  { %15537 = sst [smem:[#allocation55_spill]] %s13673_s25 }
  0x4a   :  { %s13683_s12 = sld [smem:[%s15424_s0 + %s13455_s28]]   ;;  %s13459_s28 = smov 41  }
  0x4b   :  { %s13688_s20 = sld [smem:[%s15424_s0 + %s13456_s7]]   ;;  %s13460_s7 = smov 42  }
  0x4c   :  { %s13693_s25 = sld [smem:[%s15424_s0 + %s13457_s15]]   ;;  %s13461_s15 = smov 43  }
  0x4d   :  { %s13713_s3 = sld [smem:[%s15424_s0 + %s13461_s15]]   ;;  %s13465_s15 = smov 47  }
  0x4e   :  { %15538 = sst [smem:[#allocation56_spill]] %s13678_s30 }
  0x4f   :  { %s13698_s30 = sld [smem:[%s15424_s0 + %s13458_s22]]   ;;  %s13462_s22 = smov 44  }
  0x50   :  { %15539 = sst [smem:[#allocation57_spill]] %s13683_s12 }
  0x51   :  { %15540 = sst [smem:[#allocation58_spill]] %s13688_s20 }
  0x52   :  { %15541 = sst [smem:[#allocation59_spill]] %s13693_s25 }
  0x53   :  { %s13703_s12 = sld [smem:[%s15424_s0 + %s13459_s28]]   ;;  %s13463_s28 = smov 45  }
  0x54   :  { %s13708_s20 = sld [smem:[%s15424_s0 + %s13460_s7]]   ;;  %s13464_s7 = smov 46  }
  0x55   :  { %15542 = sst [smem:[#allocation60_spill]] %s13698_s30 }
  0x56   :  { %15545 = sst [smem:[#allocation63_spill]] %s13713_s3 }
  0x57   :  { %s13718_s25 = sld [smem:[%s15424_s0 + %s13462_s22]]  }
  0x58   :  { %s13723_s29 = sld [smem:[%s15424_s0 + %s13463_s28]]  }
  0x59   :  { %15543 = sst [smem:[#allocation61_spill]] %s13703_s12 }
  0x5a   :  { %15544 = sst [smem:[#allocation62_spill]] %s13708_s20 }
  0x5b   :  { %s13728_s4 = sld [smem:[%s15424_s0 + %s13464_s7]]  }
  0x5c   :  { %s13733_s13 = sld [smem:[%s15424_s0 + %s13465_s15]]  }
  0x5d   :  { %15546 = sst [smem:[#allocation64_spill]] %s13718_s25 }
  0x5e   :  { %15547 = sst [smem:[#allocation65_spill]] %s13723_s29 }
  0x62   :  { %15548 = sst [smem:[#allocation66_spill]] %s13733_s13 }
  0x63   :  { %100 = vsyncpa [#allocation3], 0 }
  0x64   :  { %101 = vsyncpa [#allocation5], 0 }
  0x65   :  { %102 = vsyncpa [#allocation8], 0 }
  0x66   :  { %103 = vsyncpa [#allocation11], 0 }
  0x67   :  { %104 = vsyncpa [#allocation14], 0  ;;  %s13735_s22 = smov 0  }
  0x68 LB: > { %s15549_s30 = sld [smem:[#allocation60_spill]]  ;;  %s15550_s29 = sld [smem:[#allocation65_spill]]  ;;  %s13417_s22 = sphi %s13735_s22, %s110_s22  }
  0x69   : > { %s15551_s25 = sld [smem:[#allocation64_spill]]  ;;  %s15554_s20 = sld [smem:[#allocation62_spill]] }
  0x6a   : > { %s15552_s24 = sld [smem:[#allocation48_spill]]  ;;  %s15555_s19 = sld [smem:[#allocation30_spill]] }
  0x6b   : > { %s15553_s21 = sld [smem:[#allocation24_spill]]  ;;  %s15556_s17 = sld [smem:[#allocation23_spill]] }
  0x6c   : > { %s15557_s14 = sld [smem:[#allocation29_spill]]  ;;  %s15559_s6 = sld [smem:[#allocation47_spill]] }
  0x6d   : > { %s15558_s12 = sld [smem:[#allocation61_spill]]  ;;  %s15560_s3 = sld [smem:[#allocation63_spill]] }
  0x6e   : > { %15561 = sst [smem:[#allocation67_spill]] %s13417_s22  ;;  %s13466_s23 = smov [#allocation4]  }
  0x6f   : > { %s1236_s26 = sshll.u32 %s13466_s23, 4  ;;  %s13741_s28 = sadd.s32 4294967295, %s13417_s22   ;;  %s13746_s26 = int_to_ptr.vmem [resolvable:$true] %s1236_s26 }
  0x70   : > { %p10753_p0 = scmp.ge.s32.totalorder %s13417_s22, 1  ;;  %p1143_p1 = scmp.lt.s32.totalorder %s13417_s22, 3 }
  0x71   : > { %p15453_p2 = scmp.eq.s32.totalorder %s13741_s28, 0  ;;  %s13467_s1 = smov [#allocation7]  }
  0x72   : > { %p13748_p3 = pnand %p10753_p0, %p1143_p1  ;;  %s1294_s2 = sshll.u32 %s13467_s1, 4  ;;  %s13754_s2 = int_to_ptr.vmem [resolvable:$true] %s1294_s2 }
  0x73   : > { %s13468_s7 = smov [#allocation10]   ;;  %s13469_s15 = smov [#allocation2]  }
  0x74   : > { %s15562_s0 = scalar_select %p13748_p3, 1, 0 }
  0x75   : > { %p12665_p4 = pneg %p13748_p3  ;;  %s1316_s10 = sshll.u32 %s13468_s7, 4  ;;  %s13762_s10 = int_to_ptr.vmem [resolvable:$true] %s1316_s10 }
  0x76   : > { %s1174_s16 = sshll.u32 %s13469_s15, 4  ;;  %s13167_s18 = scalar_lea.hbm %s15559_s6, 16  ;;  %s13764_s16 = int_to_ptr.vmem [resolvable:$true] %s1174_s16 }
  0x77   : > { %p13758_p5 = pnand %p15453_p2, %p12665_p4  ;;  %p13168_p6 = scmp.ne.s32.totalorder %s15559_s6, %s13167_s18 }
  0x78   : > { %p13174_p10 = scmp.lt.u32.totalorder %s13167_s18, %s15559_s6 }
  0x79   : > { %p13770_p7 = pneg %p13758_p5 }
  0x7b   : > { %p13170_p8 = pnand %p13770_p7, %p13168_p6 }
  0x7d   : > { %p13171_p9 = pneg %p13170_p8 }
  0x7f   : > { %p13176_p11 = pnand %p13174_p10, %p13171_p9 }
  0x81   : > { %13179 = shalt.err (!%p13176_p11)
}
  0x82   : > { %s13180_s1 = scalar_lea.vmem %s13746_s26, 16  ;;  %s13187_s7 = scalar_lea.vmem %s13746_s26, 32 }
  0x83   : > { %p13181_p12 = scmp.ne.s32.totalorder %s13746_s26, %s13180_s1  ;;  %p13188_p1 = scmp.lt.s32.totalorder %s13746_s26, %s13746_s26 }
  0x84   : > { %p13189_p4 = scmp.lt.s32.totalorder %s13187_s7, %s13180_s1 }
  0x85   : > { %p13183_p13 = pnand %p13181_p12, %p13770_p7 }
  0x86   : > { %p13190_p2 = por %p13189_p4, %p13188_p1 }
  0x87   : > { %p13184_p0 = pneg %p13183_p13 }
  0x89   : > { %p13191_p6 = pnand %p13190_p2, %p13184_p0 }
  0x8b   : > { %13194 = shalt.err (!%p13191_p6)
}
  0x8c   : > { %12671 = dma.hbm_to_vmem [thread:$0]  (!%p13758_p5), %s15559_s6, 16, %s13746_s26, [#allocation5]  }
  0x8d   : > { %s13195_s15 = scalar_lea.hbm %s15558_s12, 16 }
  0x8e   : > { %p13196_p8 = scmp.ne.s32.totalorder %s15558_s12, %s13195_s15  ;;  %p13202_p11 = scmp.lt.u32.totalorder %s13195_s15, %s15558_s12 }
  0x90   : > { %p13198_p9 = pnand %p13196_p8, %p13770_p7 }
  0x92   : > { %p13199_p10 = pneg %p13198_p9 }
  0x94   : > { %p13204_p12 = pnand %p13202_p11, %p13199_p10 }
  0x96   : > { %13207 = shalt.err (!%p13204_p12)
}
  0x97   : > { %s13208_s18 = scalar_lea.vmem %s13754_s2, 16  ;;  %s13215_s1 = scalar_lea.vmem %s13754_s2, 32 }
  0x98   : > { %p13209_p2 = scmp.ne.s32.totalorder %s13754_s2, %s13208_s18  ;;  %p13216_p1 = scmp.lt.s32.totalorder %s13754_s2, %s13754_s2 }
  0x99   : > { %p13217_p4 = scmp.lt.s32.totalorder %s13215_s1, %s13208_s18 }
  0x9a   : > { %p13211_p13 = pnand %p13209_p2, %p13770_p7 }
  0x9b   : > { %p13218_p6 = por %p13217_p4, %p13216_p1 }
  0x9c   : > { %p13212_p0 = pneg %p13211_p13 }
  0x9e   : > { %p13219_p8 = pnand %p13218_p6, %p13212_p0 }
  0xa0   : > { %13222 = shalt.err (!%p13219_p8)
}
  0xa1   : > { %12677 = dma.hbm_to_vmem [thread:$0]  (!%p13758_p5), %s15558_s12, 16, %s13754_s2, [#allocation8]  }
  0xa2   : > { %s13223_s26 = scalar_lea.hbm %s15560_s3, 16 }
  0xa3   : > { %p13224_p9 = scmp.ne.s32.totalorder %s15560_s3, %s13223_s26  ;;  %p13230_p12 = scmp.lt.u32.totalorder %s13223_s26, %s15560_s3 }
  0xa5   : > { %p13226_p10 = pnand %p13224_p9, %p13770_p7 }
  0xa7   : > { %p13227_p11 = pneg %p13226_p10 }
  0xa9   : > { %p13232_p2 = pnand %p13230_p12, %p13227_p11 }
  0xab   : > { %13235 = shalt.err (!%p13232_p2)
}
  0xac   : > { %s13236_s7 = scalar_lea.vmem %s13762_s10, 16  ;;  %s13243_s15 = scalar_lea.vmem %s13762_s10, 32 }
  0xad   : > { %p13237_p13 = scmp.ne.s32.totalorder %s13762_s10, %s13236_s7  ;;  %p13244_p4 = scmp.lt.s32.totalorder %s13762_s10, %s13762_s10 }
  0xae   : > { %p13245_p6 = scmp.lt.s32.totalorder %s13243_s15, %s13236_s7 }
  0xaf   : > { %p13239_p0 = pnand %p13237_p13, %p13770_p7 }
  0xb0   : > { %p13246_p8 = por %p13245_p6, %p13244_p4 }
  0xb1   : > { %p13240_p1 = pneg %p13239_p0 }
  0xb3   : > { %p13247_p9 = pnand %p13246_p8, %p13240_p1 }
  0xb5   : > { %13250 = shalt.err (!%p13247_p9)
}
  0xb6   : > { %12683 = dma.hbm_to_vmem [thread:$0]  (!%p13758_p5), %s15560_s3, 16, %s13762_s10, [#allocation11]  }
  0xb7   : > { %s13251_s2 = scalar_lea.hbm %s15557_s14, 16 }
  0xb8   : > { %p13252_p10 = scmp.ne.s32.totalorder %s15557_s14, %s13251_s2  ;;  %p13258_p2 = scmp.lt.u32.totalorder %s13251_s2, %s15557_s14 }
  0xba   : > { %p13254_p11 = pnand %p13252_p10, %p13770_p7 }
  0xbc   : > { %p13255_p12 = pneg %p13254_p11 }
  0xbe   : > { %p13260_p13 = pnand %p13258_p2, %p13255_p12 }
  0xc0   : > { %13263 = shalt.err (!%p13260_p13)
}
  0xc1   : > { %s13264_s18 = scalar_lea.vmem %s13764_s16, 16  ;;  %s13271_s1 = scalar_lea.vmem %s13764_s16, 32 }
  0xc2   : > { %p13265_p0 = scmp.ne.s32.totalorder %s13764_s16, %s13264_s18  ;;  %p13272_p6 = scmp.lt.s32.totalorder %s13764_s16, %s13764_s16 }
  0xc3   : > { %p13273_p8 = scmp.lt.s32.totalorder %s13271_s1, %s13264_s18 }
  0xc4   : > { %p13267_p1 = pnand %p13265_p0, %p13770_p7 }
  0xc5   : > { %p13274_p9 = por %p13273_p8, %p13272_p6 }
  0xc6   : > { %p13268_p4 = pneg %p13267_p1 }
  0xc8   : > { %p13275_p10 = pnand %p13274_p9, %p13268_p4 }
  0xca   : > { %13278 = shalt.err (!%p13275_p10)
}
  0xcb   : > { %12668 = dma.hbm_to_vmem [thread:$0]  (!%p13758_p5), %s15557_s14, 16, %s13764_s16, [#allocation3]  }
  0xcc   : > { %s13470_s10 = smov [#allocation6]   ;;  %s13471_s7 = smov [#allocation9]  }
  0xcd   : > { %s1247_s26 = sshll.u32 %s13470_s10, 4  ;;  %s1305_s15 = sshll.u32 %s13471_s7, 4  ;;  %s1248_s26 = int_to_ptr.vmem [resolvable:$true] %s1247_s26  ;;  %s1306_s15 = int_to_ptr.vmem [resolvable:$true] %s1305_s15 }
  0xce   : > { %s13279_s2 = scalar_lea.hbm %s15552_s24, 16 }
  0xcf   : > { %p13280_p11 = scmp.ne.s32.totalorder %s15552_s24, %s13279_s2  ;;  %p13286_p13 = scmp.lt.u32.totalorder %s13279_s2, %s15552_s24 }
  0xd1   : > { %p13282_p12 = pnand %p13280_p11, %p13770_p7 }
  0xd3   : > { %p13283_p2 = pneg %p13282_p12 }
  0xd5   : > { %p13288_p0 = pnand %p13286_p13, %p13283_p2 }
  0xd7   : > { %13291 = shalt.err (!%p13288_p0)
}
  0xd8   : > { %s13292_s18 = scalar_lea.vmem %s1248_s26, 16  ;;  %s13299_s16 = scalar_lea.vmem %s1248_s26, 32 }
  0xd9   : > { %p13293_p1 = scmp.ne.s32.totalorder %s1248_s26, %s13292_s18  ;;  %p13300_p8 = scmp.lt.s32.totalorder %s1248_s26, %s1248_s26 }
  0xda   : > { %p13301_p9 = scmp.lt.s32.totalorder %s13299_s16, %s13292_s18 }
  0xdb   : > { %p13295_p4 = pnand %p13293_p1, %p13770_p7 }
  0xdc   : > { %p13302_p10 = por %p13301_p9, %p13300_p8 }
  0xdd   : > { %p13296_p6 = pneg %p13295_p4 }
  0xdf   : > { %p13303_p3 = pnand %p13302_p10, %p13296_p6 }
  0xe1   : > { %13306 = shalt.err (!%p13303_p3)
}
  0xe2   : > { %12674 = dma.hbm_to_vmem [thread:$0]  (!%p13758_p5), %s15552_s24, 16, %s1248_s26, [#allocation5]  }
  0xe3   : > { %s13307_s1 = scalar_lea.hbm %s15554_s20, 16 }
  0xe4   : > { %p13308_p11 = scmp.ne.s32.totalorder %s15554_s20, %s13307_s1  ;;  %p13314_p13 = scmp.lt.u32.totalorder %s13307_s1, %s15554_s20 }
  0xe6   : > { %p13310_p12 = pnand %p13308_p11, %p13770_p7 }
  0xe8   : > { %p13311_p2 = pneg %p13310_p12 }
  0xea   : > { %p13316_p0 = pnand %p13314_p13, %p13311_p2 }
  0xec   : > { %13319 = shalt.err (!%p13316_p0)
}
  0xed   : > { %s13320_s10 = scalar_lea.vmem %s1306_s15, 16  ;;  %s13327_s7 = scalar_lea.vmem %s1306_s15, 32 }
  0xee   : > { %p13321_p3 = scmp.ne.s32.totalorder %s1306_s15, %s13320_s10  ;;  %p13328_p6 = scmp.lt.s32.totalorder %s1306_s15, %s1306_s15 }
  0xef   : > { %p13329_p8 = scmp.lt.s32.totalorder %s13327_s7, %s13320_s10 }
  0xf0   : > { %p13323_p1 = pnand %p13321_p3, %p13770_p7 }
  0xf1   : > { %p13330_p9 = por %p13329_p8, %p13328_p6 }
  0xf2   : > { %p13324_p4 = pneg %p13323_p1 }
  0xf4   : > { %p13331_p10 = pnand %p13330_p9, %p13324_p4 }
  0xf6   : > { %13334 = shalt.err (!%p13331_p10)
}
  0xf7   : > { %12680 = dma.hbm_to_vmem [thread:$0]  (!%p13758_p5), %s15554_s20, 16, %s1306_s15, [#allocation8]  }
  0xf8   : > { %s13472_s26 = smov [#allocation12]   ;;  %s13473_s18 = smov [#allocation13]  }
  0xf9   : > { %s1327_s2 = sshll.u32 %s13472_s26, 4  ;;  %s1338_s16 = sshll.u32 %s13473_s18, 4  ;;  %s1328_s2 = int_to_ptr.vmem [resolvable:$true] %s1327_s2  ;;  %s1339_s16 = int_to_ptr.vmem [resolvable:$true] %s1338_s16 }
  0xfa   : > { %s13335_s1 = scalar_lea.hbm %s15551_s25, 16 }
  0xfb   : > { %p13336_p11 = scmp.ne.s32.totalorder %s15551_s25, %s13335_s1  ;;  %p13342_p13 = scmp.lt.u32.totalorder %s13335_s1, %s15551_s25 }
  0xfd   : > { %p13338_p12 = pnand %p13336_p11, %p13770_p7 }
  0xff   : > { %p13339_p2 = pneg %p13338_p12 }
 0x101   : > { %p13344_p0 = pnand %p13342_p13, %p13339_p2 }
 0x103   : > { %13347 = shalt.err (!%p13344_p0)
}
 0x104   : > { %s13348_s10 = scalar_lea.vmem %s1328_s2, 16  ;;  %s13355_s15 = scalar_lea.vmem %s1328_s2, 32 }
 0x105   : > { %p13349_p3 = scmp.ne.s32.totalorder %s1328_s2, %s13348_s10  ;;  %p13356_p6 = scmp.lt.s32.totalorder %s1328_s2, %s1328_s2 }
 0x106   : > { %p13357_p8 = scmp.lt.s32.totalorder %s13355_s15, %s13348_s10 }
 0x107   : > { %p13351_p1 = pnand %p13349_p3, %p13770_p7 }
 0x108   : > { %p13358_p9 = por %p13357_p8, %p13356_p6 }
 0x109   : > { %p13352_p4 = pneg %p13351_p1 }
 0x10b   : > { %p13359_p10 = pnand %p13358_p9, %p13352_p4 }
 0x10d   : > { %13362 = shalt.err (!%p13359_p10)
}
 0x10e   : > { %12686 = dma.hbm_to_vmem [thread:$0]  (!%p13758_p5), %s15551_s25, 16, %s1328_s2, [#allocation11]  }
 0x10f   : > { %s13363_s7 = scalar_lea.hbm %s15550_s29, 16 }
 0x110   : > { %p13364_p11 = scmp.ne.s32.totalorder %s15550_s29, %s13363_s7  ;;  %p13370_p13 = scmp.lt.u32.totalorder %s13363_s7, %s15550_s29 }
 0x112   : > { %p13366_p12 = pnand %p13364_p11, %p13770_p7 }
 0x114   : > { %p13367_p2 = pneg %p13366_p12 }
 0x116   : > { %p13372_p0 = pnand %p13370_p13, %p13367_p2 }
 0x118   : > { %13375 = shalt.err (!%p13372_p0)
}
 0x119   : > { %s13376_s26 = scalar_lea.vmem %s1339_s16, 16  ;;  %s13383_s18 = scalar_lea.vmem %s1339_s16, 32 }
 0x11a   : > { %p13377_p3 = scmp.ne.s32.totalorder %s1339_s16, %s13376_s26  ;;  %p13384_p6 = scmp.lt.s32.totalorder %s1339_s16, %s1339_s16 }
 0x11b   : > { %p13385_p8 = scmp.lt.s32.totalorder %s13383_s18, %s13376_s26 }
 0x11c   : > { %p13379_p1 = pnand %p13377_p3, %p13770_p7 }
 0x11d   : > { %p13386_p9 = por %p13385_p8, %p13384_p6 }
 0x11e   : > { %p13380_p4 = pneg %p13379_p1 }
 0x120   : > { %p13387_p10 = pnand %p13386_p9, %p13380_p4 }
 0x122   : > { %13390 = shalt.err (!%p13387_p10)
}
 0x123   : > { %12689 = dma.hbm_to_vmem [thread:$0]  (!%p13758_p5), %s15550_s29, 16, %s1339_s16, [#allocation14]  }
 0x124   : > { %p15565_p11 = scmp.ne.s32.totalorder %s15562_s0, 0 }
 0x126   : > { %1377 = sbr.rel (%p15565_p11) target bundleno = 20070 (0x4e66), region = 208 }
 0x12d   : > { %p15566_p12 = scmp.eq.s32.totalorder %s13741_s28, 0 }
 0x12f   : > { %13396 = dma.done.wait (%p15566_p12), [#allocation3], 16   ;;  %p15567_p2 = pmov %p15566_p12 }
 0x131   : > { %13398 = vsyncadd (%p15567_p2), [#allocation3], 4294967280  ;;  %p15568_p7 = pmov %p15567_p2 }
 0x132   : > { %p15569_p13 = pmov %p15567_p2 }
 0x133   : > { %13400 = dma.done.wait (%p15568_p7), [#allocation5], 32  }
 0x134   : > { %13402 = vsyncadd (%p15569_p13), [#allocation5], 4294967264  ;;  %p15570_p0 = pmov %p15567_p2 }
 0x136   : > { %13404 = dma.done.wait (%p15570_p0), [#allocation8], 32   ;;  %p15571_p5 = pmov %p15570_p0 }
 0x137   : > { %p15572_p3 = pmov %p15570_p0 }
 0x138   : > { %13406 = vsyncadd (%p15571_p5), [#allocation8], 4294967264 }
 0x139   : > { %13408 = dma.done.wait (%p15572_p3), [#allocation11], 32   ;;  %p15573_p1 = pmov %p15570_p0 }
 0x13a   : > { %p15574_p4 = pmov %p15570_p0 }
 0x13b   : > { %13410 = vsyncadd (%p15573_p1), [#allocation11], 4294967264 }
 0x13c   : > { %13412 = dma.done.wait (%p15574_p4), [#allocation14], 16   ;;  %p15575_p6 = pmov %p15570_p0 }
 0x13d   : > { %s15576_s9 = sld [smem:[#allocation21_spill]]  ;;  %p1525_p8 = scmp.lt.s32.totalorder %s13741_s28, 1  ;;  %v13474_v0 = vmov 0   ;;  %v1553_v3 = vld [vmem:[%s15556_s17] sm:$0xff]  ;;  %v13475_v4 = vmov 1   ;;  %v1748_v6 = vld [vmem:[%s15549_s30 + $0x8] sm:$0xff]  ;;  %v1574_v16 = vlaneseq }
 0x13e   : > { %13414 = vsyncadd (%p15575_p6), [#allocation14], 4294967280  ;;  %12787 = vset.pattern.permute.xlu1 %v13474_v0  ;;  %12785 = vset.pattern.permute.xlu0 %v13474_v0  ;;  %v1747_v5 = vld [vmem:[%s15549_s30] sm:$0xff]  ;;  %v13476_v8 = vmov 0.0|0.0   ;;  %v1749_v9 = vld [vmem:[%s15549_s30 + $0x10] sm:$0xff]  ;;  %s15578_s27 = sld [smem:[#allocation50_spill]] }
 0x13f   : > { %s15630_s28 = smov (!%p1525_p8, %s13741_s28), 1  ;;  %v12395_v7 = vpack.c.bf16 %v1748_v6, %v1747_v5  ;;  %12394 = vmatprep.subr.bf16.mxu1 %v13476_v8  ;;  %12391 = vmatprep.subr.bf16.mxu0 %v13476_v8  ;;  %v1750_v10 = vld [vmem:[%s15549_s30 + $0x18] sm:$0xff]  ;;  %v1554_v11 = vld [vmem:[%s15556_s17 + $0x8] sm:$0xff]  ;;  %vm13477_vm0 = vmmov 0   ;;  %s15579_s5 = sld [smem:[#allocation20_spill]]  ;;  %v13478_v14 = vmov 0.0  }
 0x140   : > { %15577 = sst [smem:[#allocation68_spill]] %s15630_s28  ;;  %s12632_s0 = smul.u32 24, %s15630_s28  ;;  %v12398_v12 = vpack.c.bf16 %v1750_v10, %v1749_v9  ;;  %11500 = vmatprep.mubr.msk.f32.mxu1 %vm13477_vm0, %v13478_v14  ;;  %11489 = vmatprep.mubr.msk.f32.mxu0 %vm13477_vm0, %v13478_v14  ;;  %v1555_v15 = vld [vmem:[%s15556_s17 + $0x10] sm:$0x3]  ;;  %v13921_v17 = vshrl.u32 %v1574_v16, 7  ;;  %v1653_v43 = vld [vmem:[%s15553_s21] sm:$0xff] }
 0x141   : > { %12396 = vmatpush3.bf16.msra.mxu1 %v12395_v7  ;;  %s15580_s8 = sld [smem:[#allocation49_spill]]  ;;  %vm1763_vm1 = vcmask 261120   ;;  %v1654_v56 = vld [vmem:[%s15553_s21 + $0x8] sm:$0xff]  ;;  %s15581_s2 = sld [smem:[#allocation22_spill]]  ;;  %v1660_v7 = vld [vmem:[%s15555_s19] sm:$0xff]  ;;  %vm1669_vm2 = vcmask 130048  }
 0x142   : > { %12397 = vmatprep.subr.bf16.mxu1 %v13476_v8  ;;  %v13924_v18 = vsub.s32 0, %v13921_v17  ;;  %v13928_v20 = vsub.s32 1, %v13921_v17  ;;  %s15582_s16 = sld [smem:[#allocation54_spill]]  ;;  %v1661_v9 = vld [vmem:[%s15555_s19 + $0x8] sm:$0xff]  ;;  %s15455_s1 = sshll.u32 %s15630_s28, 3  ;;  %vm1865_vm3 = vcmask 64512  }
 0x143   : > { %s1534_s11 = scalar_lea.vmem %s15576_s9, %s12632_s0  ;;  %v12392_v10 = vpack.c.bf16 %v1661_v9, %v1660_v7  ;;  %s15477_s15 = smov 96   ;;  %vm14001_vm4 = vmpackc.low %vm1865_vm3, %vm1865_vm3  ;;  %vm1961_vm5 = vcmask 146432   ;;  %vm1968_vm6 = vcmask 140288   ;;  %vm2013_vm7 = vcmask 1041408  }
 0x144   : > { %v1551_v1 = vld [vmem:[%s1534_s11 + $0x8] sm:$0xff]  ;;  %v1550_v2 = vld [vmem:[%s1534_s11] sm:$0xff]  ;;  %v1552_v13 = vld [vmem:[%s1534_s11 + $0x10] sm:$0x3]  ;;  %s15474_s7 = smov 88   ;;  %s15472_s26 = smov 120  }
 0x145   : > { %1566 = vperm.xlu1 %12787, %v1551_v1   ;;  %1561 = vperm.xlu0 %12785, %v1550_v2   ;;  %v1548_v19 = vld [vmem:[%s15578_s27] sm:$0x3]  ;;  %s13934_s23 = scalar_lea.vmem %s15579_s5, %s12632_s0  ;;  %s15585_s18 = sld [smem:[#allocation26_spill]]  ;;  %vm3184_vm8 = vcmask 254976   ;;  %vm3375_vm9 = vcmask 523264   ;;  %vm5528_vm10 = vcmask 46080  }
 0x146   : > { %12399 = vmatpush3.bf16.msra.mxu1 %v12398_v12  ;;  %v1577_v21 = vrot.slane %v1548_v19, %v13924_v18  ;;  %v1556_v24 = vld [vmem:[%s13934_s23] sm:$0xff]  ;;  %v1599_v27 = vrot.slane %v1548_v19, %v13928_v20  ;;  %v1557_v39 = vld [vmem:[%s13934_s23 + $0x8] sm:$0xff]  ;;  %v1558_v54 = vld [vmem:[%s13934_s23 + $0x10] sm:$0x3]  ;;  %12393 = vmatpush3.bf16.msra.mxu0 %v12392_v10  ;;  %s15470_s0 = smov 64   ;;  %s15468_s11 = smov 56  }
 0x147   : > { %12404 = vmatprep.subr.bf16.mxu1 %v13476_v8  ;;  %v1549_v26 = vld [vmem:[%s15580_s8] sm:$0x3]  ;;  %12400 = vmatprep.subr.bf16.mxu0 %v13476_v8  ;;  %s1538_s10 = scalar_lea.vmem %s15581_s2, %s15455_s1  ;;  %s15458_s23 = smov 80   ;;  %vm5546_vm11 = vcmask 1045504   ;;  %vm5542_vm12 = vcmask 48128   ;;  %vm6419_vm13 = vcmask 259072  }
 0x148   : > { %v1624_v30 = vrot.slane %v1549_v26, %v13924_v18  ;;  %v1646_v33 = vrot.slane %v1549_v26, %v13928_v20  ;;  %s15456_s2 = smov 112   ;;  %s15466_s1 = smov 48   ;;  %vm6715_vm14 = vcmask 144384   ;;  %vm10546_vm15 = vcmask 128000  }
 0x149   : > { %1608 = vperm.xlu1 %12787, %v1553_v3   ;;  %12786 = vset.pattern.permute.xlu0 %v13475_v4  ;;  %s15594_s3 = smov 88   ;;  %s15595_s5 = smov 120  }
 0x14a   : > { %1585 = vperm.xlu0 %12786, %v1550_v2   ;;  %s15597_s6 = smov 56   ;;  %s15598_s8 = smov 80  }
 0x14b   : > { %s15599_s9 = smov 112   ;;  %s15600_s12 = smov 48  }
 0x14c   : > { %s15601_s14 = smov 72   ;;  %s15603_s17 = smov 40  }
 0x14d   : > { %12788 = vset.pattern.permute.xlu1 %v13475_v4  ;;  %v1655_v4 = vld [vmem:[%s15553_s21 + $0x10] sm:$0x3]  ;;  %s15612_s19 = sld [smem:[#allocation45_spill]]  ;;  %s15613_s20 = sld [smem:[#allocation39_spill]] }
 0x14e   : > { %1589 = vperm.xlu1 %12788, %v1551_v1   ;;  %1632 = vperm.xlu0 %12786, %v1553_v3   ;;  %s15614_s21 = sld [smem:[#allocation38_spill]]  ;;  %s15616_s24 = sld [smem:[#allocation36_spill]] }
 0x14f   : > { %s15617_s25 = sld [smem:[#allocation28_spill]]  ;;  %s15619_s27 = sld [smem:[#allocation34_spill]] }
 0x150   : > { %s15620_s29 = sld [smem:[#allocation40_spill]]  ;;  %s15622_s22 = sld [smem:[#allocation31_spill]] }
 0x151   : > { %s15624_s28 = sld [smem:[#allocation32_spill]] }
 0x152   : > { %12789 = vset.pattern.permute.xlu1 %v13474_v0  ;;  %1636 = vperm.xlu0 %12786, %v1554_v11  }
 0x153   : > { %1613 = vperm.xlu1 %12789, %v1554_v11  }
 0x156   : > { %1593 = vperm.xlu0 %12786, %v1552_v13   ;;  %s15623_s13 = smov %s15622_s22 }
 0x157   : > { %1571 = vperm.xlu1 %12789, %v1552_v13   ;;  %v1659_v13 = vld [vmem:[%s1538_s10] sm:$0x3f]  ;;  %s15586_s10 = sld [smem:[#allocation59_spill]] }
 0x158   : > { %11490 = vmatmul.mubr.msk.f32.vlgmr.msra.gmra.mrb[0].mxu0 %vm1669_vm2, %v1659_v13 }
 0x159   : > { %11515 = vmatprep.mubr.msk.f32.mxu0 %vm13477_vm0, %v13478_v14 }
 0x15a   : > { %1640 = vperm.xlu0 %12786, %v1555_v15  }
 0x15b   : > { %1618 = vperm.xlu1 %12789, %v1555_v15   ;;  %v10778_v15 = vld [vmem:[%s15582_s16] ss:$0 sm:$0xff] }
 0x1c4   : > { %v1567_v22 = vpop.permute.xlu1 %1566  ;;  %v1562_v23 = vpop.permute.xlu0 %1561 }
 0x1c5   : > { %v1578_v25 = vmul.f32 %v1577_v21, %v1562_v23  ;;  %v1579_v36 = vmul.f32 %v1577_v21, %v1567_v22 }
 0x1c7   : > { %v1581_v28 = vadd.f32 %v1578_v25, %v1556_v24  ;;  %v1582_v45 = vadd.f32 %v1579_v36, %v1557_v39 }
 0x1c8   : > { %v1609_v29 = vpop.permute.xlu1 %1608 }
 0x1c9   : > { %v1586_v31 = vpop.permute.xlu0 %1585  ;;  %v1625_v34 = vmul.f32 %v1624_v30, %v1609_v29 }
 0x1ca   : > { %v1600_v32 = vmul.f32 %v1599_v27, %v1586_v31 }
 0x1cc   : > { %v1603_v35 = vadd.f32 %v1600_v32, %v1581_v28 }
 0x1cd   : > { %v1590_v37 = vpop.permute.xlu1 %1589  ;;  %v1633_v38 = vpop.permute.xlu0 %1632 }
 0x1ce   : > { %v1628_v40 = vadd.f32 %v1625_v34, %v1603_v35  ;;  %v1647_v41 = vmul.f32 %v1646_v33, %v1633_v38  ;;  %v1601_v42 = vmul.f32 %v1599_v27, %v1590_v37 }
 0x1d0   : > { %v1650_v44 = vadd.f32 %v1647_v41, %v1628_v40  ;;  %v1604_v49 = vadd.f32 %v1601_v42, %v1582_v45 }
 0x1d1   : > { %v1637_v46 = vpop.permute.xlu0 %1636 }
 0x1d2   : > { %v13943_v47 = vadd.f32 %v1653_v43, %v1650_v44  ;;  %v1614_v48 = vpop.permute.xlu1 %1613  ;;  %v1648_v51 = vmul.f32 %v1646_v33, %v1637_v46  ;;  %v14039_v46 = vld [vmem:[%s15585_s18] sm:$0xff] }
 0x1d3   : > { %v1626_v50 = vmul.f32 %v1624_v30, %v1614_v48 }
 0x1d4   : > { %11501 = vmatmul.mubr.msk.f32.vlgmr.msra.gmra.mrb[0].mxu1 %vm1763_vm1, %v13943_v47 }
 0x1d5   : > { %v1629_v52 = vadd.f32 %v1626_v50, %v1604_v49  ;;  %v1594_v53 = vpop.permute.xlu0 %1593  ;;  %11503 = vmatprep.mubr.msk.f32.mxu1 %vm13477_vm0, %v13478_v14 }
 0x1d6   : > { %v1572_v55 = vpop.permute.xlu1 %1571  ;;  %v1602_v59 = vmul.f32 %v1599_v27, %v1594_v53 }
 0x1d7   : > { %v1651_v57 = vadd.f32 %v1648_v51, %v1629_v52  ;;  %v1580_v58 = vmul.f32 %v1577_v21, %v1572_v55  ;;  %v14043_v51 = vld [vmem:[%s15585_s18 + $0x8] sm:$0xff] }
 0x1d9   : > { %v1583_v60 = vadd.f32 %v1580_v58, %v1558_v54  ;;  %v13951_v61 = vadd.f32 %v1654_v56, %v1651_v57  ;;  %v1641_v62 = vpop.permute.xlu0 %1640  ;;  %v14048_v56 = vld [vmem:[%s15585_s18 + $0x10] sm:$0x3] }
 0x1da   : > { %v1619_v63 = vpop.permute.xlu1 %1618  ;;  %v1649_v2 = vmul.f32 %v1646_v33, %v1641_v62 }
 0x1db   : > { %v1605_v0 = vadd.f32 %v1602_v59, %v1583_v60  ;;  %v1627_v1 = vmul.f32 %v1624_v30, %v1619_v63  ;;  %11504 = vmatmul.mubr.msk.f32.gmra.mrb[2].mxu1 %vm1763_vm1, %v13951_v61 }
 0x1dc   : > { %11506 = vmatprep.mubr.msk.f32.mxu1 %vm13477_vm0, %v13478_v14 }
 0x1dd   : > { %v1630_v3 = vadd.f32 %v1627_v1, %v1605_v0 }
 0x1df   : > { %v1652_v5 = vadd.f32 %v1649_v2, %v1630_v3 }
 0x1e1   : > { %v13958_v6 = vadd.f32 %v1655_v4, %v1652_v5 }
 0x1e3   : > { %11507 = vmatmul.mubr.msk.f32.gmra.mrb[4].mxu1 %vm1763_vm1, %v13958_v6 }
 0x1e4   : > { %11530 = vmatprep.mubr.msk.f32.mxu1 %vm13477_vm0, %v13478_v14 }
 0x22b   : > { %v14036_v44 = vpop.f32.mrb[0].mxu0 }
 0x22c   : > { %v11491_v45 = vpop.f32.mrb[1].mxu0 }
 0x2a7   : > { %v1839_v11 = vpop.f32.mrb[0].mxu1 }
 0x2a8   : > { %v11502_v12 = vpop.f32.mrb[1].mxu1  ;;  %v1840_v19 = vadd.f32 %v10778_v15, %v1839_v11 }
 0x2aa   : > { %v13984_v27 = vmul.f32 0.35355338, %v1840_v19 }
 0x2ae   : > { %v1844_v16 = vpop.f32.mrb[2].mxu1 }
 0x2af   : > { %v1845_v21 = vadd.f32 %v10778_v15, %v1844_v16  ;;  %v11505_v22 = vpop.f32.mrb[3].mxu1 }
 0x2b1   : > { %v13974_v23 = vpack.i.bf16 %v1845_v21, %v1840_v19  ;;  %v13995_v29 = vmul.f32 0.35355338, %v1845_v21 }
 0x2b3   : > { %12791 = vrot.lane.b32.xlu1 %v13974_v23, %s15477_s15 }
 0x2b6   : > { %v1849_v24 = vpop.f32.mrb[4].mxu1 }
 0x2b7   : > { %v13978_v25 = vadd.f32 %v10778_v15, %v1849_v24  ;;  %12796 = vrot.lane.b32.xlu1 %v13974_v23, %s15474_s7  ;;  %v11508_v26 = vpop.f32.mrb[5].mxu1 }
 0x2b9   : > { %1863 = vrot.lane.b32.xlu0 %v13978_v25, %s15477_s15  ;;  %v13991_v28 = vmul.f32 0.35355338, %v13978_v25 }
 0x2bb   : > { %2096 = vrot.lane.b32.xlu1 %v13984_v27, %s15472_s26 }
 0x2bd   : > { %2106 = vrot.lane.b32.xlu0 %v13978_v25, %s15474_s7  ;;  %s15593_s7 = sld [smem:[#allocation52_spill]] }
 0x2bf   : > { %2100 = vrot.lane.b32.xlu1 %v13991_v28, %s15472_s26 }
 0x2c1   : > { %2098 = vrot.lane.b32.xlu0 %v13995_v29, %s15472_s26  ;;  %s15592_s26 = sld [smem:[#allocation51_spill]] }
 0x325   : > { %v12792_v30 = vpop.permute.xlu1 %12791 }
 0x326   : > { %v12794_v31 = vunpack.i.h.bf16 %v12792_v30  ;;  %v12793_v32 = vunpack.i.l.bf16 %v12792_v30 }
 0x328   : > { %v12401_v34 = vpack.c.bf16 %v12794_v31, %v12793_v32 }
 0x329   : > { %v12797_v35 = vpop.permute.xlu1 %12796 }
 0x32a   : > { %12403 = vmatpush3.bf16.xpose.msk.msra.mxu0 %vm14001_vm4, %v12401_v34  ;;  %v12799_v36 = vunpack.i.h.bf16 %v12797_v35  ;;  %v12798_v37 = vunpack.i.l.bf16 %v12797_v35 }
 0x32b   : > { %11513 = vmatprep.subr.mxu0 %v13478_v14  ;;  %v1864_v38 = vpop.permute.xlu0 %1863 }
 0x32c   : > { %v12408_v39 = vpack.c.bf16 %v12799_v36, %v12798_v37 }
 0x32d   : > { %v2097_v41 = vpop.permute.xlu1 %2096 }
 0x32f   : > { %v2107_v40 = vpop.permute.xlu0 %2106 }
 0x331   : > { %v2101_v43 = vpop.permute.xlu1 %2100 }
 0x332   : > { %11514 = vmatpush3.xpose.msk.msra.mxu0 %vm1865_vm3, %v1864_v38 }
 0x333   : > { %12407 = vmatprep.subr.bf16.mxu0 %v13476_v8  ;;  %v2099_v42 = vpop.permute.xlu0 %2098 }
 0x335   : > { %11516 = vmatmul.mubr.msk.f32.vlgmr.msra.gmra.mrb[2].mxu0 %vm1865_vm3, %v13984_v27 }
 0x336   : > { %12410 = vmatpush3.bf16.xpose.msk.msra.mxu0 %vm14001_vm4, %v12408_v39  ;;  %11518 = vmatprep.mubr.msk.f32.mxu0 %vm13477_vm0, %v13478_v14 }
 0x337   : > { %11543 = vmatprep.subr.mxu0 %v13478_v14 }
 0x339   : > { %11519 = vmatmul.mubr.msk.f32.gmra.mrb[4].mxu0 %vm1865_vm3, %v13995_v29 }
 0x33a   : > { %11521 = vmatprep.mubr.msk.f32.mxu0 %vm13477_vm0, %v13478_v14 }
 0x33d   : > { %11522 = vmatmul.mubr.msk.f32.gmra.mrb[6].mxu0 %vm1865_vm3, %v13991_v28 }
 0x33e   : > { %11544 = vmatpush3.xpose.msk.msra.mxu0 %vm1865_vm3, %v2107_v40  ;;  %11545 = vmatprep.mubr.msk.f32.mxu0 %vm13477_vm0, %v13478_v14 }
 0x33f   : > { %11569 = vmatprep.subr.mxu0 %v13478_v14 }
 0x341   : > { %11546 = vmatmul.mubr.msk.f32.vlgmr.msra.gmra.mrb[8].mxu0 %vm1865_vm3, %v2097_v41 }
 0x342   : > { %11548 = vmatprep.mubr.msk.f32.mxu0 %vm13477_vm0, %v13478_v14 }
 0x345   : > { %11549 = vmatmul.mubr.msk.f32.gmra.mrb[10].mxu0 %vm1865_vm3, %v2099_v42 }
 0x346   : > { %11551 = vmatprep.mubr.msk.f32.mxu0 %vm13477_vm0, %v13478_v14 }
 0x349   : > { %11552 = vmatmul.mubr.msk.f32.gmra.mrb[12].mxu0 %vm1865_vm3, %v2101_v43 }
 0x34a   : > { %11571 = vmatprep.mubr.msk.f32.mxu0 %vm13477_vm0, %v13478_v14 }
 0x408   : > { %v1947_v48 = vpop.f32.mrb[2].mxu0 }
 0x409   : > { %v1948_v49 = vadd.f32 %v1947_v48, %v14039_v46  ;;  %v11517_v50 = vpop.f32.mrb[3].mxu0 }
 0x40b   : > { %v1962_v52 = vsel %vm1961_vm5, %v1948_v49, -inf }
 0x40c   : > { %v1952_v53 = vpop.f32.mrb[4].mxu0  ;;  %1963 = vmax.xlane.f32.xlu0 %v1962_v52 }
 0x40d   : > { %v1953_v54 = vadd.f32 %v1952_v53, %v14043_v51  ;;  %v11520_v55 = vpop.f32.mrb[5].mxu0 }
 0x40f   : > { %v1965_v57 = vsel %vm1961_vm5, %v1953_v54, -inf }
 0x410   : > { %v1957_v58 = vpop.f32.mrb[6].mxu0  ;;  %1966 = vmax.xlane.f32.xlu1 %v1965_v57 }
 0x411   : > { %v1958_v59 = vadd.f32 %v1957_v58, %v14048_v56  ;;  %v11523_v60 = vpop.f32.mrb[7].mxu0 }
 0x413   : > { %v1969_v62 = vsel %vm1968_vm6, %v1958_v59, -inf }
 0x414   : > { %v2186_v63 = vpop.f32.mrb[8].mxu0  ;;  %1970 = vmax.xlane.f32.xlu0 %v1969_v62 }
 0x415   : > { %v2187_v0 = vadd.f32 %v2186_v63, %v14039_v46  ;;  %v11547_v1 = vpop.f32.mrb[9].mxu0 }
 0x417   : > { %v2200_v2 = vsel %vm1961_vm5, %v2187_v0, -inf }
 0x418   : > { %v2191_v3 = vpop.f32.mrb[10].mxu0  ;;  %2201 = vmax.xlane.f32.xlu0 %v2200_v2 }
 0x419   : > { %v2192_v4 = vadd.f32 %v2191_v3, %v14043_v51  ;;  %v11550_v5 = vpop.f32.mrb[11].mxu0 }
 0x41b   : > { %v2203_v7 = vsel %vm1961_vm5, %v2192_v4, -inf }
 0x41c   : > { %v2196_v9 = vpop.f32.mrb[12].mxu0  ;;  %2204 = vmax.xlane.f32.xlu1 %v2203_v7 }
 0x41d   : > { %v2197_v10 = vadd.f32 %v2196_v9, %v14048_v56  ;;  %v11553_v11 = vpop.f32.mrb[13].mxu0 }
 0x41f   : > { %v2206_v12 = vsel %vm1968_vm6, %v2197_v10, -inf }
 0x420   : > { %2207 = vmax.xlane.f32.xlu0 %v2206_v12 }
 0x42d   : > { %2000 = vrot.lane.b32.xlu1 %v13978_v25, %s15470_s0 }
 0x436   : > { %12801 = vrot.lane.b32.xlu0 %v13974_v23, %s15470_s0  ;;  %s15591_s0 = sld [smem:[#allocation58_spill]] }
 0x499   : > { %v1964_v13 = vpop.xlane.xlu0 %1963 }
 0x49a   : > { %v1972_v15 = vsub.f32 %v1948_v49, %v1964_v13 }
 0x49c   : > { %v1975_v16 = vmul.f32 1.442695, %v1972_v15 }
 0x49d   : > { %v1967_v19 = vpop.xlane.xlu1 %1966 }
 0x49e   : > { %12940 = vpow2.f32 %v1975_v16  ;;  %v1973_v21 = vsub.f32 %v1953_v54, %v1967_v19 }
 0x4a0   : > { %v1977_v22 = vmul.f32 1.442695, %v1973_v21 }
 0x4a1   : > { %v1971_v24 = vpop.xlane.xlu0 %1970 }
 0x4a2   : > { %12942 = vpow2.f32 %v1977_v22  ;;  %v1974_v26 = vsub.f32 %v1958_v59, %v1971_v24 }
 0x4a4   : > { %v1979_v30 = vmul.f32 1.442695, %v1974_v26 }
 0x4a5   : > { %v2202_v31 = vpop.xlane.xlu0 %2201 }
 0x4a6   : > { %12944 = vpow2.f32 %v1979_v30  ;;  %v2209_v32 = vsub.f32 %v2187_v0, %v2202_v31 }
 0x4a8   : > { %v12941_v34 = vpop.eup %12940  ;;  %v2212_v35 = vmul.f32 1.442695, %v2209_v32 }
 0x4a9   : > { %v2205_v36 = vpop.xlane.xlu1 %2204  ;;  %v1981_v37 = vsel %vm1961_vm5, %v12941_v34, 0.0 }
 0x4aa   : > { %12946 = vpow2.f32 %v2212_v35  ;;  %v2210_v38 = vsub.f32 %v2192_v4, %v2205_v36  ;;  %1982 = vadd.xlane.f32.xlu1 %v1981_v37  ;;  %v1752_v35 = vld [vmem:[%s15586_s10] sm:$0xff]  ;;  %v1753_v36 = vld [vmem:[%s15586_s10 + $0x8] sm:$0xff] }
 0x4ab   : > { %11570 = vmatpush3.msra.mxu0 %v1753_v36 }
 0x4ac   : > { %v12943_v39 = vpop.eup %12942  ;;  %v2214_v40 = vmul.f32 1.442695, %v2210_v38  ;;  %12414 = vmatprep.subr.bf16.mxu0 %v13476_v8 }
 0x4ad   : > { %v2208_v41 = vpop.xlane.xlu0 %2207  ;;  %v1984_v42 = vsel %vm1961_vm5, %v12943_v39, 0.0  ;;  %v2001_v59 = vpop.permute.xlu1 %2000 }
 0x4ae   : > { %12948 = vpow2.f32 %v2214_v40  ;;  %v2211_v43 = vsub.f32 %v2197_v10, %v2208_v41  ;;  %1985 = vadd.xlane.f32.xlu0 %v1984_v42 }
 0x4b0   : > { %v12945_v45 = vpop.eup %12944  ;;  %v2216_v48 = vmul.f32 1.442695, %v2211_v43 }
 0x4b1   : > { %v12802_v49 = vpop.permute.xlu0 %12801  ;;  %v1987_v50 = vsel %vm1968_vm6, %v12945_v45, 0.0 }
 0x4b2   : > { %12950 = vpow2.f32 %v2216_v48  ;;  %v12804_v52 = vunpack.i.h.bf16 %v12802_v49  ;;  %v12803_v53 = vunpack.i.l.bf16 %v12802_v49  ;;  %1988 = vadd.xlane.f32.xlu1 %v1987_v50 }
 0x4b4   : > { %v12947_v54 = vpop.eup %12946  ;;  %v12405_v55 = vpack.c.bf16 %v12804_v52, %v12803_v53 }
 0x4b5   : > { %v2218_v57 = vsel %vm1961_vm5, %v12947_v54, 0.0 }
 0x4b6   : > { %2219 = vadd.xlane.f32.xlu0 %v2218_v57  ;;  %12406 = vmatpush3.bf16.msra.mxu1 %v12405_v55 }
 0x4b7   : > { %11528 = vmatprep.subr.mxu1 %v13478_v14 }
 0x4b8   : > { %v12949_v58 = vpop.eup %12948 }
 0x4b9   : > { %v2221_v60 = vsel %vm1961_vm5, %v12949_v58, 0.0 }
 0x4ba   : > { %2222 = vadd.xlane.f32.xlu1 %v2221_v60  ;;  %11529 = vmatpush3.msk.msra.mxu1 %vm2013_vm7, %v2001_v59 }
 0x4bb   : > { %12411 = vmatprep.subr.bf16.mxu1 %v13476_v8 }
 0x4bc   : > { %v12951_v62 = vpop.eup %12950 }
 0x4bd   : > { %v2224_v63 = vsel %vm1968_vm6, %v12951_v62, 0.0 }
 0x4be   : > { %2225 = vadd.xlane.f32.xlu1 %v2224_v63 }
 0x4cc   : > { %12806 = vrot.lane.b32.xlu0 %v13974_v23, %s15468_s11 }
 0x4cf   : > { %2237 = vrot.lane.b32.xlu1 %v13978_v25, %s15468_s11  ;;  %s15590_s11 = sld [smem:[#allocation55_spill]] }
 0x4d0   : > { %12811 = vrot.lane.b32.xlu0 %v13974_v23, %s15458_s23 }
 0x4d3   : > { %2520 = vrot.lane.b32.xlu1 %v13978_v25, %s15458_s23  ;;  %s15460_s23 = smov 104  }
 0x4d4   : > { %2510 = vrot.lane.b32.xlu0 %v13984_v27, %s15456_s2 }
 0x4d7   : > { %2512 = vrot.lane.b32.xlu1 %v13995_v29, %s15456_s2 }
 0x4d8   : > { %2514 = vrot.lane.b32.xlu0 %v13991_v28, %s15456_s2  ;;  %s15464_s2 = smov 72  }
 0x537   : > { %v1983_v0 = vpop.xlane.xlu1 %1982 }
 0x538   : > { %12952 = vrcp.f32 %v1983_v0 }
 0x53b   : > { %v1986_v1 = vpop.xlane.xlu0 %1985 }
 0x53c   : > { %12954 = vrcp.f32 %v1986_v1 }
 0x53f   : > { %v1989_v2 = vpop.xlane.xlu1 %1988 }
 0x540   : > { %12956 = vrcp.f32 %v1989_v2 }
 0x542   : > { %v12953_v3 = vpop.eup %12952 }
 0x543   : > { %v1993_v4 = vmul.f32 %v12953_v3, %v12941_v34  ;;  %v2220_v5 = vpop.xlane.xlu0 %2219 }
 0x544   : > { %12958 = vrcp.f32 %v2220_v5 }
 0x545   : > { %11531 = vmatmul.mubr.msk.f32.vlgmr.msra.gmra.mrb[6].mxu1 %vm1961_vm5, %v1993_v4 }
 0x546   : > { %v12955_v7 = vpop.eup %12954  ;;  %11533 = vmatprep.mubr.msk.f32.mxu1 %vm13477_vm0, %v13478_v14 }
 0x547   : > { %v2223_v9 = vpop.xlane.xlu1 %2222  ;;  %v12807_v10 = vpop.permute.xlu0 %12806  ;;  %v1994_v11 = vmul.f32 %v12955_v7, %v12943_v39 }
 0x548   : > { %12960 = vrcp.f32 %v2223_v9  ;;  %v12809_v12 = vunpack.i.h.bf16 %v12807_v10  ;;  %v12808_v13 = vunpack.i.l.bf16 %v12807_v10 }
 0x549   : > { %11534 = vmatmul.mubr.msk.f32.gmra.mrb[8].mxu1 %vm1961_vm5, %v1994_v11 }
 0x54a   : > { %v12957_v15 = vpop.eup %12956  ;;  %v12412_v16 = vpack.c.bf16 %v12809_v12, %v12808_v13  ;;  %11536 = vmatprep.mubr.msk.f32.mxu1 %vm13477_vm0, %v13478_v14 }
 0x54b   : > { %v2226_v19 = vpop.xlane.xlu1 %2225  ;;  %v1995_v21 = vmul.f32 %v12957_v15, %v12945_v45  ;;  %v12812_v40 = vpop.permute.xlu0 %12811 }
 0x54c   : > { %12962 = vrcp.f32 %v2226_v19  ;;  %12413 = vmatpush3.bf16.msra.mxu1 %v12412_v16  ;;  %v12814_v42 = vunpack.i.h.bf16 %v12812_v40  ;;  %v12813_v43 = vunpack.i.l.bf16 %v12812_v40 }
 0x54d   : > { %11537 = vmatmul.mubr.msk.f32.gmra.mrb[10].mxu1 %vm1961_vm5, %v1995_v21  ;;  %11558 = vmatprep.subr.mxu1 %v13478_v14 }
 0x54e   : > { %v12959_v22 = vpop.eup %12958  ;;  %11560 = vmatprep.mubr.msk.f32.mxu1 %vm13477_vm0, %v13478_v14  ;;  %v12415_v49 = vpack.c.bf16 %v12814_v42, %v12813_v43 }
 0x54f   : > { %v2230_v24 = vmul.f32 %v12959_v22, %v12947_v54  ;;  %v2238_v26 = vpop.permute.xlu1 %2237  ;;  %v2511_v59 = vpop.permute.xlu0 %2510 }
 0x550   : > { %11559 = vmatpush3.msk.msra.mxu1 %vm2013_vm7, %v2238_v26 }
 0x551   : > { %11561 = vmatmul.mubr.msk.f32.vlgmr.msra.gmra.mrb[12].mxu1 %vm1961_vm5, %v2230_v24  ;;  %11580 = vmatprep.subr.mxu1 %v13478_v14 }
 0x552   : > { %v12961_v30 = vpop.eup %12960  ;;  %11563 = vmatprep.mubr.msk.f32.mxu1 %vm13477_vm0, %v13478_v14  ;;  %11581 = vmatpush3.msra.mxu1 %v1752_v35 }
 0x553   : > { %v2231_v31 = vmul.f32 %v12961_v30, %v12949_v58  ;;  %12418 = vmatprep.subr.bf16.mxu1 %v13476_v8  ;;  %v2521_v57 = vpop.permute.xlu1 %2520 }
 0x555   : > { %11564 = vmatmul.mubr.msk.f32.gmra.mrb[14].mxu1 %vm1961_vm5, %v2231_v31 }
 0x556   : > { %v12963_v32 = vpop.eup %12962  ;;  %11566 = vmatprep.mubr.msk.f32.mxu1 %vm13477_vm0, %v13478_v14 }
 0x557   : > { %v2232_v34 = vmul.f32 %v12963_v32, %v12951_v62  ;;  %v2513_v60 = vpop.permute.xlu1 %2512  ;;  %v2515_v62 = vpop.permute.xlu0 %2514 }
 0x559   : > { %11567 = vmatmul.mubr.msk.f32.gmra.mrb[16].mxu1 %vm1961_vm5, %v2232_v34 }
 0x55a   : > { %11582 = vmatprep.mubr.msk.f32.mxu1 %vm13477_vm0, %v13478_v14 }
 0x618   : > { %v2082_v37 = vpop.f32.mrb[6].mxu1 }
 0x619   : > { %v11532_v38 = vpop.f32.mrb[7].mxu1  ;;  %11583 = vmatmul.mubr.msk.f32.vlgmr.msra.gmra.mrb[18].mxu1 %vm1865_vm3, %v2082_v37 }
 0x61a   : > { %11585 = vmatprep.mubr.msk.f32.mxu1 %vm13477_vm0, %v13478_v14 }
 0x61c   : > { %v2087_v39 = vpop.f32.mrb[8].mxu1 }
 0x61d   : > { %v11535_v41 = vpop.f32.mrb[9].mxu1  ;;  %11586 = vmatmul.mubr.msk.f32.gmra.mrb[20].mxu1 %vm1865_vm3, %v2087_v39 }
 0x61e   : > { %11588 = vmatprep.mubr.msk.f32.mxu1 %vm13477_vm0, %v13478_v14 }
 0x620   : > { %v2092_v45 = vpop.f32.mrb[10].mxu1 }
 0x621   : > { %v11538_v48 = vpop.f32.mrb[11].mxu1  ;;  %11589 = vmatmul.mubr.msk.f32.gmra.mrb[22].mxu1 %vm1865_vm3, %v2092_v45 }
 0x622   : > { %11612 = vmatprep.mubr.msk.f32.mxu1 %vm13477_vm0, %v13478_v14 }
 0x624   : > { %v2318_v50 = vpop.f32.mrb[12].mxu1 }
 0x625   : > { %v11562_v52 = vpop.f32.mrb[13].mxu1  ;;  %11572 = vmatmul.mubr.msk.f32.vlgmr.msra.gmra.mrb[14].mxu0 %vm1865_vm3, %v2318_v50 }
 0x626   : > { %12417 = vmatpush3.bf16.xpose.msk.msra.mxu0 %vm14001_vm4, %v12415_v49  ;;  %11574 = vmatprep.mubr.msk.f32.mxu0 %vm13477_vm0, %v13478_v14 }
 0x627   : > { %11595 = vmatprep.subr.mxu0 %v13478_v14 }
 0x628   : > { %v2323_v53 = vpop.f32.mrb[14].mxu1 }
 0x629   : > { %v11565_v54 = vpop.f32.mrb[15].mxu1  ;;  %11575 = vmatmul.mubr.msk.f32.gmra.mrb[16].mxu0 %vm1865_vm3, %v2323_v53 }
 0x62a   : > { %11577 = vmatprep.mubr.msk.f32.mxu0 %vm13477_vm0, %v13478_v14 }
 0x62c   : > { %v2328_v55 = vpop.f32.mrb[16].mxu1 }
 0x62d   : > { %v11568_v58 = vpop.f32.mrb[17].mxu1  ;;  %11578 = vmatmul.mubr.msk.f32.gmra.mrb[18].mxu0 %vm1865_vm3, %v2328_v55 }
 0x62e   : > { %11596 = vmatpush3.xpose.msk.msra.mxu0 %vm1865_vm3, %v2521_v57  ;;  %11597 = vmatprep.mubr.msk.f32.mxu0 %vm13477_vm0, %v13478_v14 }
 0x62f   : > { %11621 = vmatprep.subr.mxu0 %v13478_v14 }
 0x631   : > { %11598 = vmatmul.mubr.msk.f32.vlgmr.msra.gmra.mrb[20].mxu0 %vm1865_vm3, %v2511_v59 }
 0x632   : > { %11600 = vmatprep.mubr.msk.f32.mxu0 %vm13477_vm0, %v13478_v14 }
 0x635   : > { %11601 = vmatmul.mubr.msk.f32.gmra.mrb[22].mxu0 %vm1865_vm3, %v2513_v60 }
 0x636   : > { %11603 = vmatprep.mubr.msk.f32.mxu0 %vm13477_vm0, %v13478_v14 }
 0x639   : > { %11604 = vmatmul.mubr.msk.f32.gmra.mrb[24].mxu0 %vm1865_vm3, %v2515_v62 }
 0x63a   : > { %11623 = vmatprep.mubr.msk.f32.mxu0 %vm13477_vm0, %v13478_v14 }
 0x6ec   : > { %v2496_v63 = vpop.f32.mrb[18].mxu1 }
 0x6ed   : > { %v11584_v0 = vpop.f32.mrb[19].mxu1 }
 0x6f0   : > { %v2501_v1 = vpop.f32.mrb[20].mxu1 }
 0x6f1   : > { %v11587_v2 = vpop.f32.mrb[21].mxu1 }
 0x6f4   : > { %v2506_v3 = vpop.f32.mrb[22].mxu1 }
 0x6f5   : > { %v11590_v4 = vpop.f32.mrb[23].mxu1 }
 0x6f8   : > { %v2407_v5 = vpop.f32.mrb[14].mxu0 }
 0x6f9   : > { %v14143_v7 = vadd.f32 %v2496_v63, %v2407_v5  ;;  %v11573_v9 = vpop.f32.mrb[15].mxu0 }
 0x6fc   : > { %v2412_v10 = vpop.f32.mrb[16].mxu0 }
 0x6fd   : > { %v14145_v11 = vadd.f32 %v2501_v1, %v2412_v10  ;;  %v11576_v12 = vpop.f32.mrb[17].mxu0 }
 0x700   : > { %v2417_v13 = vpop.f32.mrb[18].mxu0 }
 0x701   : > { %v14147_v15 = vadd.f32 %v2506_v3, %v2417_v13  ;;  %v11579_v16 = vpop.f32.mrb[19].mxu0 }
 0x704   : > { %v2600_v19 = vpop.f32.mrb[20].mxu0 }
 0x705   : > { %v2601_v21 = vadd.f32 %v2600_v19, %v14039_v46  ;;  %v11599_v22 = vpop.f32.mrb[21].mxu0 }
 0x707   : > { %v2614_v24 = vsel %vm1961_vm5, %v2601_v21, -inf }
 0x708   : > { %2615 = vmax.xlane.f32.xlu1 %v2614_v24  ;;  %v2605_v26 = vpop.f32.mrb[22].mxu0  ;;  %v1754_v24 = vld [vmem:[%s15586_s10 + $0x10] sm:$0xff] }
 0x709   : > { %v2606_v30 = vadd.f32 %v2605_v26, %v14043_v51  ;;  %v11602_v31 = vpop.f32.mrb[23].mxu0  ;;  %11622 = vmatpush3.msra.mxu0 %v1754_v24 }
 0x70a   : > { %12425 = vmatprep.subr.bf16.mxu0 %v13476_v8 }
 0x70b   : > { %v2617_v32 = vsel %vm1961_vm5, %v2606_v30, -inf }
 0x70c   : > { %2618 = vmax.xlane.f32.xlu0 %v2617_v32  ;;  %v2610_v34 = vpop.f32.mrb[24].mxu0 }
 0x70d   : > { %v2611_v35 = vadd.f32 %v2610_v34, %v14048_v56  ;;  %v11605_v36 = vpop.f32.mrb[25].mxu0 }
 0x70f   : > { %v2620_v37 = vsel %vm1968_vm6, %v2611_v35, -inf }
 0x710   : > { %2621 = vmax.xlane.f32.xlu0 %v2620_v37 }
 0x795   : > { %v2616_v38 = vpop.xlane.xlu1 %2615 }
 0x796   : > { %v2623_v39 = vsub.f32 %v2601_v21, %v2616_v38 }
 0x798   : > { %v2626_v40 = vmul.f32 1.442695, %v2623_v39 }
 0x799   : > { %v2619_v41 = vpop.xlane.xlu0 %2618 }
 0x79a   : > { %12964 = vpow2.f32 %v2626_v40  ;;  %v2624_v42 = vsub.f32 %v2606_v30, %v2619_v41 }
 0x79c   : > { %v2628_v43 = vmul.f32 1.442695, %v2624_v42 }
 0x79d   : > { %v2622_v52 = vpop.xlane.xlu0 %2621 }
 0x79e   : > { %12966 = vpow2.f32 %v2628_v43  ;;  %v2625_v53 = vsub.f32 %v2611_v35, %v2622_v52 }
 0x7a0   : > { %v2630_v54 = vmul.f32 1.442695, %v2625_v53 }
 0x7a2   : > { %12968 = vpow2.f32 %v2630_v54 }
 0x7a4   : > { %v12965_v45 = vpop.eup %12964 }
 0x7a5   : > { %v2632_v48 = vsel %vm1961_vm5, %v12965_v45, 0.0 }
 0x7a6   : > { %2633 = vadd.xlane.f32.xlu1 %v2632_v48 }
 0x7a8   : > { %v12967_v49 = vpop.eup %12966 }
 0x7a9   : > { %v2635_v50 = vsel %vm1961_vm5, %v12967_v49, 0.0 }
 0x7aa   : > { %2636 = vadd.xlane.f32.xlu0 %v2635_v50 }
 0x7ac   : > { %v12969_v55 = vpop.eup %12968 }
 0x7ad   : > { %v2638_v57 = vsel %vm1968_vm6, %v12969_v55, 0.0 }
 0x7b7   : > { %2651 = vrot.lane.b32.xlu1 %v13978_v25, %s15466_s1 }
 0x7bb   : > { %12821 = vrot.lane.b32.xlu1 %v13974_v23, %s15464_s2 }
 0x7c0   : > { %12816 = vrot.lane.b32.xlu0 %v13974_v23, %s15466_s1  ;;  %s15589_s1 = sld [smem:[#allocation56_spill]] }
 0x7c4   : > { %2848 = vrot.lane.b32.xlu0 %v13978_v25, %s15464_s2  ;;  %s15588_s2 = sld [smem:[#allocation57_spill]] }
 0x7c8   : > { %2840 = vrot.lane.b32.xlu0 %v13995_v29, %s15460_s23 }
 0x7df   : > { %2639 = vadd.xlane.f32.xlu1 %v2638_v57 }
 0x7f0   : > { %2838 = vrot.lane.b32.xlu1 %v13984_v27, %s15460_s23 }
 0x7f4   : > { %2842 = vrot.lane.b32.xlu1 %v13991_v28, %s15460_s23  ;;  %s15462_s23 = smov 40  }
 0x833   : > { %v2634_v58 = vpop.xlane.xlu1 %2633 }
 0x834   : > { %12970 = vrcp.f32 %v2634_v58 }
 0x837   : > { %v2637_v59 = vpop.xlane.xlu0 %2636  ;;  %v2652_v62 = vpop.permute.xlu1 %2651 }
 0x838   : > { %12972 = vrcp.f32 %v2637_v59 }
 0x83b   : > { %v12817_v60 = vpop.permute.xlu0 %12816  ;;  %v12822_v2 = vpop.permute.xlu1 %12821 }
 0x83c   : > { %v12819_v29 = vunpack.i.h.bf16 %v12817_v60  ;;  %v12818_v63 = vunpack.i.l.bf16 %v12817_v60  ;;  %v12824_v27 = vunpack.i.h.bf16 %v12822_v2  ;;  %v12823_v28 = vunpack.i.l.bf16 %v12822_v2 }
 0x83e   : > { %v12419_v0 = vpack.c.bf16 %v12819_v29, %v12818_v63  ;;  %v12971_v1 = vpop.eup %12970  ;;  %v12422_v9 = vpack.c.bf16 %v12824_v27, %v12823_v28 }
 0x83f   : > { %v2644_v3 = vmul.f32 %v12971_v1, %v12965_v45  ;;  %v2849_v10 = vpop.permute.xlu0 %2848 }
 0x840   : > { %12420 = vmatpush3.bf16.msra.mxu1 %v12419_v0 }
 0x841   : > { %11610 = vmatprep.subr.mxu1 %v13478_v14 }
 0x842   : > { %v12973_v4 = vpop.eup %12972 }
 0x843   : > { %v2645_v5 = vmul.f32 %v12973_v4, %v12967_v49  ;;  %v2841_v21 = vpop.permute.xlu0 %2840 }
 0x844   : > { %11611 = vmatpush3.msk.msra.mxu1 %vm2013_vm7, %v2652_v62 }
 0x845   : > { %11613 = vmatmul.mubr.msk.f32.vlgmr.msra.gmra.mrb[24].mxu1 %vm1961_vm5, %v2644_v3  ;;  %12421 = vmatprep.subr.bf16.mxu1 %v13476_v8 }
 0x846   : > { %11615 = vmatprep.mubr.msk.f32.mxu1 %vm13477_vm0, %v13478_v14 }
 0x849   : > { %11616 = vmatmul.mubr.msk.f32.gmra.mrb[26].mxu1 %vm1961_vm5, %v2645_v5 }
 0x84a   : > { %11618 = vmatprep.mubr.msk.f32.mxu1 %vm13477_vm0, %v13478_v14 }
 0x84b   : > { %12424 = vmatpush3.bf16.xpose.msk.msra.mxu1 %vm14001_vm4, %v12422_v9 }
 0x84c   : > { %11636 = vmatprep.subr.mxu1 %v13478_v14 }
 0x853   : > { %11637 = vmatpush3.xpose.msk.msra.mxu1 %vm1865_vm3, %v2849_v10 }
 0x854   : > { %11662 = vmatprep.subr.mxu1 %v13478_v14 }
 0x86c   : > { %v2640_v12 = vpop.xlane.xlu1 %2639 }
 0x86d   : > { %12974 = vrcp.f32 %v2640_v12 }
 0x870   : > { %v2839_v19 = vpop.permute.xlu1 %2838 }
 0x874   : > { %v2843_v22 = vpop.permute.xlu1 %2842 }
 0x877   : > { %v12975_v13 = vpop.eup %12974 }
 0x878   : > { %v2646_v16 = vmul.f32 %v12975_v13, %v12969_v55 }
 0x87a   : > { %11619 = vmatmul.mubr.msk.f32.gmra.mrb[28].mxu1 %vm1961_vm5, %v2646_v16 }
 0x87b   : > { %11638 = vmatprep.mubr.msk.f32.mxu1 %vm13477_vm0, %v13478_v14 }
 0x87e   : > { %11639 = vmatmul.mubr.msk.f32.vlgmr.msra.gmra.mrb[30].mxu1 %vm1865_vm3, %v2839_v19 }
 0x87f   : > { %11641 = vmatprep.mubr.msk.f32.mxu1 %vm13477_vm0, %v13478_v14 }
 0x882   : > { %11642 = vmatmul.mubr.msk.f32.gmra.mrb[32].mxu1 %vm1865_vm3, %v2841_v21 }
 0x883   : > { %11644 = vmatprep.mubr.msk.f32.mxu1 %vm13477_vm0, %v13478_v14 }
 0x886   : > { %11645 = vmatmul.mubr.msk.f32.gmra.mrb[34].mxu1 %vm1865_vm3, %v2843_v22 }
 0x887   : > { %11664 = vmatprep.mubr.msk.f32.mxu1 %vm13477_vm0, %v13478_v14 }
 0x918   : > { %v2732_v26 = vpop.f32.mrb[24].mxu1 }
 0x919   : > { %v11614_v30 = vpop.f32.mrb[25].mxu1  ;;  %11624 = vmatmul.mubr.msk.f32.vlgmr.msra.gmra.mrb[26].mxu0 %vm1865_vm3, %v2732_v26 }
 0x91a   : > { %11626 = vmatprep.mubr.msk.f32.mxu0 %vm13477_vm0, %v13478_v14 }
 0x91c   : > { %v2737_v31 = vpop.f32.mrb[26].mxu1 }
 0x91d   : > { %v11617_v32 = vpop.f32.mrb[27].mxu1  ;;  %11627 = vmatmul.mubr.msk.f32.gmra.mrb[28].mxu0 %vm1865_vm3, %v2737_v31 }
 0x91e   : > { %11629 = vmatprep.mubr.msk.f32.mxu0 %vm13477_vm0, %v13478_v14 }
 0x94d   : > { %v2742_v34 = vpop.f32.mrb[28].mxu1 }
 0x94e   : > { %v11620_v35 = vpop.f32.mrb[29].mxu1  ;;  %11630 = vmatmul.mubr.msk.f32.gmra.mrb[30].mxu0 %vm1865_vm3, %v2742_v34 }
 0x94f   : > { %11653 = vmatprep.mubr.msk.f32.mxu0 %vm13477_vm0, %v13478_v14 }
 0x951   : > { %v2928_v36 = vpop.f32.mrb[30].mxu1 }
 0x952   : > { %v2929_v37 = vadd.f32 %v2928_v36, %v14039_v46  ;;  %v11640_v38 = vpop.f32.mrb[31].mxu1 }
 0x954   : > { %v2942_v39 = vsel %vm1961_vm5, %v2929_v37, -inf }
 0x955   : > { %2943 = vmax.xlane.f32.xlu0 %v2942_v39  ;;  %v2933_v40 = vpop.f32.mrb[32].mxu1 }
 0x956   : > { %v2934_v41 = vadd.f32 %v2933_v40, %v14043_v51  ;;  %v11643_v42 = vpop.f32.mrb[33].mxu1 }
 0x958   : > { %v2945_v43 = vsel %vm1961_vm5, %v2934_v41, -inf }
 0x959   : > { %2946 = vmax.xlane.f32.xlu1 %v2945_v43  ;;  %v2938_v45 = vpop.f32.mrb[34].mxu1 }
 0x95a   : > { %v2939_v48 = vadd.f32 %v2938_v45, %v14048_v56  ;;  %v11646_v49 = vpop.f32.mrb[35].mxu1 }
 0x95c   : > { %v2948_v50 = vsel %vm1968_vm6, %v2939_v48, -inf }
 0x95d   : > { %2949 = vmax.xlane.f32.xlu0 %v2948_v50 }
 0x9e2   : > { %v2944_v52 = vpop.xlane.xlu0 %2943 }
 0x9e3   : > { %v2951_v46 = vsub.f32 %v2929_v37, %v2944_v52 }
 0x9e5   : > { %v2954_v53 = vmul.f32 1.442695, %v2951_v46 }
 0x9e6   : > { %v2947_v54 = vpop.xlane.xlu1 %2946 }
 0x9e7   : > { %12976 = vpow2.f32 %v2954_v53  ;;  %v2952_v55 = vsub.f32 %v2934_v41, %v2947_v54 }
 0x9e9   : > { %v2956_v57 = vmul.f32 1.442695, %v2952_v55 }
 0x9ea   : > { %v2950_v58 = vpop.xlane.xlu0 %2949 }
 0x9eb   : > { %12978 = vpow2.f32 %v2956_v57  ;;  %v2953_v51 = vsub.f32 %v2939_v48, %v2950_v58 }
 0x9ec   : > { %v2821_v59 = vpop.f32.mrb[26].mxu0 }
 0x9ed   : > { %v2958_v60 = vmul.f32 1.442695, %v2953_v51  ;;  %v14216_v62 = vadd.f32 %v2821_v59, %v14143_v7  ;;  %v11625_v56 = vpop.f32.mrb[27].mxu0 }
 0x9ef   : > { %12980 = vpow2.f32 %v2958_v60 }
 0x9f0   : > { %v2826_v29 = vpop.f32.mrb[28].mxu0 }
 0x9f1   : > { %v12977_v63 = vpop.eup %12976  ;;  %v14219_v0 = vadd.f32 %v2826_v29, %v14145_v11  ;;  %v11628_v1 = vpop.f32.mrb[29].mxu0  ;;  %v1755_v11 = vld [vmem:[%s15586_s10 + $0x18] sm:$0xff] }
 0x9f2   : > { %v2960_v2 = vsel %vm1961_vm5, %v12977_v63, 0.0  ;;  %11663 = vmatpush3.msra.mxu1 %v1755_v11 }
 0x9f3   : > { %2961 = vadd.xlane.f32.xlu0 %v2960_v2  ;;  %12434 = vmatprep.subr.bf16.mxu1 %v13476_v8 }
 0x9f5   : > { %v12979_v3 = vpop.eup %12978 }
 0x9f6   : > { %v2963_v4 = vsel %vm1961_vm5, %v12979_v3, 0.0 }
 0x9f7   : > { %2964 = vadd.xlane.f32.xlu1 %v2963_v4 }
 0x9f9   : > { %v12981_v27 = vpop.eup %12980 }
 0x9fa   : > { %v2966_v7 = vsel %vm1968_vm6, %v12981_v27, 0.0 }
 0x9fb   : > { %2967 = vadd.xlane.f32.xlu0 %v2966_v7 }
 0xa08   : > { %12826 = vrot.lane.b32.xlu1 %v13974_v23, %s15462_s23 }
 0xa11   : > { %2979 = vrot.lane.b32.xlu0 %v13978_v25, %s15462_s23  ;;  %s15587_s23 = sld [smem:[#allocation53_spill]] }
 0xa17   : > { %v10834_v39 = vld [vmem:[%s15587_s23] ss:$0 sm:$0xff] }
 0xa21   : > { %v2831_v28 = vpop.f32.mrb[30].mxu0 }
 0xa22   : > { %v2837_v5 = vadd.f32 %v2831_v28, %v14147_v15  ;;  %v11631_v9 = vpop.f32.mrb[31].mxu0  ;;  %v3233_v28 = vld [vmem:[%s15588_s2] sm:$0xff] }
 0xa80   : > { %v2962_v10 = vpop.xlane.xlu0 %2961 }
 0xa81   : > { %12982 = vrcp.f32 %v2962_v10  ;;  %v3235_v10 = vld [vmem:[%s15588_s2 + $0x10] sm:$0xff] }
 0xa84   : > { %v2965_v12 = vpop.xlane.xlu1 %2964 }
 0xa85   : > { %12984 = vrcp.f32 %v2965_v12  ;;  %v3236_v12 = vld [vmem:[%s15588_s2 + $0x18] sm:$0xff] }
 0xa88   : > { %v12827_v13 = vpop.permute.xlu1 %12826  ;;  %v2968_v16 = vpop.xlane.xlu0 %2967 }
 0xa89   : > { %v12829_v19 = vunpack.i.h.bf16 %v12827_v13  ;;  %v12828_v21 = vunpack.i.l.bf16 %v12827_v13  ;;  %12986 = vrcp.f32 %v2968_v16  ;;  %v12432_v13 = vpack.c.bf16 %v3236_v12, %v3235_v10 }
 0xa8b   : > { %v12426_v23 = vpack.c.bf16 %v12829_v19, %v12828_v21  ;;  %v12983_v22 = vpop.eup %12982 }
 0xa8c   : > { %v2972_v25 = vmul.f32 %v12983_v22, %v12977_v63  ;;  %v2980_v24 = vpop.permute.xlu0 %2979 }
 0xa8d   : > { %12427 = vmatpush3.bf16.msra.mxu0 %v12426_v23 }
 0xa8e   : > { %11651 = vmatprep.subr.mxu0 %v13478_v14 }
 0xa8f   : > { %v12985_v26 = vpop.eup %12984 }
 0xa90   : > { %v2973_v15 = vmul.f32 %v12985_v26, %v12979_v3 }
 0xa91   : > { %11652 = vmatpush3.msk.msra.mxu0 %vm2013_vm7, %v2980_v24 }
 0xa92   : > { %11654 = vmatmul.mubr.msk.f32.vlgmr.msra.gmra.mrb[32].mxu0 %vm1961_vm5, %v2972_v25  ;;  %12428 = vmatprep.subr.bf16.mxu0 %v13476_v8 }
 0xa93   : > { %11656 = vmatprep.mubr.msk.f32.mxu0 %vm13477_vm0, %v13478_v14  ;;  %v12987_v30 = vpop.eup %12986 }
 0xa94   : > { %v2974_v31 = vmul.f32 %v12987_v30, %v12981_v27 }
 0xa96   : > { %11657 = vmatmul.mubr.msk.f32.gmra.mrb[34].mxu0 %vm1961_vm5, %v2973_v15  ;;  %v14271_v15 = vld [vmem:[%s15589_s1] sm:$0x3] }
 0xa97   : > { %11659 = vmatprep.mubr.msk.f32.mxu0 %vm13477_vm0, %v13478_v14 }
 0xa9a   : > { %11660 = vmatmul.mubr.msk.f32.gmra.mrb[36].mxu0 %vm1961_vm5, %v2974_v31  ;;  %v14274_v31 = vld [vmem:[%s15590_s11] sm:$0x3] }
 0xa9b   : > { %11681 = vmatprep.mubr.msk.f32.mxu0 %vm13477_vm0, %v13478_v14 }
 0xb65   : > { %v3060_v32 = vpop.f32.mrb[32].mxu0 }
 0xb66   : > { %v11655_v34 = vpop.f32.mrb[33].mxu0  ;;  %11665 = vmatmul.mubr.msk.f32.vlgmr.msra.gmra.mrb[36].mxu1 %vm1865_vm3, %v3060_v32  ;;  %v3222_v32 = vrot.slane %v14271_v15, %v13924_v18 }
 0xb67   : > { %11667 = vmatprep.mubr.msk.f32.mxu1 %vm13477_vm0, %v13478_v14 }
 0xb69   : > { %v3065_v35 = vpop.f32.mrb[34].mxu0 }
 0xb6a   : > { %v11658_v36 = vpop.f32.mrb[35].mxu0  ;;  %11668 = vmatmul.mubr.msk.f32.gmra.mrb[38].mxu1 %vm1865_vm3, %v3065_v35 }
 0xb6b   : > { %11670 = vmatprep.mubr.msk.f32.mxu1 %vm13477_vm0, %v13478_v14  ;;  %v3229_v36 = vrot.slane %v14274_v31, %v13924_v18 }
 0xb6d   : > { %v3070_v37 = vpop.f32.mrb[36].mxu0 }
 0xb6e   : > { %v11661_v38 = vpop.f32.mrb[37].mxu0  ;;  %11671 = vmatmul.mubr.msk.f32.gmra.mrb[40].mxu1 %vm1865_vm3, %v3070_v37 }
 0xb6f   : > { %11706 = vmatprep.mubr.msk.f32.mxu1 %vm13477_vm0, %v13478_v14 }
 0xc39   : > { %v3149_v40 = vpop.f32.mrb[36].mxu1 }
 0xc3a   : > { %v3163_v41 = vadd.f32 %v3149_v40, %v14216_v62  ;;  %v11666_v42 = vpop.f32.mrb[37].mxu1 }
 0xc3c   : > { %v3172_v43 = vadd.f32 %v10834_v39, %v3163_v41 }
 0xc3d   : > { %v3154_v45 = vpop.f32.mrb[38].mxu1 }
 0xc3e   : > { %v3164_v48 = vadd.f32 %v3154_v45, %v14219_v0  ;;  %v11669_v49 = vpop.f32.mrb[39].mxu1  ;;  %v3175_v50 = vadd.f32 %v3172_v43, %v13943_v47 }
 0xc40   : > { %v3173_v52 = vadd.f32 %v10834_v39, %v3164_v48  ;;  %v3178_v46 = vsel %vm1763_vm1, %v3175_v50, 0.0 }
 0xc41   : > { %3179 = vadd.xlane.f32.xlu1 %v3178_v46  ;;  %v3159_v53 = vpop.f32.mrb[40].mxu1 }
 0xc42   : > { %v3165_v54 = vadd.f32 %v3159_v53, %v2837_v5  ;;  %v11672_v55 = vpop.f32.mrb[41].mxu1  ;;  %v3176_v57 = vadd.f32 %v3173_v52, %v13951_v61  ;;  %v3234_v5 = vld [vmem:[%s15588_s2 + $0x8] sm:$0xff]  ;;  %v3240_v53 = vld [vmem:[%s15591_s0 + $0x10] sm:$0xff] }
 0xc43   : > { %v12429_v9 = vpack.c.bf16 %v3234_v5, %v3233_v28  ;;  %v3239_v52 = vld [vmem:[%s15591_s0 + $0x8] sm:$0xff] }
 0xc44   : > { %v3174_v58 = vadd.f32 %v10834_v39, %v3165_v54  ;;  %v3181_v51 = vsel %vm1763_vm1, %v3176_v57, 0.0  ;;  %v3241_v54 = vld [vmem:[%s15591_s0 + $0x18] sm:$0xff] }
 0xc45   : > { %3182 = vadd.xlane.f32.xlu0 %v3181_v51  ;;  %12430 = vmatpush3.bf16.msra.mxu0 %v12429_v9  ;;  %v12438_v55 = vpack.c.bf16 %v3241_v54, %v3240_v53 }
 0xc46   : > { %v3177_v59 = vadd.f32 %v3174_v58, %v13958_v6  ;;  %12431 = vmatprep.subr.bf16.mxu0 %v13476_v8  ;;  %v3243_v58 = vld [vmem:[%s15591_s0 + $0x28] sm:$0xff] }
 0xc48   : > { %v3185_v60 = vsel %vm3184_vm8, %v3177_v59, 0.0 }
 0xc49   : > { %3186 = vadd.xlane.f32.xlu1 %v3185_v60  ;;  %12433 = vmatpush3.bf16.msra.mxu0 %v12432_v13  ;;  %v3245_v60 = vld [vmem:[%s15591_s0 + $0x38] sm:$0xff] }
 0xc4a   : > { %12446 = vmatprep.subr.bf16.mxu0 %v13476_v8 }
 0xcce   : > { %v3180_v47 = vpop.xlane.xlu1 %3179 }
 0xccf   : > { %v3189_v62 = vmul.f32 0.03125, %v3180_v47 }
 0xcd1   : > { %v3192_v56 = vsub.f32 %v3175_v50, %v3189_v62  ;;  %v3238_v50 = vld [vmem:[%s15591_s0] sm:$0xff] }
 0xcd2   : > { %v3183_v29 = vpop.xlane.xlu0 %3182  ;;  %v12435_v46 = vpack.c.bf16 %v3239_v52, %v3238_v50  ;;  %v10835_v62 = vld [vmem:[%s15592_s26] ss:$0 sm:$0xff] }
 0xcd3   : > { %v3190_v63 = vmul.f32 0.03125, %v3183_v29  ;;  %v3195_v0 = vmul.f32 %v3192_v56, %v3192_v56 }
 0xcd4   : > { %12436 = vmatpush3.bf16.msra.mxu1 %v12435_v46 }
 0xcd5   : > { %v3193_v1 = vsub.f32 %v3176_v57, %v3190_v63  ;;  %v3198_v61 = vsel %vm1763_vm1, %v3195_v0, 0.0  ;;  %12437 = vmatprep.subr.bf16.mxu1 %v13476_v8  ;;  %v3242_v57 = vld [vmem:[%s15591_s0 + $0x20] sm:$0xff] }
 0xcd6   : > { %3199 = vadd.xlane.f32.xlu0 %v3198_v61  ;;  %v3187_v2 = vpop.xlane.xlu1 %3186  ;;  %v12441_v51 = vpack.c.bf16 %v3243_v58, %v3242_v57 }
 0xcd7   : > { %v3191_v3 = vmul.f32 0.03125, %v3187_v2  ;;  %v3196_v6 = vmul.f32 %v3193_v1, %v3193_v1 }
 0xcd8   : > { %12439 = vmatpush3.bf16.msra.mxu1 %v12438_v55 }
 0xcd9   : > { %v3194_v4 = vsub.f32 %v3177_v59, %v3191_v3  ;;  %v3201_v27 = vsel %vm1763_vm1, %v3196_v6, 0.0  ;;  %12440 = vmatprep.subr.bf16.mxu1 %v13476_v8  ;;  %v3244_v59 = vld [vmem:[%s15591_s0 + $0x30] sm:$0xff] }
 0xcda   : > { %3202 = vadd.xlane.f32.xlu1 %v3201_v27  ;;  %v12444_v47 = vpack.c.bf16 %v3245_v60, %v3244_v59 }
 0xcdb   : > { %v3197_v7 = vmul.f32 %v3194_v4, %v3194_v4 }
 0xcdc   : > { %12442 = vmatpush3.bf16.msra.mxu1 %v12441_v51 }
 0xcdd   : > { %v3204_v11 = vsel %vm3184_vm8, %v3197_v7, 0.0  ;;  %12443 = vmatprep.subr.bf16.mxu1 %v13476_v8 }
 0xcde   : > { %3205 = vadd.xlane.f32.xlu0 %v3204_v11 }
 0xce0   : > { %12445 = vmatpush3.bf16.msra.mxu1 %v12444_v47 }
 0xce1   : > { %12452 = vmatprep.subr.bf16.mxu1 %v13476_v8 }
 0xd63   : > { %v3200_v16 = vpop.xlane.xlu0 %3199 }
 0xd64   : > { %v3207_v19 = vmul.f32 0.03125, %v3200_v16 }
 0xd66   : > { %v3210_v21 = vadd.f32 1e-05, %v3207_v19 }
 0xd67   : > { %v3203_v23 = vpop.xlane.xlu1 %3202 }
 0xd68   : > { %12988 = vrsqrt.f32 %v3210_v21  ;;  %v3208_v22 = vmul.f32 0.03125, %v3203_v23 }
 0xd6a   : > { %v3211_v25 = vadd.f32 1e-05, %v3208_v22 }
 0xd6b   : > { %v3206_v24 = vpop.xlane.xlu0 %3205 }
 0xd6c   : > { %12990 = vrsqrt.f32 %v3211_v25  ;;  %v3209_v26 = vmul.f32 0.03125, %v3206_v24 }
 0xd6e   : > { %v3212_v30 = vadd.f32 1e-05, %v3209_v26 }
 0xd70   : > { %12992 = vrsqrt.f32 %v3212_v30 }
 0xd72   : > { %v12989_v34 = vpop.eup %12988 }
 0xd73   : > { %v3216_v35 = vmul.f32 %v12989_v34, %v3192_v56 }
 0xd75   : > { %v3223_v37 = vmul.f32 %v3222_v32, %v3216_v35 }
 0xd76   : > { %v12991_v38 = vpop.eup %12990 }
 0xd77   : > { %v14280_v39 = vadd.f32 %v3229_v36, %v3223_v37  ;;  %v3217_v40 = vmul.f32 %v12991_v38, %v3193_v1 }
 0xd79   : > { %11682 = vmatmul.mubr.msk.f32.vlgmr.msra.gmra.mrb[38].mxu0 %vm1763_vm1, %v14280_v39  ;;  %v3224_v41 = vmul.f32 %v3222_v32, %v3217_v40 }
 0xd7a   : > { %v12993_v42 = vpop.eup %12992  ;;  %11684 = vmatprep.mubr.msk.f32.mxu0 %vm13477_vm0, %v13478_v14 }
 0xd7b   : > { %v14286_v43 = vadd.f32 %v3229_v36, %v3224_v41  ;;  %v3218_v45 = vmul.f32 %v12993_v42, %v3194_v4  ;;  %v10839_v42 = vld [vmem:[%s15593_s7] ss:$0 sm:$0xff] }
 0xd7d   : > { %11685 = vmatmul.mubr.msk.f32.gmra.mrb[40].mxu0 %vm1763_vm1, %v14286_v43  ;;  %v3225_v48 = vmul.f32 %v3222_v32, %v3218_v45 }
 0xd7e   : > { %11687 = vmatprep.mubr.msk.f32.mxu0 %vm13477_vm0, %v13478_v14 }
 0xd7f   : > { %v14292_v49 = vadd.f32 %v3229_v36, %v3225_v48 }
 0xd81   : > { %11688 = vmatmul.mubr.msk.f32.gmra.mrb[42].mxu0 %vm1763_vm1, %v14292_v49 }
 0xd82   : > { %11723 = vmatprep.mubr.msk.f32.mxu0 %vm13477_vm0, %v13478_v14 }
 0xe4c   : > { %v3328_v56 = vpop.f32.mrb[38].mxu0 }
 0xe4d   : > { %v3329_v29 = vadd.f32 %v10835_v62, %v3328_v56  ;;  %v11683_v63 = vpop.f32.mrb[39].mxu0 }
 0xe4f   : > { %v3345_v0 = vmul.f32 0.044715, %v3329_v29  ;;  %v3342_v24 = vmul.f32 0.5, %v3329_v29 }
 0xe50   : > { %v3333_v1 = vpop.f32.mrb[40].mxu0 }
 0xe51   : > { %v3348_v61 = vmul.f32 %v3345_v0, %v3329_v29  ;;  %v3334_v2 = vadd.f32 %v10835_v62, %v3333_v1  ;;  %v11686_v3 = vpop.f32.mrb[41].mxu0 }
 0xe53   : > { %v3351_v6 = vmul.f32 %v3348_v61, %v3329_v29  ;;  %v3346_v4 = vmul.f32 0.044715, %v3334_v2  ;;  %v3343_v34 = vmul.f32 0.5, %v3334_v2 }
 0xe54   : > { %v3338_v27 = vpop.f32.mrb[42].mxu0 }
 0xe55   : > { %v3354_v7 = vadd.f32 %v3351_v6, %v3329_v29  ;;  %v3349_v11 = vmul.f32 %v3346_v4, %v3334_v2  ;;  %v3339_v28 = vadd.f32 %v10835_v62, %v3338_v27  ;;  %v11689_v5 = vpop.f32.mrb[43].mxu0 }
 0xe57   : > { %v3357_v9 = vmul.f32 0.7978846, %v3354_v7  ;;  %v3352_v10 = vmul.f32 %v3349_v11, %v3334_v2  ;;  %v3347_v12 = vmul.f32 0.044715, %v3339_v28  ;;  %v3344_v38 = vmul.f32 0.5, %v3339_v28  ;;  %v10845_v11 = vld [vmem:[%s15549_s30 + $0x20] sm:$0xff] }
 0xe59   : > { %12994 = vtanh.f32 %v3357_v9  ;;  %v3355_v13 = vadd.f32 %v3352_v10, %v3334_v2  ;;  %v3350_v16 = vmul.f32 %v3347_v12, %v3339_v28  ;;  %v10847_v9 = vld [vmem:[%s15549_s30 + $0x30] sm:$0xff]  ;;  %v10848_v10 = vld [vmem:[%s15549_s30 + $0x38] sm:$0xff] }
 0xe5a   : > { %v12450_v12 = vpack.c.bf16 %v10848_v10, %v10847_v9 }
 0xe5b   : > { %v3353_v19 = vmul.f32 %v3350_v16, %v3339_v28  ;;  %v3358_v21 = vmul.f32 0.7978846, %v3355_v13 }
 0xe5d   : > { %v3356_v23 = vadd.f32 %v3353_v19, %v3339_v28  ;;  %12996 = vtanh.f32 %v3358_v21  ;;  %v10846_v28 = vld [vmem:[%s15549_s30 + $0x28] sm:$0xff]  ;;  %s15621_s30 = sld [smem:[#allocation41_spill]] }
 0xe5e   : > { %v12447_v5 = vpack.c.bf16 %v10846_v28, %v10845_v11  ;;  %v14416_v11 = vld [vmem:[%s15585_s18] sm:$0xff] }
 0xe5f   : > { %v3359_v22 = vmul.f32 0.7978846, %v3356_v23 }
 0xe60   : > { %12448 = vmatpush3.bf16.msra.mxu0 %v12447_v5 }
 0xe61   : > { %12998 = vtanh.f32 %v3359_v22  ;;  %12449 = vmatprep.subr.bf16.mxu0 %v13476_v8 }
 0xe63   : > { %v12995_v25 = vpop.eup %12994 }
 0xe64   : > { %v3363_v26 = vadd.f32 1.0, %v12995_v25  ;;  %12451 = vmatpush3.bf16.msra.mxu0 %v12450_v12  ;;  %v14421_v12 = vld [vmem:[%s15585_s18 + $0x8] sm:$0xff] }
 0xe65   : > { %12456 = vmatprep.subr.bf16.mxu0 %v13476_v8 }
 0xe66   : > { %v3366_v30 = vmul.f32 %v3363_v26, %v3342_v24 }
 0xe67   : > { %v12997_v32 = vpop.eup %12996 }
 0xe68   : > { %11707 = vmatmul.mubr.msk.f32.vlgmr.msra.gmra.mrb[42].mxu1 %vm3375_vm9, %v3366_v30  ;;  %v3364_v35 = vadd.f32 1.0, %v12997_v32  ;;  %v3510_v30 = vrot.slane %v14271_v15, %v13928_v20 }
 0xe69   : > { %11709 = vmatprep.mubr.msk.f32.mxu1 %vm13477_vm0, %v13478_v14 }
 0xe6a   : > { %v3367_v36 = vmul.f32 %v3364_v35, %v3343_v34  ;;  %v3517_v35 = vrot.slane %v14274_v31, %v13928_v20 }
 0xe6b   : > { %v12999_v37 = vpop.eup %12998 }
 0xe6c   : > { %11710 = vmatmul.mubr.msk.f32.gmra.mrb[44].mxu1 %vm3375_vm9, %v3367_v36  ;;  %v3365_v40 = vadd.f32 1.0, %v12999_v37 }
 0xe6d   : > { %11712 = vmatprep.mubr.msk.f32.mxu1 %vm13477_vm0, %v13478_v14 }
 0xe6e   : > { %v3368_v41 = vmul.f32 %v3365_v40, %v3344_v38 }
 0xe70   : > { %11713 = vmatmul.mubr.msk.f32.gmra.mrb[46].mxu1 %vm3375_vm9, %v3368_v41 }
 0xe71   : > { %11738 = vmatprep.mubr.msk.f32.mxu1 %vm13477_vm0, %v13478_v14 }
 0xf3b   : > { %v3451_v45 = vpop.f32.mrb[42].mxu1 }
 0xf3c   : > { %v3452_v48 = vadd.f32 %v10839_v42, %v3451_v45  ;;  %v11708_v50 = vpop.f32.mrb[43].mxu1 }
 0xf3e   : > { %v3465_v52 = vadd.f32 %v3452_v48, %v14280_v39 }
 0xf3f   : > { %v3456_v46 = vpop.f32.mrb[44].mxu1 }
 0xf40   : > { %v3457_v53 = vadd.f32 %v10839_v42, %v3456_v46  ;;  %v11711_v54 = vpop.f32.mrb[45].mxu1  ;;  %v3468_v55 = vsel %vm1763_vm1, %v3465_v52, 0.0  ;;  %v10855_v46 = vld [vmem:[%s15582_s16 + $0x1] ss:$0 sm:$0xff]  ;;  %s15602_s16 = smov 104  }
 0xf41   : > { %3469 = vadd.xlane.f32.xlu1 %v3468_v55 }
 0xf42   : > { %v3466_v57 = vadd.f32 %v3457_v53, %v14286_v43 }
 0xf43   : > { %v3461_v58 = vpop.f32.mrb[46].mxu1 }
 0xf44   : > { %v3462_v51 = vadd.f32 %v10839_v42, %v3461_v58  ;;  %v11714_v59 = vpop.f32.mrb[47].mxu1  ;;  %v3471_v60 = vsel %vm1763_vm1, %v3466_v57, 0.0 }
 0xf45   : > { %3472 = vadd.xlane.f32.xlu0 %v3471_v60 }
 0xf46   : > { %v3467_v47 = vadd.f32 %v3462_v51, %v14292_v49 }
 0xf48   : > { %v3474_v62 = vsel %vm3184_vm8, %v3467_v47, 0.0 }
 0xf49   : > { %3475 = vadd.xlane.f32.xlu1 %v3474_v62 }
 0xfce   : > { %v3470_v39 = vpop.xlane.xlu1 %3469 }
 0xfcf   : > { %v3477_v56 = vmul.f32 0.03125, %v3470_v39 }
 0xfd1   : > { %v3480_v29 = vsub.f32 %v3465_v52, %v3477_v56 }
 0xfd2   : > { %v3473_v63 = vpop.xlane.xlu0 %3472 }
 0xfd3   : > { %v3478_v0 = vmul.f32 0.03125, %v3473_v63  ;;  %v3483_v1 = vmul.f32 %v3480_v29, %v3480_v29 }
 0xfd5   : > { %v3481_v43 = vsub.f32 %v3466_v57, %v3478_v0  ;;  %v3486_v61 = vsel %vm1763_vm1, %v3483_v1, 0.0 }
 0xfd6   : > { %3487 = vadd.xlane.f32.xlu0 %v3486_v61  ;;  %v3476_v2 = vpop.xlane.xlu1 %3475 }
 0xfd7   : > { %v3479_v3 = vmul.f32 0.03125, %v3476_v2  ;;  %v3484_v49 = vmul.f32 %v3481_v43, %v3481_v43 }
 0xfd9   : > { %v3482_v6 = vsub.f32 %v3467_v47, %v3479_v3  ;;  %v3489_v4 = vsel %vm1763_vm1, %v3484_v49, 0.0 }
 0xfda   : > { %3490 = vadd.xlane.f32.xlu1 %v3489_v4 }
 0xfdb   : > { %v3485_v27 = vmul.f32 %v3482_v6, %v3482_v6 }
 0xfdd   : > { %v3492_v7 = vsel %vm3184_vm8, %v3485_v27, 0.0 }
 0xfde   : > { %3493 = vadd.xlane.f32.xlu0 %v3492_v7 }
0x1063   : > { %v3488_v13 = vpop.xlane.xlu0 %3487 }
0x1064   : > { %v3495_v16 = vmul.f32 0.03125, %v3488_v13 }
0x1066   : > { %v3498_v19 = vadd.f32 1e-05, %v3495_v16 }
0x1067   : > { %v3491_v21 = vpop.xlane.xlu1 %3490 }
0x1068   : > { %13000 = vrsqrt.f32 %v3498_v19  ;;  %v3496_v23 = vmul.f32 0.03125, %v3491_v21 }
0x106a   : > { %v3499_v22 = vadd.f32 1e-05, %v3496_v23  ;;  %v14426_v23 = vld [vmem:[%s15585_s18 + $0x10] sm:$0x3]  ;;  %s15611_s18 = sld [smem:[#allocation42_spill]] }
0x106b   : > { %v3494_v25 = vpop.xlane.xlu0 %3493 }
0x106c   : > { %13002 = vrsqrt.f32 %v3499_v22  ;;  %v3497_v24 = vmul.f32 0.03125, %v3494_v25 }
0x106e   : > { %v3500_v26 = vadd.f32 1e-05, %v3497_v24 }
0x1070   : > { %13004 = vrsqrt.f32 %v3500_v26 }
0x1072   : > { %v13001_v32 = vpop.eup %13000 }
0x1073   : > { %v3504_v34 = vmul.f32 %v13001_v32, %v3480_v29 }
0x1075   : > { %v3511_v36 = vmul.f32 %v3510_v30, %v3504_v34 }
0x1076   : > { %v13003_v37 = vpop.eup %13002 }
0x1077   : > { %v14340_v38 = vadd.f32 %v3517_v35, %v3511_v36  ;;  %v3505_v40 = vmul.f32 %v13003_v37, %v3481_v43 }
0x1079   : > { %11724 = vmatmul.mubr.msk.f32.vlgmr.msra.gmra.mrb[44].mxu0 %vm1763_vm1, %v14340_v38  ;;  %v3512_v41 = vmul.f32 %v3510_v30, %v3505_v40 }
0x107a   : > { %v13005_v42 = vpop.eup %13004  ;;  %11726 = vmatprep.mubr.msk.f32.mxu0 %vm13477_vm0, %v13478_v14 }
0x107b   : > { %v14346_v15 = vadd.f32 %v3517_v35, %v3512_v41  ;;  %v3506_v45 = vmul.f32 %v13005_v42, %v3482_v6 }
0x107d   : > { %11727 = vmatmul.mubr.msk.f32.gmra.mrb[46].mxu0 %vm1763_vm1, %v14346_v15  ;;  %v3513_v31 = vmul.f32 %v3510_v30, %v3506_v45 }
0x107e   : > { %11729 = vmatprep.mubr.msk.f32.mxu0 %vm13477_vm0, %v13478_v14 }
0x107f   : > { %v14352_v48 = vadd.f32 %v3517_v35, %v3513_v31 }
0x1081   : > { %11730 = vmatmul.mubr.msk.f32.gmra.mrb[48].mxu0 %vm1763_vm1, %v14352_v48 }
0x1082   : > { %11753 = vmatprep.mubr.msk.f32.mxu0 %vm13477_vm0, %v13478_v14 }
0x114c   : > { %v3620_v50 = vpop.f32.mrb[44].mxu0 }
0x114d   : > { %v11725_v52 = vpop.f32.mrb[45].mxu0  ;;  %v3621_v54 = vadd.f32 %v10855_v46, %v3620_v50 }
0x114f   : > { %v14369_v47 = vmul.f32 0.35355338, %v3621_v54 }
0x1150   : > { %v3625_v53 = vpop.f32.mrb[46].mxu0 }
0x1151   : > { %v3626_v55 = vadd.f32 %v10855_v46, %v3625_v53  ;;  %v11728_v57 = vpop.f32.mrb[47].mxu0 }
0x1153   : > { %v14359_v58 = vpack.i.bf16 %v3626_v55, %v3621_v54  ;;  %v14380_v39 = vmul.f32 0.35355338, %v3626_v55 }
0x1154   : > { %v3630_v51 = vpop.f32.mrb[48].mxu0 }
0x1155   : > { %v14361_v59 = vadd.f32 %v10855_v46, %v3630_v51  ;;  %12831 = vrot.lane.b32.xlu1 %v14359_v58, %s15477_s15  ;;  %v11731_v60 = vpop.f32.mrb[49].mxu0 }
0x1157   : > { %3644 = vrot.lane.b32.xlu0 %v14361_v59, %s15477_s15  ;;  %v14376_v62 = vmul.f32 0.35355338, %v14361_v59  ;;  %s15596_s15 = smov 64  }
0x1159   : > { %12836 = vrot.lane.b32.xlu1 %v14359_v58, %s15594_s3 }
0x115b   : > { %3873 = vrot.lane.b32.xlu0 %v14369_v47, %s15595_s5 }
0x115d   : > { %3883 = vrot.lane.b32.xlu1 %v14361_v59, %s15594_s3 }
0x115f   : > { %3877 = vrot.lane.b32.xlu0 %v14376_v62, %s15595_s5 }
0x1161   : > { %3875 = vrot.lane.b32.xlu1 %v14380_v39, %s15595_s5 }
0x11c7   : > { %v12832_v56 = vpop.permute.xlu1 %12831 }
0x11c8   : > { %v12834_v29 = vunpack.i.h.bf16 %v12832_v56  ;;  %v12833_v63 = vunpack.i.l.bf16 %v12832_v56 }
0x11c9   : > { %v3645_v2 = vpop.permute.xlu0 %3644 }
0x11ca   : > { %v12453_v0 = vpack.c.bf16 %v12834_v29, %v12833_v63 }
0x11cb   : > { %v12837_v1 = vpop.permute.xlu1 %12836 }
0x11cc   : > { %12455 = vmatpush3.bf16.xpose.msk.msra.mxu1 %vm14001_vm4, %v12453_v0  ;;  %v12839_v43 = vunpack.i.h.bf16 %v12837_v1  ;;  %v12838_v61 = vunpack.i.l.bf16 %v12837_v1 }
0x11cd   : > { %11736 = vmatprep.subr.mxu1 %v13478_v14  ;;  %v3874_v6 = vpop.permute.xlu0 %3873 }
0x11ce   : > { %v12460_v3 = vpack.c.bf16 %v12839_v43, %v12838_v61 }
0x11cf   : > { %v3884_v49 = vpop.permute.xlu1 %3883 }
0x11d1   : > { %v3878_v27 = vpop.permute.xlu0 %3877 }
0x11d3   : > { %v3876_v4 = vpop.permute.xlu1 %3875 }
0x11d4   : > { %11737 = vmatpush3.xpose.msk.msra.mxu1 %vm1865_vm3, %v3645_v2 }
0x11d5   : > { %12459 = vmatprep.subr.bf16.mxu1 %v13476_v8 }
0x11d7   : > { %11739 = vmatmul.mubr.msk.f32.vlgmr.msra.gmra.mrb[48].mxu1 %vm1865_vm3, %v14369_v47 }
0x11d8   : > { %12462 = vmatpush3.bf16.xpose.msk.msra.mxu1 %vm14001_vm4, %v12460_v3  ;;  %11741 = vmatprep.mubr.msk.f32.mxu1 %vm13477_vm0, %v13478_v14 }
0x11d9   : > { %11766 = vmatprep.subr.mxu1 %v13478_v14 }
0x11db   : > { %11742 = vmatmul.mubr.msk.f32.gmra.mrb[50].mxu1 %vm1865_vm3, %v14380_v39 }
0x11dc   : > { %11744 = vmatprep.mubr.msk.f32.mxu1 %vm13477_vm0, %v13478_v14 }
0x11df   : > { %11745 = vmatmul.mubr.msk.f32.gmra.mrb[52].mxu1 %vm1865_vm3, %v14376_v62 }
0x11e0   : > { %11767 = vmatpush3.xpose.msk.msra.mxu1 %vm1865_vm3, %v3884_v49  ;;  %11768 = vmatprep.mubr.msk.f32.mxu1 %vm13477_vm0, %v13478_v14 }
0x11e1   : > { %11792 = vmatprep.subr.mxu1 %v13478_v14 }
0x11e3   : > { %11769 = vmatmul.mubr.msk.f32.vlgmr.msra.gmra.mrb[54].mxu1 %vm1865_vm3, %v3874_v6 }
0x11e4   : > { %11771 = vmatprep.mubr.msk.f32.mxu1 %vm13477_vm0, %v13478_v14 }
0x11e7   : > { %11772 = vmatmul.mubr.msk.f32.gmra.mrb[56].mxu1 %vm1865_vm3, %v3876_v4 }
0x11e8   : > { %11774 = vmatprep.mubr.msk.f32.mxu1 %vm13477_vm0, %v13478_v14 }
0x11eb   : > { %11775 = vmatmul.mubr.msk.f32.gmra.mrb[58].mxu1 %vm1865_vm3, %v3878_v27 }
0x11ec   : > { %11794 = vmatprep.mubr.msk.f32.mxu1 %vm13477_vm0, %v13478_v14 }
0x12aa   : > { %v3727_v7 = vpop.f32.mrb[48].mxu1 }
0x12ab   : > { %v3728_v28 = vadd.f32 %v14416_v11, %v3727_v7  ;;  %v11740_v5 = vpop.f32.mrb[49].mxu1 }
0x12ad   : > { %v3741_v9 = vsel %vm1961_vm5, %v3728_v28, -inf }
0x12ae   : > { %3742 = vmax.xlane.f32.xlu1 %v3741_v9  ;;  %v3732_v10 = vpop.f32.mrb[50].mxu1 }
0x12af   : > { %v3733_v13 = vadd.f32 %v14421_v12, %v3732_v10  ;;  %v11743_v16 = vpop.f32.mrb[51].mxu1 }
0x12b1   : > { %v3744_v19 = vsel %vm1961_vm5, %v3733_v13, -inf }
0x12b2   : > { %3745 = vmax.xlane.f32.xlu0 %v3744_v19  ;;  %v3737_v21 = vpop.f32.mrb[52].mxu1 }
0x12b3   : > { %v3738_v22 = vadd.f32 %v14426_v23, %v3737_v21  ;;  %v11746_v25 = vpop.f32.mrb[53].mxu1 }
0x12b5   : > { %v3747_v24 = vsel %vm1968_vm6, %v3738_v22, -inf }
0x12b6   : > { %3748 = vmax.xlane.f32.xlu0 %v3747_v24  ;;  %v3963_v26 = vpop.f32.mrb[54].mxu1 }
0x12b7   : > { %v3964_v30 = vadd.f32 %v14416_v11, %v3963_v26  ;;  %v11770_v32 = vpop.f32.mrb[55].mxu1 }
0x12b9   : > { %v3977_v34 = vsel %vm1961_vm5, %v3964_v30, -inf }
0x12ba   : > { %3978 = vmax.xlane.f32.xlu1 %v3977_v34  ;;  %v3968_v35 = vpop.f32.mrb[56].mxu1 }
0x12bb   : > { %v3969_v36 = vadd.f32 %v14421_v12, %v3968_v35  ;;  %v11773_v37 = vpop.f32.mrb[57].mxu1 }
0x12bd   : > { %v3980_v40 = vsel %vm1961_vm5, %v3969_v36, -inf }
0x12be   : > { %3981 = vmax.xlane.f32.xlu0 %v3980_v40  ;;  %v3973_v41 = vpop.f32.mrb[58].mxu1 }
0x12bf   : > { %v3974_v42 = vadd.f32 %v14426_v23, %v3973_v41  ;;  %v11776_v45 = vpop.f32.mrb[59].mxu1 }
0x12c1   : > { %v3983_v31 = vsel %vm1968_vm6, %v3974_v42, -inf }
0x12c2   : > { %3984 = vmax.xlane.f32.xlu1 %v3983_v31 }
0x12d3   : > { %12841 = vrot.lane.b32.xlu1 %v14359_v58, %s15596_s15 }
0x133b   : > { %v3743_v50 = vpop.xlane.xlu1 %3742 }
0x133c   : > { %v3750_v52 = vsub.f32 %v3728_v28, %v3743_v50 }
0x133e   : > { %v3753_v46 = vmul.f32 1.442695, %v3750_v52 }
0x133f   : > { %v3746_v53 = vpop.xlane.xlu0 %3745 }
0x1340   : > { %13006 = vpow2.f32 %v3753_v46  ;;  %v3751_v54 = vsub.f32 %v3733_v13, %v3746_v53 }
0x1342   : > { %v3755_v55 = vmul.f32 1.442695, %v3751_v54 }
0x1343   : > { %v3749_v57 = vpop.xlane.xlu0 %3748 }
0x1344   : > { %13008 = vpow2.f32 %v3755_v55  ;;  %v3752_v51 = vsub.f32 %v3738_v22, %v3749_v57 }
0x1346   : > { %v3757_v60 = vmul.f32 1.442695, %v3752_v51 }
0x1347   : > { %v3979_v56 = vpop.xlane.xlu1 %3978 }
0x1348   : > { %13010 = vpow2.f32 %v3757_v60  ;;  %v3986_v29 = vsub.f32 %v3964_v30, %v3979_v56 }
0x134a   : > { %v13007_v63 = vpop.eup %13006  ;;  %v3989_v0 = vmul.f32 1.442695, %v3986_v29 }
0x134b   : > { %v3982_v1 = vpop.xlane.xlu0 %3981  ;;  %v3759_v43 = vsel %vm1961_vm5, %v13007_v63, 0.0 }
0x134c   : > { %13012 = vpow2.f32 %v3989_v0  ;;  %v3987_v61 = vsub.f32 %v3969_v36, %v3982_v1  ;;  %3760 = vadd.xlane.f32.xlu0 %v3759_v43  ;;  %v10850_v0 = vld [vmem:[%s15586_s10 + $0x20] sm:$0xff]  ;;  %v10851_v1 = vld [vmem:[%s15586_s10 + $0x28] sm:$0xff] }
0x134d   : > { %11793 = vmatpush3.msra.mxu1 %v10851_v1 }
0x134e   : > { %v13009_v2 = vpop.eup %13008  ;;  %v3991_v3 = vmul.f32 1.442695, %v3987_v61  ;;  %12466 = vmatprep.subr.bf16.mxu1 %v13476_v8 }
0x134f   : > { %v3985_v49 = vpop.xlane.xlu1 %3984  ;;  %v3762_v6 = vsel %vm1961_vm5, %v13009_v2, 0.0 }
0x1350   : > { %13014 = vpow2.f32 %v3991_v3  ;;  %v3988_v4 = vsub.f32 %v3974_v42, %v3985_v49  ;;  %3763 = vadd.xlane.f32.xlu1 %v3762_v6 }
0x1352   : > { %v13011_v27 = vpop.eup %13010  ;;  %v3993_v7 = vmul.f32 1.442695, %v3988_v4 }
0x1353   : > { %v12842_v28 = vpop.permute.xlu1 %12841  ;;  %v3765_v5 = vsel %vm1968_vm6, %v13011_v27, 0.0 }
0x1354   : > { %13016 = vpow2.f32 %v3993_v7  ;;  %v12844_v9 = vunpack.i.h.bf16 %v12842_v28  ;;  %v12843_v10 = vunpack.i.l.bf16 %v12842_v28  ;;  %3766 = vadd.xlane.f32.xlu0 %v3765_v5 }
0x1356   : > { %v13013_v13 = vpop.eup %13012  ;;  %v12457_v16 = vpack.c.bf16 %v12844_v9, %v12843_v10 }
0x1357   : > { %v3995_v19 = vsel %vm1961_vm5, %v13013_v13, 0.0 }
0x1358   : > { %3996 = vadd.xlane.f32.xlu1 %v3995_v19  ;;  %12458 = vmatpush3.bf16.msra.mxu0 %v12457_v16 }
0x1359   : > { %11751 = vmatprep.subr.mxu0 %v13478_v14 }
0x135a   : > { %v13015_v21 = vpop.eup %13014 }
0x135b   : > { %v3998_v22 = vsel %vm1961_vm5, %v13015_v21, 0.0 }
0x135c   : > { %3999 = vadd.xlane.f32.xlu0 %v3998_v22 }
0x135e   : > { %v13017_v25 = vpop.eup %13016 }
0x135f   : > { %v4001_v24 = vsel %vm1968_vm6, %v13017_v25, 0.0 }
0x1360   : > { %4002 = vadd.xlane.f32.xlu0 %v4001_v24 }
0x1369   : > { %12846 = vrot.lane.b32.xlu1 %v14359_v58, %s15597_s6 }
0x136d   : > { %4014 = vrot.lane.b32.xlu1 %v14361_v59, %s15597_s6 }
0x1371   : > { %12851 = vrot.lane.b32.xlu1 %v14359_v58, %s15598_s8 }
0x1375   : > { %4287 = vrot.lane.b32.xlu1 %v14369_v47, %s15599_s9 }
0x1376   : > { %3778 = vrot.lane.b32.xlu0 %v14361_v59, %s15596_s15 }
0x1379   : > { %4291 = vrot.lane.b32.xlu1 %v14376_v62, %s15599_s9 }
0x137a   : > { %4297 = vrot.lane.b32.xlu0 %v14361_v59, %s15598_s8 }
0x137e   : > { %4289 = vrot.lane.b32.xlu0 %v14380_v39, %s15599_s9 }
0x13d9   : > { %v3761_v26 = vpop.xlane.xlu0 %3760 }
0x13da   : > { %13018 = vrcp.f32 %v3761_v26 }
0x13dd   : > { %v3764_v30 = vpop.xlane.xlu1 %3763 }
0x13de   : > { %13020 = vrcp.f32 %v3764_v30 }
0x13e1   : > { %v3767_v32 = vpop.xlane.xlu0 %3766 }
0x13e2   : > { %13022 = vrcp.f32 %v3767_v32 }
0x13e4   : > { %v13019_v40 = vpop.eup %13018 }
0x13e5   : > { %v3997_v34 = vpop.xlane.xlu1 %3996  ;;  %v3771_v45 = vmul.f32 %v13019_v40, %v13007_v63 }
0x13e6   : > { %13024 = vrcp.f32 %v3997_v34 }
0x13e8   : > { %v13021_v50 = vpop.eup %13020 }
0x13e9   : > { %v4000_v35 = vpop.xlane.xlu0 %3999  ;;  %v12847_v36 = vpop.permute.xlu1 %12846  ;;  %v3772_v46 = vmul.f32 %v13021_v50, %v13009_v2 }
0x13ea   : > { %v12849_v41 = vunpack.i.h.bf16 %v12847_v36  ;;  %v12848_v42 = vunpack.i.l.bf16 %v12847_v36  ;;  %13026 = vrcp.f32 %v4000_v35 }
0x13ec   : > { %v12464_v52 = vpack.c.bf16 %v12849_v41, %v12848_v42  ;;  %v13023_v53 = vpop.eup %13022 }
0x13ed   : > { %v4003_v37 = vpop.xlane.xlu0 %4002  ;;  %v4015_v54 = vpop.permute.xlu1 %4014  ;;  %v3773_v55 = vmul.f32 %v13023_v53, %v13011_v27 }
0x13ee   : > { %13028 = vrcp.f32 %v4003_v37 }
0x13f0   : > { %v13025_v57 = vpop.eup %13024 }
0x13f1   : > { %v3779_v31 = vpop.permute.xlu0 %3778  ;;  %v4007_v51 = vmul.f32 %v13025_v57, %v13013_v13  ;;  %v12852_v3 = vpop.permute.xlu1 %12851 }
0x13f2   : > { %11752 = vmatpush3.msk.msra.mxu0 %vm2013_vm7, %v3779_v31  ;;  %v12854_v6 = vunpack.i.h.bf16 %v12852_v3  ;;  %v12853_v4 = vunpack.i.l.bf16 %v12852_v3 }
0x13f3   : > { %11754 = vmatmul.mubr.msk.f32.vlgmr.msra.gmra.mrb[50].mxu0 %vm1961_vm5, %v3771_v45  ;;  %12463 = vmatprep.subr.bf16.mxu0 %v13476_v8 }
0x13f4   : > { %12465 = vmatpush3.bf16.msra.mxu0 %v12464_v52  ;;  %11756 = vmatprep.mubr.msk.f32.mxu0 %vm13477_vm0, %v13478_v14  ;;  %v13027_v60 = vpop.eup %13026  ;;  %v12467_v28 = vpack.c.bf16 %v12854_v6, %v12853_v4 }
0x13f5   : > { %11781 = vmatprep.subr.mxu0 %v13478_v14  ;;  %v4008_v56 = vmul.f32 %v13027_v60, %v13015_v21  ;;  %v4298_v19 = vpop.permute.xlu0 %4297  ;;  %v4288_v22 = vpop.permute.xlu1 %4287 }
0x13f7   : > { %11757 = vmatmul.mubr.msk.f32.gmra.mrb[52].mxu0 %vm1961_vm5, %v3772_v46 }
0x13f8   : > { %11782 = vmatpush3.msk.msra.mxu0 %vm2013_vm7, %v4015_v54  ;;  %11759 = vmatprep.mubr.msk.f32.mxu0 %vm13477_vm0, %v13478_v14  ;;  %v13029_v29 = vpop.eup %13028 }
0x13f9   : > { %11803 = vmatprep.subr.mxu0 %v13478_v14  ;;  %v4009_v63 = vmul.f32 %v13029_v29, %v13017_v25  ;;  %v4290_v25 = vpop.permute.xlu0 %4289  ;;  %v4292_v24 = vpop.permute.xlu1 %4291 }
0x13fb   : > { %11760 = vmatmul.mubr.msk.f32.gmra.mrb[54].mxu0 %vm1961_vm5, %v3773_v55 }
0x13fc   : > { %11783 = vmatprep.mubr.msk.f32.mxu0 %vm13477_vm0, %v13478_v14 }
0x13ff   : > { %11784 = vmatmul.mubr.msk.f32.vlgmr.msra.gmra.mrb[56].mxu0 %vm1961_vm5, %v4007_v51 }
0x1400   : > { %11786 = vmatprep.mubr.msk.f32.mxu0 %vm13477_vm0, %v13478_v14  ;;  %11804 = vmatpush3.msra.mxu0 %v10850_v0 }
0x1401   : > { %12470 = vmatprep.subr.bf16.mxu0 %v13476_v8 }
0x1403   : > { %11787 = vmatmul.mubr.msk.f32.gmra.mrb[58].mxu0 %vm1961_vm5, %v4008_v56 }
0x1404   : > { %11789 = vmatprep.mubr.msk.f32.mxu0 %vm13477_vm0, %v13478_v14 }
0x1407   : > { %11790 = vmatmul.mubr.msk.f32.gmra.mrb[60].mxu0 %vm1961_vm5, %v4009_v63 }
0x1408   : > { %11805 = vmatprep.mubr.msk.f32.mxu0 %vm13477_vm0, %v13478_v14 }
0x14c6   : > { %v3859_v43 = vpop.f32.mrb[50].mxu0 }
0x14c7   : > { %v11755_v61 = vpop.f32.mrb[51].mxu0  ;;  %11806 = vmatmul.mubr.msk.f32.vlgmr.msra.gmra.mrb[62].mxu0 %vm1865_vm3, %v3859_v43 }
0x14c8   : > { %11808 = vmatprep.mubr.msk.f32.mxu0 %vm13477_vm0, %v13478_v14 }
0x14ca   : > { %v3864_v2 = vpop.f32.mrb[52].mxu0 }
0x14cb   : > { %v11758_v49 = vpop.f32.mrb[53].mxu0  ;;  %11809 = vmatmul.mubr.msk.f32.gmra.mrb[64].mxu0 %vm1865_vm3, %v3864_v2 }
0x14cc   : > { %11811 = vmatprep.mubr.msk.f32.mxu0 %vm13477_vm0, %v13478_v14 }
0x14ce   : > { %v3869_v27 = vpop.f32.mrb[54].mxu0 }
0x14cf   : > { %v11761_v7 = vpop.f32.mrb[55].mxu0  ;;  %11812 = vmatmul.mubr.msk.f32.gmra.mrb[66].mxu0 %vm1865_vm3, %v3869_v27 }
0x14d0   : > { %11835 = vmatprep.mubr.msk.f32.mxu0 %vm13477_vm0, %v13478_v14 }
0x14d2   : > { %v4095_v5 = vpop.f32.mrb[56].mxu0 }
0x14d3   : > { %v11785_v9 = vpop.f32.mrb[57].mxu0  ;;  %11795 = vmatmul.mubr.msk.f32.vlgmr.msra.gmra.mrb[60].mxu1 %vm1865_vm3, %v4095_v5 }
0x14d4   : > { %12469 = vmatpush3.bf16.xpose.msk.msra.mxu1 %vm14001_vm4, %v12467_v28  ;;  %11797 = vmatprep.mubr.msk.f32.mxu1 %vm13477_vm0, %v13478_v14 }
0x14d5   : > { %11818 = vmatprep.subr.mxu1 %v13478_v14 }
0x14d6   : > { %v4100_v10 = vpop.f32.mrb[58].mxu0 }
0x14d7   : > { %v11788_v13 = vpop.f32.mrb[59].mxu0  ;;  %11798 = vmatmul.mubr.msk.f32.gmra.mrb[62].mxu1 %vm1865_vm3, %v4100_v10 }
0x14d8   : > { %11800 = vmatprep.mubr.msk.f32.mxu1 %vm13477_vm0, %v13478_v14 }
0x14da   : > { %v4105_v16 = vpop.f32.mrb[60].mxu0 }
0x14db   : > { %v11791_v21 = vpop.f32.mrb[61].mxu0  ;;  %11801 = vmatmul.mubr.msk.f32.gmra.mrb[64].mxu1 %vm1865_vm3, %v4105_v16 }
0x14dc   : > { %11819 = vmatpush3.xpose.msk.msra.mxu1 %vm1865_vm3, %v4298_v19  ;;  %11820 = vmatprep.mubr.msk.f32.mxu1 %vm13477_vm0, %v13478_v14 }
0x14dd   : > { %11844 = vmatprep.subr.mxu1 %v13478_v14 }
0x14df   : > { %11821 = vmatmul.mubr.msk.f32.vlgmr.msra.gmra.mrb[66].mxu1 %vm1865_vm3, %v4288_v22 }
0x14e0   : > { %11823 = vmatprep.mubr.msk.f32.mxu1 %vm13477_vm0, %v13478_v14 }
0x14e3   : > { %11824 = vmatmul.mubr.msk.f32.gmra.mrb[68].mxu1 %vm1865_vm3, %v4290_v25 }
0x14e4   : > { %11826 = vmatprep.mubr.msk.f32.mxu1 %vm13477_vm0, %v13478_v14 }
0x14e7   : > { %11827 = vmatmul.mubr.msk.f32.gmra.mrb[70].mxu1 %vm1865_vm3, %v4292_v24 }
0x14e8   : > { %11846 = vmatprep.mubr.msk.f32.mxu1 %vm13477_vm0, %v13478_v14 }
0x159a   : > { %v4273_v26 = vpop.f32.mrb[62].mxu0 }
0x159b   : > { %v11807_v30 = vpop.f32.mrb[63].mxu0 }
0x159e   : > { %v4278_v32 = vpop.f32.mrb[64].mxu0 }
0x159f   : > { %v11810_v34 = vpop.f32.mrb[65].mxu0 }
0x15a2   : > { %v4283_v35 = vpop.f32.mrb[66].mxu0 }
0x15a3   : > { %v11813_v36 = vpop.f32.mrb[67].mxu0 }
0x15a6   : > { %v4184_v37 = vpop.f32.mrb[60].mxu1 }
0x15a7   : > { %v14520_v40 = vadd.f32 %v4273_v26, %v4184_v37  ;;  %v11796_v41 = vpop.f32.mrb[61].mxu1 }
0x15aa   : > { %v4189_v42 = vpop.f32.mrb[62].mxu1 }
0x15ab   : > { %v14522_v45 = vadd.f32 %v4278_v32, %v4189_v42  ;;  %v11799_v31 = vpop.f32.mrb[63].mxu1 }
0x15ae   : > { %v4194_v50 = vpop.f32.mrb[64].mxu1 }
0x15af   : > { %v14524_v52 = vadd.f32 %v4283_v35, %v4194_v50  ;;  %v11802_v46 = vpop.f32.mrb[65].mxu1 }
0x15b2   : > { %v4377_v53 = vpop.f32.mrb[66].mxu1 }
0x15b3   : > { %v4378_v54 = vadd.f32 %v14416_v11, %v4377_v53  ;;  %v11822_v55 = vpop.f32.mrb[67].mxu1 }
0x15b5   : > { %v4391_v57 = vsel %vm1961_vm5, %v4378_v54, -inf }
0x15b6   : > { %4392 = vmax.xlane.f32.xlu0 %v4391_v57  ;;  %v4382_v51 = vpop.f32.mrb[68].mxu1  ;;  %v10852_v57 = vld [vmem:[%s15586_s10 + $0x30] sm:$0xff] }
0x15b7   : > { %v4383_v60 = vadd.f32 %v14421_v12, %v4382_v51  ;;  %v11825_v56 = vpop.f32.mrb[69].mxu1  ;;  %11845 = vmatpush3.msra.mxu1 %v10852_v57 }
0x15b8   : > { %12477 = vmatprep.subr.bf16.mxu1 %v13476_v8 }
0x15b9   : > { %v4394_v29 = vsel %vm1961_vm5, %v4383_v60, -inf }
0x15ba   : > { %4395 = vmax.xlane.f32.xlu1 %v4394_v29  ;;  %v4387_v63 = vpop.f32.mrb[70].mxu1 }
0x15bb   : > { %v4388_v0 = vadd.f32 %v14426_v23, %v4387_v63  ;;  %v11828_v1 = vpop.f32.mrb[71].mxu1 }
0x15bd   : > { %v4397_v43 = vsel %vm1968_vm6, %v4388_v0, -inf }
0x15be   : > { %4398 = vmax.xlane.f32.xlu0 %v4397_v43 }
0x15cb   : > { %12856 = vrot.lane.b32.xlu1 %v14359_v58, %s15600_s12 }
0x15cf   : > { %12861 = vrot.lane.b32.xlu1 %v14359_v58, %s15601_s14 }
0x1643   : > { %v4393_v61 = vpop.xlane.xlu0 %4392 }
0x1644   : > { %v4400_v2 = vsub.f32 %v4378_v54, %v4393_v61 }
0x1646   : > { %v4403_v3 = vmul.f32 1.442695, %v4400_v2 }
0x1647   : > { %v4396_v49 = vpop.xlane.xlu1 %4395 }
0x1648   : > { %13030 = vpow2.f32 %v4403_v3  ;;  %v4401_v6 = vsub.f32 %v4383_v60, %v4396_v49 }
0x164a   : > { %v4405_v4 = vmul.f32 1.442695, %v4401_v6 }
0x164b   : > { %v12857_v27 = vpop.permute.xlu1 %12856  ;;  %v4399_v19 = vpop.xlane.xlu0 %4398 }
0x164c   : > { %13032 = vpow2.f32 %v4405_v4  ;;  %v12859_v7 = vunpack.i.h.bf16 %v12857_v27  ;;  %v12858_v28 = vunpack.i.l.bf16 %v12857_v27  ;;  %v4402_v21 = vsub.f32 %v4388_v0, %v4399_v19 }
0x164e   : > { %v12471_v5 = vpack.c.bf16 %v12859_v7, %v12858_v28  ;;  %v4407_v22 = vmul.f32 1.442695, %v4402_v21 }
0x164f   : > { %v12862_v26 = vpop.permute.xlu1 %12861 }
0x1650   : > { %12472 = vmatpush3.bf16.msra.mxu0 %v12471_v5  ;;  %13034 = vpow2.f32 %v4407_v22  ;;  %v12863_v35 = vunpack.i.l.bf16 %v12862_v26 }
0x1651   : > { %11833 = vmatprep.subr.mxu0 %v13478_v14 }
0x1652   : > { %v13031_v9 = vpop.eup %13030 }
0x1653   : > { %v4409_v10 = vsel %vm1961_vm5, %v13031_v9, 0.0 }
0x1654   : > { %4410 = vadd.xlane.f32.xlu0 %v4409_v10 }
0x1656   : > { %v13033_v13 = vpop.eup %13032 }
0x1657   : > { %v4412_v16 = vsel %vm1961_vm5, %v13033_v13, 0.0 }
0x1658   : > { %4413 = vadd.xlane.f32.xlu1 %v4412_v16 }
0x165a   : > { %v13035_v25 = vpop.eup %13034 }
0x165b   : > { %v4415_v24 = vsel %vm1968_vm6, %v13035_v25, 0.0 }
0x1669   : > { %4625 = vrot.lane.b32.xlu1 %v14361_v59, %s15601_s14 }
0x166a   : > { %4428 = vrot.lane.b32.xlu0 %v14361_v59, %s15600_s12 }
0x166d   : > { %4617 = vrot.lane.b32.xlu1 %v14380_v39, %s15602_s16  ;;  %v12864_v39 = vunpack.i.h.bf16 %v12862_v26 }
0x166f   : > { %v12474_v41 = vpack.c.bf16 %v12864_v39, %v12863_v35 }
0x1689   : > { %4416 = vadd.xlane.f32.xlu0 %v4415_v24 }
0x169f   : > { %4615 = vrot.lane.b32.xlu0 %v14369_v47, %s15602_s16 }
0x16a3   : > { %4619 = vrot.lane.b32.xlu0 %v14376_v62, %s15602_s16 }
0x16e1   : > { %v4411_v30 = vpop.xlane.xlu0 %4410 }
0x16e2   : > { %13036 = vrcp.f32 %v4411_v30 }
0x16e5   : > { %v4414_v32 = vpop.xlane.xlu1 %4413  ;;  %v4429_v34 = vpop.permute.xlu0 %4428 }
0x16e6   : > { %13038 = vrcp.f32 %v4414_v32  ;;  %11834 = vmatpush3.msk.msra.mxu0 %vm2013_vm7, %v4429_v34 }
0x16e7   : > { %12473 = vmatprep.subr.bf16.mxu0 %v13476_v8 }
0x16e9   : > { %v4626_v42 = vpop.permute.xlu1 %4625 }
0x16ec   : > { %v13037_v36 = vpop.eup %13036 }
0x16ed   : > { %v4421_v37 = vmul.f32 %v13037_v36, %v13031_v9  ;;  %v4618_v54 = vpop.permute.xlu1 %4617 }
0x16ef   : > { %11836 = vmatmul.mubr.msk.f32.vlgmr.msra.gmra.mrb[68].mxu0 %vm1961_vm5, %v4421_v37 }
0x16f0   : > { %v13039_v47 = vpop.eup %13038  ;;  %12476 = vmatpush3.bf16.xpose.msk.msra.mxu0 %vm14001_vm4, %v12474_v41  ;;  %11838 = vmatprep.mubr.msk.f32.mxu0 %vm13477_vm0, %v13478_v14 }
0x16f1   : > { %v4422_v62 = vmul.f32 %v13039_v47, %v13033_v13  ;;  %11859 = vmatprep.subr.mxu0 %v13478_v14 }
0x16f3   : > { %11839 = vmatmul.mubr.msk.f32.gmra.mrb[70].mxu0 %vm1961_vm5, %v4422_v62 }
0x16f4   : > { %11841 = vmatprep.mubr.msk.f32.mxu0 %vm13477_vm0, %v13478_v14 }
0x16f8   : > { %11860 = vmatpush3.xpose.msk.msra.mxu0 %vm1865_vm3, %v4626_v42 }
0x16f9   : > { %11885 = vmatprep.subr.mxu0 %v13478_v14 }
0x1716   : > { %v4417_v31 = vpop.xlane.xlu0 %4416 }
0x1717   : > { %13040 = vrcp.f32 %v4417_v31 }
0x171a   : > { %v4616_v53 = vpop.permute.xlu0 %4615 }
0x171e   : > { %v4620_v55 = vpop.permute.xlu0 %4619 }
0x1721   : > { %v13041_v50 = vpop.eup %13040 }
0x1722   : > { %v4423_v46 = vmul.f32 %v13041_v50, %v13035_v25 }
0x1724   : > { %11842 = vmatmul.mubr.msk.f32.gmra.mrb[72].mxu0 %vm1961_vm5, %v4423_v46 }
0x1725   : > { %11861 = vmatprep.mubr.msk.f32.mxu0 %vm13477_vm0, %v13478_v14 }
0x1728   : > { %11862 = vmatmul.mubr.msk.f32.vlgmr.msra.gmra.mrb[74].mxu0 %vm1865_vm3, %v4616_v53 }
0x1729   : > { %11864 = vmatprep.mubr.msk.f32.mxu0 %vm13477_vm0, %v13478_v14 }
0x172c   : > { %11865 = vmatmul.mubr.msk.f32.gmra.mrb[76].mxu0 %vm1865_vm3, %v4618_v54 }
0x172d   : > { %11867 = vmatprep.mubr.msk.f32.mxu0 %vm13477_vm0, %v13478_v14 }
0x1730   : > { %11868 = vmatmul.mubr.msk.f32.gmra.mrb[78].mxu0 %vm1865_vm3, %v4620_v55 }
0x1731   : > { %11887 = vmatprep.mubr.msk.f32.mxu0 %vm13477_vm0, %v13478_v14 }
0x17c2   : > { %v4509_v51 = vpop.f32.mrb[68].mxu0 }
0x17c3   : > { %v11837_v60 = vpop.f32.mrb[69].mxu0  ;;  %11847 = vmatmul.mubr.msk.f32.vlgmr.msra.gmra.mrb[72].mxu1 %vm1865_vm3, %v4509_v51 }
0x17c4   : > { %11849 = vmatprep.mubr.msk.f32.mxu1 %vm13477_vm0, %v13478_v14 }
0x17c6   : > { %v4514_v56 = vpop.f32.mrb[70].mxu0 }
0x17c7   : > { %v11840_v29 = vpop.f32.mrb[71].mxu0  ;;  %11850 = vmatmul.mubr.msk.f32.gmra.mrb[74].mxu1 %vm1865_vm3, %v4514_v56 }
0x17c8   : > { %11852 = vmatprep.mubr.msk.f32.mxu1 %vm13477_vm0, %v13478_v14 }
0x17f7   : > { %v4519_v63 = vpop.f32.mrb[72].mxu0 }
0x17f8   : > { %v11843_v0 = vpop.f32.mrb[73].mxu0  ;;  %11853 = vmatmul.mubr.msk.f32.gmra.mrb[76].mxu1 %vm1865_vm3, %v4519_v63 }
0x17f9   : > { %11876 = vmatprep.mubr.msk.f32.mxu1 %vm13477_vm0, %v13478_v14 }
0x17fb   : > { %v4705_v1 = vpop.f32.mrb[74].mxu0 }
0x17fc   : > { %v4706_v43 = vadd.f32 %v14416_v11, %v4705_v1  ;;  %v11863_v61 = vpop.f32.mrb[75].mxu0 }
0x17fe   : > { %v4719_v2 = vsel %vm1961_vm5, %v4706_v43, -inf }
0x17ff   : > { %4720 = vmax.xlane.f32.xlu1 %v4719_v2  ;;  %v4710_v3 = vpop.f32.mrb[76].mxu0  ;;  %v10911_v2 = vld [vmem:[%s15587_s23 + $0x1] ss:$0 sm:$0xff]  ;;  %s15615_s23 = sld [smem:[#allocation33_spill]] }
0x1800   : > { %v4711_v49 = vadd.f32 %v14421_v12, %v4710_v3  ;;  %v11866_v6 = vpop.f32.mrb[77].mxu0 }
0x1802   : > { %v4722_v4 = vsel %vm1961_vm5, %v4711_v49, -inf }
0x1803   : > { %4723 = vmax.xlane.f32.xlu0 %v4722_v4  ;;  %v4715_v27 = vpop.f32.mrb[78].mxu0 }
0x1804   : > { %v4716_v7 = vadd.f32 %v14426_v23, %v4715_v27  ;;  %v11869_v28 = vpop.f32.mrb[79].mxu0 }
0x1806   : > { %v4725_v5 = vsel %vm1968_vm6, %v4716_v7, -inf }
0x1807   : > { %4726 = vmax.xlane.f32.xlu0 %v4725_v5 }
0x188c   : > { %v4721_v9 = vpop.xlane.xlu1 %4720 }
0x188d   : > { %v4728_v11 = vsub.f32 %v4706_v43, %v4721_v9 }
0x188f   : > { %v4731_v10 = vmul.f32 1.442695, %v4728_v11 }
0x1890   : > { %v4724_v13 = vpop.xlane.xlu0 %4723 }
0x1891   : > { %13042 = vpow2.f32 %v4731_v10  ;;  %v4729_v16 = vsub.f32 %v4711_v49, %v4724_v13 }
0x1893   : > { %v4733_v19 = vmul.f32 1.442695, %v4729_v16 }
0x1894   : > { %v4727_v21 = vpop.xlane.xlu0 %4726 }
0x1895   : > { %13044 = vpow2.f32 %v4733_v19  ;;  %v4730_v12 = vsub.f32 %v4716_v7, %v4727_v21 }
0x1896   : > { %v4598_v22 = vpop.f32.mrb[72].mxu1 }
0x1897   : > { %v4735_v25 = vmul.f32 1.442695, %v4730_v12  ;;  %v14593_v24 = vadd.f32 %v4598_v22, %v14520_v40  ;;  %v11848_v23 = vpop.f32.mrb[73].mxu1 }
0x1899   : > { %13046 = vpow2.f32 %v4735_v25 }
0x189a   : > { %v4603_v26 = vpop.f32.mrb[74].mxu1 }
0x189b   : > { %v13043_v30 = vpop.eup %13042  ;;  %v14596_v32 = vadd.f32 %v4603_v26, %v14522_v45  ;;  %v11851_v34 = vpop.f32.mrb[75].mxu1  ;;  %v10853_v45 = vld [vmem:[%s15586_s10 + $0x38] sm:$0xff]  ;;  %s15604_s10 = sld [smem:[#allocation46_spill]] }
0x189c   : > { %v4737_v39 = vsel %vm1961_vm5, %v13043_v30, 0.0  ;;  %11886 = vmatpush3.msra.mxu0 %v10853_v45 }
0x189d   : > { %4738 = vadd.xlane.f32.xlu1 %v4737_v39  ;;  %12486 = vmatprep.subr.bf16.mxu0 %v13476_v8 }
0x189f   : > { %v13045_v35 = vpop.eup %13044 }
0x18a0   : > { %v4740_v36 = vsel %vm1961_vm5, %v13045_v35, 0.0 }
0x18a1   : > { %4741 = vadd.xlane.f32.xlu0 %v4740_v36 }
0x18a3   : > { %v13047_v37 = vpop.eup %13046 }
0x18a4   : > { %v4743_v40 = vsel %vm1968_vm6, %v13047_v37, 0.0 }
0x18a5   : > { %4744 = vadd.xlane.f32.xlu1 %v4743_v40 }
0x18b6   : > { %4756 = vrot.lane.b32.xlu1 %v14361_v59, %s15603_s17 }
0x18b7   : > { %12866 = vrot.lane.b32.xlu0 %v14359_v58, %s15603_s17 }
0x18cb   : > { %v4608_v41 = vpop.f32.mrb[76].mxu1 }
0x18cc   : > { %v4614_v47 = vadd.f32 %v4608_v41, %v14524_v52  ;;  %v11854_v62 = vpop.f32.mrb[77].mxu1  ;;  %v10912_v41 = vld [vmem:[%s15588_s2 + $0x20] sm:$0xff] }
0x192a   : > { %v4739_v42 = vpop.xlane.xlu1 %4738 }
0x192b   : > { %13048 = vrcp.f32 %v4739_v42  ;;  %v10914_v42 = vld [vmem:[%s15588_s2 + $0x30] sm:$0xff] }
0x192e   : > { %v4742_v31 = vpop.xlane.xlu0 %4741 }
0x192f   : > { %13050 = vrcp.f32 %v4742_v31  ;;  %v10915_v31 = vld [vmem:[%s15588_s2 + $0x38] sm:$0xff] }
0x1932   : > { %v4745_v50 = vpop.xlane.xlu1 %4744  ;;  %v12867_v46 = vpop.permute.xlu0 %12866 }
0x1933   : > { %v12869_v53 = vunpack.i.h.bf16 %v12867_v46  ;;  %v12868_v54 = vunpack.i.l.bf16 %v12867_v46  ;;  %13052 = vrcp.f32 %v4745_v50  ;;  %v12484_v50 = vpack.c.bf16 %v10915_v31, %v10914_v42 }
0x1935   : > { %v12478_v59 = vpack.c.bf16 %v12869_v53, %v12868_v54  ;;  %v13049_v55 = vpop.eup %13048 }
0x1936   : > { %v4749_v58 = vmul.f32 %v13049_v55, %v13043_v30  ;;  %v4757_v57 = vpop.permute.xlu1 %4756 }
0x1937   : > { %12479 = vmatpush3.bf16.msra.mxu1 %v12478_v59 }
0x1938   : > { %11874 = vmatprep.subr.mxu1 %v13478_v14 }
0x1939   : > { %v13051_v51 = vpop.eup %13050 }
0x193a   : > { %v4750_v52 = vmul.f32 %v13051_v51, %v13045_v35 }
0x193b   : > { %11875 = vmatpush3.msk.msra.mxu1 %vm2013_vm7, %v4757_v57 }
0x193c   : > { %11877 = vmatmul.mubr.msk.f32.vlgmr.msra.gmra.mrb[78].mxu1 %vm1961_vm5, %v4749_v58  ;;  %12480 = vmatprep.subr.bf16.mxu1 %v13476_v8 }
0x193d   : > { %11879 = vmatprep.mubr.msk.f32.mxu1 %vm13477_vm0, %v13478_v14  ;;  %v13053_v60 = vpop.eup %13052 }
0x193e   : > { %v4751_v56 = vmul.f32 %v13053_v60, %v13047_v37 }
0x1940   : > { %11880 = vmatmul.mubr.msk.f32.gmra.mrb[80].mxu1 %vm1961_vm5, %v4750_v52  ;;  %v14648_v52 = vld [vmem:[%s15589_s1 + $0x2] sm:$0x3]  ;;  %s15605_s1 = sld [smem:[#allocation25_spill]] }
0x1941   : > { %11882 = vmatprep.mubr.msk.f32.mxu1 %vm13477_vm0, %v13478_v14 }
0x1944   : > { %11883 = vmatmul.mubr.msk.f32.gmra.mrb[82].mxu1 %vm1961_vm5, %v4751_v56  ;;  %v14651_v56 = vld [vmem:[%s15590_s11 + $0x2] sm:$0x3]  ;;  %s15609_s11 = sld [smem:[#allocation44_spill]] }
0x1945   : > { %11904 = vmatprep.mubr.msk.f32.mxu1 %vm13477_vm0, %v13478_v14 }
0x1a0f   : > { %v4837_v29 = vpop.f32.mrb[78].mxu1 }
0x1a10   : > { %v11878_v63 = vpop.f32.mrb[79].mxu1  ;;  %11888 = vmatmul.mubr.msk.f32.vlgmr.msra.gmra.mrb[80].mxu0 %vm1865_vm3, %v4837_v29  ;;  %v4997_v29 = vrot.slane %v14648_v52, %v13924_v18 }
0x1a11   : > { %11890 = vmatprep.mubr.msk.f32.mxu0 %vm13477_vm0, %v13478_v14 }
0x1a13   : > { %v4842_v0 = vpop.f32.mrb[80].mxu1 }
0x1a14   : > { %v11881_v1 = vpop.f32.mrb[81].mxu1  ;;  %11891 = vmatmul.mubr.msk.f32.gmra.mrb[82].mxu0 %vm1865_vm3, %v4842_v0 }
0x1a15   : > { %11893 = vmatprep.mubr.msk.f32.mxu0 %vm13477_vm0, %v13478_v14  ;;  %v5004_v1 = vrot.slane %v14651_v56, %v13924_v18 }
0x1a17   : > { %v4847_v43 = vpop.f32.mrb[82].mxu1 }
0x1a18   : > { %v11884_v61 = vpop.f32.mrb[83].mxu1  ;;  %11894 = vmatmul.mubr.msk.f32.gmra.mrb[84].mxu0 %vm1865_vm3, %v4847_v43  ;;  %v5360_v43 = vld [vmem:[%s15604_s10] sm:$0xff] }
0x1a19   : > { %11929 = vmatprep.mubr.msk.f32.mxu0 %vm13477_vm0, %v13478_v14  ;;  %v5361_v61 = vld [vmem:[%s15604_s10 + $0x8] sm:$0xff] }
0x1ae3   : > { %v4926_v3 = vpop.f32.mrb[80].mxu0 }
0x1ae4   : > { %v4940_v49 = vadd.f32 %v4926_v3, %v14593_v24  ;;  %v11889_v6 = vpop.f32.mrb[81].mxu0 }
0x1ae6   : > { %v4949_v4 = vadd.f32 %v10911_v2, %v4940_v49  ;;  %v12499_v49 = vpack.c.bf16 %v5361_v61, %v5360_v43 }
0x1ae7   : > { %v4931_v27 = vpop.f32.mrb[82].mxu0 }
0x1ae8   : > { %v4941_v7 = vadd.f32 %v4931_v27, %v14596_v32  ;;  %v11892_v28 = vpop.f32.mrb[83].mxu0  ;;  %v4952_v5 = vadd.f32 %v4949_v4, %v14340_v38  ;;  %v5362_v27 = vld [vmem:[%s15604_s10 + $0x10] sm:$0xff] }
0x1aea   : > { %v4950_v9 = vadd.f32 %v10911_v2, %v4941_v7  ;;  %v4955_v11 = vsel %vm1763_vm1, %v4952_v5, 0.0  ;;  %v5363_v7 = vld [vmem:[%s15604_s10 + $0x18] sm:$0xff] }
0x1aeb   : > { %4956 = vadd.xlane.f32.xlu1 %v4955_v11  ;;  %v4936_v10 = vpop.f32.mrb[84].mxu0 }
0x1aec   : > { %v4942_v13 = vadd.f32 %v4936_v10, %v4614_v47  ;;  %v11895_v16 = vpop.f32.mrb[85].mxu0  ;;  %v4953_v19 = vadd.f32 %v4950_v9, %v14346_v15  ;;  %v10913_v47 = vld [vmem:[%s15588_s2 + $0x28] sm:$0xff]  ;;  %v12502_v9 = vpack.c.bf16 %v5363_v7, %v5362_v27  ;;  %s15608_s2 = sld [smem:[#allocation27_spill]] }
0x1aed   : > { %v12481_v62 = vpack.c.bf16 %v10913_v47, %v10912_v41 }
0x1aee   : > { %v4951_v21 = vadd.f32 %v10911_v2, %v4942_v13  ;;  %v4958_v12 = vsel %vm1763_vm1, %v4953_v19, 0.0  ;;  %v10776_v13 = vld [vmem:[#allocation2] ss:$0 sm:$0xff] }
0x1aef   : > { %4959 = vadd.xlane.f32.xlu0 %v4958_v12  ;;  %12482 = vmatpush3.bf16.msra.mxu1 %v12481_v62  ;;  %v1743_v12 = vld [vmem:[%s15605_s1] sm:$0x3f]  ;;  %s15606_s1 = sld [smem:[#allocation37_spill]] }
0x1af0   : > { %v4954_v22 = vadd.f32 %v4951_v21, %v14352_v48  ;;  %12483 = vmatprep.subr.bf16.mxu1 %v13476_v8 }
0x1af2   : > { %v4961_v25 = vsel %vm3184_vm8, %v4954_v22, 0.0 }
0x1af3   : > { %4962 = vadd.xlane.f32.xlu0 %v4961_v25  ;;  %12485 = vmatpush3.bf16.msra.mxu1 %v12484_v50  ;;  %v10918_v25 = vld [vmem:[%s15591_s0 + $0x48] sm:$0xff] }
0x1af4   : > { %12498 = vmatprep.subr.bf16.mxu1 %v13476_v8 }
0x1b78   : > { %v4957_v24 = vpop.xlane.xlu1 %4956 }
0x1b79   : > { %v4964_v38 = vmul.f32 0.03125, %v4957_v24 }
0x1b7b   : > { %v4967_v23 = vsub.f32 %v4952_v5, %v4964_v38  ;;  %v10919_v38 = vld [vmem:[%s15591_s0 + $0x50] sm:$0xff] }
0x1b7c   : > { %v4960_v26 = vpop.xlane.xlu0 %4959 }
0x1b7d   : > { %v4965_v30 = vmul.f32 0.03125, %v4960_v26  ;;  %v4970_v32 = vmul.f32 %v4967_v23, %v4967_v23 }
0x1b7f   : > { %v4968_v34 = vsub.f32 %v4953_v19, %v4965_v30  ;;  %v4973_v15 = vsel %vm1763_vm1, %v4970_v32, 0.0  ;;  %v1740_v19 = vadd.f32 %v10776_v13, %v14036_v44  ;;  %v10917_v44 = vld [vmem:[%s15591_s0 + $0x40] sm:$0xff]  ;;  %v10922_v32 = vld [vmem:[%s15591_s0 + $0x68] sm:$0xff] }
0x1b80   : > { %4974 = vadd.xlane.f32.xlu1 %v4973_v15  ;;  %v4963_v39 = vpop.xlane.xlu0 %4962  ;;  %v12487_v24 = vpack.c.bf16 %v10918_v25, %v10917_v44  ;;  %v10921_v30 = vld [vmem:[%s15591_s0 + $0x60] sm:$0xff]  ;;  %v10923_v15 = vld [vmem:[%s15591_s0 + $0x70] sm:$0xff] }
0x1b81   : > { %v4966_v35 = vmul.f32 0.03125, %v4963_v39  ;;  %v4971_v48 = vmul.f32 %v4968_v34, %v4968_v34  ;;  %v10924_v39 = vld [vmem:[%s15591_s0 + $0x78] sm:$0xff] }
0x1b82   : > { %12488 = vmatpush3.bf16.msra.mxu0 %v12487_v24 }
0x1b83   : > { %v4969_v36 = vsub.f32 %v4954_v22, %v4966_v35  ;;  %v4976_v37 = vsel %vm1763_vm1, %v4971_v48, 0.0  ;;  %v14683_v22 = vadd.f32 %v1743_v12, %v1740_v19  ;;  %12489 = vmatprep.subr.bf16.mxu0 %v13476_v8  ;;  %v12496_v35 = vpack.c.bf16 %v10924_v39, %v10923_v15  ;;  %v10926_v48 = vld [vmem:[%s15592_s26 + $0x1] ss:$0 sm:$0xff]  ;;  %s15618_s26 = sld [smem:[#allocation43_spill]] }
0x1b84   : > { %4977 = vadd.xlane.f32.xlu0 %v4976_v37 }
0x1b85   : > { %v4972_v40 = vmul.f32 %v4969_v36, %v4969_v36 }
0x1b87   : > { %v4979_v45 = vsel %vm3184_vm8, %v4972_v40, 0.0 }
0x1b88   : > { %4980 = vadd.xlane.f32.xlu1 %v4979_v45 }
0x1c0d   : > { %v4975_v46 = vpop.xlane.xlu1 %4974 }
0x1c0e   : > { %v4982_v53 = vmul.f32 0.03125, %v4975_v46 }
0x1c10   : > { %v4985_v54 = vadd.f32 1e-05, %v4982_v53 }
0x1c11   : > { %v4978_v59 = vpop.xlane.xlu0 %4977 }
0x1c12   : > { %13054 = vrsqrt.f32 %v4985_v54  ;;  %v4983_v55 = vmul.f32 0.03125, %v4978_v59 }
0x1c14   : > { %v4986_v58 = vadd.f32 1e-05, %v4983_v55 }
0x1c15   : > { %v4981_v57 = vpop.xlane.xlu1 %4980 }
0x1c16   : > { %13056 = vrsqrt.f32 %v4986_v58  ;;  %v4984_v51 = vmul.f32 0.03125, %v4981_v57  ;;  %v10936_v58 = vld [vmem:[%s15606_s1] ss:$0 sm:$0xff] }
0x1c18   : > { %v4987_v60 = vadd.f32 1e-05, %v4984_v51 }
0x1c1a   : > { %13058 = vrsqrt.f32 %v4987_v60 }
0x1c1c   : > { %v13055_v63 = vpop.eup %13054 }
0x1c1d   : > { %v4991_v0 = vmul.f32 %v13055_v63, %v4967_v23  ;;  %v10920_v23 = vld [vmem:[%s15591_s0 + $0x58] sm:$0xff]  ;;  %s15607_s0 = smov 96  }
0x1c1e   : > { %v12490_v26 = vpack.c.bf16 %v10920_v23, %v10919_v38 }
0x1c1f   : > { %v4998_v2 = vmul.f32 %v4997_v29, %v4991_v0 }
0x1c20   : > { %v13057_v3 = vpop.eup %13056  ;;  %12491 = vmatpush3.bf16.msra.mxu0 %v12490_v26 }
0x1c21   : > { %v14659_v6 = vadd.f32 %v5004_v1, %v4998_v2  ;;  %v4992_v4 = vmul.f32 %v13057_v3, %v4968_v34  ;;  %12492 = vmatprep.subr.bf16.mxu0 %v13476_v8  ;;  %v12493_v34 = vpack.c.bf16 %v10922_v32, %v10921_v30 }
0x1c23   : > { %11905 = vmatmul.mubr.msk.f32.vlgmr.msra.gmra.mrb[84].mxu1 %vm1763_vm1, %v14659_v6  ;;  %v4999_v28 = vmul.f32 %v4997_v29, %v4992_v4 }
0x1c24   : > { %v13059_v5 = vpop.eup %13058  ;;  %11907 = vmatprep.mubr.msk.f32.mxu1 %vm13477_vm0, %v13478_v14  ;;  %12500 = vmatpush3.bf16.msra.mxu1 %v12499_v49 }
0x1c25   : > { %v14667_v11 = vadd.f32 %v5004_v1, %v4999_v28  ;;  %v4993_v10 = vmul.f32 %v13059_v5, %v4969_v36  ;;  %12501 = vmatprep.subr.bf16.mxu1 %v13476_v8  ;;  %12494 = vmatpush3.bf16.msra.mxu0 %v12493_v34 }
0x1c26   : > { %12495 = vmatprep.subr.bf16.mxu0 %v13476_v8 }
0x1c27   : > { %11908 = vmatmul.mubr.msk.f32.gmra.mrb[86].mxu1 %vm1763_vm1, %v14667_v11  ;;  %v5000_v16 = vmul.f32 %v4997_v29, %v4993_v10 }
0x1c28   : > { %11910 = vmatprep.mubr.msk.f32.mxu1 %vm13477_vm0, %v13478_v14  ;;  %12503 = vmatpush3.bf16.msra.mxu1 %v12502_v9 }
0x1c29   : > { %v14675_v21 = vadd.f32 %v5004_v1, %v5000_v16  ;;  %11949 = vmatprep.subr.mxu1 %v13478_v14  ;;  %12497 = vmatpush3.bf16.msra.mxu0 %v12496_v35  ;;  %v14741_v35 = vld [vmem:[%s15608_s2] sm:$0x3f] }
0x1c2a   : > { %11954 = vmatprep.subr.mxu0 %v13478_v14 }
0x1c2b   : > { %11911 = vmatmul.mubr.msk.f32.gmra.mrb[88].mxu1 %vm1763_vm1, %v14675_v21 }
0x1c2c   : > { %11946 = vmatprep.mubr.msk.f32.mxu1 %vm13477_vm0, %v13478_v14 }
0x1c2f   : > { %11947 = vmatmul.mubr.msk.f32.vlgmr.msra.gmra.mrb[90].mxu1 %vm1763_vm1, %v14683_v22 }
0x1c30   : > { %11951 = vmatprep.mubr.msk.f32.mxu1 %vm13477_vm0, %v13478_v14 }
0x1cf6   : > { %v5107_v36 = vpop.f32.mrb[84].mxu1 }
0x1cf7   : > { %v5108_v37 = vadd.f32 %v10926_v48, %v5107_v36  ;;  %v11906_v40 = vpop.f32.mrb[85].mxu1 }
0x1cf9   : > { %v5124_v45 = vmul.f32 0.044715, %v5108_v37  ;;  %v5121_v7 = vmul.f32 0.5, %v5108_v37 }
0x1cfa   : > { %v5112_v41 = vpop.f32.mrb[86].mxu1 }
0x1cfb   : > { %v5127_v47 = vmul.f32 %v5124_v45, %v5108_v37  ;;  %v5113_v62 = vadd.f32 %v10926_v48, %v5112_v41  ;;  %v11909_v42 = vpop.f32.mrb[87].mxu1 }
0x1cfd   : > { %v5130_v31 = vmul.f32 %v5127_v47, %v5108_v37  ;;  %v5125_v50 = vmul.f32 0.044715, %v5113_v62  ;;  %v5122_v10 = vmul.f32 0.5, %v5113_v62 }
0x1cfe   : > { %v5117_v46 = vpop.f32.mrb[88].mxu1 }
0x1cff   : > { %v5133_v53 = vadd.f32 %v5130_v31, %v5108_v37  ;;  %v5128_v54 = vmul.f32 %v5125_v50, %v5113_v62  ;;  %v5118_v59 = vadd.f32 %v10926_v48, %v5117_v46  ;;  %v11912_v55 = vpop.f32.mrb[89].mxu1 }
0x1d01   : > { %v5136_v57 = vmul.f32 0.7978846, %v5133_v53  ;;  %v5131_v51 = vmul.f32 %v5128_v54, %v5113_v62  ;;  %v5126_v60 = vmul.f32 0.044715, %v5118_v59  ;;  %v5123_v12 = vmul.f32 0.5, %v5118_v59 }
0x1d02   : > { %v5445_v29 = vpop.f32.mrb[90].mxu1 }
0x1d03   : > { %13060 = vtanh.f32 %v5136_v57  ;;  %v5134_v63 = vadd.f32 %v5131_v51, %v5113_v62  ;;  %v5129_v0 = vmul.f32 %v5126_v60, %v5118_v59  ;;  %v14703_v1 = vadd.f32 %v10936_v58, %v5445_v29  ;;  %v11948_v43 = vpop.f32.mrb[91].mxu1  ;;  %v5366_v60 = vld [vmem:[%s15609_s11 + $0x8] sm:$0xff] }
0x1d05   : > { %v5132_v61 = vmul.f32 %v5129_v0, %v5118_v59  ;;  %5621 = vrot.lane.b32.xlu1 %v14703_v1, %s15594_s3  ;;  %5451 = vrot.lane.b32.xlu0 %v14703_v1, %s15607_s0  ;;  %v5137_v2 = vmul.f32 0.7978846, %v5134_v63  ;;  %v14710_v49 = vmul.f32 0.35355338, %v14703_v1 }
0x1d07   : > { %v5135_v3 = vadd.f32 %v5132_v61, %v5118_v59  ;;  %13062 = vtanh.f32 %v5137_v2 }
0x1d09   : > { %5619 = vrot.lane.b32.xlu1 %v14710_v49, %s15595_s5  ;;  %v5138_v4 = vmul.f32 0.7978846, %v5135_v3 }
0x1d0b   : > { %13064 = vtanh.f32 %v5138_v4  ;;  %v5365_v4 = vld [vmem:[%s15609_s11] sm:$0xff] }
0x1d0d   : > { %v13061_v27 = vpop.eup %13060 }
0x1d0e   : > { %v5142_v28 = vadd.f32 1.0, %v13061_v27 }
0x1d10   : > { %v5145_v5 = vmul.f32 %v5142_v28, %v5121_v7 }
0x1d11   : > { %v13063_v9 = vpop.eup %13062 }
0x1d12   : > { %11930 = vmatmul.mubr.msk.f32.vlgmr.msra.gmra.mrb[86].mxu0 %vm3375_vm9, %v5145_v5  ;;  %v5143_v13 = vadd.f32 1.0, %v13063_v9 }
0x1d13   : > { %11932 = vmatprep.mubr.msk.f32.mxu0 %vm13477_vm0, %v13478_v14 }
0x1d14   : > { %v5146_v16 = vmul.f32 %v5143_v13, %v5122_v10 }
0x1d15   : > { %v13065_v19 = vpop.eup %13064 }
0x1d16   : > { %11933 = vmatmul.mubr.msk.f32.gmra.mrb[88].mxu0 %vm3375_vm9, %v5146_v16  ;;  %v5144_v44 = vadd.f32 1.0, %v13065_v19 }
0x1d17   : > { %11935 = vmatprep.mubr.msk.f32.mxu0 %vm13477_vm0, %v13478_v14 }
0x1d18   : > { %v5147_v25 = vmul.f32 %v5144_v44, %v5123_v12 }
0x1d1a   : > { %11936 = vmatmul.mubr.msk.f32.gmra.mrb[90].mxu0 %vm3375_vm9, %v5147_v25 }
0x1d1b   : > { %11956 = vmatprep.mubr.msk.f32.mxu0 %vm13477_vm0, %v13478_v14 }
0x1d77   : > { %v5452_v24 = vpop.permute.xlu0 %5451  ;;  %v5622_v38 = vpop.permute.xlu1 %5621 }
0x1d78   : > { %11950 = vmatpush3.xpose.msk.msra.mxu1 %vm1865_vm3, %v5452_v24 }
0x1d79   : > { %11959 = vmatprep.subr.mxu1 %v13478_v14 }
0x1d7b   : > { %11952 = vmatmul.mubr.msk.f32.vlgmr.msra.gmra.mrb[92].mxu1 %vm1865_vm3, %v14710_v49  ;;  %v5620_v23 = vpop.permute.xlu1 %5619 }
0x1d7c   : > { %11960 = vmatpush3.xpose.msk.msra.mxu1 %vm1865_vm3, %v5622_v38  ;;  %11961 = vmatprep.mubr.msk.f32.mxu1 %vm13477_vm0, %v13478_v14 }
0x1d7d   : > { %11969 = vmatprep.subr.mxu1 %v13478_v14 }
0x1d7f   : > { %11962 = vmatmul.mubr.msk.f32.vlgmr.msra.gmra.mrb[94].mxu1 %vm1865_vm3, %v5620_v23 }
0x1d80   : > { %11971 = vmatprep.mubr.msk.f32.mxu1 %vm13477_vm0, %v13478_v14  ;;  %11970 = vmatpush3.msra.mxu1 %v5366_v60 }
0x1d81   : > { %11979 = vmatprep.subr.mxu1 %v13478_v14 }
0x1de5   : > { %v14734_v26 = vpop.f32.mrb[86].mxu0 }
0x1de6   : > { %v11931_v30 = vpop.f32.mrb[87].mxu0 }
0x1de9   : > { %v14736_v32 = vpop.f32.mrb[88].mxu0 }
0x1dea   : > { %v11934_v34 = vpop.f32.mrb[89].mxu0 }
0x1ded   : > { %v14738_v15 = vpop.f32.mrb[90].mxu0 }
0x1dee   : > { %v11937_v39 = vpop.f32.mrb[91].mxu0 }
0x1e4e   : > { %v5524_v48 = vpop.f32.mrb[92].mxu1 }
0x1e4f   : > { %v5525_v36 = vadd.f32 %v5524_v48, %v14741_v35  ;;  %v11953_v37 = vpop.f32.mrb[93].mxu1 }
0x1e51   : > { %v5529_v40 = vsel %vm5528_vm10, %v5525_v36, -inf }
0x1e52   : > { %5530 = vmax.xlane.f32.xlu0 %v5529_v40  ;;  %v5693_v45 = vpop.f32.mrb[94].mxu1 }
0x1e53   : > { %v5694_v41 = vadd.f32 %v5693_v45, %v14741_v35  ;;  %v11963_v47 = vpop.f32.mrb[95].mxu1 }
0x1e55   : > { %v5697_v62 = vsel %vm5528_vm10, %v5694_v41, -inf }
0x1e56   : > { %5698 = vmax.xlane.f32.xlu1 %v5697_v62  ;;  %v5367_v62 = vld [vmem:[%s15609_s11 + $0x10] sm:$0xff] }
0x1e67   : > { %5540 = vrot.lane.b32.xlu1 %v14703_v1, %s15596_s15 }
0x1e6b   : > { %5933 = vrot.lane.b32.xlu1 %v14703_v1, %s15598_s8 }
0x1e6f   : > { %5931 = vrot.lane.b32.xlu1 %v14710_v49, %s15599_s9 }
0x1edf   : > { %v5531_v42 = vpop.xlane.xlu0 %5530 }
0x1ee0   : > { %v5532_v31 = vsub.f32 %v5525_v36, %v5531_v42  ;;  %v10930_v42 = vld [vmem:[%s15593_s7 + $0x1] ss:$0 sm:$0xff]  ;;  %s15610_s7 = sld [smem:[#allocation35_spill]] }
0x1ee1   : > { %v5240_v60 = vadd.f32 %v10930_v42, %v14738_v15 }
0x1ee2   : > { %v5533_v50 = vmul.f32 1.442695, %v5532_v31 }
0x1ee3   : > { %v5699_v46 = vpop.xlane.xlu1 %5698 }
0x1ee4   : > { %13066 = vpow2.f32 %v5533_v50  ;;  %v5700_v53 = vsub.f32 %v5694_v41, %v5699_v46  ;;  %v5230_v46 = vadd.f32 %v10930_v42, %v14734_v26  ;;  %v5245_v26 = vadd.f32 %v5240_v60, %v14675_v21 }
0x1ee6   : > { %v5701_v54 = vmul.f32 1.442695, %v5700_v53 }
0x1ee7   : > { %v5541_v59 = vpop.permute.xlu1 %5540 }
0x1ee8   : > { %13068 = vpow2.f32 %v5701_v54  ;;  %11955 = vmatpush3.msk.msra.mxu0 %vm5546_vm11, %v5541_v59 }
0x1ee9   : > { %11964 = vmatprep.subr.mxu0 %v13478_v14 }
0x1eeb   : > { %v5934_v28 = vpop.permute.xlu1 %5933 }
0x1eee   : > { %v13067_v55 = vpop.eup %13066 }
0x1eef   : > { %v5535_v58 = vsel %vm5528_vm10, %v13067_v55, 0.0  ;;  %v5932_v10 = vpop.permute.xlu1 %5931 }
0x1ef0   : > { %5536 = vadd.xlane.f32.xlu0 %v5535_v58  ;;  %v5235_v58 = vadd.f32 %v10930_v42, %v14736_v32 }
0x1ef2   : > { %v13069_v57 = vpop.eup %13068 }
0x1ef3   : > { %v5703_v51 = vsel %vm5528_vm10, %v13069_v57, 0.0 }
0x1ef4   : > { %5704 = vadd.xlane.f32.xlu0 %v5703_v51  ;;  %v5244_v51 = vadd.f32 %v5235_v58, %v14667_v11 }
0x1f0a   : > { %5708 = vrot.lane.b32.xlu0 %v14703_v1, %s15597_s6 }
0x1f7d   : > { %v5537_v29 = vpop.xlane.xlu0 %5536 }
0x1f7e   : > { %13070 = vrcp.f32 %v5537_v29 }
0x1f81   : > { %v5705_v63 = vpop.xlane.xlu0 %5704 }
0x1f82   : > { %13072 = vrcp.f32 %v5705_v63  ;;  %v5249_v63 = vsel %vm1763_vm1, %v5244_v51, 0.0 }
0x1f85   : > { %v5709_v61 = vpop.permute.xlu0 %5708 }
0x1f88   : > { %v13071_v0 = vpop.eup %13070 }
0x1f89   : > { %v5539_v43 = vmul.f32 %v13071_v0, %v13067_v55  ;;  %v5243_v55 = vadd.f32 %v5230_v46, %v14659_v6 }
0x1f8b   : > { %11957 = vmatmul.mubr.msk.f32.vlgmr.msra.gmra.mrb[92].mxu0 %vm5542_vm12, %v5539_v43  ;;  %v5246_v29 = vsel %vm1763_vm1, %v5243_v55, 0.0 }
0x1f8c   : > { %v13073_v2 = vpop.eup %13072  ;;  %11965 = vmatpush3.msk.msra.mxu0 %vm5546_vm11, %v5709_v61  ;;  %11966 = vmatprep.mubr.msk.f32.mxu0 %vm13477_vm0, %v13478_v14 }
0x1f8d   : > { %v5707_v3 = vmul.f32 %v13073_v2, %v13069_v57  ;;  %11974 = vmatprep.subr.mxu0 %v13478_v14 }
0x1f8f   : > { %11967 = vmatmul.mubr.msk.f32.vlgmr.msra.gmra.mrb[94].mxu0 %vm5542_vm12, %v5707_v3 }
0x1f90   : > { %11976 = vmatprep.mubr.msk.f32.mxu0 %vm13477_vm0, %v13478_v14  ;;  %11975 = vmatpush3.msra.mxu0 %v5365_v4 }
0x1f91   : > { %11984 = vmatprep.subr.mxu0 %v13478_v14 }
0x205e   : > { %v5615_v27 = vpop.f32.mrb[92].mxu0 }
0x205f   : > { %v11958_v7 = vpop.f32.mrb[93].mxu0  ;;  %11977 = vmatmul.mubr.msk.f32.vlgmr.msra.gmra.mrb[96].mxu0 %vm1865_vm3, %v5615_v27 }
0x2060   : > { %11986 = vmatprep.mubr.msk.f32.mxu0 %vm13477_vm0, %v13478_v14 }
0x2062   : > { %v5781_v5 = vpop.f32.mrb[94].mxu0 }
0x2063   : > { %v11968_v9 = vpop.f32.mrb[95].mxu0  ;;  %11972 = vmatmul.mubr.msk.f32.vlgmr.msra.gmra.mrb[96].mxu1 %vm1865_vm3, %v5781_v5 }
0x2064   : > { %11980 = vmatpush3.xpose.msk.msra.mxu1 %vm1865_vm3, %v5934_v28  ;;  %11981 = vmatprep.mubr.msk.f32.mxu1 %vm13477_vm0, %v13478_v14 }
0x2065   : > { %11989 = vmatprep.subr.mxu1 %v13478_v14 }
0x2067   : > { %11982 = vmatmul.mubr.msk.f32.vlgmr.msra.gmra.mrb[98].mxu1 %vm1865_vm3, %v5932_v10 }
0x2068   : > { %11991 = vmatprep.mubr.msk.f32.mxu1 %vm13477_vm0, %v13478_v14  ;;  %11990 = vmatpush3.msra.mxu1 %v5367_v62  ;;  %v5295_v62 = vrot.slane %v14651_v56, %v13928_v20 }
0x2069   : > { %11999 = vmatprep.subr.mxu1 %v13478_v14 }
0x2132   : > { %v5927_v13 = vpop.f32.mrb[96].mxu0 }
0x2133   : > { %v11978_v16 = vpop.f32.mrb[97].mxu0 }
0x2136   : > { %v5854_v19 = vpop.f32.mrb[96].mxu1 }
0x2137   : > { %v14782_v12 = vadd.f32 %v5927_v13, %v5854_v19  ;;  %v11973_v44 = vpop.f32.mrb[97].mxu1 }
0x213a   : > { %v6005_v25 = vpop.f32.mrb[98].mxu1 }
0x213b   : > { %v6006_v24 = vadd.f32 %v6005_v25, %v14741_v35  ;;  %v11983_v38 = vpop.f32.mrb[99].mxu1 }
0x213d   : > { %v6009_v23 = vsel %vm5528_vm10, %v6006_v24, -inf }
0x213e   : > { %6010 = vmax.xlane.f32.xlu0 %v6009_v23 }
0x2154   : > { %6020 = vrot.lane.b32.xlu0 %v14703_v1, %s15600_s12 }
0x2158   : > { %6171 = vrot.lane.b32.xlu0 %v14710_v49, %s15602_s16 }
0x21cb   : > { %v6011_v30 = vpop.xlane.xlu0 %6010 }
0x21cc   : > { %v6012_v34 = vsub.f32 %v6006_v24, %v6011_v30 }
0x21ce   : > { %v6013_v39 = vmul.f32 1.442695, %v6012_v34 }
0x21cf   : > { %v6021_v48 = vpop.permute.xlu0 %6020 }
0x21d0   : > { %13074 = vpow2.f32 %v6013_v39  ;;  %11985 = vmatpush3.msk.msra.mxu0 %vm5546_vm11, %v6021_v48 }
0x21d1   : > { %11994 = vmatprep.subr.mxu0 %v13478_v14 }
0x21d3   : > { %v6172_v47 = vpop.permute.xlu0 %6171 }
0x21da   : > { %v13075_v36 = vpop.eup %13074 }
0x21db   : > { %v6015_v37 = vsel %vm5528_vm10, %v13075_v36, 0.0 }
0x21dc   : > { %6016 = vadd.xlane.f32.xlu1 %v6015_v37 }
0x21ed   : > { %6173 = vrot.lane.b32.xlu1 %v14703_v1, %s15601_s14 }
0x2269   : > { %v6017_v40 = vpop.xlane.xlu1 %6016 }
0x226a   : > { %13076 = vrcp.f32 %v6017_v40 }
0x226d   : > { %v6174_v41 = vpop.permute.xlu1 %6173 }
0x2274   : > { %v13077_v49 = vpop.eup %13076 }
0x2275   : > { %v6019_v45 = vmul.f32 %v13077_v49, %v13075_v36 }
0x2277   : > { %11987 = vmatmul.mubr.msk.f32.vlgmr.msra.gmra.mrb[98].mxu0 %vm5542_vm12, %v6019_v45 }
0x2278   : > { %11995 = vmatpush3.xpose.msk.msra.mxu0 %vm1865_vm3, %v6174_v41  ;;  %11996 = vmatprep.mubr.msk.f32.mxu0 %vm13477_vm0, %v13478_v14 }
0x2279   : > { %12004 = vmatprep.subr.mxu0 %v13478_v14 }
0x227b   : > { %11997 = vmatmul.mubr.msk.f32.vlgmr.msra.gmra.mrb[100].mxu0 %vm1865_vm3, %v6172_v47 }
0x227c   : > { %12006 = vmatprep.mubr.msk.f32.mxu0 %vm13477_vm0, %v13478_v14 }
0x234a   : > { %v6093_v31 = vpop.f32.mrb[98].mxu0 }
0x234b   : > { %v11988_v50 = vpop.f32.mrb[99].mxu0  ;;  %11992 = vmatmul.mubr.msk.f32.vlgmr.msra.gmra.mrb[100].mxu1 %vm1865_vm3, %v6093_v31 }
0x234c   : > { %12001 = vmatprep.mubr.msk.f32.mxu1 %vm13477_vm0, %v13478_v14 }
0x234e   : > { %v6245_v53 = vpop.f32.mrb[100].mxu0 }
0x234f   : > { %v6246_v54 = vadd.f32 %v6245_v53, %v14741_v35  ;;  %v11998_v59 = vpop.f32.mrb[101].mxu0  ;;  %v5252_v35 = vsel %vm3184_vm8, %v5245_v26, 0.0 }
0x2351   : > { %v6249_v57 = vsel %vm5528_vm10, %v6246_v54, -inf }
0x2352   : > { %6250 = vmax.xlane.f32.xlu1 %v6249_v57 }
0x2356   : > { %5247 = vadd.xlane.f32.xlu1 %v5246_v29  ;;  %v5368_v29 = vld [vmem:[%s15609_s11 + $0x18] sm:$0xff] }
0x2357   : > { %12005 = vmatpush3.msra.mxu0 %v5368_v29 }
0x2358   : > { %12510 = vmatprep.subr.bf16.mxu0 %v13476_v8 }
0x235a   : > { %5250 = vadd.xlane.f32.xlu1 %v5249_v63 }
0x235e   : > { %5253 = vadd.xlane.f32.xlu1 %v5252_v35 }
0x23df   : > { %v6251_v6 = vpop.xlane.xlu1 %6250 }
0x23e0   : > { %v6252_v32 = vsub.f32 %v6246_v54, %v6251_v6 }
0x23e2   : > { %v6253_v0 = vmul.f32 1.442695, %v6252_v32 }
0x23e3   : > { %v5248_v43 = vpop.xlane.xlu1 %5247 }
0x23e4   : > { %13078 = vpow2.f32 %v6253_v0  ;;  %v5255_v61 = vmul.f32 0.03125, %v5248_v43  ;;  %v10958_v0 = vld [vmem:[%s15610_s7] ss:$0 sm:$0xff] }
0x23e6   : > { %v5258_v11 = vsub.f32 %v5243_v55, %v5255_v61 }
0x23e7   : > { %v5251_v2 = vpop.xlane.xlu1 %5250 }
0x23e8   : > { %v5256_v15 = vmul.f32 0.03125, %v5251_v2  ;;  %v5261_v3 = vmul.f32 %v5258_v11, %v5258_v11 }
0x23ea   : > { %v5259_v4 = vsub.f32 %v5244_v51, %v5256_v15  ;;  %v5264_v27 = vsel %vm1763_vm1, %v5261_v3, 0.0 }
0x23eb   : > { %5265 = vadd.xlane.f32.xlu1 %v5264_v27  ;;  %v5254_v21 = vpop.xlane.xlu1 %5253 }
0x23ec   : > { %v5257_v7 = vmul.f32 0.03125, %v5254_v21  ;;  %v5262_v28 = vmul.f32 %v5259_v4, %v5259_v4 }
0x23ee   : > { %v13079_v5 = vpop.eup %13078  ;;  %v5260_v9 = vsub.f32 %v5245_v26, %v5257_v7  ;;  %v5267_v10 = vsel %vm1763_vm1, %v5262_v28, 0.0 }
0x23ef   : > { %5268 = vadd.xlane.f32.xlu1 %v5267_v10  ;;  %v6255_v13 = vsel %vm5528_vm10, %v13079_v5, 0.0 }
0x23f0   : > { %6256 = vadd.xlane.f32.xlu0 %v6255_v13  ;;  %v5263_v16 = vmul.f32 %v5260_v9, %v5260_v9 }
0x23f2   : > { %v5270_v19 = vsel %vm3184_vm8, %v5263_v16, 0.0 }
0x23f3   : > { %5271 = vadd.xlane.f32.xlu1 %v5270_v19 }
0x2406   : > { %6260 = vrot.lane.b32.xlu0 %v14703_v1, %s15603_s17 }
0x241e   : > { %v6166_v44 = vpop.f32.mrb[100].mxu1 }
0x241f   : > { %v6170_v25 = vadd.f32 %v6166_v44, %v14782_v12  ;;  %v11993_v24 = vpop.f32.mrb[101].mxu1  ;;  %v5288_v12 = vrot.slane %v14648_v52, %v13928_v20  ;;  %v6448_v44 = vld [vmem:[%s15611_s18] sm:$0xff] }
0x2478   : > { %v5266_v38 = vpop.xlane.xlu1 %5265 }
0x2479   : > { %v5273_v23 = vmul.f32 0.03125, %v5266_v38  ;;  %v6450_v38 = vld [vmem:[%s15611_s18 + $0x10] sm:$0xff] }
0x247b   : > { %v5276_v30 = vadd.f32 1e-05, %v5273_v23  ;;  %v6451_v23 = vld [vmem:[%s15611_s18 + $0x18] sm:$0xff] }
0x247c   : > { %v5269_v34 = vpop.xlane.xlu1 %5268 }
0x247d   : > { %13080 = vrsqrt.f32 %v5276_v30  ;;  %v5274_v39 = vmul.f32 0.03125, %v5269_v34  ;;  %v6257_v48 = vpop.xlane.xlu0 %6256  ;;  %v12514_v30 = vpack.c.bf16 %v6451_v23, %v6450_v38 }
0x247e   : > { %13082 = vrcp.f32 %v6257_v48 }
0x247f   : > { %v5277_v36 = vadd.f32 1e-05, %v5274_v39 }
0x2480   : > { %v5272_v37 = vpop.xlane.xlu1 %5271 }
0x2481   : > { %13084 = vrsqrt.f32 %v5277_v36  ;;  %v5275_v40 = vmul.f32 0.03125, %v5272_v37  ;;  %v6261_v49 = vpop.permute.xlu0 %6260 }
0x2482   : > { %12000 = vmatpush3.msk.msra.mxu1 %vm5546_vm11, %v6261_v49 }
0x2483   : > { %v5278_v1 = vadd.f32 1e-05, %v5275_v40  ;;  %12504 = vmatprep.subr.bf16.mxu1 %v13476_v8 }
0x2485   : > { %13086 = vrsqrt.f32 %v5278_v1 }
0x2487   : > { %v13081_v45 = vpop.eup %13080 }
0x2488   : > { %v13083_v41 = vpop.eup %13082  ;;  %v5282_v47 = vmul.f32 %v13081_v45, %v5258_v11 }
0x2489   : > { %v6259_v42 = vmul.f32 %v13083_v41, %v13079_v5 }
0x248a   : > { %v5289_v31 = vmul.f32 %v5288_v12, %v5282_v47 }
0x248b   : > { %v13085_v50 = vpop.eup %13084  ;;  %12002 = vmatmul.mubr.msk.f32.vlgmr.msra.gmra.mrb[102].mxu1 %vm5542_vm12, %v6259_v42 }
0x248c   : > { %v5296_v46 = vadd.f32 %v5295_v62, %v5289_v31  ;;  %v5283_v53 = vmul.f32 %v13085_v50, %v5259_v4  ;;  %12017 = vmatprep.mubr.msk.f32.mxu1 %vm13477_vm0, %v13478_v14  ;;  %v10934_v50 = vld [vmem:[#allocation9] ss:$0 sm:$0xff] }
0x248e   : > { %v5301_v54 = vsel %vm1763_vm1, %v5296_v46, 0.0  ;;  %v5290_v52 = vmul.f32 %v5288_v12, %v5283_v53  ;;  %v10935_v53 = vld [vmem:[#allocation7] ss:$0 sm:$0xff] }
0x248f   : > { %v13087_v59 = vpop.eup %13086  ;;  %5302 = vadd.xlane.f32.xlu0 %v5301_v54 }
0x2490   : > { %v5297_v55 = vadd.f32 %v5295_v62, %v5290_v52  ;;  %v5284_v58 = vmul.f32 %v13087_v59, %v5260_v9 }
0x2492   : > { %v5304_v56 = vsel %vm1763_vm1, %v5297_v55, 0.0  ;;  %v5291_v57 = vmul.f32 %v5288_v12, %v5284_v58 }
0x2493   : > { %5305 = vadd.xlane.f32.xlu1 %v5304_v56 }
0x2494   : > { %v5298_v51 = vadd.f32 %v5295_v62, %v5291_v57 }
0x2496   : > { %v5307_v60 = vsel %vm3184_vm8, %v5298_v51, 0.0 }
0x2497   : > { %5308 = vadd.xlane.f32.xlu1 %v5307_v60 }
0x251c   : > { %v5303_v35 = vpop.xlane.xlu0 %5302 }
0x251d   : > { %v5310_v32 = vmul.f32 0.03125, %v5303_v35 }
0x251f   : > { %v5313_v2 = vsub.f32 %v5296_v46, %v5310_v32  ;;  %v6446_v32 = vld [vmem:[%s15612_s19 + $0x18] sm:$0xff] }
0x2520   : > { %v5306_v6 = vpop.xlane.xlu1 %5305 }
0x2521   : > { %v5311_v15 = vmul.f32 0.03125, %v5306_v6  ;;  %v5316_v5 = vmul.f32 %v5313_v2, %v5313_v2  ;;  %v6445_v6 = vld [vmem:[%s15612_s19 + $0x10] sm:$0xff] }
0x2523   : > { %v5314_v21 = vsub.f32 %v5297_v55, %v5311_v15  ;;  %v5319_v10 = vsel %vm1763_vm1, %v5316_v5, 0.0  ;;  %v14885_v15 = vld [vmem:[%s15614_s21] sm:$0x7] }
0x2524   : > { %v5309_v4 = vpop.xlane.xlu1 %5308 }
0x2525   : > { %v5312_v7 = vmul.f32 0.03125, %v5309_v4  ;;  %v5317_v13 = vmul.f32 %v5314_v21, %v5314_v21 }
0x2527   : > { %v5315_v9 = vsub.f32 %v5298_v51, %v5312_v7  ;;  %v5322_v16 = vsel %vm1763_vm1, %v5317_v13, 0.0 }
0x2529   : > { %v5318_v19 = vmul.f32 %v5315_v9, %v5315_v9 }
0x255e   : > { %v6333_v26 = vpop.f32.mrb[102].mxu1 }
0x255f   : > { %v12003_v63 = vpop.f32.mrb[103].mxu1  ;;  %12007 = vmatmul.mubr.msk.f32.vlgmr.msra.gmra.mrb[102].mxu0 %vm1865_vm3, %v6333_v26  ;;  %v6443_v26 = vld [vmem:[%s15612_s19] sm:$0xff] }
0x2560   : > { %12028 = vmatprep.mubr.msk.f32.mxu0 %vm13477_vm0, %v13478_v14  ;;  %v6444_v63 = vld [vmem:[%s15612_s19 + $0x8] sm:$0xff] }
0x2561   : > { %v12505_v35 = vpack.c.bf16 %v6444_v63, %v6443_v26 }
0x2563   : > { %12506 = vmatpush3.bf16.msra.mxu1 %v12505_v35 }
0x2564   : > { %12507 = vmatprep.subr.bf16.mxu1 %v13476_v8 }
0x2632   : > { %v6406_v43 = vpop.f32.mrb[102].mxu0 }
0x2633   : > { %v6410_v61 = vadd.f32 %v6406_v43, %v6170_v25  ;;  %v12008_v11 = vpop.f32.mrb[103].mxu0  ;;  %v6449_v25 = vld [vmem:[%s15611_s18 + $0x8] sm:$0xff] }
0x2634   : > { %v12511_v24 = vpack.c.bf16 %v6449_v25, %v6448_v44 }
0x2635   : > { %v6417_v3 = vadd.f32 %v10958_v0, %v6410_v61  ;;  %v12508_v0 = vpack.c.bf16 %v6446_v32, %v6445_v6 }
0x2636   : > { %12512 = vmatpush3.bf16.msra.mxu0 %v12511_v24 }
0x2637   : > { %v6418_v27 = vadd.f32 %v6417_v3, %v14683_v22  ;;  %v5325_v22 = vsel %vm3184_vm8, %v5318_v19, 0.0  ;;  %12513 = vmatprep.subr.bf16.mxu0 %v13476_v8  ;;  %12509 = vmatpush3.bf16.msra.mxu1 %v12508_v0 }
0x2638   : > { %12516 = vmatprep.subr.bf16.mxu1 %v13476_v8 }
0x2639   : > { %v6420_v28 = vsel %vm6419_vm13, %v6418_v27, 0.0 }
0x263a   : > { %6421 = vadd.xlane.f32.xlu1 %v6420_v28  ;;  %12515 = vmatpush3.bf16.msra.mxu0 %v12514_v30 }
0x263b   : > { %12520 = vmatprep.subr.bf16.mxu0 %v13476_v8 }
0x263e   : > { %5320 = vadd.xlane.f32.xlu1 %v5319_v10  ;;  %v10961_v10 = vld [vmem:[%s15615_s23] ss:$0 sm:$0xff] }
0x2642   : > { %5323 = vadd.xlane.f32.xlu1 %v5322_v16 }
0x2646   : > { %5326 = vadd.xlane.f32.xlu1 %v5325_v22 }
0x26c7   : > { %v6422_v34 = vpop.xlane.xlu1 %6421 }
0x26c8   : > { %v6423_v39 = vmul.f32 0.03125, %v6422_v34  ;;  %v10959_v34 = vld [vmem:[%s15616_s24] ss:$0 sm:$0xff] }
0x26ca   : > { %v6424_v48 = vsub.f32 %v6418_v27, %v6423_v39 }
0x26cb   : > { %v5321_v36 = vpop.xlane.xlu1 %5320 }
0x26cc   : > { %v5328_v37 = vmul.f32 0.03125, %v5321_v36  ;;  %v6425_v40 = vmul.f32 %v6424_v48, %v6424_v48 }
0x26ce   : > { %v5331_v49 = vadd.f32 1e-05, %v5328_v37  ;;  %v6426_v1 = vsel %vm6419_vm13, %v6425_v40, 0.0 }
0x26cf   : > { %6427 = vadd.xlane.f32.xlu1 %v6426_v1  ;;  %v5324_v12 = vpop.xlane.xlu1 %5323 }
0x26d0   : > { %13088 = vrsqrt.f32 %v5331_v49  ;;  %v5329_v45 = vmul.f32 0.03125, %v5324_v12 }
0x26d2   : > { %v5332_v41 = vadd.f32 1e-05, %v5329_v45 }
0x26d3   : > { %v5327_v47 = vpop.xlane.xlu1 %5326 }
0x26d4   : > { %13090 = vrsqrt.f32 %v5332_v41  ;;  %v5330_v62 = vmul.f32 0.03125, %v5327_v47  ;;  %v14926_v41 = vld [vmem:[%s15617_s25] sm:$0x3f] }
0x26d6   : > { %v5333_v42 = vadd.f32 1e-05, %v5330_v62 }
0x26d8   : > { %13092 = vrsqrt.f32 %v5333_v42 }
0x26da   : > { %v13089_v31 = vpop.eup %13088 }
0x26db   : > { %v5337_v46 = vmul.f32 %v13089_v31, %v5313_v2  ;;  %v14882_v2 = vld [vmem:[%s15613_s20] sm:$0x7] }
0x26dc   : > { %v6436_v3 = vrot.slane %v14882_v2, %v13924_v18 }
0x26dd   : > { %v5346_v54 = vmul.f32 %v10934_v50, %v5337_v46 }
0x26de   : > { %v13091_v52 = vpop.eup %13090 }
0x26df   : > { %v14857_v59 = vadd.f32 %v10935_v53, %v5346_v54  ;;  %v5338_v55 = vmul.f32 %v13091_v52, %v5314_v21  ;;  %v6441_v21 = vrot.slane %v14885_v15, %v13924_v18 }
0x26e1   : > { %12029 = vmatmul.mubr.msk.f32.vlgmr.msra.gmra.mrb[104].mxu0 %vm1763_vm1, %v14857_v59  ;;  %v5347_v58 = vmul.f32 %v10934_v50, %v5338_v55 }
0x26e2   : > { %v13093_v56 = vpop.eup %13092  ;;  %12031 = vmatprep.mubr.msk.f32.mxu0 %vm13477_vm0, %v13478_v14 }
0x26e3   : > { %v14863_v57 = vadd.f32 %v10935_v53, %v5347_v58  ;;  %v5339_v51 = vmul.f32 %v13093_v56, %v5315_v9 }
0x26e5   : > { %12032 = vmatmul.mubr.msk.f32.gmra.mrb[106].mxu0 %vm1763_vm1, %v14863_v57  ;;  %v5348_v60 = vmul.f32 %v10934_v50, %v5339_v51 }
0x26e6   : > { %12034 = vmatprep.mubr.msk.f32.mxu0 %vm13477_vm0, %v13478_v14 }
0x26e7   : > { %v14869_v29 = vadd.f32 %v10935_v53, %v5348_v60 }
0x26e9   : > { %12035 = vmatmul.mubr.msk.f32.gmra.mrb[108].mxu0 %vm1763_vm1, %v14869_v29 }
0x26ea   : > { %12052 = vmatprep.mubr.msk.f32.mxu0 %vm13477_vm0, %v13478_v14 }
0x275c   : > { %v6428_v43 = vpop.xlane.xlu1 %6427 }
0x275d   : > { %v6429_v61 = vmul.f32 0.03125, %v6428_v43 }
0x275f   : > { %v6430_v11 = vadd.f32 1e-05, %v6429_v61 }
0x2761   : > { %13094 = vrsqrt.f32 %v6430_v11 }
0x276b   : > { %v13095_v4 = vpop.eup %13094 }
0x276c   : > { %v6432_v27 = vmul.f32 %v13095_v4, %v6424_v48 }
0x276e   : > { %v6437_v7 = vmul.f32 %v6436_v3, %v6432_v27 }
0x2770   : > { %v14891_v28 = vadd.f32 %v6441_v21, %v6437_v7 }
0x2772   : > { %12018 = vmatmul.mubr.msk.f32.vlgmr.msra.gmra.mrb[104].mxu1 %vm1763_vm1, %v14891_v28 }
0x2773   : > { %12043 = vmatprep.mubr.msk.f32.mxu1 %vm13477_vm0, %v13478_v14 }
0x27b4   : > { %v6619_v5 = vpop.f32.mrb[104].mxu0 }
0x27b5   : > { %v12030_v9 = vpop.f32.mrb[105].mxu0  ;;  %v6620_v16 = vadd.f32 %v10961_v10, %v6619_v5 }
0x27b8   : > { %v6624_v13 = vpop.f32.mrb[106].mxu0 }
0x27b9   : > { %v6625_v19 = vadd.f32 %v10961_v10, %v6624_v13  ;;  %v12033_v22 = vpop.f32.mrb[107].mxu0 }
0x27ba   : > { %v6453_v22 = vld [vmem:[%s15618_s26] sm:$0xff] }
0x27bb   : > { %v14898_v44 = vpack.i.bf16 %v6625_v19, %v6620_v16  ;;  %v12517_v25 = vpack.c.bf16 %v6625_v19, %v6620_v16 }
0x27bc   : > { %v6629_v24 = vpop.f32.mrb[108].mxu0 }
0x27bd   : > { %v14900_v38 = vadd.f32 %v10961_v10, %v6629_v24  ;;  %12871 = vrot.lane.b32.xlu0 %v14898_v44, %s15595_s5  ;;  %v12036_v23 = vpop.f32.mrb[109].mxu0  ;;  %12519 = vmatpush3.bf16.xpose.msk.msra.mxu1 %vm14001_vm4, %v12517_v25  ;;  %v6454_v25 = vld [vmem:[%s15618_s26 + $0x8] sm:$0xff] }
0x27be   : > { %12041 = vmatprep.subr.mxu1 %v13478_v14 }
0x27bf   : > { %6816 = vrot.lane.b32.xlu1 %v14900_v38, %s15595_s5 }
0x27c5   : > { %12042 = vmatpush3.xpose.msk.msra.mxu1 %vm1865_vm3, %v14900_v38 }
0x27c6   : > { %12523 = vmatprep.subr.bf16.mxu1 %v13476_v8 }
0x282f   : > { %v12872_v30 = vpop.permute.xlu0 %12871 }
0x2830   : > { %v12874_v39 = vunpack.i.h.bf16 %v12872_v30  ;;  %v12873_v48 = vunpack.i.l.bf16 %v12872_v30 }
0x2831   : > { %v6817_v12 = vpop.permute.xlu1 %6816 }
0x2832   : > { %v12524_v1 = vpack.c.bf16 %v12874_v39, %v12873_v48 }
0x2845   : > { %v6533_v36 = vpop.f32.mrb[104].mxu1 }
0x2846   : > { %v6534_v37 = vadd.f32 %v10959_v34, %v6533_v36  ;;  %v12019_v40 = vpop.f32.mrb[105].mxu1 }
0x2848   : > { %v6537_v49 = vmul.f32 0.35355338, %v6534_v37 }
0x284a   : > { %6810 = vrot.lane.b32.xlu1 %v6537_v49, %s15595_s5  ;;  %12044 = vmatmul.mubr.msk.f32.vlgmr.msra.gmra.mrb[106].mxu1 %vm1865_vm3, %v6537_v49 }
0x284b   : > { %12526 = vmatpush3.bf16.xpose.msk.msra.mxu1 %vm14001_vm4, %v12524_v1  ;;  %12061 = vmatprep.mubr.msk.f32.mxu1 %vm13477_vm0, %v13478_v14 }
0x284c   : > { %12059 = vmatprep.subr.mxu1 %v13478_v14 }
0x2853   : > { %12060 = vmatpush3.xpose.msk.msra.mxu1 %vm1865_vm3, %v6817_v12 }
0x2854   : > { %12078 = vmatprep.subr.mxu1 %v13478_v14 }
0x28bc   : > { %v6811_v45 = vpop.permute.xlu1 %6810 }
0x28bd   : > { %12062 = vmatmul.mubr.msk.f32.vlgmr.msra.gmra.mrb[108].mxu1 %vm1865_vm3, %v6811_v45 }
0x28be   : > { %12080 = vmatprep.mubr.msk.f32.mxu1 %vm13477_vm0, %v13478_v14  ;;  %12079 = vmatpush3.msra.mxu1 %v6453_v22 }
0x28bf   : > { %12534 = vmatprep.subr.bf16.mxu1 %v13476_v8 }
0x291d   : > { %v6711_v47 = vpop.f32.mrb[106].mxu1 }
0x291e   : > { %v6712_v62 = vadd.f32 %v6711_v47, %v14926_v41  ;;  %v12045_v42 = vpop.f32.mrb[107].mxu1 }
0x2920   : > { %v6716_v31 = vsel %vm6715_vm14, %v6712_v62, -inf }
0x2921   : > { %6717 = vmax.xlane.f32.xlu1 %v6716_v31 }
0x2932   : > { %12876 = vrot.lane.b32.xlu1 %v14898_v44, %s15607_s0 }
0x2936   : > { %12881 = vrot.lane.b32.xlu1 %v14898_v44, %s15594_s3 }
0x293a   : > { %6911 = vrot.lane.b32.xlu1 %v14900_v38, %s15594_s3 }
0x293e   : > { %12886 = vrot.lane.b32.xlu1 %v14898_v44, %s15599_s9 }
0x2942   : > { %7136 = vrot.lane.b32.xlu1 %v6537_v49, %s15599_s9 }
0x2946   : > { %7396 = vrot.lane.b32.xlu1 %v14900_v38, %s15602_s16 }
0x2990   : > { %v6892_v50 = vpop.f32.mrb[108].mxu1 }
0x2991   : > { %v6893_v46 = vadd.f32 %v6892_v50, %v14926_v41  ;;  %v12063_v53 = vpop.f32.mrb[109].mxu1 }
0x2993   : > { %v6896_v54 = vsel %vm6715_vm14, %v6893_v46, -inf }
0x2994   : > { %6897 = vmax.xlane.f32.xlu0 %v6896_v54 }
0x29ae   : > { %v6718_v52 = vpop.xlane.xlu1 %6717 }
0x29af   : > { %v6719_v55 = vsub.f32 %v6712_v62, %v6718_v52 }
0x29b1   : > { %v6720_v58 = vmul.f32 1.442695, %v6719_v55 }
0x29b2   : > { %v12877_v56 = vpop.permute.xlu1 %12876 }
0x29b3   : > { %13096 = vpow2.f32 %v6720_v58  ;;  %v12879_v51 = vunpack.i.h.bf16 %v12877_v56  ;;  %v12878_v60 = vunpack.i.l.bf16 %v12877_v56 }
0x29b5   : > { %v12521_v26 = vpack.c.bf16 %v12879_v51, %v12878_v60 }
0x29b6   : > { %v12882_v3 = vpop.permute.xlu1 %12881 }
0x29b7   : > { %12522 = vmatpush3.bf16.msra.mxu0 %v12521_v26  ;;  %v12884_v21 = vunpack.i.h.bf16 %v12882_v3  ;;  %v12883_v7 = vunpack.i.l.bf16 %v12882_v3 }
0x29b8   : > { %12050 = vmatprep.subr.mxu0 %v13478_v14 }
0x29b9   : > { %v12528_v10 = vpack.c.bf16 %v12884_v21, %v12883_v7 }
0x29ba   : > { %v6912_v13 = vpop.permute.xlu1 %6911 }
0x29bd   : > { %v13097_v63 = vpop.eup %13096 }
0x29be   : > { %v6722_v35 = vsel %vm6715_vm14, %v13097_v63, 0.0  ;;  %v12887_v23 = vpop.permute.xlu1 %12886 }
0x29bf   : > { %6723 = vadd.xlane.f32.xlu0 %v6722_v35  ;;  %v12889_v34 = vunpack.i.h.bf16 %v12887_v23  ;;  %v12888_v39 = vunpack.i.l.bf16 %v12887_v23 }
0x29c1   : > { %v12531_v36 = vpack.c.bf16 %v12889_v34, %v12888_v39 }
0x29c2   : > { %v7137_v45 = vpop.permute.xlu1 %7136 }
0x29c6   : > { %v7397_v62 = vpop.permute.xlu1 %7396 }
0x2a21   : > { %v6898_v6 = vpop.xlane.xlu0 %6897 }
0x2a22   : > { %v6899_v32 = vsub.f32 %v6893_v46, %v6898_v6 }
0x2a24   : > { %v6900_v0 = vmul.f32 1.442695, %v6899_v32 }
0x2a26   : > { %13098 = vpow2.f32 %v6900_v0 }
0x2a30   : > { %v13099_v43 = vpop.eup %13098 }
0x2a31   : > { %v6902_v61 = vsel %vm6715_vm14, %v13099_v43, 0.0 }
0x2a32   : > { %6903 = vadd.xlane.f32.xlu0 %v6902_v61 }
0x2a48   : > { %6731 = vrot.lane.b32.xlu0 %v14900_v38, %s15607_s0 }
0x2a4c   : > { %7142 = vrot.lane.b32.xlu0 %v14900_v38, %s15599_s9  ;;  %v6724_v11 = vpop.xlane.xlu0 %6723 }
0x2a4d   : > { %13100 = vrcp.f32 %v6724_v11 }
0x2a50   : > { %12891 = vrot.lane.b32.xlu0 %v14898_v44, %s15602_s16 }
0x2a54   : > { %7390 = vrot.lane.b32.xlu0 %v6537_v49, %s15602_s16 }
0x2a57   : > { %v13101_v27 = vpop.eup %13100 }
0x2a58   : > { %v6726_v5 = vmul.f32 %v13101_v27, %v13097_v63 }
0x2abf   : > { %v6904_v4 = vpop.xlane.xlu0 %6903 }
0x2ac0   : > { %13102 = vrcp.f32 %v6904_v4 }
0x2ac3   : > { %v6732_v9 = vpop.permute.xlu0 %6731 }
0x2ac4   : > { %12051 = vmatpush3.msk.msra.mxu0 %vm2013_vm7, %v6732_v9 }
0x2ac5   : > { %12053 = vmatmul.mubr.msk.f32.vlgmr.msra.gmra.mrb[110].mxu0 %vm1961_vm5, %v6726_v5  ;;  %12527 = vmatprep.subr.bf16.mxu0 %v13476_v8 }
0x2ac6   : > { %12529 = vmatpush3.bf16.msra.mxu0 %v12528_v10  ;;  %12070 = vmatprep.mubr.msk.f32.mxu0 %vm13477_vm0, %v13478_v14 }
0x2ac7   : > { %12068 = vmatprep.subr.mxu0 %v13478_v14  ;;  %v7143_v48 = vpop.permute.xlu0 %7142 }
0x2aca   : > { %v13103_v16 = vpop.eup %13102  ;;  %12069 = vmatpush3.msk.msra.mxu0 %vm2013_vm7, %v6912_v13 }
0x2acb   : > { %v6906_v19 = vmul.f32 %v13103_v16, %v13099_v43  ;;  %12073 = vmatprep.subr.mxu0 %v13478_v14  ;;  %v12892_v49 = vpop.permute.xlu0 %12891  ;;  %v6455_v16 = vld [vmem:[%s15618_s26 + $0x10] sm:$0xff] }
0x2acc   : > { %v12894_v1 = vunpack.i.h.bf16 %v12892_v49  ;;  %v12893_v12 = vunpack.i.l.bf16 %v12892_v49 }
0x2acd   : > { %12071 = vmatmul.mubr.msk.f32.vlgmr.msra.gmra.mrb[112].mxu0 %vm1961_vm5, %v6906_v19 }
0x2ace   : > { %12075 = vmatprep.mubr.msk.f32.mxu0 %vm13477_vm0, %v13478_v14  ;;  %12074 = vmatpush3.msra.mxu0 %v6454_v25  ;;  %v12538_v47 = vpack.c.bf16 %v12894_v1, %v12893_v12 }
0x2acf   : > { %12530 = vmatprep.subr.bf16.mxu0 %v13476_v8  ;;  %v7391_v42 = vpop.permute.xlu0 %7390 }
0x2b98   : > { %v6806_v24 = vpop.f32.mrb[110].mxu0 }
0x2b99   : > { %v12054_v30 = vpop.f32.mrb[111].mxu0  ;;  %12081 = vmatmul.mubr.msk.f32.vlgmr.msra.gmra.mrb[110].mxu1 %vm1865_vm3, %v6806_v24 }
0x2b9a   : > { %12098 = vmatprep.mubr.msk.f32.mxu1 %vm13477_vm0, %v13478_v14 }
0x2ba0   : > { %v6986_v37 = vpop.f32.mrb[112].mxu0 }
0x2ba1   : > { %v12072_v40 = vpop.f32.mrb[113].mxu0  ;;  %12076 = vmatmul.mubr.msk.f32.vlgmr.msra.gmra.mrb[114].mxu0 %vm1865_vm3, %v6986_v37 }
0x2ba2   : > { %12533 = vmatpush3.bf16.xpose.msk.msra.mxu0 %vm14001_vm4, %v12531_v36  ;;  %12089 = vmatprep.mubr.msk.f32.mxu0 %vm13477_vm0, %v13478_v14  ;;  %v6456_v36 = vld [vmem:[%s15618_s26 + $0x18] sm:$0xff] }
0x2ba3   : > { %12087 = vmatprep.subr.mxu0 %v13478_v14 }
0x2baa   : > { %12088 = vmatpush3.xpose.msk.msra.mxu0 %vm1865_vm3, %v7143_v48 }
0x2bab   : > { %12537 = vmatprep.subr.bf16.mxu0 %v13476_v8 }
0x2bad   : > { %12090 = vmatmul.mubr.msk.f32.vlgmr.msra.gmra.mrb[116].mxu0 %vm1865_vm3, %v7137_v45  ;;  %v10993_v45 = vld [vmem:[%s15619_s27] ss:$0 sm:$0xff] }
0x2bae   : > { %12540 = vmatpush3.bf16.xpose.msk.msra.mxu0 %vm14001_vm4, %v12538_v47  ;;  %12112 = vmatprep.mubr.msk.f32.mxu0 %vm13477_vm0, %v13478_v14 }
0x2baf   : > { %12110 = vmatprep.subr.mxu0 %v13478_v14 }
0x2bb6   : > { %12111 = vmatpush3.xpose.msk.msra.mxu0 %vm1865_vm3, %v7397_v62 }
0x2bb7   : > { %12550 = vmatprep.subr.bf16.mxu0 %v13476_v8 }
0x2bb9   : > { %12113 = vmatmul.mubr.msk.f32.vlgmr.msra.gmra.mrb[118].mxu0 %vm1865_vm3, %v7391_v42 }
0x2bba   : > { %12156 = vmatprep.mubr.msk.f32.mxu0 %vm13477_vm0, %v13478_v14 }
0x2c6c   : > { %v7132_v31 = vpop.f32.mrb[110].mxu1 }
0x2c6d   : > { %v12082_v50 = vpop.f32.mrb[111].mxu1 }
0x2c74   : > { %v7059_v46 = vpop.f32.mrb[114].mxu0 }
0x2c75   : > { %v14990_v53 = vadd.f32 %v7132_v31, %v7059_v46  ;;  %v12077_v54 = vpop.f32.mrb[115].mxu0 }
0x2c80   : > { %v7218_v52 = vpop.f32.mrb[116].mxu0 }
0x2c81   : > { %v7219_v55 = vadd.f32 %v7218_v52, %v14926_v41  ;;  %v12091_v58 = vpop.f32.mrb[117].mxu0 }
0x2c83   : > { %v7222_v56 = vsel %vm6715_vm14, %v7219_v55, -inf }
0x2c84   : > { %7223 = vmax.xlane.f32.xlu1 %v7222_v56  ;;  %v7675_v56 = vld [vmem:[%s15620_s29] sm:$0xff] }
0x2c8c   : > { %v7472_v51 = vpop.f32.mrb[118].mxu0 }
0x2c8d   : > { %v12114_v60 = vpop.f32.mrb[119].mxu0  ;;  %v7473_v26 = vadd.f32 %v7472_v51, %v14926_v41  ;;  %v7676_v51 = vld [vmem:[%s15620_s29 + $0x8] sm:$0xff] }
0x2c8e   : > { %v12545_v60 = vpack.c.bf16 %v7676_v51, %v7675_v56  ;;  %v11002_v51 = vld [vmem:[%s15604_s10 + $0x30] sm:$0xff] }
0x2c8f   : > { %v7476_v63 = vsel %vm6715_vm14, %v7473_v26, -inf }
0x2c95   : > { %7237 = vrot.lane.b32.xlu1 %v14900_v38, %s15598_s8 }
0x2cb9   : > { %7477 = vmax.xlane.f32.xlu1 %v7476_v63  ;;  %v7678_v63 = vld [vmem:[%s15620_s29 + $0x18] sm:$0xff] }
0x2cca   : > { %7491 = vrot.lane.b32.xlu1 %v14900_v38, %s15601_s14 }
0x2d11   : > { %v7224_v35 = vpop.xlane.xlu1 %7223 }
0x2d12   : > { %v7225_v6 = vsub.f32 %v7219_v55, %v7224_v35 }
0x2d14   : > { %v7226_v32 = vmul.f32 1.442695, %v7225_v6 }
0x2d15   : > { %v7238_v61 = vpop.permute.xlu1 %7237 }
0x2d16   : > { %13104 = vpow2.f32 %v7226_v32 }
0x2d20   : > { %v13105_v0 = vpop.eup %13104 }
0x2d21   : > { %v7228_v43 = vsel %vm6715_vm14, %v13105_v0, 0.0 }
0x2d22   : > { %7229 = vadd.xlane.f32.xlu0 %v7228_v43 }
0x2d38   : > { %12896 = vrot.lane.b32.xlu0 %v14898_v44, %s15598_s8 }
0x2d46   : > { %v7478_v11 = vpop.xlane.xlu1 %7477 }
0x2d47   : > { %v7479_v41 = vsub.f32 %v7473_v26, %v7478_v11  ;;  %v7677_v26 = vld [vmem:[%s15620_s29 + $0x10] sm:$0xff]  ;;  %v7673_v11 = vrot.slane %v14885_v15, %v13928_v20 }
0x2d49   : > { %v7480_v3 = vmul.f32 1.442695, %v7479_v41 }
0x2d4a   : > { %v7492_v39 = vpop.permute.xlu1 %7491 }
0x2d4b   : > { %13106 = vpow2.f32 %v7480_v3 }
0x2d55   : > { %v13107_v4 = vpop.eup %13106 }
0x2d56   : > { %v7482_v38 = vsel %vm6715_vm14, %v13107_v4, 0.0 }
0x2d57   : > { %7483 = vadd.xlane.f32.xlu0 %v7482_v38  ;;  %v7681_v38 = vld [vmem:[%s15621_s30 + $0x8] sm:$0xff] }
0x2d6d   : > { %12901 = vrot.lane.b32.xlu0 %v14898_v44, %s15601_s14 }
0x2daf   : > { %v7230_v27 = vpop.xlane.xlu0 %7229 }
0x2db0   : > { %13108 = vrcp.f32 %v7230_v27 }
0x2db3   : > { %v12897_v21 = vpop.permute.xlu0 %12896 }
0x2db4   : > { %v12899_v7 = vunpack.i.h.bf16 %v12897_v21  ;;  %v12898_v5 = vunpack.i.l.bf16 %v12897_v21  ;;  %v7682_v21 = vld [vmem:[%s15621_s30 + $0x10] sm:$0xff] }
0x2db6   : > { %v12535_v9 = vpack.c.bf16 %v12899_v7, %v12898_v5  ;;  %v7683_v7 = vld [vmem:[%s15621_s30 + $0x18] sm:$0xff] }
0x2db7   : > { %v12554_v5 = vpack.c.bf16 %v7683_v7, %v7682_v21 }
0x2db8   : > { %12536 = vmatpush3.bf16.msra.mxu1 %v12535_v9  ;;  %v7684_v9 = vld [vmem:[%s15621_s30 + $0x20] sm:$0xff] }
0x2db9   : > { %12096 = vmatprep.subr.mxu1 %v13478_v14 }
0x2dba   : > { %v13109_v10 = vpop.eup %13108 }
0x2dbb   : > { %v7232_v13 = vmul.f32 %v13109_v10, %v13105_v0  ;;  %v7668_v0 = vrot.slane %v14882_v2, %v13928_v20  ;;  %v7685_v10 = vld [vmem:[%s15621_s30 + $0x28] sm:$0xff] }
0x2dbc   : > { %12097 = vmatpush3.msk.msra.mxu1 %vm2013_vm7, %v7238_v61 }
0x2dbd   : > { %12099 = vmatmul.mubr.msk.f32.vlgmr.msra.gmra.mrb[112].mxu1 %vm1961_vm5, %v7232_v13  ;;  %12101 = vmatprep.subr.mxu1 %v13478_v14  ;;  %v12557_v13 = vpack.c.bf16 %v7685_v10, %v7684_v9 }
0x2dbe   : > { %12102 = vmatpush3.msra.mxu1 %v6455_v16  ;;  %12103 = vmatprep.mubr.msk.f32.mxu1 %vm13477_vm0, %v13478_v14  ;;  %v7686_v16 = vld [vmem:[%s15621_s30 + $0x30] sm:$0xff] }
0x2dbf   : > { %12541 = vmatprep.subr.bf16.mxu1 %v13476_v8 }
0x2de4   : > { %v7484_v44 = vpop.xlane.xlu0 %7483 }
0x2de5   : > { %13110 = vrcp.f32 %v7484_v44  ;;  %v7687_v44 = vld [vmem:[%s15621_s30 + $0x38] sm:$0xff] }
0x2de8   : > { %v12902_v19 = vpop.permute.xlu0 %12901 }
0x2de9   : > { %v12904_v22 = vunpack.i.h.bf16 %v12902_v19  ;;  %v12903_v25 = vunpack.i.l.bf16 %v12902_v19  ;;  %v12560_v19 = vpack.c.bf16 %v7687_v44, %v7686_v16 }
0x2deb   : > { %v12542_v24 = vpack.c.bf16 %v12904_v22, %v12903_v25  ;;  %v10994_v22 = vld [vmem:[%s15622_s22] ss:$0 sm:$0xff] }
0x2def   : > { %v13111_v34 = vpop.eup %13110 }
0x2df0   : > { %v7486_v48 = vmul.f32 %v13111_v34, %v13107_v4  ;;  %v7680_v4 = vld [vmem:[%s15621_s30] sm:$0xff] }
0x2df1   : > { %v12551_v27 = vpack.c.bf16 %v7681_v38, %v7680_v4 }
0x2df3   : > { %12552 = vmatpush3.bf16.msra.mxu0 %v12551_v27 }
0x2df4   : > { %12553 = vmatprep.subr.bf16.mxu0 %v13476_v8 }
0x2df7   : > { %12555 = vmatpush3.bf16.msra.mxu0 %v12554_v5  ;;  %v15108_v5 = vld [vmem:[%s15608_s2] sm:$0x3f] }
0x2df8   : > { %12556 = vmatprep.subr.bf16.mxu0 %v13476_v8 }
0x2dfb   : > { %12558 = vmatpush3.bf16.msra.mxu0 %v12557_v13 }
0x2dfc   : > { %12559 = vmatprep.subr.bf16.mxu0 %v13476_v8 }
0x2dff   : > { %12561 = vmatpush3.bf16.msra.mxu0 %v12560_v19 }
0x2e00   : > { %12175 = vmatprep.subr.mxu0 %v13478_v14 }
0x2e90   : > { %v7312_v23 = vpop.f32.mrb[112].mxu1 }
0x2e91   : > { %v12100_v30 = vpop.f32.mrb[113].mxu1  ;;  %12104 = vmatmul.mubr.msk.f32.vlgmr.msra.gmra.mrb[114].mxu1 %vm1865_vm3, %v7312_v23 }
0x2e92   : > { %12543 = vmatpush3.bf16.msra.mxu1 %v12542_v24  ;;  %12121 = vmatprep.mubr.msk.f32.mxu1 %vm13477_vm0, %v13478_v14 }
0x2e93   : > { %12119 = vmatprep.subr.mxu1 %v13478_v14 }
0x2e96   : > { %12120 = vmatpush3.msk.msra.mxu1 %vm2013_vm7, %v7492_v39 }
0x2e97   : > { %12122 = vmatmul.mubr.msk.f32.vlgmr.msra.gmra.mrb[116].mxu1 %vm1961_vm5, %v7486_v48  ;;  %12124 = vmatprep.subr.mxu1 %v13478_v14 }
0x2e98   : > { %12126 = vmatprep.mubr.msk.f32.mxu1 %vm13477_vm0, %v13478_v14  ;;  %12125 = vmatpush3.msra.mxu1 %v6456_v36 }
0x2e99   : > { %12544 = vmatprep.subr.bf16.mxu1 %v13476_v8 }
0x2f64   : > { %v7385_v37 = vpop.f32.mrb[114].mxu1 }
0x2f65   : > { %v7389_v40 = vadd.f32 %v7385_v37, %v14990_v53  ;;  %v12105_v49 = vpop.f32.mrb[115].mxu1 }
0x2f6a   : > { %v7566_v1 = vpop.f32.mrb[116].mxu1 }
0x2f6b   : > { %v12123_v12 = vpop.f32.mrb[117].mxu1  ;;  %12127 = vmatmul.mubr.msk.f32.vlgmr.msra.gmra.mrb[118].mxu1 %vm1865_vm3, %v7566_v1 }
0x2f6c   : > { %12137 = vmatprep.mubr.msk.f32.mxu1 %vm13477_vm0, %v13478_v14  ;;  %12546 = vmatpush3.bf16.msra.mxu1 %v12545_v60  ;;  %v10996_v12 = vld [vmem:[%s15624_s28] ss:$0 sm:$0xff]  ;;  %v11003_v60 = vld [vmem:[%s15604_s10 + $0x38] sm:$0xff] }
0x2f6d   : > { %12547 = vmatprep.subr.bf16.mxu1 %v13476_v8 }
0x303e   : > { %v7639_v47 = vpop.f32.mrb[118].mxu1 }
0x303f   : > { %v7643_v62 = vadd.f32 %v7639_v47, %v7389_v40  ;;  %v12128_v42 = vpop.f32.mrb[119].mxu1 }
0x3041   : > { %v7650_v31 = vadd.f32 %v10993_v45, %v7643_v62 }
0x3043   : > { %v7651_v50 = vadd.f32 %v7650_v31, %v14891_v28  ;;  %v12548_v28 = vpack.c.bf16 %v7678_v63, %v7677_v26  ;;  %v12566_v26 = vpack.c.bf16 %v11003_v60, %v11002_v51 }
0x3045   : > { %v7652_v46 = vsel %vm6419_vm13, %v7651_v50, 0.0  ;;  %12549 = vmatpush3.bf16.msra.mxu1 %v12548_v28 }
0x3046   : > { %7653 = vadd.xlane.f32.xlu1 %v7652_v46  ;;  %12562 = vmatprep.subr.bf16.mxu1 %v13476_v8 }
0x30d3   : > { %v7654_v53 = vpop.xlane.xlu1 %7653 }
0x30d4   : > { %v7655_v54 = vmul.f32 0.03125, %v7654_v53 }
0x30d6   : > { %v7656_v52 = vsub.f32 %v7651_v50, %v7655_v54 }
0x30d8   : > { %v7657_v55 = vmul.f32 %v7656_v52, %v7656_v52 }
0x30da   : > { %v7658_v58 = vsel %vm6419_vm13, %v7657_v55, 0.0  ;;  %v11000_v55 = vld [vmem:[%s15604_s10 + $0x20] sm:$0xff] }
0x30db   : > { %7659 = vadd.xlane.f32.xlu0 %v7658_v58  ;;  %v11001_v58 = vld [vmem:[%s15604_s10 + $0x28] sm:$0xff] }
0x30dc   : > { %v12563_v56 = vpack.c.bf16 %v11001_v58, %v11000_v55 }
0x3168   : > { %v7660_v35 = vpop.xlane.xlu0 %7659 }
0x3169   : > { %v7661_v6 = vmul.f32 0.03125, %v7660_v35 }
0x316b   : > { %v7662_v32 = vadd.f32 1e-05, %v7661_v6  ;;  %v15072_v6 = vsub.s32 2, %v13921_v17 }
0x316d   : > { %13112 = vrsqrt.f32 %v7662_v32  ;;  %v7873_v32 = vrot.slane %v14882_v2, %v15072_v6 }
0x3177   : > { %v13113_v43 = vpop.eup %13112 }
0x3178   : > { %v7664_v61 = vmul.f32 %v13113_v43, %v7656_v52 }
0x317a   : > { %v7669_v41 = vmul.f32 %v7668_v0, %v7664_v61  ;;  %v7878_v61 = vrot.slane %v14885_v15, %v15072_v6 }
0x317c   : > { %v7674_v3 = vadd.f32 %v7673_v11, %v7669_v41 }
0x317e   : > { %12138 = vmatmul.mubr.msk.f32.vlgmr.msra.gmra.mrb[120].mxu1 %vm1763_vm1, %v7674_v3 }
0x317f   : > { %12167 = vmatprep.mubr.msk.f32.mxu1 %vm13477_vm0, %v13478_v14  ;;  %12564 = vmatpush3.bf16.msra.mxu1 %v12563_v56 }
0x3180   : > { %12565 = vmatprep.subr.bf16.mxu1 %v13476_v8 }
0x3183   : > { %12567 = vmatpush3.bf16.msra.mxu1 %v12566_v26 }
0x3184   : > { %12170 = vmatprep.subr.mxu1 %v13478_v14 }
0x3251   : > { %v7764_v25 = vpop.f32.mrb[120].mxu1 }
0x3252   : > { %v7765_v24 = vadd.f32 %v10994_v22, %v7764_v25  ;;  %v12139_v23 = vpop.f32.mrb[121].mxu1 }
0x3254   : > { %v7769_v30 = vmul.f32 0.044715, %v7765_v24  ;;  %v7768_v40 = vmul.f32 0.5, %v7765_v24 }
0x3256   : > { %v7770_v34 = vmul.f32 %v7769_v30, %v7765_v24 }
0x3258   : > { %v7771_v39 = vmul.f32 %v7770_v34, %v7765_v24 }
0x325a   : > { %v7772_v48 = vadd.f32 %v7771_v39, %v7765_v24 }
0x325c   : > { %v7773_v36 = vmul.f32 0.7978846, %v7772_v48 }
0x325e   : > { %13114 = vtanh.f32 %v7773_v36 }
0x3268   : > { %v13115_v37 = vpop.eup %13114 }
0x3269   : > { %v7775_v49 = vadd.f32 1.0, %v13115_v37 }
0x326b   : > { %v7776_v1 = vmul.f32 %v7775_v49, %v7768_v40  ;;  %v11006_v49 = vld [vmem:[%s15609_s11 + $0x28] sm:$0xff] }
0x326d   : > { %12157 = vmatmul.mubr.msk.f32.vlgmr.msra.gmra.mrb[120].mxu0 %vm3375_vm9, %v7776_v1 }
0x326e   : > { %12177 = vmatprep.mubr.msk.f32.mxu0 %vm13477_vm0, %v13478_v14 }
0x3340   : > { %v7852_v45 = vpop.f32.mrb[120].mxu0 }
0x3341   : > { %v7853_v47 = vadd.f32 %v10996_v12, %v7852_v45  ;;  %v12158_v62 = vpop.f32.mrb[121].mxu0 }
0x3343   : > { %v7856_v42 = vadd.f32 %v7853_v47, %v7674_v3  ;;  %v11010_v3 = vld [vmem:[%s15606_s1 + $0x1] ss:$0 sm:$0xff] }
0x3345   : > { %v7857_v31 = vsel %vm6419_vm13, %v7856_v42, 0.0 }
0x3346   : > { %7858 = vadd.xlane.f32.xlu0 %v7857_v31 }
0x33d3   : > { %v7859_v50 = vpop.xlane.xlu0 %7858 }
0x33d4   : > { %v7860_v46 = vmul.f32 0.03125, %v7859_v50 }
0x33d6   : > { %v7861_v53 = vsub.f32 %v7856_v42, %v7860_v46  ;;  %v11005_v46 = vld [vmem:[%s15609_s11 + $0x20] sm:$0xff] }
0x33d8   : > { %v7862_v54 = vmul.f32 %v7861_v53, %v7861_v53 }
0x33da   : > { %v7863_v52 = vsel %vm6419_vm13, %v7862_v54, 0.0 }
0x33db   : > { %7864 = vadd.xlane.f32.xlu0 %v7863_v52 }
0x3468   : > { %v7865_v63 = vpop.xlane.xlu0 %7864 }
0x3469   : > { %v7866_v28 = vmul.f32 0.03125, %v7865_v63 }
0x346b   : > { %v7867_v35 = vadd.f32 1e-05, %v7866_v28 }
0x346d   : > { %13116 = vrsqrt.f32 %v7867_v35 }
0x3477   : > { %v13117_v0 = vpop.eup %13116 }
0x3478   : > { %v7869_v43 = vmul.f32 %v13117_v0, %v7861_v53 }
0x347a   : > { %v7874_v11 = vmul.f32 %v7873_v32, %v7869_v43 }
0x347c   : > { %v15078_v41 = vadd.f32 %v7878_v61, %v7874_v11 }
0x347e   : > { %12168 = vmatmul.mubr.msk.f32.vlgmr.msra.gmra.mrb[122].mxu1 %vm1763_vm1, %v15078_v41 }
0x347f   : > { %12172 = vmatprep.mubr.msk.f32.mxu1 %vm13477_vm0, %v13478_v14 }
0x3551   : > { %v7973_v17 = vpop.f32.mrb[122].mxu1 }
0x3552   : > { %v15085_v4 = vadd.f32 %v11010_v3, %v7973_v17  ;;  %v12169_v38 = vpop.f32.mrb[123].mxu1 }
0x3554   : > { %8146 = vrot.lane.b32.xlu0 %v15085_v4, %s15594_s3  ;;  %7979 = vrot.lane.b32.xlu1 %v15085_v4, %s15607_s0  ;;  %v15092_v2 = vmul.f32 0.35355338, %v15085_v4 }
0x3558   : > { %8144 = vrot.lane.b32.xlu1 %v15092_v2, %s15595_s5 }
0x35c6   : > { %v7980_v15 = vpop.permute.xlu1 %7979  ;;  %v8147_v27 = vpop.permute.xlu0 %8146 }
0x35c7   : > { %12171 = vmatpush3.xpose.msk.msra.mxu1 %vm1865_vm3, %v7980_v15 }
0x35c8   : > { %12180 = vmatprep.subr.mxu1 %v13478_v14 }
0x35ca   : > { %12173 = vmatmul.mubr.msk.f32.vlgmr.msra.gmra.mrb[124].mxu1 %vm1865_vm3, %v15092_v2  ;;  %v8145_v21 = vpop.permute.xlu1 %8144 }
0x35cb   : > { %12181 = vmatpush3.xpose.msk.msra.mxu1 %vm1865_vm3, %v8147_v27  ;;  %12182 = vmatprep.mubr.msk.f32.mxu1 %vm13477_vm0, %v13478_v14 }
0x35cc   : > { %12190 = vmatprep.subr.mxu1 %v13478_v14 }
0x35ce   : > { %12183 = vmatmul.mubr.msk.f32.vlgmr.msra.gmra.mrb[126].mxu1 %vm1865_vm3, %v8145_v21 }
0x35cf   : > { %12192 = vmatprep.mubr.msk.f32.mxu1 %vm13477_vm0, %v13478_v14  ;;  %12191 = vmatpush3.msra.mxu1 %v11006_v49 }
0x35d0   : > { %12200 = vmatprep.subr.mxu1 %v13478_v14 }
0x369d   : > { %v8052_v7 = vpop.f32.mrb[124].mxu1 }
0x369e   : > { %v8053_v9 = vadd.f32 %v15108_v5, %v8052_v7  ;;  %v12174_v10 = vpop.f32.mrb[125].mxu1 }
0x369f   : > { %v11007_v10 = vld [vmem:[%s15609_s11 + $0x30] sm:$0xff] }
0x36a0   : > { %v8056_v13 = vsel %vm5528_vm10, %v8053_v9, -inf }
0x36a1   : > { %8057 = vmax.xlane.f32.xlu1 %v8056_v13  ;;  %v8218_v16 = vpop.f32.mrb[126].mxu1 }
0x36a2   : > { %v8219_v44 = vadd.f32 %v15108_v5, %v8218_v16  ;;  %v12184_v19 = vpop.f32.mrb[127].mxu1 }
0x36a4   : > { %v8222_v22 = vsel %vm5528_vm10, %v8219_v44, -inf }
0x36a5   : > { %8223 = vmax.xlane.f32.xlu0 %v8222_v22 }
0x372e   : > { %v8058_v25 = vpop.xlane.xlu1 %8057 }
0x372f   : > { %v8059_v24 = vsub.f32 %v8053_v9, %v8058_v25 }
0x3731   : > { %v8060_v23 = vmul.f32 1.442695, %v8059_v24 }
0x3732   : > { %v8224_v30 = vpop.xlane.xlu0 %8223 }
0x3733   : > { %13118 = vpow2.f32 %v8060_v23  ;;  %v8225_v34 = vsub.f32 %v8219_v44, %v8224_v30 }
0x3735   : > { %v8226_v39 = vmul.f32 1.442695, %v8225_v34 }
0x3737   : > { %13120 = vpow2.f32 %v8226_v39 }
0x373d   : > { %v13119_v48 = vpop.eup %13118 }
0x373e   : > { %v8062_v36 = vsel %vm5528_vm10, %v13119_v48, 0.0 }
0x373f   : > { %8063 = vadd.xlane.f32.xlu0 %v8062_v36 }
0x3741   : > { %v13121_v37 = vpop.eup %13120 }
0x3742   : > { %v8228_v40 = vsel %vm5528_vm10, %v13121_v37, 0.0 }
0x3743   : > { %8229 = vadd.xlane.f32.xlu1 %v8228_v40 }
0x3754   : > { %8233 = vrot.lane.b32.xlu1 %v15085_v4, %s15597_s6 }
0x3755   : > { %8067 = vrot.lane.b32.xlu0 %v15085_v4, %s15596_s15 }
0x3758   : > { %8458 = vrot.lane.b32.xlu1 %v15085_v4, %s15598_s8 }
0x375c   : > { %8456 = vrot.lane.b32.xlu1 %v15092_v2, %s15599_s9 }
0x37cc   : > { %v8064_v1 = vpop.xlane.xlu0 %8063 }
0x37cd   : > { %13122 = vrcp.f32 %v8064_v1 }
0x37d0   : > { %v8230_v12 = vpop.xlane.xlu1 %8229  ;;  %v8068_v45 = vpop.permute.xlu0 %8067 }
0x37d1   : > { %13124 = vrcp.f32 %v8230_v12  ;;  %12176 = vmatpush3.msk.msra.mxu0 %vm5546_vm11, %v8068_v45  ;;  %v11038_v12 = vld [vmem:[%s15611_s18 + $0x20] sm:$0xff]  ;;  %v11039_v45 = vld [vmem:[%s15611_s18 + $0x28] sm:$0xff] }
0x37d2   : > { %12185 = vmatprep.subr.mxu0 %v13478_v14 }
0x37d4   : > { %v8234_v42 = vpop.permute.xlu1 %8233 }
0x37d7   : > { %v13123_v47 = vpop.eup %13122 }
0x37d8   : > { %v8066_v62 = vmul.f32 %v13123_v47, %v13119_v48  ;;  %v8459_v52 = vpop.permute.xlu1 %8458  ;;  %v11008_v48 = vld [vmem:[%s15609_s11 + $0x38] sm:$0xff]  ;;  %v12575_v47 = vpack.c.bf16 %v11039_v45, %v11038_v12 }
0x37da   : > { %12178 = vmatmul.mubr.msk.f32.vlgmr.msra.gmra.mrb[122].mxu0 %vm5542_vm12, %v8066_v62  ;;  %v11040_v62 = vld [vmem:[%s15611_s18 + $0x30] sm:$0xff] }
0x37db   : > { %v13125_v31 = vpop.eup %13124  ;;  %12186 = vmatpush3.msk.msra.mxu0 %vm5546_vm11, %v8234_v42  ;;  %12187 = vmatprep.mubr.msk.f32.mxu0 %vm13477_vm0, %v13478_v14  ;;  %v11041_v42 = vld [vmem:[%s15611_s18 + $0x38] sm:$0xff] }
0x37dc   : > { %v8232_v50 = vmul.f32 %v13125_v31, %v13121_v37  ;;  %12195 = vmatprep.subr.mxu0 %v13478_v14  ;;  %v8457_v56 = vpop.permute.xlu1 %8456 }
0x37de   : > { %12188 = vmatmul.mubr.msk.f32.vlgmr.msra.gmra.mrb[124].mxu0 %vm5542_vm12, %v8232_v50 }
0x37df   : > { %12197 = vmatprep.mubr.msk.f32.mxu0 %vm13477_vm0, %v13478_v14  ;;  %12196 = vmatpush3.msra.mxu0 %v11005_v46  ;;  %v12578_v46 = vpack.c.bf16 %v11041_v42, %v11040_v62 }
0x37e0   : > { %12205 = vmatprep.subr.mxu0 %v13478_v14 }
0x38ad   : > { %v8140_v53 = vpop.f32.mrb[122].mxu0 }
0x38ae   : > { %v12179_v54 = vpop.f32.mrb[123].mxu0  ;;  %12198 = vmatmul.mubr.msk.f32.vlgmr.msra.gmra.mrb[126].mxu0 %vm1865_vm3, %v8140_v53  ;;  %v11032_v53 = vld [vmem:[%s15610_s7 + $0x1] ss:$0 sm:$0xff] }
0x38af   : > { %12207 = vmatprep.mubr.msk.f32.mxu0 %vm13477_vm0, %v13478_v14 }
0x38b1   : > { %v8306_v55 = vpop.f32.mrb[124].mxu0 }
0x38b2   : > { %v12189_v58 = vpop.f32.mrb[125].mxu0  ;;  %12193 = vmatmul.mubr.msk.f32.vlgmr.msra.gmra.mrb[128].mxu1 %vm1865_vm3, %v8306_v55 }
0x38b3   : > { %12201 = vmatpush3.xpose.msk.msra.mxu1 %vm1865_vm3, %v8459_v52  ;;  %12202 = vmatprep.mubr.msk.f32.mxu1 %vm13477_vm0, %v13478_v14 }
0x38b4   : > { %12210 = vmatprep.subr.mxu1 %v13478_v14 }
0x38b6   : > { %12203 = vmatmul.mubr.msk.f32.vlgmr.msra.gmra.mrb[130].mxu1 %vm1865_vm3, %v8457_v56  ;;  %v11050_v56 = vld [vmem:[%s15615_s23 + $0x1] ss:$0 sm:$0xff] }
0x38b7   : > { %12212 = vmatprep.mubr.msk.f32.mxu1 %vm13477_vm0, %v13478_v14  ;;  %12211 = vmatpush3.msra.mxu1 %v11007_v10 }
0x38b8   : > { %12220 = vmatprep.subr.mxu1 %v13478_v14 }
0x3981   : > { %v8452_v51 = vpop.f32.mrb[126].mxu0 }
0x3982   : > { %v12199_v60 = vpop.f32.mrb[127].mxu0 }
0x3985   : > { %v8379_v26 = vpop.f32.mrb[128].mxu1 }
0x3986   : > { %v8453_v63 = vadd.f32 %v8452_v51, %v8379_v26  ;;  %v12194_v28 = vpop.f32.mrb[129].mxu1 }
0x3989   : > { %v8530_v35 = vpop.f32.mrb[130].mxu1 }
0x398a   : > { %v8531_v32 = vadd.f32 %v15108_v5, %v8530_v35  ;;  %v12204_v0 = vpop.f32.mrb[131].mxu1 }
0x398c   : > { %v8534_v43 = vsel %vm5528_vm10, %v8531_v32, -inf }
0x398d   : > { %8535 = vmax.xlane.f32.xlu0 %v8534_v43 }
0x39a3   : > { %8545 = vrot.lane.b32.xlu0 %v15085_v4, %s15600_s12 }
0x39a7   : > { %8696 = vrot.lane.b32.xlu0 %v15092_v2, %s15602_s16 }
0x3a1a   : > { %v8536_v61 = vpop.xlane.xlu0 %8535 }
0x3a1b   : > { %v8537_v11 = vsub.f32 %v8531_v32, %v8536_v61 }
0x3a1d   : > { %v8538_v3 = vmul.f32 1.442695, %v8537_v11 }
0x3a1e   : > { %v8546_v17 = vpop.permute.xlu0 %8545 }
0x3a1f   : > { %13126 = vpow2.f32 %v8538_v3  ;;  %12206 = vmatpush3.msk.msra.mxu0 %vm5546_vm11, %v8546_v17 }
0x3a20   : > { %12215 = vmatprep.subr.mxu0 %v13478_v14 }
0x3a22   : > { %v8697_v9 = vpop.permute.xlu0 %8696 }
0x3a29   : > { %v13127_v38 = vpop.eup %13126 }
0x3a2a   : > { %v8540_v15 = vsel %vm5528_vm10, %v13127_v38, 0.0 }
0x3a2b   : > { %8541 = vadd.xlane.f32.xlu1 %v8540_v15  ;;  %v11033_v15 = vld [vmem:[%s15612_s19 + $0x20] sm:$0xff] }
0x3a3c   : > { %8698 = vrot.lane.b32.xlu1 %v15085_v4, %s15601_s14 }
0x3ab8   : > { %v8542_v27 = vpop.xlane.xlu1 %8541 }
0x3ab9   : > { %13128 = vrcp.f32 %v8542_v27  ;;  %v11034_v27 = vld [vmem:[%s15612_s19 + $0x28] sm:$0xff] }
0x3abc   : > { %v8699_v7 = vpop.permute.xlu1 %8698 }
0x3ac3   : > { %v13129_v2 = vpop.eup %13128 }
0x3ac4   : > { %v8544_v21 = vmul.f32 %v13129_v2, %v13127_v38  ;;  %v12569_v2 = vpack.c.bf16 %v11034_v27, %v11033_v15 }
0x3ac6   : > { %12208 = vmatmul.mubr.msk.f32.vlgmr.msra.gmra.mrb[128].mxu0 %vm5542_vm12, %v8544_v21  ;;  %v11035_v21 = vld [vmem:[%s15612_s19 + $0x30] sm:$0xff] }
0x3ac7   : > { %12216 = vmatpush3.xpose.msk.msra.mxu0 %vm1865_vm3, %v8699_v7  ;;  %12217 = vmatprep.mubr.msk.f32.mxu0 %vm13477_vm0, %v13478_v14  ;;  %v11036_v7 = vld [vmem:[%s15612_s19 + $0x38] sm:$0xff] }
0x3ac8   : > { %12225 = vmatprep.subr.mxu0 %v13478_v14 }
0x3aca   : > { %12218 = vmatmul.mubr.msk.f32.vlgmr.msra.gmra.mrb[130].mxu0 %vm1865_vm3, %v8697_v9  ;;  %v12572_v9 = vpack.c.bf16 %v11036_v7, %v11035_v21 }
0x3acb   : > { %12227 = vmatprep.mubr.msk.f32.mxu0 %vm13477_vm0, %v13478_v14  ;;  %12226 = vmatpush3.msra.mxu0 %v11008_v48 }
0x3acc   : > { %12574 = vmatprep.subr.bf16.mxu0 %v13476_v8 }
0x3b99   : > { %v8618_v13 = vpop.f32.mrb[128].mxu0 }
0x3b9a   : > { %v12209_v16 = vpop.f32.mrb[129].mxu0  ;;  %12213 = vmatmul.mubr.msk.f32.vlgmr.msra.gmra.mrb[132].mxu1 %vm1865_vm3, %v8618_v13 }
0x3b9b   : > { %12222 = vmatprep.mubr.msk.f32.mxu1 %vm13477_vm0, %v13478_v14 }
0x3b9d   : > { %v8770_v44 = vpop.f32.mrb[130].mxu0 }
0x3b9e   : > { %v8771_v19 = vadd.f32 %v15108_v5, %v8770_v44  ;;  %v12219_v22 = vpop.f32.mrb[131].mxu0  ;;  %v15228_v44 = vld [vmem:[%s15613_s20 + $0x4] sm:$0x7] }
0x3b9f   : > { %v8960_v22 = vrot.slane %v15228_v44, %v13924_v18 }
0x3ba0   : > { %v8774_v25 = vsel %vm5528_vm10, %v8771_v19, -inf }
0x3ba1   : > { %8775 = vmax.xlane.f32.xlu1 %v8774_v25 }
0x3c2e   : > { %v8776_v24 = vpop.xlane.xlu1 %8775 }
0x3c2f   : > { %v8777_v23 = vsub.f32 %v8771_v19, %v8776_v24  ;;  %v15231_v19 = vld [vmem:[%s15614_s21 + $0x4] sm:$0x7] }
0x3c31   : > { %v8778_v30 = vmul.f32 1.442695, %v8777_v23  ;;  %v8965_v23 = vrot.slane %v15231_v19, %v13924_v18 }
0x3c33   : > { %13130 = vpow2.f32 %v8778_v30 }
0x3c3d   : > { %v13131_v34 = vpop.eup %13130 }
0x3c3e   : > { %v8780_v39 = vsel %vm5528_vm10, %v13131_v34, 0.0 }
0x3c3f   : > { %8781 = vadd.xlane.f32.xlu0 %v8780_v39  ;;  %v11048_v39 = vld [vmem:[%s15616_s24 + $0x1] ss:$0 sm:$0xff] }
0x3c55   : > { %8785 = vrot.lane.b32.xlu0 %v15085_v4, %s15603_s17 }
0x3c6d   : > { %v8691_v5 = vpop.f32.mrb[132].mxu1 }
0x3c6e   : > { %v8695_v36 = vadd.f32 %v8691_v5, %v8453_v63  ;;  %v12214_v37 = vpop.f32.mrb[133].mxu1 }
0x3ccc   : > { %v8782_v40 = vpop.xlane.xlu0 %8781 }
0x3ccd   : > { %13132 = vrcp.f32 %v8782_v40 }
0x3cd0   : > { %v8786_v49 = vpop.permute.xlu0 %8785 }
0x3cd1   : > { %12221 = vmatpush3.msk.msra.mxu1 %vm5546_vm11, %v8786_v49 }
0x3cd2   : > { %12568 = vmatprep.subr.bf16.mxu1 %v13476_v8 }
0x3cd7   : > { %v13133_v1 = vpop.eup %13132 }
0x3cd8   : > { %v8784_v4 = vmul.f32 %v13133_v1, %v13131_v34 }
0x3cda   : > { %12223 = vmatmul.mubr.msk.f32.vlgmr.msra.gmra.mrb[134].mxu1 %vm5542_vm12, %v8784_v4 }
0x3cdb   : > { %12238 = vmatprep.mubr.msk.f32.mxu1 %vm13477_vm0, %v13478_v14  ;;  %12570 = vmatpush3.bf16.msra.mxu1 %v12569_v2 }
0x3cdc   : > { %12571 = vmatprep.subr.bf16.mxu1 %v13476_v8 }
0x3cdf   : > { %12573 = vmatpush3.bf16.msra.mxu1 %v12572_v9 }
0x3ce0   : > { %12580 = vmatprep.subr.bf16.mxu1 %v13476_v8 }
0x3dad   : > { %v8858_v31 = vpop.f32.mrb[134].mxu1 }
0x3dae   : > { %v12224_v50 = vpop.f32.mrb[135].mxu1  ;;  %12228 = vmatmul.mubr.msk.f32.vlgmr.msra.gmra.mrb[132].mxu0 %vm1865_vm3, %v8858_v31 }
0x3daf   : > { %12576 = vmatpush3.bf16.msra.mxu0 %v12575_v47  ;;  %12249 = vmatprep.mubr.msk.f32.mxu0 %vm13477_vm0, %v13478_v14 }
0x3db0   : > { %12577 = vmatprep.subr.bf16.mxu0 %v13476_v8 }
0x3db3   : > { %12579 = vmatpush3.bf16.msra.mxu0 %v12578_v46 }
0x3db4   : > { %12584 = vmatprep.subr.bf16.mxu0 %v13476_v8 }
0x3db6   : > { %12250 = vmatmul.mubr.msk.f32.vlgmr.msra.gmra.mrb[134].mxu0 %vm1763_vm1, %v14857_v59 }
0x3db7   : > { %12252 = vmatprep.mubr.msk.f32.mxu0 %vm13477_vm0, %v13478_v14 }
0x3dba   : > { %12253 = vmatmul.mubr.msk.f32.gmra.mrb[136].mxu0 %vm1763_vm1, %v14863_v57 }
0x3dbb   : > { %12255 = vmatprep.mubr.msk.f32.mxu0 %vm13477_vm0, %v13478_v14 }
0x3dbe   : > { %12256 = vmatmul.mubr.msk.f32.gmra.mrb[138].mxu0 %vm1763_vm1, %v14869_v29 }
0x3dbf   : > { %12273 = vmatprep.mubr.msk.f32.mxu0 %vm13477_vm0, %v13478_v14 }
0x3e81   : > { %v8931_v54 = vpop.f32.mrb[132].mxu0 }
0x3e82   : > { %v8935_v52 = vadd.f32 %v8931_v54, %v8695_v36  ;;  %v12229_v55 = vpop.f32.mrb[133].mxu0 }
0x3e84   : > { %v8942_v59 = vadd.f32 %v11032_v53, %v8935_v52  ;;  %v15279_v53 = vld [vmem:[%s15617_s25] sm:$0x3f] }
0x3e86   : > { %v8943_v58 = vadd.f32 %v8942_v59, %v15078_v41 }
0x3e88   : > { %v8944_v51 = vsel %vm6419_vm13, %v8943_v58, 0.0 }
0x3e89   : > { %v9140_v57 = vpop.f32.mrb[134].mxu0  ;;  %8945 = vadd.xlane.f32.xlu1 %v8944_v51 }
0x3e8a   : > { %v9141_v60 = vadd.f32 %v11050_v56, %v9140_v57  ;;  %v12251_v26 = vpop.f32.mrb[135].mxu0 }
0x3e8d   : > { %v9145_v63 = vpop.f32.mrb[136].mxu0 }
0x3e8e   : > { %v9146_v29 = vadd.f32 %v11050_v56, %v9145_v63  ;;  %v12254_v28 = vpop.f32.mrb[137].mxu0 }
0x3e90   : > { %v15210_v35 = vpack.i.bf16 %v9146_v29, %v9141_v60  ;;  %v12581_v32 = vpack.c.bf16 %v9146_v29, %v9141_v60 }
0x3e91   : > { %v9150_v0 = vpop.f32.mrb[138].mxu0 }
0x3e92   : > { %v15212_v43 = vadd.f32 %v11050_v56, %v9150_v0  ;;  %v12257_v41 = vpop.f32.mrb[139].mxu0 }
0x3e94   : > { %9336 = vrot.lane.b32.xlu0 %v15212_v43, %s15595_s5 }
0x3f06   : > { %v9337_v4 = vpop.permute.xlu0 %9336 }
0x3f16   : > { %v8946_v61 = vpop.xlane.xlu1 %8945 }
0x3f17   : > { %v8947_v11 = vmul.f32 0.03125, %v8946_v61 }
0x3f19   : > { %v8948_v3 = vsub.f32 %v8943_v58, %v8947_v11 }
0x3f1b   : > { %v8949_v17 = vmul.f32 %v8948_v3, %v8948_v3 }
0x3f1d   : > { %v8950_v38 = vsel %vm6419_vm13, %v8949_v17, 0.0 }
0x3f1e   : > { %8951 = vadd.xlane.f32.xlu1 %v8950_v38 }
0x3f2f   : > { %12906 = vrot.lane.b32.xlu1 %v15210_v35, %s15595_s5 }
0x3f33   : > { %12911 = vrot.lane.b32.xlu1 %v15210_v35, %s15599_s9 }
0x3fab   : > { %v8952_v10 = vpop.xlane.xlu1 %8951 }
0x3fac   : > { %v8953_v13 = vmul.f32 0.03125, %v8952_v10 }
0x3fae   : > { %v8954_v16 = vadd.f32 1e-05, %v8953_v13 }
0x3faf   : > { %v12907_v18 = vpop.permute.xlu1 %12906 }
0x3fb0   : > { %13134 = vrsqrt.f32 %v8954_v16  ;;  %v12909_v5 = vunpack.i.h.bf16 %v12907_v18  ;;  %v12908_v36 = vunpack.i.l.bf16 %v12907_v18 }
0x3fb2   : > { %v12588_v1 = vpack.c.bf16 %v12909_v5, %v12908_v36 }
0x3fb3   : > { %v12912_v12 = vpop.permute.xlu1 %12911 }
0x3fb4   : > { %v12914_v45 = vunpack.i.h.bf16 %v12912_v12  ;;  %v12913_v47 = vunpack.i.l.bf16 %v12912_v12 }
0x3fb6   : > { %v12595_v62 = vpack.c.bf16 %v12914_v45, %v12913_v47  ;;  %v11044_v47 = vld [vmem:[%s15618_s26 + $0x28] sm:$0xff] }
0x3fba   : > { %v13135_v25 = vpop.eup %13134 }
0x3fbb   : > { %v8956_v24 = vmul.f32 %v13135_v25, %v8948_v3 }
0x3fbd   : > { %v8961_v30 = vmul.f32 %v8960_v22, %v8956_v24 }
0x3fbf   : > { %v15237_v34 = vadd.f32 %v8965_v23, %v8961_v30 }
0x3fc1   : > { %12239 = vmatmul.mubr.msk.f32.vlgmr.msra.gmra.mrb[136].mxu1 %vm1763_vm1, %v15237_v34 }
0x3fc2   : > { %12583 = vmatpush3.bf16.xpose.msk.msra.mxu1 %vm14001_vm4, %v12581_v32  ;;  %12264 = vmatprep.mubr.msk.f32.mxu1 %vm13477_vm0, %v13478_v14 }
0x3fc3   : > { %12262 = vmatprep.subr.mxu1 %v13478_v14 }
0x3fca   : > { %12263 = vmatpush3.xpose.msk.msra.mxu1 %vm1865_vm3, %v15212_v43 }
0x3fcb   : > { %12587 = vmatprep.subr.bf16.mxu1 %v13476_v8 }
0x4094   : > { %v9063_v48 = vpop.f32.mrb[136].mxu1 }
0x4095   : > { %v9064_v37 = vadd.f32 %v11048_v39, %v9063_v48  ;;  %v12240_v40 = vpop.f32.mrb[137].mxu1 }
0x4097   : > { %v15250_v49 = vmul.f32 0.35355338, %v9064_v37 }
0x4099   : > { %9656 = vrot.lane.b32.xlu1 %v15250_v49, %s15599_s9  ;;  %9330 = vrot.lane.b32.xlu0 %v15250_v49, %s15595_s5  ;;  %s15625_s5 = sld [smem:[#allocation68_spill]] }
0x409a   : > { %12265 = vmatmul.mubr.msk.f32.vlgmr.msra.gmra.mrb[138].mxu1 %vm1865_vm3, %v15250_v49 }
0x409b   : > { %12590 = vmatpush3.bf16.xpose.msk.msra.mxu1 %vm14001_vm4, %v12588_v1  ;;  %12282 = vmatprep.mubr.msk.f32.mxu1 %vm13477_vm0, %v13478_v14 }
0x409c   : > { %12280 = vmatprep.subr.mxu1 %v13478_v14 }
0x409d   : > { %9662 = vrot.lane.b32.xlu0 %v15212_v43, %s15599_s9  ;;  %s15626_s9 = sld [smem:[#allocation66_spill]] }
0x409f   : > { %s15627_s17 = sshll.u32 %s15625_s5, 3 }
0x40a3   : > { %12281 = vmatpush3.xpose.msk.msra.mxu1 %vm1865_vm3, %v9337_v4 }
0x40a4   : > { %12594 = vmatprep.subr.bf16.mxu1 %v13476_v8 }
0x410b   : > { %v9331_v42 = vpop.permute.xlu0 %9330  ;;  %v9657_v50 = vpop.permute.xlu1 %9656 }
0x410c   : > { %12283 = vmatmul.mubr.msk.f32.vlgmr.msra.gmra.mrb[140].mxu1 %vm1865_vm3, %v9331_v42 }
0x410d   : > { %12597 = vmatpush3.bf16.xpose.msk.msra.mxu1 %vm14001_vm4, %v12595_v62  ;;  %12310 = vmatprep.mubr.msk.f32.mxu1 %vm13477_vm0, %v13478_v14 }
0x410e   : > { %12308 = vmatprep.subr.mxu1 %v13478_v14 }
0x410f   : > { %v9663_v31 = vpop.permute.xlu0 %9662 }
0x4115   : > { %12309 = vmatpush3.xpose.msk.msra.mxu1 %vm1865_vm3, %v9663_v31 }
0x4116   : > { %12601 = vmatprep.subr.bf16.mxu1 %v13476_v8 }
0x4118   : > { %12311 = vmatmul.mubr.msk.f32.vlgmr.msra.gmra.mrb[142].mxu1 %vm1865_vm3, %v9657_v50 }
0x4119   : > { %12333 = vmatprep.mubr.msk.f32.mxu1 %vm13477_vm0, %v13478_v14 }
0x416d   : > { %v9232_v46 = vpop.f32.mrb[138].mxu1 }
0x416e   : > { %v9233_v54 = vadd.f32 %v15279_v53, %v9232_v46  ;;  %v12266_v52 = vpop.f32.mrb[139].mxu1  ;;  %v11043_v46 = vld [vmem:[%s15618_s26 + $0x20] sm:$0xff] }
0x4170   : > { %v9236_v55 = vsel %vm6715_vm14, %v9233_v54, -inf }
0x4171   : > { %9237 = vmax.xlane.f32.xlu0 %v9236_v55 }
0x41df   : > { %v9412_v59 = vpop.f32.mrb[140].mxu1 }
0x41e0   : > { %v9413_v58 = vadd.f32 %v15279_v53, %v9412_v59  ;;  %v12284_v56 = vpop.f32.mrb[141].mxu1 }
0x41e2   : > { %v9416_v51 = vsel %vm6715_vm14, %v9413_v58, -inf }
0x41e3   : > { %9417 = vmax.xlane.f32.xlu1 %v9416_v51 }
0x41eb   : > { %v9738_v57 = vpop.f32.mrb[142].mxu1 }
0x41ec   : > { %v12312_v60 = vpop.f32.mrb[143].mxu1  ;;  %v9739_v0 = vadd.f32 %v15279_v53, %v9738_v57 }
0x41ee   : > { %v9742_v41 = vsel %vm6715_vm14, %v9739_v0, -inf }
0x41f4   : > { %9251 = vrot.lane.b32.xlu1 %v15212_v43, %s15607_s0 }
0x41f8   : > { %12921 = vrot.lane.b32.xlu1 %v15210_v35, %s15594_s3 }
0x41fc   : > { %9431 = vrot.lane.b32.xlu1 %v15212_v43, %s15594_s3  ;;  %s1542_s3 = scalar_lea.vmem %s15626_s9, %s15627_s17 }
0x41fe   : > { %v9238_v26 = vpop.xlane.xlu0 %9237 }
0x41ff   : > { %v9239_v63 = vsub.f32 %v9233_v54, %v9238_v26 }
0x4200   : > { %9916 = vrot.lane.b32.xlu1 %v15212_v43, %s15602_s16 }
0x4201   : > { %v9240_v29 = vmul.f32 1.442695, %v9239_v63 }
0x4203   : > { %13136 = vpow2.f32 %v9240_v29 }
0x420d   : > { %v13137_v28 = vpop.eup %13136 }
0x420e   : > { %v9242_v32 = vsel %vm6715_vm14, %v13137_v28, 0.0 }
0x420f   : > { %9243 = vadd.xlane.f32.xlu0 %v9242_v32 }
0x4224   : > { %9743 = vmax.xlane.f32.xlu1 %v9742_v41 }
0x4235   : > { %9757 = vrot.lane.b32.xlu1 %v15212_v43, %s15598_s8 }
0x4270   : > { %v9418_v61 = vpop.xlane.xlu1 %9417 }
0x4271   : > { %v9419_v11 = vsub.f32 %v9413_v58, %v9418_v61 }
0x4273   : > { %v9420_v3 = vmul.f32 1.442695, %v9419_v11 }
0x4274   : > { %v9252_v15 = vpop.permute.xlu1 %9251 }
0x4275   : > { %13138 = vpow2.f32 %v9420_v3 }
0x4278   : > { %v12922_v27 = vpop.permute.xlu1 %12921 }
0x4279   : > { %v12924_v5 = vunpack.i.h.bf16 %v12922_v27  ;;  %v12923_v36 = vunpack.i.l.bf16 %v12922_v27 }
0x427b   : > { %v12592_v4 = vpack.c.bf16 %v12924_v5, %v12923_v36 }
0x427c   : > { %v9432_v2 = vpop.permute.xlu1 %9431 }
0x427f   : > { %v13139_v17 = vpop.eup %13138 }
0x4280   : > { %v9422_v38 = vsel %vm6715_vm14, %v13139_v17, 0.0  ;;  %v9917_v21 = vpop.permute.xlu1 %9916 }
0x4281   : > { %9423 = vadd.xlane.f32.xlu0 %v9422_v38 }
0x4297   : > { %12916 = vrot.lane.b32.xlu0 %v15210_v35, %s15607_s0 }
0x429b   : > { %12926 = vrot.lane.b32.xlu0 %v15210_v35, %s15602_s16 }
0x429c   : > { %v9244_v22 = vpop.xlane.xlu0 %9243 }
0x429f   : > { %9910 = vrot.lane.b32.xlu0 %v15250_v49, %s15602_s16 }
0x42b1   : > { %v9744_v7 = vpop.xlane.xlu1 %9743 }
0x42b2   : > { %v9745_v9 = vsub.f32 %v9739_v0, %v9744_v7 }
0x42b4   : > { %v9746_v10 = vmul.f32 1.442695, %v9745_v9 }
0x42b5   : > { %v9758_v63 = vpop.permute.xlu1 %9757 }
0x42b6   : > { %13140 = vpow2.f32 %v9746_v10 }
0x42b7   : > { %13142 = vrcp.f32 %v9244_v22  ;;  %v11046_v22 = vld [vmem:[%s15618_s26 + $0x38] sm:$0xff] }
0x42c0   : > { %v15305_v13 = vpop.eup %13140 }
0x42c1   : > { %v9748_v16 = vsel %vm6715_vm14, %v15305_v13, 0.0  ;;  %v13143_v48 = vpop.eup %13142 }
0x42c2   : > { %9749 = vadd.xlane.f32.xlu0 %v9748_v16  ;;  %v9246_v1 = vmul.f32 %v13143_v48, %v13137_v28 }
0x42d8   : > { %12931 = vrot.lane.b32.xlu0 %v15210_v35, %s15598_s8 }
0x430e   : > { %v9424_v25 = vpop.xlane.xlu0 %9423 }
0x430f   : > { %13144 = vrcp.f32 %v9424_v25 }
0x4312   : > { %v12917_v24 = vpop.permute.xlu0 %12916 }
0x4313   : > { %v12919_v23 = vunpack.i.h.bf16 %v12917_v24  ;;  %v12918_v30 = vunpack.i.l.bf16 %v12917_v24 }
0x4315   : > { %v12585_v18 = vpack.c.bf16 %v12919_v23, %v12918_v30 }
0x4316   : > { %v12927_v39 = vpop.permute.xlu0 %12926 }
0x4317   : > { %v12929_v37 = vunpack.i.h.bf16 %v12927_v39  ;;  %v12928_v40 = vunpack.i.l.bf16 %v12927_v39  ;;  %12586 = vmatpush3.bf16.msra.mxu0 %v12585_v18  ;;  %v11082_v39 = vld [vmem:[%s15619_s27 + $0x1] ss:$0 sm:$0xff] }
0x4318   : > { %12271 = vmatprep.subr.mxu0 %v13478_v14 }
0x4319   : > { %v12602_v49 = vpack.c.bf16 %v12929_v37, %v12928_v40  ;;  %v13145_v12 = vpop.eup %13144 }
0x431a   : > { %v9426_v45 = vmul.f32 %v13145_v12, %v13139_v17  ;;  %v9911_v33 = vpop.permute.xlu0 %9910 }
0x431b   : > { %12272 = vmatpush3.msk.msra.mxu0 %vm2013_vm7, %v9252_v15  ;;  %12604 = vmatpush3.bf16.xpose.msk.msra.mxu1 %vm14001_vm4, %v12602_v49 }
0x431c   : > { %12274 = vmatmul.mubr.msk.f32.vlgmr.msra.gmra.mrb[140].mxu0 %vm1961_vm5, %v9246_v1  ;;  %12591 = vmatprep.subr.bf16.mxu0 %v13476_v8 }
0x431d   : > { %12593 = vmatpush3.bf16.msra.mxu0 %v12592_v4  ;;  %12291 = vmatprep.mubr.msk.f32.mxu0 %vm13477_vm0, %v13478_v14 }
0x431e   : > { %12289 = vmatprep.subr.mxu0 %v13478_v14  ;;  %12331 = vmatprep.subr.mxu1 %v13478_v14 }
0x4321   : > { %12290 = vmatpush3.msk.msra.mxu0 %vm2013_vm7, %v9432_v2 }
0x4322   : > { %12292 = vmatmul.mubr.msk.f32.vlgmr.msra.gmra.mrb[142].mxu0 %vm1961_vm5, %v9426_v45  ;;  %12294 = vmatprep.subr.mxu0 %v13478_v14 }
0x4323   : > { %12332 = vmatpush3.xpose.msk.msra.mxu1 %vm1865_vm3, %v9917_v21  ;;  %12296 = vmatprep.mubr.msk.f32.mxu0 %vm13477_vm0, %v13478_v14 }
0x4324   : > { %12614 = vmatprep.subr.bf16.mxu1 %v13476_v8  ;;  %12295 = vmatpush3.msra.mxu0 %v11044_v47  ;;  %v11083_v47 = vld [vmem:[%s15620_s29 + $0x20] sm:$0xff] }
0x4325   : > { %12299 = vmatprep.subr.mxu0 %v13478_v14 }
0x4326   : > { %12334 = vmatmul.mubr.msk.f32.vlgmr.msra.gmra.mrb[144].mxu1 %vm1865_vm3, %v9911_v33 }
0x4327   : > { %12377 = vmatprep.mubr.msk.f32.mxu1 %vm13477_vm0, %v13478_v14 }
0x434f   : > { %v9750_v62 = vpop.xlane.xlu0 %9749 }
0x4350   : > { %13146 = vrcp.f32 %v9750_v62  ;;  %v11084_v62 = vld [vmem:[%s15620_s29 + $0x28] sm:$0xff] }
0x4353   : > { %v12932_v50 = vpop.permute.xlu0 %12931 }
0x4354   : > { %v12934_v54 = vunpack.i.h.bf16 %v12932_v50  ;;  %v12933_v52 = vunpack.i.l.bf16 %v12932_v50  ;;  %v11086_v50 = vld [vmem:[%s15620_s29 + $0x38] sm:$0xff] }
0x4356   : > { %v12599_v58 = vpack.c.bf16 %v12934_v54, %v12933_v52 }
0x435a   : > { %v13147_v60 = vpop.eup %13146 }
0x435b   : > { %v9752_v29 = vmul.f32 %v13147_v60, %v15305_v13  ;;  %v11088_v60 = vld [vmem:[%s15621_s30 + $0x40] sm:$0xff] }
0x43ef   : > { %v9326_v42 = vpop.f32.mrb[140].mxu0 }
0x43f0   : > { %v12275_v31 = vpop.f32.mrb[141].mxu0 }
0x43f1   : > { %v11085_v31 = vld [vmem:[%s15620_s29 + $0x30] sm:$0xff] }
0x43f5   : > { %v9506_v55 = vpop.f32.mrb[142].mxu0 }
0x43f6   : > { %v12293_v59 = vpop.f32.mrb[143].mxu0  ;;  %12297 = vmatmul.mubr.msk.f32.vlgmr.msra.gmra.mrb[144].mxu0 %vm1865_vm3, %v9506_v55  ;;  %v10188_v55 = vrot.slane %v15228_v44, %v13928_v20 }
0x43f7   : > { %12300 = vmatpush3.msra.mxu0 %v11043_v46  ;;  %12301 = vmatprep.mubr.msk.f32.mxu0 %vm13477_vm0, %v13478_v14  ;;  %v12612_v46 = vpack.c.bf16 %v11086_v50, %v11085_v31 }
0x43f8   : > { %12598 = vmatprep.subr.bf16.mxu0 %v13476_v8 }
0x43f9   : > { %v9992_v56 = vpop.f32.mrb[144].mxu1 }
0x43fa   : > { %v9993_v51 = vadd.f32 %v15279_v53, %v9992_v56  ;;  %12302 = vmatmul.mubr.msk.f32.vlgmr.msra.gmra.mrb[146].mxu0 %vm1865_vm3, %v9326_v42  ;;  %v12335_v57 = vpop.f32.mrb[145].mxu1  ;;  %v11045_v53 = vld [vmem:[%s15618_s26 + $0x30] sm:$0xff]  ;;  %v12609_v42 = vpack.c.bf16 %v11084_v62, %v11083_v47  ;;  %v10193_v56 = vrot.slane %v15231_v19, %v13928_v20  ;;  %v11092_v20 = vld [vmem:[%s15621_s30 + $0x60] sm:$0xff] }
0x43fb   : > { %12600 = vmatpush3.bf16.msra.mxu0 %v12599_v58  ;;  %12319 = vmatprep.mubr.msk.f32.mxu0 %vm13477_vm0, %v13478_v14 }
0x43fc   : > { %12317 = vmatprep.subr.mxu0 %v13478_v14  ;;  %v9996_v26 = vsel %vm6715_vm14, %v9993_v51, -inf }
0x43fd   : > { %9997 = vmax.xlane.f32.xlu1 %v9996_v26  ;;  %v11089_v26 = vld [vmem:[%s15621_s30 + $0x48] sm:$0xff] }
0x43ff   : > { %12318 = vmatpush3.msk.msra.mxu0 %vm2013_vm7, %v9758_v63  ;;  %v12615_v63 = vpack.c.bf16 %v11089_v26, %v11088_v60 }
0x4400   : > { %12320 = vmatmul.mubr.msk.f32.vlgmr.msra.gmra.mrb[148].mxu0 %vm1961_vm5, %v9752_v29  ;;  %12322 = vmatprep.subr.mxu0 %v13478_v14  ;;  %v11090_v29 = vld [vmem:[%s15621_s30 + $0x50] sm:$0xff] }
0x4401   : > { %12324 = vmatprep.mubr.msk.f32.mxu0 %vm13477_vm0, %v13478_v14  ;;  %12323 = vmatpush3.msra.mxu0 %v11045_v53  ;;  %v11091_v53 = vld [vmem:[%s15621_s30 + $0x58] sm:$0xff] }
0x4402   : > { %12605 = vmatprep.subr.bf16.mxu0 %v13476_v8  ;;  %12616 = vmatpush3.bf16.msra.mxu1 %v12615_v63 }
0x4403   : > { %12617 = vmatprep.subr.bf16.mxu1 %v13476_v8 }
0x440e   : > { %10011 = vrot.lane.b32.xlu1 %v15212_v43, %s15601_s14 }
0x448a   : > { %v9998_v28 = vpop.xlane.xlu1 %9997 }
0x448b   : > { %v9999_v32 = vsub.f32 %v9993_v51, %v9998_v28  ;;  %v12618_v28 = vpack.c.bf16 %v11091_v53, %v11090_v29  ;;  %v10462_v29 = vld [vmem:[%s13728_s4] sm:$0xff]  ;;  %v10463_v53 = vld [vmem:[%s13728_s4 + $0x8] sm:$0xff] }
0x448d   : > { %v10000_v0 = vmul.f32 1.442695, %v9999_v32  ;;  %v11093_v32 = vld [vmem:[%s15621_s30 + $0x68] sm:$0xff]  ;;  %12619 = vmatpush3.bf16.msra.mxu1 %v12618_v28  ;;  %v12627_v28 = vpack.c.bf16 %v10463_v53, %v10462_v29 }
0x448e   : > { %v10012_v13 = vpop.permute.xlu1 %10011  ;;  %12620 = vmatprep.subr.bf16.mxu1 %v13476_v8 }
0x448f   : > { %13148 = vpow2.f32 %v10000_v0  ;;  %v12621_v0 = vpack.c.bf16 %v11093_v32, %v11092_v20  ;;  %v10464_v20 = vld [vmem:[%s13728_s4 + $0x10] sm:$0xff]  ;;  %v10465_v32 = vld [vmem:[%s13728_s4 + $0x18] sm:$0xff] }
0x4491   : > { %12622 = vmatpush3.bf16.msra.mxu1 %v12621_v0  ;;  %v12630_v0 = vpack.c.bf16 %v10465_v32, %v10464_v20 }
0x4492   : > { %12623 = vmatprep.subr.bf16.mxu1 %v13476_v8 }
0x4499   : > { %v13149_v41 = vpop.eup %13148 }
0x449a   : > { %v10002_v61 = vsel %vm6715_vm14, %v13149_v41, 0.0 }
0x449b   : > { %10003 = vadd.xlane.f32.xlu0 %v10002_v61  ;;  %v11095_v61 = vld [vmem:[%s15621_s30 + $0x78] sm:$0xff] }
0x44b1   : > { %12936 = vrot.lane.b32.xlu0 %v15210_v35, %s15601_s14 }
0x44c9   : > { %v9579_v11 = vpop.f32.mrb[144].mxu0 }
0x44ca   : > { %v12298_v3 = vpop.f32.mrb[145].mxu0 }
0x44cd   : > { %v9652_v17 = vpop.f32.mrb[146].mxu0 }
0x44ce   : > { %v9653_v38 = vadd.f32 %v9652_v17, %v9579_v11  ;;  %v12303_v43 = vpop.f32.mrb[147].mxu0  ;;  %v11097_v11 = vld [vmem:[%s15623_s13 + $0x1] ss:$0 sm:$0xff] }
0x44d3   : > { %v9832_v15 = vpop.f32.mrb[148].mxu0 }
0x44d4   : > { %v12321_v27 = vpop.f32.mrb[149].mxu0  ;;  %12325 = vmatmul.mubr.msk.f32.vlgmr.msra.gmra.mrb[150].mxu0 %vm1865_vm3, %v9832_v15 }
0x44d5   : > { %12342 = vmatprep.mubr.msk.f32.mxu0 %vm13477_vm0, %v13478_v14 }
0x4528   : > { %v10004_v2 = vpop.xlane.xlu0 %10003 }
0x4529   : > { %13150 = vrcp.f32 %v10004_v2 }
0x452c   : > { %v12937_v21 = vpop.permute.xlu0 %12936 }
0x452d   : > { %v12939_v7 = vunpack.i.h.bf16 %v12937_v21  ;;  %v12938_v9 = vunpack.i.l.bf16 %v12937_v21 }
0x452f   : > { %v12606_v10 = vpack.c.bf16 %v12939_v7, %v12938_v9 }
0x4531   : > { %12607 = vmatpush3.bf16.msra.mxu0 %v12606_v10 }
0x4532   : > { %12340 = vmatprep.subr.mxu0 %v13478_v14 }
0x4533   : > { %v13151_v35 = vpop.eup %13150 }
0x4534   : > { %v10006_v16 = vmul.f32 %v13151_v35, %v13149_v41  ;;  %v11094_v41 = vld [vmem:[%s15621_s30 + $0x70] sm:$0xff] }
0x4535   : > { %12341 = vmatpush3.msk.msra.mxu0 %vm2013_vm7, %v10012_v13  ;;  %v11099_v13 = vld [vmem:[%s15624_s28 + $0x1] ss:$0 sm:$0xff] }
0x4536   : > { %12343 = vmatmul.mubr.msk.f32.vlgmr.msra.gmra.mrb[152].mxu0 %vm1961_vm5, %v10006_v16  ;;  %12345 = vmatprep.subr.mxu0 %v13478_v14 }
0x4537   : > { %12347 = vmatprep.mubr.msk.f32.mxu0 %vm13477_vm0, %v13478_v14  ;;  %12346 = vmatpush3.msra.mxu0 %v11046_v22 }
0x4538   : > { %12608 = vmatprep.subr.bf16.mxu0 %v13476_v8 }
0x45a7   : > { %v9905_v25 = vpop.f32.mrb[150].mxu0 }
0x45a8   : > { %v9909_v24 = vadd.f32 %v9905_v25, %v9653_v38  ;;  %v12326_v23 = vpop.f32.mrb[151].mxu0 }
0x4609   : > { %v10086_v30 = vpop.f32.mrb[152].mxu0 }
0x460a   : > { %v12344_v18 = vpop.f32.mrb[153].mxu0  ;;  %12348 = vmatmul.mubr.msk.f32.vlgmr.msra.gmra.mrb[154].mxu0 %vm1865_vm3, %v10086_v30 }
0x460b   : > { %12358 = vmatprep.mubr.msk.f32.mxu0 %vm13477_vm0, %v13478_v14  ;;  %12610 = vmatpush3.bf16.msra.mxu0 %v12609_v42 }
0x460c   : > { %12611 = vmatprep.subr.bf16.mxu0 %v13476_v8 }
0x460f   : > { %12613 = vmatpush3.bf16.msra.mxu0 %v12612_v46 }
0x4610   : > { %12626 = vmatprep.subr.bf16.mxu0 %v13476_v8 }
0x46dd   : > { %v10159_v48 = vpop.f32.mrb[154].mxu0 }
0x46de   : > { %v10163_v5 = vadd.f32 %v10159_v48, %v9909_v24  ;;  %v12349_v36 = vpop.f32.mrb[155].mxu0 }
0x46e0   : > { %v10170_v37 = vadd.f32 %v11082_v39, %v10163_v5 }
0x46e2   : > { %v10171_v40 = vadd.f32 %v10170_v37, %v15237_v34 }
0x46e4   : > { %v10172_v49 = vsel %vm6419_vm13, %v10171_v40, 0.0 }
0x46e5   : > { %10173 = vadd.xlane.f32.xlu1 %v10172_v49  ;;  %v10397_v49 = vrot.slane %v15228_v44, %v15072_v6 }
0x4772   : > { %v10174_v1 = vpop.xlane.xlu1 %10173 }
0x4773   : > { %v10175_v4 = vmul.f32 0.03125, %v10174_v1 }
0x4775   : > { %v10176_v12 = vsub.f32 %v10171_v40, %v10175_v4 }
0x4777   : > { %v10177_v45 = vmul.f32 %v10176_v12, %v10176_v12 }
0x4779   : > { %v10178_v33 = vsel %vm6419_vm13, %v10177_v45, 0.0 }
0x477a   : > { %10179 = vadd.xlane.f32.xlu0 %v10178_v33 }
0x4807   : > { %v10180_v34 = vpop.xlane.xlu0 %10179 }
0x4808   : > { %v10181_v54 = vmul.f32 0.03125, %v10180_v34 }
0x480a   : > { %v10182_v52 = vadd.f32 1e-05, %v10181_v54 }
0x480c   : > { %13152 = vrsqrt.f32 %v10182_v52 }
0x4816   : > { %v13153_v59 = vpop.eup %13152 }
0x4817   : > { %v10184_v58 = vmul.f32 %v13153_v59, %v10176_v12  ;;  %v10402_v12 = vrot.slane %v15231_v19, %v15072_v6  ;;  %v11101_v6 = vld [vmem:[#allocation6] ss:$0 sm:$0xff] }
0x4819   : > { %v10189_v51 = vmul.f32 %v10188_v55, %v10184_v58  ;;  %v11102_v55 = vld [vmem:[#allocation4] ss:$0 sm:$0xff] }
0x481b   : > { %v10194_v57 = vadd.f32 %v10193_v56, %v10189_v51 }
0x481d   : > { %12359 = vmatmul.mubr.msk.f32.vlgmr.msra.gmra.mrb[156].mxu0 %vm1763_vm1, %v10194_v57 }
0x481e   : > { %12388 = vmatprep.mubr.msk.f32.mxu0 %vm13477_vm0, %v13478_v14  ;;  %v12624_v14 = vpack.c.bf16 %v11095_v61, %v11094_v41  ;;  %12628 = vmatpush3.bf16.msra.mxu0 %v12627_v28 }
0x481f   : > { %12629 = vmatprep.subr.bf16.mxu0 %v13476_v8 }
0x4820   : > { %12625 = vmatpush3.bf16.msra.mxu1 %v12624_v14 }
0x4822   : > { %12631 = vmatpush3.bf16.msra.mxu0 %v12630_v0 }
0x48f0   : > { %v10288_v3 = vpop.f32.mrb[156].mxu0 }
0x48f1   : > { %v10289_v17 = vadd.f32 %v11097_v11, %v10288_v3  ;;  %v12360_v38 = vpop.f32.mrb[157].mxu0  ;;  %v11103_v3 = vld [vmem:[#allocation13] ss:$0 sm:$0xff] }
0x48f2   : > { %v11104_v38 = vld [vmem:[#allocation12] ss:$0 sm:$0xff] }
0x48f3   : > { %v10293_v43 = vmul.f32 0.044715, %v10289_v17  ;;  %v10292_v9 = vmul.f32 0.5, %v10289_v17 }
0x48f5   : > { %v10294_v15 = vmul.f32 %v10293_v43, %v10289_v17 }
0x48f7   : > { %v10295_v27 = vmul.f32 %v10294_v15, %v10289_v17 }
0x48f9   : > { %v10296_v2 = vadd.f32 %v10295_v27, %v10289_v17  ;;  %v11105_v27 = vld [vmem:[#allocation10] ss:$0 sm:$0xff] }
0x48fb   : > { %v10297_v21 = vmul.f32 0.7978846, %v10296_v2 }
0x48fd   : > { %13154 = vtanh.f32 %v10297_v21 }
0x4907   : > { %v13155_v7 = vpop.eup %13154 }
0x4908   : > { %v10299_v10 = vadd.f32 1.0, %v13155_v7 }
0x490a   : > { %v10300_v35 = vmul.f32 %v10299_v10, %v10292_v9 }
0x490c   : > { %12378 = vmatmul.mubr.msk.f32.vlgmr.msra.gmra.mrb[146].mxu1 %vm3375_vm9, %v10300_v35 }
0x49df   : > { %v10376_v16 = vpop.f32.mrb[146].mxu1 }
0x49e0   : > { %v10377_v22 = vadd.f32 %v11099_v13, %v10376_v16  ;;  %v12379_v25 = vpop.f32.mrb[147].mxu1 }
0x49e2   : > { %v10380_v24 = vadd.f32 %v10377_v22, %v10194_v57 }
0x49e4   : > { %v10381_v23 = vsel %vm6419_vm13, %v10380_v24, 0.0 }
0x49e5   : > { %10382 = vadd.xlane.f32.xlu0 %v10381_v23 }
0x4a72   : > { %v10383_v30 = vpop.xlane.xlu0 %10382 }
0x4a73   : > { %v10384_v18 = vmul.f32 0.03125, %v10383_v30 }
0x4a75   : > { %v10385_v39 = vsub.f32 %v10380_v24, %v10384_v18 }
0x4a77   : > { %v10386_v48 = vmul.f32 %v10385_v39, %v10385_v39 }
0x4a79   : > { %v10387_v5 = vsel %vm6419_vm13, %v10386_v48, 0.0 }
0x4a7a   : > { %10388 = vadd.xlane.f32.xlu0 %v10387_v5 }
0x4b07   : > { %v10389_v36 = vpop.xlane.xlu0 %10388 }
0x4b08   : > { %v10390_v37 = vmul.f32 0.03125, %v10389_v36 }
0x4b0a   : > { %v10391_v40 = vadd.f32 1e-05, %v10390_v37 }
0x4b0c   : > { %13156 = vrsqrt.f32 %v10391_v40 }
0x4b16   : > { %v13157_v1 = vpop.eup %13156 }
0x4b17   : > { %v10393_v4 = vmul.f32 %v13157_v1, %v10385_v39 }
0x4b19   : > { %v10398_v45 = vmul.f32 %v10397_v49, %v10393_v4 }
0x4b1b   : > { %v10403_v33 = vadd.f32 %v10402_v12, %v10398_v45 }
0x4b1d   : > { %v10406_v47 = vsel %vm6419_vm13, %v10403_v33, 0.0 }
0x4b1e   : > { %10407 = vadd.xlane.f32.xlu1 %v10406_v47 }
0x4bab   : > { %v10408_v62 = vpop.xlane.xlu1 %10407 }
0x4bac   : > { %v10409_v42 = vmul.f32 0.03125, %v10408_v62 }
0x4bae   : > { %v10410_v31 = vsub.f32 %v10403_v33, %v10409_v42 }
0x4bb0   : > { %v10411_v50 = vmul.f32 %v10410_v31, %v10410_v31 }
0x4bb2   : > { %v10412_v46 = vsel %vm6419_vm13, %v10411_v50, 0.0 }
0x4bb3   : > { %10413 = vadd.xlane.f32.xlu0 %v10412_v46 }
0x4c40   : > { %v10414_v34 = vpop.xlane.xlu0 %10413 }
0x4c41   : > { %v10415_v54 = vmul.f32 0.03125, %v10414_v34 }
0x4c43   : > { %v10416_v44 = vadd.f32 1e-05, %v10415_v54 }
0x4c45   : > { %13158 = vrsqrt.f32 %v10416_v44 }
0x4c4f   : > { %v13159_v52 = vpop.eup %13158 }
0x4c50   : > { %v10418_v19 = vmul.f32 %v13159_v52, %v10410_v31 }
0x4c52   : > { %v10425_v59 = vmul.f32 %v11101_v6, %v10418_v19 }
0x4c54   : > { %v10432_v58 = vadd.f32 %v11102_v55, %v10425_v59 }
0x4c56   : > { %v10435_v56 = vsel %vm6419_vm13, %v10432_v58, 0.0 }
0x4c57   : > { %10436 = vadd.xlane.f32.xlu1 %v10435_v56 }
0x4ce4   : > { %v10437_v51 = vpop.xlane.xlu1 %10436 }
0x4ce5   : > { %v10438_v57 = vmul.f32 0.03125, %v10437_v51 }
0x4ce7   : > { %v10439_v60 = vsub.f32 %v10432_v58, %v10438_v57 }
0x4ce9   : > { %v10440_v26 = vmul.f32 %v10439_v60, %v10439_v60 }
0x4ceb   : > { %v10441_v63 = vsel %vm6419_vm13, %v10440_v26, 0.0 }
0x4cec   : > { %10442 = vadd.xlane.f32.xlu0 %v10441_v63 }
0x4d79   : > { %v10443_v41 = vpop.xlane.xlu0 %10442 }
0x4d7a   : > { %v10444_v61 = vmul.f32 0.03125, %v10443_v41 }
0x4d7c   : > { %v10445_v14 = vadd.f32 1e-05, %v10444_v61 }
0x4d7e   : > { %13160 = vrsqrt.f32 %v10445_v14 }
0x4d88   : > { %v13161_v11 = vpop.eup %13160 }
0x4d89   : > { %v10447_v17 = vmul.f32 %v13161_v11, %v10439_v60 }
0x4d8b   : > { %v10454_v43 = vmul.f32 %v11103_v3, %v10447_v17 }
0x4d8d   : > { %v10461_v15 = vadd.f32 %v11104_v38, %v10454_v43 }
0x4d8f   : > { %12389 = vmatmul.mubr.msk.f32.vlgmr.msra.gmra.mrb[158].mxu0 %vm1763_vm1, %v10461_v15 }
0x4e62   : > { %v10542_v8 = vpop.f32.mrb[158].mxu0 }
0x4e63   : > { %v10543_v2 = vadd.f32 %v11105_v27, %v10542_v8  ;;  %v12390_v21 = vpop.f32.mrb[159].mxu0 }
0x4e65   : > { %10547 = vst.msk [vmem:[%s1542_s3] sm:$0x3f] %vm10546_vm15, %v10543_v2 }
0x4e66 PF: > { %s15628_s8 = sld [smem:[#allocation67_spill]] }
0x4e6c   : > { %s110_s22 = sadd.s32 1, %s15628_s8  }
0x4e6d   : > { %p107_p9 = scmp.ge.s32.totalorder %s110_s22, 4  }
0x4e6f   :  { %109 = sbr.rel (!%p107_p9) target bundleno = 104 (0x68), region = 350 }
0x4e76   :  { %10567 = vsyncpa [#allocation3], 1 }
0x4e77   :  { %10569 = vsyncpa [#allocation3 + $0x1], 1 }
0x4e78   :  { %10570 = vsyncpa [#allocation5], 1 }
0x4e79   :  { %10571 = vsyncpa [#allocation8], 1 }
0x4e7a   :  { %10572 = vsyncpa [#allocation11], 1 }
0x4e7b   :  { %10573 = vsyncpa [#allocation14], 1 }

</bundles_post_ra>
